<compile_context>
chip_gen: v6e
topology: v6e:2x2x1
jax: 0.10.0
libtpu: 0.0.40
codegen_flags: <defaults>
</compile_context>

<pallas_src>
import functools

import jax
import jax.numpy as jnp
from jax.experimental import pallas as pl
from jax.experimental.pallas import tpu as pltpu


# ----------------------------------------------------------------------------
# Pallas kernel
# ----------------------------------------------------------------------------
def _attention_pool_kernel(x_ref, poskv_ref, wkv_ref, wqkv_ref, bqkv_ref,
                           wc_ref, bc_ref, out_ref, *, num_heads):
    # x_ref    : (B, C, HW)  raw NCHW spatial tokens (f32)
    # poskv_ref: (2C, HW)    [Wk;Wv] @ pos[1:]^T + [bk;bv]       (f32, constant)
    # wkv_ref  : (2C, C)     [Wk;Wv]                              (bf16, (out,in))
    # wqkv_ref : (3C, C)     [Wq*scale;Wk;Wv]                     (bf16, (out,in))
    # bqkv_ref : (3C, 1)     [bq*scale;bk;bv] + Wqkv_s @ pos[0]   (f32)
    # wc_ref   : (O, C)      c_proj weight                        (bf16, (out,in))
    # bc_ref   : (O, 1)      c_proj bias                          (f32)
    # out_ref  : (1, O, B)   channel-major output block
    f32 = jnp.float32
    bf16 = jnp.bfloat16
    b, c, hw = x_ref.shape
    h = num_heads
    hd = c // h

    wkv = wkv_ref[...]                                           # (2C, C) bf16
    poskv = poskv_ref[...]                                       # (2C, HW) f32

    # ---- mean ("CLS") token path: one fused Wq|Wk|Wv matmul for all B -------
    # Per-batch lane reductions give the means channel-major (C, 1) columns,
    # so no small transposes are needed anywhere in the kernel.
    mean_cols = [jnp.mean(x_ref[i], axis=1, keepdims=True) for i in range(b)]
    means_cm = jnp.concatenate(mean_cols, axis=1)                # (C, B)
    qkvm = jnp.dot(wqkv_ref[...], means_cm.astype(bf16),
                   preferred_element_type=f32) + bqkv_ref[...]   # (3C, B)
    q_cm = qkvm[0:c]                                             # (C, B)  scaled q
    km_cm = qkvm[c:2 * c]                                        # (C, B)
    vm_cm = qkvm[2 * c:3 * c]                                    # (C, B)
    # mean-token score per head: segmented sublane reduce (no selector matmul)
    s_m = jnp.sum((q_cm * km_cm).reshape(h, hd, b), axis=1)      # (H, B)

    # ---- spatial tokens: per-batch channel-major attention ------------------
    attn_cols = []
    for i in range(b):
        x_i = x_ref[i].astype(bf16)                              # (C, HW)
        # Fused K|V projection; positional embedding + bias enter through the
        # precomputed f32 constant poskv (better precision, fewer VPU ops).
        kv = jnp.dot(wkv, x_i, preferred_element_type=f32) + poskv   # (2C, HW)
        k3 = kv[0:c].reshape(h, hd, hw)                          # (H, hd, HW)
        v3 = kv[c:2 * c].reshape(h, hd, hw)                      # (H, hd, HW)

        q3 = q_cm[:, i:i + 1].reshape(h, hd, 1)                  # (H, hd, 1)
        s_x = jnp.sum(k3 * q3, axis=1)                           # (H, HW) lane-dense
        s_mi = s_m[:, i:i + 1]                                   # (H, 1)

        # Softmax over L = {mean token} U {HW spatial tokens}, all in f32.
        m = jnp.maximum(jnp.max(s_x, axis=1, keepdims=True), s_mi)   # (H, 1)
        p_x = jnp.exp(s_x - m)                                   # (H, HW)
        p_m = jnp.exp(s_mi - m)                                  # (H, 1)
        denom = jnp.sum(p_x, axis=1, keepdims=True) + p_m        # (H, 1)
        inv = pl.reciprocal(denom, approx=True)                  # (H, 1) on EUP
        p_x = p_x * inv
        p_m = p_m * inv

        # Weighted value sum: broadcast head probabilities over the hd sublanes
        # of each head and reduce over the HW lanes -> (C, 1) column.
        vm3 = vm_cm[:, i:i + 1].reshape(h, hd, 1)                # (H, hd, 1)
        num3 = (jnp.sum(v3 * p_x[:, None, :], axis=2, keepdims=True)
                + vm3 * p_m[:, None, :])                         # (H, hd, 1)
        attn_cols.append(num3.reshape(c, 1))                     # (C, 1)

    attn_cm = jnp.concatenate(attn_cols, axis=1)                 # (C, B)

    # ---- output projection (channel-major, tiny) -----------------------------
    out_cm = jnp.dot(wc_ref[...], attn_cm.astype(bf16),
                     preferred_element_type=f32) + bc_ref[...]   # (O, B)
    out_ref[0] = out_cm.astype(out_ref.dtype)


# ----------------------------------------------------------------------------
# Wrapper
# ----------------------------------------------------------------------------
def _pick_batch_tile(n_pad):
    # Prefer >= 4 grid steps (>= 2 per v7x TensorCore, room for DMA/compute
    # overlap on all chips) while keeping the per-step MXU M dim (b_tile*HW)
    # well filled.
    for bt in (8, 4):
        if n_pad % bt == 0 and n_pad // bt >= 4:
            return bt
    for bt in (8, 4, 2, 1):
        if n_pad % bt == 0 and n_pad // bt >= 2:
            return bt
    return n_pad


def attention_pool_2d(x_nchw, params, num_heads):
    pos, wq, bq, wk, bk, wv, bv, wc, bc = params
    n, c, hh, ww = x_nchw.shape
    hw = hh * ww
    o = wc.shape[0]
    assert c % num_heads == 0
    hd = c // num_heads
    assert hd % 8 == 0, "head_dim must be a multiple of 8 (sublane tile)"
    scale = 1.0 / float(hd) ** 0.5
    f32, bf16 = jnp.float32, jnp.bfloat16

    # Keep the raw (N, C, HW) layout -- no NCHW->NHWC transpose / extra HBM pass.
    x_chw = x_nchw.reshape(n, c, hw).astype(f32)

    # Pad the batch to a multiple of 4 so the grid keeps >= 2 (preferably >= 4)
    # steps and the blocks stay aligned; padded rows are sliced off at the end.
    n_pad = max(4, -(-n // 4) * 4)
    if n_pad != n:
        x_chw = jnp.pad(x_chw, ((0, n_pad - n), (0, 0), (0, 0)))
    b_tile = _pick_batch_tile(n_pad)
    grid = (n_pad // b_tile,)

    posx_t = pos[1:, :].T.astype(f32)                             # (C, HW)
    pos0 = pos[0, :].reshape(c, 1).astype(f32)                    # (C, 1)

    # Fused channel-major ((out, in)) weights; q scale folded into Wq/bq; the
    # positional-embedding contributions are folded into f32 constants here.
    wkv = jnp.concatenate([wk, wv], axis=0).astype(f32)           # (2C, C)
    bkv = jnp.concatenate([bk, bv], axis=0).reshape(2 * c, 1).astype(f32)
    poskv = wkv @ posx_t + bkv                                    # (2C, HW) f32

    wqkv = jnp.concatenate([wq * scale, wk, wv], axis=0).astype(f32)   # (3C, C)
    bqkv = jnp.concatenate([bq * scale, bk, bv],
                           axis=0).reshape(3 * c, 1).astype(f32)
    bqkv_eff = wqkv @ pos0 + bqkv                                 # (3C, 1) f32

    wkv_bf = wkv.astype(bf16)
    wqkv_bf = wqkv.astype(bf16)
    wc_bf = wc.astype(bf16)                                       # (O, C)
    bc_col = bc.reshape(o, 1).astype(f32)

    kernel = functools.partial(_attention_pool_kernel, num_heads=num_heads)

    flops = n_pad * (2 * (2 * c) * c * hw      # spatial K|V projection
                     + 2 * 3 * c * c           # mean-token Q|K|V projection
                     + 2 * o * c               # output projection
                     + 6 * c * hw)             # scores + softmax + weighted sum
    bytes_accessed = (x_chw.size * 4 + poskv.size * 4 + wkv_bf.size * 2
                      + wqkv_bf.size * 2 + bqkv_eff.size * 4 + wc_bf.size * 2
                      + bc_col.size * 4 + n_pad * o * 4)
    transcendentals = n_pad * num_heads * (hw + 2)

    out_cm = pl.pallas_call(
        kernel,
        out_shape=jax.ShapeDtypeStruct((grid[0], o, b_tile), jnp.float32),
        grid_spec=pltpu.PrefetchScalarGridSpec(
            num_scalar_prefetch=0,
            grid=grid,
            in_specs=[
                pl.BlockSpec((b_tile, c, hw), lambda i: (i, 0, 0)),   # x tile
                pl.BlockSpec((2 * c, hw), lambda i: (0, 0)),          # pos (K|V)
                pl.BlockSpec((2 * c, c), lambda i: (0, 0)),           # Wk|Wv
                pl.BlockSpec((3 * c, c), lambda i: (0, 0)),           # Wq|Wk|Wv
                pl.BlockSpec((3 * c, 1), lambda i: (0, 0)),           # fused bias
                pl.BlockSpec((o, c), lambda i: (0, 0)),               # Wc
                pl.BlockSpec((o, 1), lambda i: (0, 0)),               # bc
            ],
            out_specs=pl.BlockSpec((1, o, b_tile), lambda i: (i, 0, 0)),
        ),
        compiler_params=pltpu.CompilerParams(
            dimension_semantics=("parallel",)),
        cost_estimate=pl.CostEstimate(flops=flops,
                                      transcendentals=transcendentals,
                                      bytes_accessed=bytes_accessed),
    )(x_chw, poskv, wkv_bf, wqkv_bf, bqkv_eff, wc_bf, bc_col)

    # (G, O, b_tile) channel-major blocks -> (N, O); tiny, done once in XLA.
    out = jnp.transpose(out_cm, (0, 2, 1)).reshape(n_pad, o)
    return out[:n]


# ----------------------------------------------------------------------------
# Pure-JAX reference (mirrors F.multi_head_attention_forward semantics)
# ----------------------------------------------------------------------------
def attention_pool_2d_ref(x_nchw, params, num_heads):
    pos, wq, bq, wk, bk, wv, bv, wc, bc = params
    n, c, h, w = x_nchw.shape
    x = jnp.transpose(x_nchw.reshape(n, c, h * w), (2, 0, 1))              # (HW, N, C)
    x = jnp.concatenate([x.mean(axis=0, keepdims=True), x], axis=0)        # (L, N, C)
    x = x + pos[:, None, :]
    q_in = x[:1]
    hd = c // num_heads
    scale = hd ** -0.5
    qp = jnp.einsum("lnc,oc->lno", q_in, wq) + bq
    kp = jnp.einsum("lnc,oc->lno", x, wk) + bk
    vp = jnp.einsum("lnc,oc->lno", x, wv) + bv
    L = x.shape[0]
    qh = qp.reshape(1, n, num_heads, hd)
    kh = kp.reshape(L, n, num_heads, hd)
    vh = vp.reshape(L, n, num_heads, hd)
    s = jnp.einsum("qnhd,lnhd->nhql", qh * scale, kh)
    p = jax.nn.softmax(s, axis=-1)
    out = jnp.einsum("nhql,lnhd->qnhd", p, vh).reshape(1, n, c)
    out = jnp.einsum("qnc,oc->qno", out, wc) + bc
    return out[0]                                                          # (N, O)


# ----------------------------------------------------------------------------
# Parameter construction (deterministic, synthetic)
# ----------------------------------------------------------------------------
def make_params(key, spacial_dim, embed_dim, output_dim):
    ks = jax.random.split(key, 9)
    pos = jax.random.normal(ks[0], (spacial_dim ** 2 + 1, embed_dim),
                            jnp.float32) / (embed_dim ** 0.5)
    scale = 1.0 / (embed_dim ** 0.5)
    wq = jax.random.normal(ks[1], (embed_dim, embed_dim), jnp.float32) * scale
    bq = jax.random.normal(ks[2], (embed_dim,), jnp.float32) * 0.1
    wk = jax.random.normal(ks[3], (embed_dim, embed_dim), jnp.float32) * scale
    bk = jax.random.normal(ks[4], (embed_dim,), jnp.float32) * 0.1
    wv = jax.random.normal(ks[5], (embed_dim, embed_dim), jnp.float32) * scale
    bv = jax.random.normal(ks[6], (embed_dim,), jnp.float32) * 0.1
    wc = jax.random.normal(ks[7], (output_dim, embed_dim), jnp.float32) * scale
    bc = jax.random.normal(ks[8], (output_dim,), jnp.float32) * 0.1
    return (pos, wq, bq, wk, bk, wv, bv, wc, bc)


if __name__ == "__main__":
    # spacial_dim=16 -> HW=256 (L=257); embed_dim=128, 4 heads (head_dim=32),
    # output_dim=128; batch=16 -> b_tile=4, grid=(4,) (>=2 steps per v7x core).
    spacial_dim, embed_dim, num_heads, output_dim = 16, 128, 4, 128
    batch = 16

    key = jax.random.PRNGKey(0)
    k_x, k_p = jax.random.split(key)
    x = jax.random.normal(k_x, (batch, embed_dim, spacial_dim, spacial_dim),
                          jnp.float32)
    params = make_params(k_p, spacial_dim, embed_dim, output_dim)

    out = attention_pool_2d(x, params, num_heads)
    out = jax.block_until_ready(out)

    ref = attention_pool_2d_ref(x, params, num_heads)
    assert out.shape == (batch, output_dim)
    max_err = float(jnp.max(jnp.abs(out - ref)))
    # bf16 MXU operands (f32 accumulation) + approx reciprocal -> loose tolerance.
    assert jnp.allclose(out, ref, atol=3e-2, rtol=3e-2), f"max abs err {max_err}"
    print("KERNEL_OK")
</pallas_src>

<mosaic_0001>
module attributes {stable_mosaic.version = 11 : i64} {
  func.func @_attention_pool_kernel(%arg0: i32, %arg1: memref<4x128x256xf32, #tpu.memory_space<vmem>>, %arg2: memref<256x256xf32, #tpu.memory_space<vmem>>, %arg3: memref<256x128xbf16, #tpu.memory_space<vmem>>, %arg4: memref<384x128xbf16, #tpu.memory_space<vmem>>, %arg5: memref<384x1xf32, #tpu.memory_space<vmem>>, %arg6: memref<128x128xbf16, #tpu.memory_space<vmem>>, %arg7: memref<128x1xf32, #tpu.memory_space<vmem>>, %arg8: memref<1x128x4xf32, #tpu.memory_space<vmem>>) attributes {dimension_semantics = [#tpu.dimension_semantics<parallel>], iteration_bounds = array<i64: 4>, scalar_prefetch = 0 : i64, scratch_operands = 0 : i64, tpu.core_type = #tpu.core_type<tc>, window_params = [{transform_indices = @transform_0, window_bounds = array<i64: 4, 128, 256>}, {pipeline_mode = #tpu.pipeline_mode<synchronous>, transform_indices = @transform_1, window_bounds = array<i64: 256, 256>}, {pipeline_mode = #tpu.pipeline_mode<synchronous>, transform_indices = @transform_2, window_bounds = array<i64: 256, 128>}, {pipeline_mode = #tpu.pipeline_mode<synchronous>, transform_indices = @transform_3, window_bounds = array<i64: 384, 128>}, {pipeline_mode = #tpu.pipeline_mode<synchronous>, transform_indices = @transform_4, window_bounds = array<i64: 384, 1>}, {pipeline_mode = #tpu.pipeline_mode<synchronous>, transform_indices = @transform_5, window_bounds = array<i64: 128, 128>}, {pipeline_mode = #tpu.pipeline_mode<synchronous>, transform_indices = @transform_6, window_bounds = array<i64: 128, 1>}, {transform_indices = @transform_7, window_bounds = array<i64: 1, 128, 4>}]} {
    %c0 = arith.constant 0 : index
    %c0_0 = arith.constant 0 : index
    %0 = vector.load %arg3[%c0, %c0_0] : memref<256x128xbf16, #tpu.memory_space<vmem>>, vector<256x128xbf16>
    %c0_1 = arith.constant 0 : index
    %c0_2 = arith.constant 0 : index
    %1 = vector.load %arg2[%c0_1, %c0_2] : memref<256x256xf32, #tpu.memory_space<vmem>>, vector<256x256xf32>
    %c0_3 = arith.constant 0 : index
    %c0_4 = arith.constant 0 : index
    %c0_5 = arith.constant 0 : index
    %2 = vector.load %arg1[%c0_3, %c0_4, %c0_5] : memref<4x128x256xf32, #tpu.memory_space<vmem>>, vector<1x128x256xf32>
    %3 = vector.shape_cast %2 : vector<1x128x256xf32> to vector<128x256xf32>
    %cst = arith.constant dense<0.000000e+00> : vector<128xf32>
    %4 = vector.multi_reduction <add>, %3, %cst [1] : vector<128x256xf32> to vector<128xf32>
    %5 = vector.shape_cast %4 : vector<128xf32> to vector<128x1xf32>
    %cst_6 = arith.constant 2.560000e+02 : f32
    %6 = vector.broadcast %cst_6 : f32 to vector<128x1xf32>
    %7 = arith.divf %5, %6 : vector<128x1xf32>
    %c1 = arith.constant 1 : index
    %c0_7 = arith.constant 0 : index
    %c0_8 = arith.constant 0 : index
    %8 = vector.load %arg1[%c1, %c0_7, %c0_8] : memref<4x128x256xf32, #tpu.memory_space<vmem>>, vector<1x128x256xf32>
    %9 = vector.shape_cast %8 : vector<1x128x256xf32> to vector<128x256xf32>
    %cst_9 = arith.constant dense<0.000000e+00> : vector<128xf32>
    %10 = vector.multi_reduction <add>, %9, %cst_9 [1] : vector<128x256xf32> to vector<128xf32>
    %11 = vector.shape_cast %10 : vector<128xf32> to vector<128x1xf32>
    %cst_10 = arith.constant 2.560000e+02 : f32
    %12 = vector.broadcast %cst_10 : f32 to vector<128x1xf32>
    %13 = arith.divf %11, %12 : vector<128x1xf32>
    %c2 = arith.constant 2 : index
    %c0_11 = arith.constant 0 : index
    %c0_12 = arith.constant 0 : index
    %14 = vector.load %arg1[%c2, %c0_11, %c0_12] : memref<4x128x256xf32, #tpu.memory_space<vmem>>, vector<1x128x256xf32>
    %15 = vector.shape_cast %14 : vector<1x128x256xf32> to vector<128x256xf32>
    %cst_13 = arith.constant dense<0.000000e+00> : vector<128xf32>
    %16 = vector.multi_reduction <add>, %15, %cst_13 [1] : vector<128x256xf32> to vector<128xf32>
    %17 = vector.shape_cast %16 : vector<128xf32> to vector<128x1xf32>
    %cst_14 = arith.constant 2.560000e+02 : f32
    %18 = vector.broadcast %cst_14 : f32 to vector<128x1xf32>
    %19 = arith.divf %17, %18 : vector<128x1xf32>
    %c3 = arith.constant 3 : index
    %c0_15 = arith.constant 0 : index
    %c0_16 = arith.constant 0 : index
    %20 = vector.load %arg1[%c3, %c0_15, %c0_16] : memref<4x128x256xf32, #tpu.memory_space<vmem>>, vector<1x128x256xf32>
    %21 = vector.shape_cast %20 : vector<1x128x256xf32> to vector<128x256xf32>
    %cst_17 = arith.constant dense<0.000000e+00> : vector<128xf32>
    %22 = vector.multi_reduction <add>, %21, %cst_17 [1] : vector<128x256xf32> to vector<128xf32>
    %23 = vector.shape_cast %22 : vector<128xf32> to vector<128x1xf32>
    %cst_18 = arith.constant 2.560000e+02 : f32
    %24 = vector.broadcast %cst_18 : f32 to vector<128x1xf32>
    %25 = arith.divf %23, %24 : vector<128x1xf32>
    %26 = tpu.concatenate %7, %13, %19, %25 in 1 : vector<128x1xf32>, vector<128x1xf32>, vector<128x1xf32>, vector<128x1xf32> -> vector<128x4xf32>
    %c0_19 = arith.constant 0 : index
    %c0_20 = arith.constant 0 : index
    %27 = vector.load %arg4[%c0_19, %c0_20] : memref<384x128xbf16, #tpu.memory_space<vmem>>, vector<384x128xbf16>
    %28 = arith.truncf %26 : vector<128x4xf32> to vector<128x4xbf16>
    %cst_21 = arith.constant dense<0.000000e+00> : vector<384x4xf32>
    %29 = tpu.matmul %27, %28, %cst_21 {dimension_numbers = #tpu.dot_dimension_numbers<[1], [0], [0], [1], [0, 0, 1, 1], [], []>} : vector<384x128xbf16>, vector<128x4xbf16>, vector<384x4xf32> -> vector<384x4xf32>
    %c0_22 = arith.constant 0 : index
    %c0_23 = arith.constant 0 : index
    %30 = vector.load %arg5[%c0_22, %c0_23] : memref<384x1xf32, #tpu.memory_space<vmem>>, vector<384x1xf32>
    %31 = vector.broadcast %30 : vector<384x1xf32> to vector<384x4xf32>
    %32 = arith.addf %29, %31 : vector<384x4xf32>
    %33 = vector.extract_strided_slice %32 {offsets = [0, 0], sizes = [128, 4], strides = [1, 1]} : vector<384x4xf32> to vector<128x4xf32>
    %34 = vector.extract_strided_slice %32 {offsets = [128, 0], sizes = [128, 4], strides = [1, 1]} : vector<384x4xf32> to vector<128x4xf32>
    %35 = vector.extract_strided_slice %32 {offsets = [256, 0], sizes = [128, 4], strides = [1, 1]} : vector<384x4xf32> to vector<128x4xf32>
    %36 = arith.mulf %33, %34 : vector<128x4xf32>
    %37 = vector.shape_cast %36 : vector<128x4xf32> to vector<4x32x4xf32>
    %cst_24 = arith.constant dense<0.000000e+00> : vector<4x4xf32>
    %38 = vector.multi_reduction <add>, %37, %cst_24 [1] : vector<4x32x4xf32> to vector<4x4xf32>
    %c0_25 = arith.constant 0 : index
    %c0_26 = arith.constant 0 : index
    %c0_27 = arith.constant 0 : index
    %39 = vector.load %arg1[%c0_25, %c0_26, %c0_27] : memref<4x128x256xf32, #tpu.memory_space<vmem>>, vector<1x128x256xf32>
    %40 = vector.shape_cast %39 : vector<1x128x256xf32> to vector<128x256xf32>
    %41 = arith.truncf %40 : vector<128x256xf32> to vector<128x256xbf16>
    %cst_28 = arith.constant dense<0.000000e+00> : vector<256x256xf32>
    %42 = tpu.matmul %0, %41, %cst_28 {dimension_numbers = #tpu.dot_dimension_numbers<[1], [0], [0], [1], [0, 0, 1, 1], [], []>} : vector<256x128xbf16>, vector<128x256xbf16>, vector<256x256xf32> -> vector<256x256xf32>
    %43 = arith.addf %42, %1 : vector<256x256xf32>
    %44 = vector.extract_strided_slice %43 {offsets = [0, 0], sizes = [128, 256], strides = [1, 1]} : vector<256x256xf32> to vector<128x256xf32>
    %45 = vector.shape_cast %44 : vector<128x256xf32> to vector<4x32x256xf32>
    %46 = vector.extract_strided_slice %43 {offsets = [128, 0], sizes = [128, 256], strides = [1, 1]} : vector<256x256xf32> to vector<128x256xf32>
    %47 = vector.shape_cast %46 : vector<128x256xf32> to vector<4x32x256xf32>
    %48 = vector.extract_strided_slice %33 {offsets = [0, 0], sizes = [128, 1], strides = [1, 1]} : vector<128x4xf32> to vector<128x1xf32>
    %49 = vector.shape_cast %48 : vector<128x1xf32> to vector<4x32x1xf32>
    %50 = vector.broadcast %49 : vector<4x32x1xf32> to vector<4x32x256xf32>
    %51 = arith.mulf %45, %50 : vector<4x32x256xf32>
    %cst_29 = arith.constant dense<0.000000e+00> : vector<4x256xf32>
    %52 = vector.multi_reduction <add>, %51, %cst_29 [1] : vector<4x32x256xf32> to vector<4x256xf32>
    %53 = vector.extract_strided_slice %38 {offsets = [0, 0], sizes = [4, 1], strides = [1, 1]} : vector<4x4xf32> to vector<4x1xf32>
    %cst_30 = arith.constant dense<0xFF800000> : vector<4xf32>
    %54 = vector.multi_reduction <maximumf>, %52, %cst_30 [1] : vector<4x256xf32> to vector<4xf32>
    %55 = vector.shape_cast %54 : vector<4xf32> to vector<4x1xf32>
    %56 = arith.maximumf %55, %53 : vector<4x1xf32>
    %57 = vector.broadcast %56 : vector<4x1xf32> to vector<4x256xf32>
    %58 = arith.subf %52, %57 : vector<4x256xf32>
    %59 = math.exp %58 : vector<4x256xf32>
    %60 = arith.subf %53, %56 : vector<4x1xf32>
    %61 = math.exp %60 : vector<4x1xf32>
    %cst_31 = arith.constant dense<0.000000e+00> : vector<4xf32>
    %62 = vector.multi_reduction <add>, %59, %cst_31 [1] : vector<4x256xf32> to vector<4xf32>
    %63 = vector.shape_cast %62 : vector<4xf32> to vector<4x1xf32>
    %64 = arith.addf %63, %61 : vector<4x1xf32>
    %65 = tpu.reciprocal %64 {approx = true} : vector<4x1xf32> -> vector<4x1xf32>
    %66 = vector.broadcast %65 : vector<4x1xf32> to vector<4x256xf32>
    %67 = arith.mulf %59, %66 : vector<4x256xf32>
    %68 = arith.mulf %61, %65 : vector<4x1xf32>
    %69 = vector.extract_strided_slice %35 {offsets = [0, 0], sizes = [128, 1], strides = [1, 1]} : vector<128x4xf32> to vector<128x1xf32>
    %70 = vector.shape_cast %69 : vector<128x1xf32> to vector<4x32x1xf32>
    %71 = vector.shape_cast %67 : vector<4x256xf32> to vector<4x1x256xf32>
    %72 = vector.broadcast %71 : vector<4x1x256xf32> to vector<4x32x256xf32>
    %73 = arith.mulf %47, %72 : vector<4x32x256xf32>
    %cst_32 = arith.constant dense<0.000000e+00> : vector<4x32xf32>
    %74 = vector.multi_reduction <add>, %73, %cst_32 [2] : vector<4x32x256xf32> to vector<4x32xf32>
    %75 = vector.shape_cast %74 : vector<4x32xf32> to vector<4x32x1xf32>
    %76 = vector.shape_cast %68 : vector<4x1xf32> to vector<4x1x1xf32>
    %77 = vector.broadcast %76 : vector<4x1x1xf32> to vector<4x32x1xf32>
    %78 = arith.mulf %70, %77 : vector<4x32x1xf32>
    %79 = arith.addf %75, %78 : vector<4x32x1xf32>
    %80 = vector.shape_cast %79 : vector<4x32x1xf32> to vector<128x1xf32>
    %c1_33 = arith.constant 1 : index
    %c0_34 = arith.constant 0 : index
    %c0_35 = arith.constant 0 : index
    %81 = vector.load %arg1[%c1_33, %c0_34, %c0_35] : memref<4x128x256xf32, #tpu.memory_space<vmem>>, vector<1x128x256xf32>
    %82 = vector.shape_cast %81 : vector<1x128x256xf32> to vector<128x256xf32>
    %83 = arith.truncf %82 : vector<128x256xf32> to vector<128x256xbf16>
    %cst_36 = arith.constant dense<0.000000e+00> : vector<256x256xf32>
    %84 = tpu.matmul %0, %83, %cst_36 {dimension_numbers = #tpu.dot_dimension_numbers<[1], [0], [0], [1], [0, 0, 1, 1], [], []>} : vector<256x128xbf16>, vector<128x256xbf16>, vector<256x256xf32> -> vector<256x256xf32>
    %85 = arith.addf %84, %1 : vector<256x256xf32>
    %86 = vector.extract_strided_slice %85 {offsets = [0, 0], sizes = [128, 256], strides = [1, 1]} : vector<256x256xf32> to vector<128x256xf32>
    %87 = vector.shape_cast %86 : vector<128x256xf32> to vector<4x32x256xf32>
    %88 = vector.extract_strided_slice %85 {offsets = [128, 0], sizes = [128, 256], strides = [1, 1]} : vector<256x256xf32> to vector<128x256xf32>
    %89 = vector.shape_cast %88 : vector<128x256xf32> to vector<4x32x256xf32>
    %90 = vector.extract_strided_slice %33 {offsets = [0, 1], sizes = [128, 1], strides = [1, 1]} : vector<128x4xf32> to vector<128x1xf32>
    %91 = vector.shape_cast %90 : vector<128x1xf32> to vector<4x32x1xf32>
    %92 = vector.broadcast %91 : vector<4x32x1xf32> to vector<4x32x256xf32>
    %93 = arith.mulf %87, %92 : vector<4x32x256xf32>
    %cst_37 = arith.constant dense<0.000000e+00> : vector<4x256xf32>
    %94 = vector.multi_reduction <add>, %93, %cst_37 [1] : vector<4x32x256xf32> to vector<4x256xf32>
    %95 = vector.extract_strided_slice %38 {offsets = [0, 1], sizes = [4, 1], strides = [1, 1]} : vector<4x4xf32> to vector<4x1xf32>
    %cst_38 = arith.constant dense<0xFF800000> : vector<4xf32>
    %96 = vector.multi_reduction <maximumf>, %94, %cst_38 [1] : vector<4x256xf32> to vector<4xf32>
    %97 = vector.shape_cast %96 : vector<4xf32> to vector<4x1xf32>
    %98 = arith.maximumf %97, %95 : vector<4x1xf32>
    %99 = vector.broadcast %98 : vector<4x1xf32> to vector<4x256xf32>
    %100 = arith.subf %94, %99 : vector<4x256xf32>
    %101 = math.exp %100 : vector<4x256xf32>
    %102 = arith.subf %95, %98 : vector<4x1xf32>
    %103 = math.exp %102 : vector<4x1xf32>
    %cst_39 = arith.constant dense<0.000000e+00> : vector<4xf32>
    %104 = vector.multi_reduction <add>, %101, %cst_39 [1] : vector<4x256xf32> to vector<4xf32>
    %105 = vector.shape_cast %104 : vector<4xf32> to vector<4x1xf32>
    %106 = arith.addf %105, %103 : vector<4x1xf32>
    %107 = tpu.reciprocal %106 {approx = true} : vector<4x1xf32> -> vector<4x1xf32>
    %108 = vector.broadcast %107 : vector<4x1xf32> to vector<4x256xf32>
    %109 = arith.mulf %101, %108 : vector<4x256xf32>
    %110 = arith.mulf %103, %107 : vector<4x1xf32>
    %111 = vector.extract_strided_slice %35 {offsets = [0, 1], sizes = [128, 1], strides = [1, 1]} : vector<128x4xf32> to vector<128x1xf32>
    %112 = vector.shape_cast %111 : vector<128x1xf32> to vector<4x32x1xf32>
    %113 = vector.shape_cast %109 : vector<4x256xf32> to vector<4x1x256xf32>
    %114 = vector.broadcast %113 : vector<4x1x256xf32> to vector<4x32x256xf32>
    %115 = arith.mulf %89, %114 : vector<4x32x256xf32>
    %cst_40 = arith.constant dense<0.000000e+00> : vector<4x32xf32>
    %116 = vector.multi_reduction <add>, %115, %cst_40 [2] : vector<4x32x256xf32> to vector<4x32xf32>
    %117 = vector.shape_cast %116 : vector<4x32xf32> to vector<4x32x1xf32>
    %118 = vector.shape_cast %110 : vector<4x1xf32> to vector<4x1x1xf32>
    %119 = vector.broadcast %118 : vector<4x1x1xf32> to vector<4x32x1xf32>
    %120 = arith.mulf %112, %119 : vector<4x32x1xf32>
    %121 = arith.addf %117, %120 : vector<4x32x1xf32>
    %122 = vector.shape_cast %121 : vector<4x32x1xf32> to vector<128x1xf32>
    %c2_41 = arith.constant 2 : index
    %c0_42 = arith.constant 0 : index
    %c0_43 = arith.constant 0 : index
    %123 = vector.load %arg1[%c2_41, %c0_42, %c0_43] : memref<4x128x256xf32, #tpu.memory_space<vmem>>, vector<1x128x256xf32>
    %124 = vector.shape_cast %123 : vector<1x128x256xf32> to vector<128x256xf32>
    %125 = arith.truncf %124 : vector<128x256xf32> to vector<128x256xbf16>
    %cst_44 = arith.constant dense<0.000000e+00> : vector<256x256xf32>
    %126 = tpu.matmul %0, %125, %cst_44 {dimension_numbers = #tpu.dot_dimension_numbers<[1], [0], [0], [1], [0, 0, 1, 1], [], []>} : vector<256x128xbf16>, vector<128x256xbf16>, vector<256x256xf32> -> vector<256x256xf32>
    %127 = arith.addf %126, %1 : vector<256x256xf32>
    %128 = vector.extract_strided_slice %127 {offsets = [0, 0], sizes = [128, 256], strides = [1, 1]} : vector<256x256xf32> to vector<128x256xf32>
    %129 = vector.shape_cast %128 : vector<128x256xf32> to vector<4x32x256xf32>
    %130 = vector.extract_strided_slice %127 {offsets = [128, 0], sizes = [128, 256], strides = [1, 1]} : vector<256x256xf32> to vector<128x256xf32>
    %131 = vector.shape_cast %130 : vector<128x256xf32> to vector<4x32x256xf32>
    %132 = vector.extract_strided_slice %33 {offsets = [0, 2], sizes = [128, 1], strides = [1, 1]} : vector<128x4xf32> to vector<128x1xf32>
    %133 = vector.shape_cast %132 : vector<128x1xf32> to vector<4x32x1xf32>
    %134 = vector.broadcast %133 : vector<4x32x1xf32> to vector<4x32x256xf32>
    %135 = arith.mulf %129, %134 : vector<4x32x256xf32>
    %cst_45 = arith.constant dense<0.000000e+00> : vector<4x256xf32>
    %136 = vector.multi_reduction <add>, %135, %cst_45 [1] : vector<4x32x256xf32> to vector<4x256xf32>
    %137 = vector.extract_strided_slice %38 {offsets = [0, 2], sizes = [4, 1], strides = [1, 1]} : vector<4x4xf32> to vector<4x1xf32>
    %cst_46 = arith.constant dense<0xFF800000> : vector<4xf32>
    %138 = vector.multi_reduction <maximumf>, %136, %cst_46 [1] : vector<4x256xf32> to vector<4xf32>
    %139 = vector.shape_cast %138 : vector<4xf32> to vector<4x1xf32>
    %140 = arith.maximumf %139, %137 : vector<4x1xf32>
    %141 = vector.broadcast %140 : vector<4x1xf32> to vector<4x256xf32>
    %142 = arith.subf %136, %141 : vector<4x256xf32>
    %143 = math.exp %142 : vector<4x256xf32>
    %144 = arith.subf %137, %140 : vector<4x1xf32>
    %145 = math.exp %144 : vector<4x1xf32>
    %cst_47 = arith.constant dense<0.000000e+00> : vector<4xf32>
    %146 = vector.multi_reduction <add>, %143, %cst_47 [1] : vector<4x256xf32> to vector<4xf32>
    %147 = vector.shape_cast %146 : vector<4xf32> to vector<4x1xf32>
    %148 = arith.addf %147, %145 : vector<4x1xf32>
    %149 = tpu.reciprocal %148 {approx = true} : vector<4x1xf32> -> vector<4x1xf32>
    %150 = vector.broadcast %149 : vector<4x1xf32> to vector<4x256xf32>
    %151 = arith.mulf %143, %150 : vector<4x256xf32>
    %152 = arith.mulf %145, %149 : vector<4x1xf32>
    %153 = vector.extract_strided_slice %35 {offsets = [0, 2], sizes = [128, 1], strides = [1, 1]} : vector<128x4xf32> to vector<128x1xf32>
    %154 = vector.shape_cast %153 : vector<128x1xf32> to vector<4x32x1xf32>
    %155 = vector.shape_cast %151 : vector<4x256xf32> to vector<4x1x256xf32>
    %156 = vector.broadcast %155 : vector<4x1x256xf32> to vector<4x32x256xf32>
    %157 = arith.mulf %131, %156 : vector<4x32x256xf32>
    %cst_48 = arith.constant dense<0.000000e+00> : vector<4x32xf32>
    %158 = vector.multi_reduction <add>, %157, %cst_48 [2] : vector<4x32x256xf32> to vector<4x32xf32>
    %159 = vector.shape_cast %158 : vector<4x32xf32> to vector<4x32x1xf32>
    %160 = vector.shape_cast %152 : vector<4x1xf32> to vector<4x1x1xf32>
    %161 = vector.broadcast %160 : vector<4x1x1xf32> to vector<4x32x1xf32>
    %162 = arith.mulf %154, %161 : vector<4x32x1xf32>
    %163 = arith.addf %159, %162 : vector<4x32x1xf32>
    %164 = vector.shape_cast %163 : vector<4x32x1xf32> to vector<128x1xf32>
    %c3_49 = arith.constant 3 : index
    %c0_50 = arith.constant 0 : index
    %c0_51 = arith.constant 0 : index
    %165 = vector.load %arg1[%c3_49, %c0_50, %c0_51] : memref<4x128x256xf32, #tpu.memory_space<vmem>>, vector<1x128x256xf32>
    %166 = vector.shape_cast %165 : vector<1x128x256xf32> to vector<128x256xf32>
    %167 = arith.truncf %166 : vector<128x256xf32> to vector<128x256xbf16>
    %cst_52 = arith.constant dense<0.000000e+00> : vector<256x256xf32>
    %168 = tpu.matmul %0, %167, %cst_52 {dimension_numbers = #tpu.dot_dimension_numbers<[1], [0], [0], [1], [0, 0, 1, 1], [], []>} : vector<256x128xbf16>, vector<128x256xbf16>, vector<256x256xf32> -> vector<256x256xf32>
    %169 = arith.addf %168, %1 : vector<256x256xf32>
    %170 = vector.extract_strided_slice %169 {offsets = [0, 0], sizes = [128, 256], strides = [1, 1]} : vector<256x256xf32> to vector<128x256xf32>
    %171 = vector.shape_cast %170 : vector<128x256xf32> to vector<4x32x256xf32>
    %172 = vector.extract_strided_slice %169 {offsets = [128, 0], sizes = [128, 256], strides = [1, 1]} : vector<256x256xf32> to vector<128x256xf32>
    %173 = vector.shape_cast %172 : vector<128x256xf32> to vector<4x32x256xf32>
    %174 = vector.extract_strided_slice %33 {offsets = [0, 3], sizes = [128, 1], strides = [1, 1]} : vector<128x4xf32> to vector<128x1xf32>
    %175 = vector.shape_cast %174 : vector<128x1xf32> to vector<4x32x1xf32>
    %176 = vector.broadcast %175 : vector<4x32x1xf32> to vector<4x32x256xf32>
    %177 = arith.mulf %171, %176 : vector<4x32x256xf32>
    %cst_53 = arith.constant dense<0.000000e+00> : vector<4x256xf32>
    %178 = vector.multi_reduction <add>, %177, %cst_53 [1] : vector<4x32x256xf32> to vector<4x256xf32>
    %179 = vector.extract_strided_slice %38 {offsets = [0, 3], sizes = [4, 1], strides = [1, 1]} : vector<4x4xf32> to vector<4x1xf32>
    %cst_54 = arith.constant dense<0xFF800000> : vector<4xf32>
    %180 = vector.multi_reduction <maximumf>, %178, %cst_54 [1] : vector<4x256xf32> to vector<4xf32>
    %181 = vector.shape_cast %180 : vector<4xf32> to vector<4x1xf32>
    %182 = arith.maximumf %181, %179 : vector<4x1xf32>
    %183 = vector.broadcast %182 : vector<4x1xf32> to vector<4x256xf32>
    %184 = arith.subf %178, %183 : vector<4x256xf32>
    %185 = math.exp %184 : vector<4x256xf32>
    %186 = arith.subf %179, %182 : vector<4x1xf32>
    %187 = math.exp %186 : vector<4x1xf32>
    %cst_55 = arith.constant dense<0.000000e+00> : vector<4xf32>
    %188 = vector.multi_reduction <add>, %185, %cst_55 [1] : vector<4x256xf32> to vector<4xf32>
    %189 = vector.shape_cast %188 : vector<4xf32> to vector<4x1xf32>
    %190 = arith.addf %189, %187 : vector<4x1xf32>
    %191 = tpu.reciprocal %190 {approx = true} : vector<4x1xf32> -> vector<4x1xf32>
    %192 = vector.broadcast %191 : vector<4x1xf32> to vector<4x256xf32>
    %193 = arith.mulf %185, %192 : vector<4x256xf32>
    %194 = arith.mulf %187, %191 : vector<4x1xf32>
    %195 = vector.extract_strided_slice %35 {offsets = [0, 3], sizes = [128, 1], strides = [1, 1]} : vector<128x4xf32> to vector<128x1xf32>
    %196 = vector.shape_cast %195 : vector<128x1xf32> to vector<4x32x1xf32>
    %197 = vector.shape_cast %193 : vector<4x256xf32> to vector<4x1x256xf32>
    %198 = vector.broadcast %197 : vector<4x1x256xf32> to vector<4x32x256xf32>
    %199 = arith.mulf %173, %198 : vector<4x32x256xf32>
    %cst_56 = arith.constant dense<0.000000e+00> : vector<4x32xf32>
    %200 = vector.multi_reduction <add>, %199, %cst_56 [2] : vector<4x32x256xf32> to vector<4x32xf32>
    %201 = vector.shape_cast %200 : vector<4x32xf32> to vector<4x32x1xf32>
    %202 = vector.shape_cast %194 : vector<4x1xf32> to vector<4x1x1xf32>
    %203 = vector.broadcast %202 : vector<4x1x1xf32> to vector<4x32x1xf32>
    %204 = arith.mulf %196, %203 : vector<4x32x1xf32>
    %205 = arith.addf %201, %204 : vector<4x32x1xf32>
    %206 = vector.shape_cast %205 : vector<4x32x1xf32> to vector<128x1xf32>
    %207 = tpu.concatenate %80, %122, %164, %206 in 1 : vector<128x1xf32>, vector<128x1xf32>, vector<128x1xf32>, vector<128x1xf32> -> vector<128x4xf32>
    %c0_57 = arith.constant 0 : index
    %c0_58 = arith.constant 0 : index
    %208 = vector.load %arg6[%c0_57, %c0_58] : memref<128x128xbf16, #tpu.memory_space<vmem>>, vector<128x128xbf16>
    %209 = arith.truncf %207 : vector<128x4xf32> to vector<128x4xbf16>
    %cst_59 = arith.constant dense<0.000000e+00> : vector<128x4xf32>
    %210 = tpu.matmul %208, %209, %cst_59 {dimension_numbers = #tpu.dot_dimension_numbers<[1], [0], [0], [1], [0, 0, 1, 1], [], []>} : vector<128x128xbf16>, vector<128x4xbf16>, vector<128x4xf32> -> vector<128x4xf32>
    %c0_60 = arith.constant 0 : index
    %c0_61 = arith.constant 0 : index
    %211 = vector.load %arg7[%c0_60, %c0_61] : memref<128x1xf32, #tpu.memory_space<vmem>>, vector<128x1xf32>
    %212 = vector.broadcast %211 : vector<128x1xf32> to vector<128x4xf32>
    %213 = arith.addf %210, %212 : vector<128x4xf32>
    %c0_62 = arith.constant 0 : index
    %c0_63 = arith.constant 0 : index
    %c0_64 = arith.constant 0 : index
    %214 = vector.load %arg8[%c0_62, %c0_63, %c0_64] : memref<1x128x4xf32, #tpu.memory_space<vmem>>, vector<1x128x4xf32>
    %215 = vector.shape_cast %214 : vector<1x128x4xf32> to vector<128x4xf32>
    %216 = vector.shape_cast %213 : vector<128x4xf32> to vector<1x128x4xf32>
    tpu.vector_store %arg8[%c0_62, %c0_63, %c0_64], %216 {strides = array<i32>} : memref<1x128x4xf32, #tpu.memory_space<vmem>>, vector<1x128x4xf32>,
    return
  }
  func.func @transform_0(%arg0: i32) -> (i32, i32, i32) {
    %c0_i32 = arith.constant 0 : i32
    %c0_i32_0 = arith.constant 0 : i32
    %c0_i32_1 = arith.constant 0 : i32
    return %arg0, %c0_i32, %c0_i32_0 : i32, i32, i32
  }
  func.func @transform_1(%arg0: i32) -> (i32, i32) {
    %c0_i32 = arith.constant 0 : i32
    %c0_i32_0 = arith.constant 0 : i32
    %c0_i32_1 = arith.constant 0 : i32
    return %c0_i32, %c0_i32_0 : i32, i32
  }
  func.func @transform_2(%arg0: i32) -> (i32, i32) {
    %c0_i32 = arith.constant 0 : i32
    %c0_i32_0 = arith.constant 0 : i32
    %c0_i32_1 = arith.constant 0 : i32
    return %c0_i32, %c0_i32_0 : i32, i32
  }
  func.func @transform_3(%arg0: i32) -> (i32, i32) {
    %c0_i32 = arith.constant 0 : i32
    %c0_i32_0 = arith.constant 0 : i32
    %c0_i32_1 = arith.constant 0 : i32
    return %c0_i32, %c0_i32_0 : i32, i32
  }
  func.func @transform_4(%arg0: i32) -> (i32, i32) {
    %c0_i32 = arith.constant 0 : i32
    %c0_i32_0 = arith.constant 0 : i32
    %c0_i32_1 = arith.constant 0 : i32
    return %c0_i32, %c0_i32_0 : i32, i32
  }
  func.func @transform_5(%arg0: i32) -> (i32, i32) {
    %c0_i32 = arith.constant 0 : i32
    %c0_i32_0 = arith.constant 0 : i32
    %c0_i32_1 = arith.constant 0 : i32
    return %c0_i32, %c0_i32_0 : i32, i32
  }
  func.func @transform_6(%arg0: i32) -> (i32, i32) {
    %c0_i32 = arith.constant 0 : i32
    %c0_i32_0 = arith.constant 0 : i32
    %c0_i32_1 = arith.constant 0 : i32
    return %c0_i32, %c0_i32_0 : i32, i32
  }
  func.func @transform_7(%arg0: i32) -> (i32, i32, i32) {
    %c0_i32 = arith.constant 0 : i32
    %c0_i32_0 = arith.constant 0 : i32
    %c0_i32_1 = arith.constant 0 : i32
    return %arg0, %c0_i32, %c0_i32_0 : i32, i32, i32
  }
}

</mosaic_0001>

<bundles_post_ra>
// kernel: tpu_custom_call.1
= control target key start
LH: loop header
LB: loop body
LE: loop exit
PB: predicated region body
PF: predicated region fallthrough
CT: control target
= control target key end

     0   :  { %12 = vsyncpa [#allocation3], 0  ;;  %s10401_s0 = inlined_call_operand.hbm [shape: f32[16,128,256], index: 0, kind: input, shape index: {}]   ;;  %s10402_s1 = inlined_call_operand.hbm [shape: f32[256,256], index: 1, kind: input, shape index: {}]   ;;  %s10403_s2 = inlined_call_operand.hbm [shape: bf16[256,128], index: 2, kind: input, shape index: {}]   ;;  %s10404_s3 = inlined_call_operand.hbm [shape: bf16[384,128], index: 3, kind: input, shape index: {}]   ;;  %s10405_s4 = inlined_call_operand.vmem [shape: f32[384,1], index: 4, kind: input, shape index: {}]   ;;  %s10406_s5 = inlined_call_operand.hbm [shape: bf16[128,128], index: 5, kind: input, shape index: {}]   ;;  %s10407_s6 = inlined_call_operand.vmem [shape: f32[128,1], index: 6, kind: input, shape index: {}]   ;;  %s10408_s7 = inlined_call_operand.vmem [shape: f32[4,128,4], index: 7, kind: output, shape index: {}]  }
   0x1   :  { %14 = vsyncpa [#allocation3 + $0x1], 0 }
   0x2   :  { %15 = vsyncpa [#allocation5], 0 }
   0x3   :  { %16 = vsyncpa [#allocation8], 0  ;;  %s5898_s24 = smov 0   ;;  %s5900_s25 = smov 0  }
   0x4   :  { %s5902_s26 = smov 0   ;;  %s5904_s27 = smov 0  }
   0x5 LB: > { %s5917_s28 = sadd.s32 4294967295, %s5837_s27   ;;  %p42_p0 = scmp.ne.s32.totalorder %s5829_s25, %s5825_s24  ;;  %s5837_s27 = sphi %s5904_s27, %s11921_s27   ;;  %s5833_s26 = sphi %s5902_s26, %s11920_s26   ;;  %s5829_s25 = sphi %s5900_s25, %s11919_s25   ;;  %s5825_s24 = sphi %s5898_s24, %s11918_s24  }
   0x6   : > { %p10409_p1 = scmp.eq.s32.totalorder %s5917_s28, 0  ;;  %p5031_p2 = scmp.ge.s32.totalorder %s5837_s27, 1 }
   0x7   : > { %p205_p3 = scmp.lt.s32.totalorder %s5837_s27, 5  ;;  %s5839_s8 = smov [#allocation4]  }
   0x8   : > { %p5925_p4 = por %p10409_p1, %p42_p0  ;;  %s217_s9 = sshll.u32 %s5839_s8, 4  ;;  %s218_s9 = int_to_ptr.vmem [resolvable:$true] %s217_s9 }
   0x9   : > { %p5929_p5 = pnand %p5031_p2, %p205_p3  ;;  %s5840_s11 = smov [#allocation7]  }
   0xa   : > { %s10739_s29 = scalar_select %p5925_p4, 1, 0 }
   0xb   : > { %s10740_s30 = scalar_select %p5929_p5, 1, 0 }
   0xc   : > { %p5376_p6 = pneg %p5929_p5  ;;  %s243_s12 = sshll.u32 %s5840_s11, 4  ;;  %s244_s12 = int_to_ptr.vmem [resolvable:$true] %s243_s12 }
   0xd   : > { %s5674_s13 = scalar_lea.vmem %s218_s9, 8192  ;;  %p5682_p12 = scmp.lt.s32.totalorder %s218_s9, %s218_s9 }
   0xe   : > { %p5937_p7 = pnand %p5376_p6, %p10409_p1  ;;  %p5675_p9 = scmp.ne.s32.totalorder %s218_s9, %s5674_s13 }
   0xf   : > { %p5683_p13 = scmp.lt.s32.totalorder %s5674_s13, %s5674_s13 }
  0x10   : > { %p5665_p8 = pneg %p5937_p7 }
  0x11   : > { %p5684_p0 = por %p5683_p13, %p5682_p12 }
  0x12   : > { %p5677_p10 = pnand %p5675_p9, %p5665_p8 }
  0x14   : > { %p5678_p11 = pneg %p5677_p10 }
  0x16   : > { %p5685_p2 = pnand %p5684_p0, %p5678_p11 }
  0x18   : > { %5688 = shalt.err (!%p5685_p2)
}
  0x19   : > { %s5841_s14 = smov 256   ;;  %s5842_s15 = smov 16  }
  0x1a   : > { %5379 = dma.hbm_to_vmem [thread:$0]  (!%p5937_p7), %s10402_s1, 8192, %s218_s9, [#allocation5], %s5841_s14, %s5841_s14, %s5842_s15  }
  0x1b   : > { %s5843_s18 = smov [#allocation6]   ;;  %s5700_s20 = scalar_lea.vmem %s244_s12, 3072 }
  0x1c   : > { %s230_s19 = sshll.u32 %s5843_s18, 4  ;;  %p5701_p3 = scmp.ne.s32.totalorder %s244_s12, %s5700_s20  ;;  %s231_s19 = int_to_ptr.vmem [resolvable:$true] %s230_s19 }
  0x1d   : > { %p5708_p10 = scmp.lt.s32.totalorder %s244_s12, %s244_s12  ;;  %p5709_p11 = scmp.lt.s32.totalorder %s5700_s20, %s5700_s20 }
  0x1e   : > { %p5703_p6 = pnand %p5701_p3, %p5665_p8 }
  0x1f   : > { %p5710_p12 = por %p5709_p11, %p5708_p10 }
  0x20   : > { %p5704_p9 = pneg %p5703_p6 }
  0x22   : > { %p5711_p13 = pnand %p5710_p12, %p5704_p9 }
  0x24   : > { %5714 = shalt.err (!%p5711_p13)
}
  0x25   : > { %s5844_s21 = smov 64   ;;  %s5845_s22 = smov 4  }
  0x26   : > { %5385 = dma.hbm_to_vmem [thread:$0]  (!%p5937_p7), %s10404_s3, 3072, %s244_s12, [#allocation8], %s5844_s21, %s5844_s21, %s5845_s22  }
  0x27   : > { %s5726_s8 = scalar_lea.vmem %s231_s19, 2048  ;;  %p5734_p6 = scmp.lt.s32.totalorder %s231_s19, %s231_s19 }
  0x28   : > { %p5727_p0 = scmp.ne.s32.totalorder %s231_s19, %s5726_s8  ;;  %p5735_p10 = scmp.lt.s32.totalorder %s5726_s8, %s5726_s8 }
  0x2a   : > { %p5729_p2 = pnand %p5727_p0, %p5665_p8  ;;  %p5736_p9 = por %p5735_p10, %p5734_p6 }
  0x2c   : > { %p5730_p3 = pneg %p5729_p2 }
  0x2e   : > { %p5737_p11 = pnand %p5736_p9, %p5730_p3 }
  0x30   : > { %5740 = shalt.err (!%p5737_p11)
}
  0x31   : > { %5382 = dma.hbm_to_vmem [thread:$0]  (!%p5937_p7), %s10403_s2, 2048, %s231_s19, [#allocation5], %s5844_s21, %s5844_s21, %s5845_s22  }
  0x32   : > { %s5846_s12 = smov [#allocation9]  }
  0x33   : > { %s259_s13 = sshll.u32 %s5846_s12, 4  ;;  %s260_s13 = int_to_ptr.vmem [resolvable:$true] %s259_s13 }
  0x34   : > { %s5752_s16 = scalar_lea.vmem %s260_s13, 1024  ;;  %p5760_p2 = scmp.lt.s32.totalorder %s260_s13, %s260_s13 }
  0x35   : > { %p5753_p12 = scmp.ne.s32.totalorder %s260_s13, %s5752_s16  ;;  %p5761_p6 = scmp.lt.s32.totalorder %s5752_s16, %s5752_s16 }
  0x37   : > { %p5755_p13 = pnand %p5753_p12, %p5665_p8  ;;  %p5762_p3 = por %p5761_p6, %p5760_p2 }
  0x39   : > { %p5756_p0 = pneg %p5755_p13 }
  0x3b   : > { %p5763_p10 = pnand %p5762_p3, %p5756_p0 }
  0x3d   : > { %5766 = shalt.err (!%p5763_p10)
}
  0x3e   : > { %5388 = dma.hbm_to_vmem [thread:$0]  (!%p5937_p7), %s10406_s5, 1024, %s260_s13, [#allocation8], %s5844_s21, %s5844_s21, %s5845_s22  }
  0x3f   : > { %s5979_s19 = sadd.s32 1, %s5837_s27   ;;  %s29_s20 = sadd.s32 1, %s5833_s26 }
  0x40   : > { %s26_s23 = ssub.s32 %s5837_s27, %s5979_s19  ;;  %p36_p8 = scmp.ne.s32.totalorder %s5833_s26, %s5829_s25 }
  0x41   : > { %p27_p9 = scmp.eq.s32.totalorder %s26_s23, 0  ;;  %p37_p11 = scmp.eq.s32.totalorder %s5837_s27, 0 }
  0x42   : > { %p5397_p12 = scmp.lt.s32.totalorder %s5837_s27, 4  ;;  %s276_s10 = sand.u32 1, %s5833_s26  }
  0x43   : > { %s5990_s24 = scalar_select %p27_p9, %s5833_s26, %s29_s20  }
  0x44   : > { %p38_p13 = por %p37_p11, %p36_p8  ;;  %s5037_s8 = sshll.u32 %s276_s10, 10 }
  0x45   : > { %s5196_s9 = sshll.u32 %s5837_s27, 14  ;;  %s280_s21 = scalar_lea.vmem [#allocation2], %s5037_s8 }
  0x46   : > { %s5996_s16 = scalar_lea.hbm %s10401_s0, %s5196_s9  ;;  %s288_s22 = sshll.u32 %s280_s21, 4  ;;  %s6002_s22 = int_to_ptr.vmem [resolvable:$true] %s288_s22 }
  0x47   : > { %p5998_p7 = pnand %p5397_p12, %p38_p13  ;;  %s6004_s17 = scalar_lea.sflag [#allocation3], %s276_s10 }
  0x48   : > { %s5767_s27 = scalar_lea.hbm %s5996_s16, 16384  ;;  %s5772_s23 = scalar_lea.hbm %s10401_s0, 65536 }
  0x49   : > { %p5768_p0 = scmp.ne.s32.totalorder %s5996_s16, %s5767_s27  ;;  %p5769_p2 = pneg %p5998_p7 }
  0x4a   : > { %p5773_p10 = scmp.lt.s32.totalorder %s5996_s16, %s10401_s0  ;;  %p5774_p8 = scmp.lt.s32.totalorder %s5772_s23, %s5767_s27 }
  0x4b   : > { %p5770_p6 = pnand %p5769_p2, %p5768_p0 }
  0x4c   : > { %p5775_p9 = por %p5774_p8, %p5773_p10 }
  0x4d   : > { %p5771_p3 = pneg %p5770_p6 }
  0x4f   : > { %p5776_p11 = pnand %p5775_p9, %p5771_p3 }
  0x51   : > { %5779 = shalt.err (!%p5776_p11)
}
  0x52   : > { %s5780_s10 = scalar_lea.vmem %s6002_s22, 16384  ;;  %s5847_s11 = smov [#allocation2]  }
  0x53   : > { %p5781_p12 = scmp.ne.s32.totalorder %s6002_s22, %s5780_s10  ;;  %s5785_s12 = sshll.u32 %s5847_s11, 4  ;;  %s5786_s12 = int_to_ptr.vmem [resolvable:$false] %s5785_s12 }
  0x54   : > { %s5787_s21 = scalar_lea.vmem %s5786_s12, 32768  ;;  %p5788_p6 = scmp.lt.s32.totalorder %s6002_s22, %s5786_s12 }
  0x55   : > { %p5783_p13 = pnand %p5781_p12, %p5769_p2  ;;  %p5789_p1 = scmp.lt.s32.totalorder %s5787_s21, %s5780_s10 }
  0x57   : > { %p5784_p0 = pneg %p5783_p13  ;;  %p5790_p4 = por %p5789_p1, %p5788_p6 }
  0x59   : > { %p5791_p5 = pnand %p5790_p4, %p5784_p0 }
  0x5b   : > { %5794 = shalt.err (!%p5791_p5)
}
  0x5c   : > { %5392 = dma.hbm_to_vmem [thread:$0]  (!%p5998_p7), %s5996_s16, 16384, %s6002_s22, %s6004_s17, %s5841_s14, %s5841_s14, %s5842_s15  }
  0x5d   : > { %p10743_p2 = scmp.ne.s32.totalorder %s10740_s30, 0 }
  0x5f   : > { %300 = sbr.rel (%p10743_p2) target bundleno = 2070 (0x816), region = 48 }
  0x64   : > { %s302_s27 = sand.u32 1, %s5829_s25   ;;  %p10744_p1 = scmp.ne.s32.totalorder %s10739_s29, 0 }
  0x65   : > { %s5042_s18 = sshll.u32 %s302_s27, 10  ;;  %s303_s20 = scalar_lea.sflag [#allocation3], %s302_s27 }
  0x66   : > { %s6031_s23 = scalar_lea.vmem [#allocation2], %s5042_s18 }
  0x67   : > { %5812 = dma.done.wait (%p10744_p1), %s303_s20, 16384  }
  0x68   : > { %5814 = vsyncadd (%p10744_p1), %s303_s20, 4294950912  ;;  %p10745_p4 = scmp.eq.s32.totalorder %s5917_s28, 0 }
  0x6a   : > { %5816 = dma.done.wait (%p10745_p4), [#allocation5], 10240   ;;  %p10746_p5 = pmov %p10745_p4 }
  0x6b   : > { %p10747_p7 = pmov %p10745_p4 }
  0x6c   : > { %5818 = vsyncadd (%p10746_p5), [#allocation5], 4294957056 }
  0x6d   : > { %5820 = dma.done.wait (%p10747_p7), [#allocation8], 4096   ;;  %p10748_p3 = pmov %p10745_p4 }
  0x6e   : > { %v6046_v0 = vld [vmem:[%s6031_s23 + $0x1e0] sm:$0xff]  ;;  %v6049_v1 = vld [vmem:[%s6031_s23 + $0x1e8] sm:$0xff]  ;;  %v6052_v2 = vld [vmem:[%s6031_s23 + $0x1f0] sm:$0xff]  ;;  %vm844_vm0 = vcmask 7168   ;;  %vm861_vm1 = vcmask 15360   ;;  %vm878_vm2 = vcmask 23552  }
  0x6f   : > { %5822 = vsyncadd (%p10748_p3), [#allocation8], 4294963200  ;;  %10749 = vst [vmem:[#allocation13_spill] sm:$0xff] %v6046_v0  ;;  %v6055_v3 = vld [vmem:[%s6031_s23 + $0x1f8] sm:$0xff]  ;;  %v628_v4 = vadd.f32 %v6049_v1, %v6046_v0  ;;  %v6062_v6 = vld [vmem:[%s6031_s23 + $0xe0] sm:$0xff]  ;;  %vm1624_vm3 = vcmask 31744  }
  0x70   : > { %10750 = vst [vmem:[#allocation14_spill] sm:$0xff] %v6049_v1  ;;  %10751 = vst [vmem:[#allocation15_spill] sm:$0xff] %v6052_v2  ;;  %v6065_v7 = vld [vmem:[%s6031_s23 + $0xe8] sm:$0xff]  ;;  %v6070_v9 = vld [vmem:[%s6031_s23 + $0xf0] sm:$0xff]  ;;  %v631_v15 = vadd.f32 %v6055_v3, %v6052_v2  ;;  %vm2174_vm4 = vcmask 1041409   ;;  %vm2176_vm5 = vcmask 1042434  }
  0x71   : > { %10752 = vst [vmem:[#allocation16_spill] sm:$0xff] %v6055_v3  ;;  %10753 = vst [vmem:[#allocation17_spill] sm:$0xff] %v6062_v6  ;;  %v6073_v10 = vld [vmem:[%s6031_s23 + $0xf8] sm:$0xff]  ;;  %v530_v11 = vadd.f32 %v6065_v7, %v6062_v6  ;;  %v6078_v12 = vld [vmem:[%s6031_s23 + $0x2f0] sm:$0xff]  ;;  %629 = vadd.xlane.f32.xlu1 %v628_v4  ;;  %vm2185_vm6 = vcmask 1043456   ;;  %vm2178_vm7 = vcmask 1043459  }
  0x72   : > { %10754 = vst [vmem:[#allocation18_spill] sm:$0xff] %v6065_v7  ;;  %10755 = vst [vmem:[#allocation19_spill] sm:$0xff] %v6070_v9  ;;  %v6087_v16 = vld [vmem:[%s6031_s23 + $0x2f8] sm:$0xff]  ;;  %v6090_v17 = vld [vmem:[%s6031_s23 + $0x2e0] sm:$0xff]  ;;  %v533_v19 = vadd.f32 %v6073_v10, %v6070_v9  ;;  %s5852_s13 = smov 126   ;;  %s5853_s17 = smov 125  }
  0x73   : > { %10756 = vst [vmem:[#allocation20_spill] sm:$0xff] %v6073_v10  ;;  %10757 = vst [vmem:[#allocation21_spill] sm:$0xff] %v6078_v12  ;;  %v6093_v18 = vld [vmem:[%s6031_s23 + $0x2e8] sm:$0xff]  ;;  %531 = vadd.xlane.f32.xlu0 %v530_v11  ;;  %v6102_v22 = vld [vmem:[%s6031_s23 + $0x3f0] sm:$0xff]  ;;  %v728_v33 = vadd.f32 %v6087_v16, %v6078_v12  ;;  %s5854_s8 = smov 127   ;;  %s5855_s9 = smov 1  }
  0x74   : > { %10758 = vst [vmem:[#allocation22_spill] sm:$0xff] %v6087_v16  ;;  %10759 = vst [vmem:[#allocation23_spill] sm:$0xff] %v6090_v17  ;;  %v6105_v23 = vld [vmem:[%s6031_s23 + $0x3f8] sm:$0xff]  ;;  %v6108_v24 = vld [vmem:[%s6031_s23 + $0x3e0] sm:$0xff]  ;;  %v725_v39 = vadd.f32 %v6093_v18, %v6090_v17  ;;  %s5856_s10 = smov 2   ;;  %s5857_s11 = smov 3  }
  0x75   : > { %10760 = vst [vmem:[#allocation24_spill] sm:$0xff] %v6093_v18  ;;  %10761 = vst [vmem:[#allocation25_spill] sm:$0xff] %v6102_v22  ;;  %v6111_v25 = vld [vmem:[%s6031_s23 + $0x3e8] sm:$0xff]  ;;  %v6116_v27 = vld [vmem:[%s6031_s23 + $0xd0] sm:$0xff]  ;;  %632 = vadd.xlane.f32.xlu1 %v631_v15  ;;  %v825_v53 = vadd.f32 %v6105_v23, %v6102_v22  ;;  %p354_p10 = scmp.lt.s32.totalorder %s5917_s28, 3 }
  0x76   : > { %10762 = vst [vmem:[#allocation26_spill] sm:$0xff] %v6105_v23  ;;  %10763 = vst [vmem:[#allocation27_spill] sm:$0xff] %v6108_v24  ;;  %v6119_v28 = vld [vmem:[%s6031_s23 + $0xd8] sm:$0xff]  ;;  %v6124_v30 = vld [vmem:[%s6031_s23 + $0xc0] sm:$0xff]  ;;  %v822_v59 = vadd.f32 %v6111_v25, %v6108_v24 }
  0x77   : > { %10764 = vst [vmem:[#allocation28_spill] sm:$0xff] %v6111_v25  ;;  %10765 = vst [vmem:[#allocation29_spill] sm:$0xff] %v6116_v27  ;;  %v6127_v31 = vld [vmem:[%s6031_s23 + $0xc8] sm:$0xff]  ;;  %v6130_v32 = vld [vmem:[%s6031_s23 + $0x1d0] sm:$0xff]  ;;  %534 = vadd.xlane.f32.xlu0 %v533_v19  ;;  %v527_v29 = vadd.f32 %v6119_v28, %v6116_v27  ;;  %s11923_s28 = smov (!%p354_p10, %s5917_s28), 3 }
  0x78   : > { %10766 = vst [vmem:[#allocation30_spill] sm:$0xff] %v6119_v28  ;;  %10767 = vst [vmem:[#allocation31_spill] sm:$0xff] %v6124_v30  ;;  %v6139_v36 = vld [vmem:[%s6031_s23 + $0x1d8] sm:$0xff]  ;;  %v6142_v37 = vld [vmem:[%s6031_s23 + $0x1c0] sm:$0xff] }
  0x79   : > { %10768 = vst [vmem:[#allocation32_spill] sm:$0xff] %v6127_v31  ;;  %10769 = vst [vmem:[#allocation33_spill] sm:$0xff] %v6130_v32  ;;  %v6145_v38 = vld [vmem:[%s6031_s23 + $0x1c8] sm:$0xff]  ;;  %v6154_v42 = vld [vmem:[%s6031_s23 + $0x2d0] sm:$0xff]  ;;  %729 = vadd.xlane.f32.xlu1 %v728_v33 }
  0x7a   : > { %10770 = vst [vmem:[#allocation34_spill] sm:$0xff] %v6139_v36  ;;  %10771 = vst [vmem:[#allocation35_spill] sm:$0xff] %v6142_v37  ;;  %v6157_v43 = vld [vmem:[%s6031_s23 + $0x2d8] sm:$0xff]  ;;  %v6160_v44 = vld [vmem:[%s6031_s23 + $0x2c0] sm:$0xff] }
  0x7b   : > { %10772 = vst [vmem:[#allocation36_spill] sm:$0xff] %v6145_v38  ;;  %10773 = vst [vmem:[#allocation37_spill] sm:$0xff] %v6154_v42  ;;  %v6163_v45 = vld [vmem:[%s6031_s23 + $0x2c8] sm:$0xff]  ;;  %v6168_v47 = vld [vmem:[%s6031_s23 + $0x3d0] sm:$0xff]  ;;  %726 = vadd.xlane.f32.xlu0 %v725_v39 }
  0x7c   : > { %10774 = vst [vmem:[#allocation38_spill] sm:$0xff] %v6157_v43  ;;  %10775 = vst [vmem:[#allocation39_spill] sm:$0xff] %v6160_v44  ;;  %v6171_v48 = vld [vmem:[%s6031_s23 + $0x3d8] sm:$0xff]  ;;  %v6176_v50 = vld [vmem:[%s6031_s23 + $0x3c0] sm:$0xff] }
  0x7d   : > { %10776 = vst [vmem:[#allocation40_spill] sm:$0xff] %v6163_v45  ;;  %10777 = vst [vmem:[#allocation41_spill] sm:$0xff] %v6168_v47  ;;  %v6179_v51 = vld [vmem:[%s6031_s23 + $0x3c8] sm:$0xff]  ;;  %v6182_v52 = vld [vmem:[%s6031_s23 + $0xb0] sm:$0xff]  ;;  %826 = vadd.xlane.f32.xlu1 %v825_v53  ;;  %v524_v53 = vadd.f32 %v6127_v31, %v6124_v30 }
  0x7e   : > { %10778 = vst [vmem:[#allocation42_spill] sm:$0xff] %v6171_v48  ;;  %10779 = vst [vmem:[#allocation43_spill] sm:$0xff] %v6176_v50  ;;  %v6191_v56 = vld [vmem:[%s6031_s23 + $0xb8] sm:$0xff]  ;;  %v6194_v57 = vld [vmem:[%s6031_s23 + $0xa0] sm:$0xff] }
  0x7f   : > { %10780 = vst [vmem:[#allocation44_spill] sm:$0xff] %v6179_v51  ;;  %10781 = vst [vmem:[#allocation45_spill] sm:$0xff] %v6182_v52  ;;  %v6197_v58 = vld [vmem:[%s6031_s23 + $0xa8] sm:$0xff]  ;;  %v6206_v62 = vld [vmem:[%s6031_s23 + $0x1b0] sm:$0xff]  ;;  %823 = vadd.xlane.f32.xlu0 %v822_v59  ;;  %v625_v59 = vadd.f32 %v6139_v36, %v6130_v32 }
  0x80   : > { %10782 = vst [vmem:[#allocation46_spill] sm:$0xff] %v6191_v56  ;;  %10783 = vst [vmem:[#allocation47_spill] sm:$0xff] %v6194_v57  ;;  %v6209_v63 = vld [vmem:[%s6031_s23 + $0x1b8] sm:$0xff]  ;;  %v6212_v4 = vld [vmem:[%s6031_s23 + $0x1a0] sm:$0xff] }
  0x81   : > { %10784 = vst [vmem:[#allocation48_spill] sm:$0xff] %v6197_v58  ;;  %10785 = vst [vmem:[#allocation49_spill] sm:$0xff] %v6206_v62  ;;  %v6215_v11 = vld [vmem:[%s6031_s23 + $0x1a8] sm:$0xff]  ;;  %v6220_v19 = vld [vmem:[%s6031_s23 + $0x2b0] sm:$0xff]  ;;  %528 = vadd.xlane.f32.xlu1 %v527_v29  ;;  %v622_v29 = vadd.f32 %v6145_v38, %v6142_v37 }
  0x82   : > { %10786 = vst [vmem:[#allocation50_spill] sm:$0xff] %v6209_v63  ;;  %10787 = vst [vmem:[#allocation51_spill] sm:$0xff] %v6212_v4  ;;  %v6223_v33 = vld [vmem:[%s6031_s23 + $0x2b8] sm:$0xff]  ;;  %v6228_v54 = vld [vmem:[%s6031_s23 + $0x2a0] sm:$0xff] }
  0x83   : > { %10788 = vst [vmem:[#allocation52_spill] sm:$0xff] %v6215_v11  ;;  %10789 = vst [vmem:[#allocation53_spill] sm:$0xff] %v6220_v19  ;;  %v6231_v55 = vld [vmem:[%s6031_s23 + $0x2a8] sm:$0xff]  ;;  %v6234_v26 = vld [vmem:[%s6031_s23 + $0x3b0] sm:$0xff]  ;;  %525 = vadd.xlane.f32.xlu0 %v524_v53  ;;  %v722_v53 = vadd.f32 %v6157_v43, %v6154_v42 }
  0x84   : > { %10790 = vst [vmem:[#allocation54_spill] sm:$0xff] %v6223_v33  ;;  %10791 = vst [vmem:[#allocation55_spill] sm:$0xff] %v6228_v54  ;;  %v6243_v20 = vld [vmem:[%s6031_s23 + $0x3b8] sm:$0xff]  ;;  %v6246_v21 = vld [vmem:[%s6031_s23 + $0x3a0] sm:$0xff] }
  0x85   : > { %10792 = vst [vmem:[#allocation56_spill] sm:$0xff] %v6231_v55  ;;  %10793 = vst [vmem:[#allocation57_spill] sm:$0xff] %v6234_v26  ;;  %v6249_v15 = vld [vmem:[%s6031_s23 + $0x3a8] sm:$0xff]  ;;  %v6258_v49 = vld [vmem:[%s6031_s23 + $0x90] sm:$0xff]  ;;  %626 = vadd.xlane.f32.xlu1 %v625_v59  ;;  %v719_v59 = vadd.f32 %v6163_v45, %v6160_v44 }
  0x86   : > { %10794 = vst [vmem:[#allocation58_spill] sm:$0xff] %v6243_v20  ;;  %10795 = vst [vmem:[#allocation59_spill] sm:$0xff] %v6246_v21  ;;  %v6261_v60 = vld [vmem:[%s6031_s23 + $0x98] sm:$0xff]  ;;  %v6264_v40 = vld [vmem:[%s6031_s23 + $0x80] sm:$0xff] }
  0x87   : > { %10796 = vst [vmem:[#allocation60_spill] sm:$0xff] %v6249_v15  ;;  %v6267_v61 = vld [vmem:[%s6031_s23 + $0x88] sm:$0xff]  ;;  %v6272_v34 = vld [vmem:[%s6031_s23 + $0x190] sm:$0xff]  ;;  %v6275_v39 = vld [vmem:[%s6031_s23 + $0x198] sm:$0xff]  ;;  %623 = vadd.xlane.f32.xlu0 %v622_v29  ;;  %v819_v29 = vadd.f32 %v6171_v48, %v6168_v47 }
  0x88   : > { %v6280_v41 = vld [vmem:[%s6031_s23 + $0x180] sm:$0xff]  ;;  %v6283_v5 = vld [vmem:[%s6031_s23 + $0x188] sm:$0xff]  ;;  %v6286_v35 = vld [vmem:[%s6031_s23 + $0x290] sm:$0xff] }
  0x89   : > { %v6295_v8 = vld [vmem:[%s6031_s23 + $0x298] sm:$0xff]  ;;  %v6298_v14 = vld [vmem:[%s6031_s23 + $0x280] sm:$0xff]  ;;  %v6301_v24 = vld [vmem:[%s6031_s23 + $0x288] sm:$0xff]  ;;  %723 = vadd.xlane.f32.xlu1 %v722_v53  ;;  %v816_v53 = vadd.f32 %v6179_v51, %v6176_v50 }
  0x8a   : > { %v6310_v46 = vld [vmem:[%s6031_s23 + $0x390] sm:$0xff]  ;;  %v6313_v25 = vld [vmem:[%s6031_s23 + $0x398] sm:$0xff]  ;;  %v6316_v23 = vld [vmem:[%s6031_s23 + $0x380] sm:$0xff] }
  0x8b   : > { %10797 = vst [vmem:[#allocation61_spill] sm:$0xff] %v6310_v46  ;;  %10798 = vst [vmem:[#allocation62_spill] sm:$0xff] %v6313_v25  ;;  %v6319_v17 = vld [vmem:[%s6031_s23 + $0x388] sm:$0xff]  ;;  %v6324_v12 = vld [vmem:[%s6031_s23 + $0x70] sm:$0xff]  ;;  %720 = vadd.xlane.f32.xlu0 %v719_v59  ;;  %v521_v59 = vadd.f32 %v6191_v56, %v6182_v52 }
  0x8c   : > { %10799 = vst [vmem:[#allocation63_spill] sm:$0xff] %v6316_v23  ;;  %10800 = vst [vmem:[#allocation64_spill] sm:$0xff] %v6319_v17  ;;  %v6327_v22 = vld [vmem:[%s6031_s23 + $0x78] sm:$0xff]  ;;  %v6332_v18 = vld [vmem:[%s6031_s23 + $0x60] sm:$0xff] }
  0x8d   : > { %v6335_v16 = vld [vmem:[%s6031_s23 + $0x68] sm:$0xff]  ;;  %v6338_v37 = vld [vmem:[%s6031_s23 + $0x170] sm:$0xff]  ;;  %v6347_v30 = vld [vmem:[%s6031_s23 + $0x178] sm:$0xff]  ;;  %820 = vadd.xlane.f32.xlu1 %v819_v29  ;;  %v518_v29 = vadd.f32 %v6197_v58, %v6194_v57 }
  0x8e   : > { %v6350_v27 = vld [vmem:[%s6031_s23 + $0x160] sm:$0xff]  ;;  %v6353_v38 = vld [vmem:[%s6031_s23 + $0x168] sm:$0xff]  ;;  %v6362_v13 = vld [vmem:[%s6031_s23 + $0x270] sm:$0xff] }
  0x8f   : > { %10801 = vst [vmem:[#allocation65_spill] sm:$0xff] %v6362_v13  ;;  %v6365_v43 = vld [vmem:[%s6031_s23 + $0x278] sm:$0xff]  ;;  %v6368_v36 = vld [vmem:[%s6031_s23 + $0x260] sm:$0xff]  ;;  %v6371_v0 = vld [vmem:[%s6031_s23 + $0x268] sm:$0xff]  ;;  %817 = vadd.xlane.f32.xlu0 %v816_v53  ;;  %v619_v53 = vadd.f32 %v6209_v63, %v6206_v62 }
  0x90   : > { %10802 = vst [vmem:[#allocation66_spill] sm:$0xff] %v6365_v43  ;;  %10803 = vst [vmem:[#allocation67_spill] sm:$0xff] %v6368_v36  ;;  %v6376_v44 = vld [vmem:[%s6031_s23 + $0x370] sm:$0xff]  ;;  %v6379_v42 = vld [vmem:[%s6031_s23 + $0x378] sm:$0xff] }
  0x91   : > { %10804 = vst [vmem:[#allocation68_spill] sm:$0xff] %v6371_v0  ;;  %10805 = vst [vmem:[#allocation69_spill] sm:$0xff] %v6376_v44  ;;  %v6384_v45 = vld [vmem:[%s6031_s23 + $0x360] sm:$0xff]  ;;  %v6387_v2 = vld [vmem:[%s6031_s23 + $0x368] sm:$0xff]  ;;  %522 = vadd.xlane.f32.xlu1 %v521_v59  ;;  %v616_v59 = vadd.f32 %v6215_v11, %v6212_v4 }
  0x92   : > { %10806 = vst [vmem:[#allocation70_spill] sm:$0xff] %v6379_v42  ;;  %10807 = vst [vmem:[#allocation71_spill] sm:$0xff] %v6384_v45  ;;  %v6390_v31 = vld [vmem:[%s6031_s23 + $0x50] sm:$0xff]  ;;  %v6399_v6 = vld [vmem:[%s6031_s23 + $0x58] sm:$0xff] }
  0x93   : > { %10808 = vst [vmem:[#allocation72_spill] sm:$0xff] %v6387_v2  ;;  %v6402_v9 = vld [vmem:[%s6031_s23 + $0x40] sm:$0xff]  ;;  %v6405_v1 = vld [vmem:[%s6031_s23 + $0x48] sm:$0xff]  ;;  %v6414_v32 = vld [vmem:[%s6031_s23 + $0x150] sm:$0xff]  ;;  %519 = vadd.xlane.f32.xlu0 %v518_v29  ;;  %v716_v29 = vadd.f32 %v6223_v33, %v6220_v19  ;;  %v515_v19 = vadd.f32 %v6261_v60, %v6258_v49 }
  0x94   : > { %10809 = vst [vmem:[#allocation73_spill] sm:$0xff] %v6405_v1  ;;  %10810 = vst [vmem:[#allocation74_spill] sm:$0xff] %v6414_v32  ;;  %v6417_v48 = vld [vmem:[%s6031_s23 + $0x158] sm:$0xff]  ;;  %v6420_v3 = vld [vmem:[%s6031_s23 + $0x140] sm:$0xff] }
  0x95   : > { %10811 = vst [vmem:[#allocation75_spill] sm:$0xff] %v6417_v48  ;;  %10812 = vst [vmem:[#allocation76_spill] sm:$0xff] %v6420_v3  ;;  %v6423_v7 = vld [vmem:[%s6031_s23 + $0x148] sm:$0xff]  ;;  %v6428_v50 = vld [vmem:[%s6031_s23 + $0x250] sm:$0xff]  ;;  %620 = vadd.xlane.f32.xlu1 %v619_v53  ;;  %v713_v53 = vadd.f32 %v6231_v55, %v6228_v54 }
  0x96   : > { %10813 = vst [vmem:[#allocation77_spill] sm:$0xff] %v6423_v7  ;;  %10814 = vst [vmem:[#allocation78_spill] sm:$0xff] %v6428_v50  ;;  %v6431_v47 = vld [vmem:[%s6031_s23 + $0x258] sm:$0xff]  ;;  %v6436_v51 = vld [vmem:[%s6031_s23 + $0x240] sm:$0xff] }
  0x97   : > { %10815 = vst [vmem:[#allocation79_spill] sm:$0xff] %v6431_v47  ;;  %10816 = vst [vmem:[#allocation80_spill] sm:$0xff] %v6436_v51  ;;  %v6439_v10 = vld [vmem:[%s6031_s23 + $0x248] sm:$0xff]  ;;  %v6442_v1 = vld [vmem:[%s6031_s23 + $0x350] sm:$0xff]  ;;  %617 = vadd.xlane.f32.xlu0 %v616_v59 }
  0x98   : > { %10817 = vst [vmem:[#allocation81_spill] sm:$0xff] %v6439_v10  ;;  %10818 = vst [vmem:[#allocation82_spill] sm:$0xff] %v6442_v1  ;;  %v6451_v7 = vld [vmem:[%s6031_s23 + $0x358] sm:$0xff]  ;;  %v6454_v48 = vld [vmem:[%s6031_s23 + $0x340] sm:$0xff] }
  0x99   : > { %10819 = vst [vmem:[#allocation83_spill] sm:$0xff] %v6451_v7  ;;  %10820 = vst [vmem:[#allocation84_spill] sm:$0xff] %v6454_v48  ;;  %v6457_v32 = vld [vmem:[%s6031_s23 + $0x348] sm:$0xff]  ;;  %v6466_v28 = vld [vmem:[%s6031_s23 + $0x30] sm:$0xff]  ;;  %717 = vadd.xlane.f32.xlu1 %v716_v29  ;;  %v512_v29 = vadd.f32 %v6267_v61, %v6264_v40 }
  0x9a   : > { %10821 = vst [vmem:[#allocation85_spill] sm:$0xff] %v6457_v32  ;;  %10822 = vst [vmem:[#allocation86_spill] sm:$0xff] %v6466_v28  ;;  %v6469_v56 = vld [vmem:[%s6031_s23 + $0x38] sm:$0xff]  ;;  %v6472_v10 = vld [vmem:[%s6031_s23 + $0x20] sm:$0xff] }
  0x9b   : > { %10823 = vst [vmem:[#allocation87_spill] sm:$0xff] %v6469_v56  ;;  %10824 = vst [vmem:[#allocation88_spill] sm:$0xff] %v6472_v10  ;;  %v6475_v51 = vld [vmem:[%s6031_s23 + $0x28] sm:$0xff]  ;;  %v6480_v57 = vld [vmem:[%s6031_s23 + $0x130] sm:$0xff]  ;;  %714 = vadd.xlane.f32.xlu0 %v713_v53  ;;  %v710_v53 = vadd.f32 %v6295_v8, %v6286_v35 }
  0x9c   : > { %10825 = vst [vmem:[#allocation89_spill] sm:$0xff] %v6475_v51  ;;  %v6483_v52 = vld [vmem:[%s6031_s23 + $0x138] sm:$0xff]  ;;  %v6488_v58 = vld [vmem:[%s6031_s23 + $0x120] sm:$0xff]  ;;  %v6491_v32 = vld [vmem:[%s6031_s23 + $0x128] sm:$0xff] }
  0x9d   : > { %10826 = vst [vmem:[#allocation90_spill] sm:$0xff] %v6488_v58  ;;  %10827 = vst [vmem:[#allocation91_spill] sm:$0xff] %v6491_v32  ;;  %v6494_v48 = vld [vmem:[%s6031_s23 + $0x230] sm:$0xff]  ;;  %v6503_v51 = vld [vmem:[%s6031_s23 + $0x238] sm:$0xff] }
  0x9e   : > { %10828 = vst [vmem:[#allocation92_spill] sm:$0xff] %v6494_v48  ;;  %10829 = vst [vmem:[#allocation93_spill] sm:$0xff] %v6503_v51  ;;  %v6506_v56 = vld [vmem:[%s6031_s23 + $0x220] sm:$0xff]  ;;  %v6509_v28 = vld [vmem:[%s6031_s23 + $0x228] sm:$0xff] }
  0x9f   : > { %10830 = vst [vmem:[#allocation94_spill] sm:$0xff] %v6506_v56  ;;  %10831 = vst [vmem:[#allocation95_spill] sm:$0xff] %v6509_v28  ;;  %v6518_v3 = vld [vmem:[%s6031_s23 + $0x330] sm:$0xff]  ;;  %v6521_v63 = vld [vmem:[%s6031_s23 + $0x338] sm:$0xff] }
  0xa0   : > { %10832 = vst [vmem:[#allocation96_spill] sm:$0xff] %v6518_v3  ;;  %10833 = vst [vmem:[#allocation97_spill] sm:$0xff] %v6521_v63  ;;  %v6524_v32 = vld [vmem:[%s6031_s23 + $0x320] sm:$0xff]  ;;  %v6527_v58 = vld [vmem:[%s6031_s23 + $0x328] sm:$0xff] }
  0xa1   : > { %10834 = vst [vmem:[#allocation98_spill] sm:$0xff] %v6524_v32  ;;  %10835 = vst [vmem:[#allocation99_spill] sm:$0xff] %v6527_v58  ;;  %v6532_v4 = vld [vmem:[%s6031_s23 + $0x10] sm:$0xff]  ;;  %v6535_v62 = vld [vmem:[%s6031_s23 + $0x18] sm:$0xff] }
  0xa2   : > { %10836 = vst [vmem:[#allocation100_spill] sm:$0xff] %v6535_v62  ;;  %v6540_v11 = vld [vmem:[%s6031_s23] sm:$0xff]  ;;  %v6543_v28 = vld [vmem:[%s6031_s23 + $0x8] sm:$0xff]  ;;  %v6546_v56 = vld [vmem:[%s6031_s23 + $0x110] sm:$0xff] }
  0xa3   : > { %10837 = vst [vmem:[#allocation101_spill] sm:$0xff] %v6540_v11  ;;  %10838 = vst [vmem:[#allocation102_spill] sm:$0xff] %v6543_v28  ;;  %v6555_v58 = vld [vmem:[%s6031_s23 + $0x118] sm:$0xff]  ;;  %v6558_v63 = vld [vmem:[%s6031_s23 + $0x100] sm:$0xff] }
  0xa4   : > { %10839 = vst [vmem:[#allocation103_spill] sm:$0xff] %v6558_v63  ;;  %v6561_v3 = vld [vmem:[%s6031_s23 + $0x108] sm:$0xff]  ;;  %v6570_v33 = vld [vmem:[%s6031_s23 + $0x210] sm:$0xff]  ;;  %v6573_v10 = vld [vmem:[%s6031_s23 + $0x218] sm:$0xff]  ;;  %v610_v63 = vadd.f32 %v6283_v5, %v6280_v41 }
  0xa5   : > { %10840 = vst [vmem:[#allocation104_spill] sm:$0xff] %v6561_v3  ;;  %10841 = vst [vmem:[#allocation105_spill] sm:$0xff] %v6570_v33  ;;  %v6576_v28 = vld [vmem:[%s6031_s23 + $0x200] sm:$0xff]  ;;  %v6579_v11 = vld [vmem:[%s6031_s23 + $0x208] sm:$0xff]  ;;  %v813_v3 = vadd.f32 %v6243_v20, %v6234_v26  ;;  %v613_v26 = vadd.f32 %v6275_v39, %v6272_v34 }
  0xa6   : > { %10842 = vst [vmem:[#allocation106_spill] sm:$0xff] %v6573_v10  ;;  %10843 = vst [vmem:[#allocation107_spill] sm:$0xff] %v6576_v28  ;;  %v6584_v62 = vld [vmem:[%s6031_s23 + $0x310] sm:$0xff]  ;;  %v6587_v54 = vld [vmem:[%s6031_s23 + $0x318] sm:$0xff]  ;;  %v810_v28 = vadd.f32 %v6249_v15, %v6246_v21 }
  0xa7   : > { %10844 = vst [vmem:[#allocation108_spill] sm:$0xff] %v6579_v11  ;;  %10845 = vst [vmem:[#allocation109_spill] sm:$0xff] %v6584_v62  ;;  %v6592_v55 = vld [vmem:[%s6031_s23 + $0x300] sm:$0xff]  ;;  %v6595_v32 = vld [vmem:[%s6031_s23 + $0x308] sm:$0xff]  ;;  %814 = vadd.xlane.f32.xlu1 %v813_v3  ;;  %v707_v3 = vadd.f32 %v6301_v24, %v6298_v14 }
  0xa8   : > { %10846 = vst [vmem:[#allocation110_spill] sm:$0xff] %v6587_v54  ;;  %10847 = vst [vmem:[#allocation111_spill] sm:$0xff] %v6592_v55  ;;  %811 = vadd.xlane.f32.xlu0 %v810_v28  ;;  %v807_v28 = vadd.f32 %v6313_v25, %v6310_v46  ;;  %v10859_v21 = vld [vmem:[#allocation87_spill] sm:$0xff]  ;;  %v10861_v20 = vld [vmem:[#allocation89_spill] sm:$0xff] }
  0xa9   : > { %10848 = vst [vmem:[#allocation112_spill] sm:$0xff] %v6595_v32 }
  0xab   : > { %516 = vadd.xlane.f32.xlu1 %v515_v19  ;;  %v804_v19 = vadd.f32 %v6319_v17, %v6316_v23  ;;  %v10851_v23 = vld [vmem:[#allocation75_spill] sm:$0xff]  ;;  %v10853_v17 = vld [vmem:[#allocation77_spill] sm:$0xff] }
  0xac   : > { %513 = vadd.xlane.f32.xlu0 %v512_v29  ;;  %v509_v29 = vadd.f32 %v6327_v22, %v6324_v12 }
  0xaf   : > { %614 = vadd.xlane.f32.xlu1 %v613_v26  ;;  %v506_v26 = vadd.f32 %v6335_v16, %v6332_v18 }
  0xb0   : > { %611 = vadd.xlane.f32.xlu0 %v610_v63  ;;  %v607_v63 = vadd.f32 %v6347_v30, %v6338_v37 }
  0xb3   : > { %711 = vadd.xlane.f32.xlu1 %v710_v53  ;;  %v604_v53 = vadd.f32 %v6353_v38, %v6350_v27 }
  0xb4   : > { %708 = vadd.xlane.f32.xlu0 %v707_v3  ;;  %v704_v3 = vadd.f32 %v6365_v43, %v6362_v13 }
  0xb7   : > { %808 = vadd.xlane.f32.xlu1 %v807_v28  ;;  %v701_v28 = vadd.f32 %v6371_v0, %v6368_v36 }
  0xb8   : > { %805 = vadd.xlane.f32.xlu0 %v804_v19  ;;  %v801_v19 = vadd.f32 %v6379_v42, %v6376_v44  ;;  %v10857_v42 = vld [vmem:[#allocation85_spill] sm:$0xff] }
  0xbb   : > { %510 = vadd.xlane.f32.xlu1 %v509_v29  ;;  %v798_v29 = vadd.f32 %v6387_v2, %v6384_v45  ;;  %v10855_v45 = vld [vmem:[#allocation81_spill] sm:$0xff] }
  0xbc   : > { %507 = vadd.xlane.f32.xlu0 %v506_v26  ;;  %v503_v26 = vadd.f32 %v6399_v6, %v6390_v31 }
  0xbf   : > { %608 = vadd.xlane.f32.xlu1 %v607_v63  ;;  %v10849_v63 = vld [vmem:[#allocation73_spill] sm:$0xff] }
  0xc0   : > { %605 = vadd.xlane.f32.xlu0 %v604_v53  ;;  %v500_v59 = vadd.f32 %v10849_v63, %v6402_v9  ;;  %v10850_v53 = vld [vmem:[#allocation74_spill] sm:$0xff] }
  0xc1   : > { %v601_v46 = vadd.f32 %v10851_v23, %v10850_v53 }
  0xc3   : > { %705 = vadd.xlane.f32.xlu1 %v704_v3  ;;  %v10852_v3 = vld [vmem:[#allocation76_spill] sm:$0xff] }
  0xc4   : > { %702 = vadd.xlane.f32.xlu0 %v701_v28  ;;  %v598_v44 = vadd.f32 %v10853_v17, %v10852_v3  ;;  %v698_v28 = vadd.f32 %v6431_v47, %v6428_v50  ;;  %v10869_v47 = vld [vmem:[#allocation99_spill] sm:$0xff] }
  0xc7   : > { %802 = vadd.xlane.f32.xlu1 %v801_v19  ;;  %v10854_v19 = vld [vmem:[#allocation80_spill] sm:$0xff] }
  0xc8   : > { %799 = vadd.xlane.f32.xlu0 %v798_v29  ;;  %v695_v2 = vadd.f32 %v10855_v45, %v10854_v19  ;;  %v795_v29 = vadd.f32 %v6451_v7, %v6442_v1  ;;  %v10863_v19 = vld [vmem:[#allocation91_spill] sm:$0xff]  ;;  %v10867_v7 = vld [vmem:[#allocation97_spill] sm:$0xff] }
  0xcb   : > { %504 = vadd.xlane.f32.xlu1 %v503_v26  ;;  %v10856_v26 = vld [vmem:[#allocation84_spill] sm:$0xff] }
  0xcc   : > { %501 = vadd.xlane.f32.xlu0 %v500_v59  ;;  %v792_v25 = vadd.f32 %v10857_v42, %v10856_v26  ;;  %v10858_v59 = vld [vmem:[#allocation86_spill] sm:$0xff]  ;;  %v10865_v26 = vld [vmem:[#allocation95_spill] sm:$0xff] }
  0xcd   : > { %v497_v15 = vadd.f32 %v10859_v21, %v10858_v59 }
  0xcf   : > { %602 = vadd.xlane.f32.xlu1 %v601_v46  ;;  %v10860_v46 = vld [vmem:[#allocation88_spill] sm:$0xff] }
  0xd0   : > { %599 = vadd.xlane.f32.xlu0 %v598_v44  ;;  %v494_v50 = vadd.f32 %v10861_v20, %v10860_v46  ;;  %v595_v44 = vadd.f32 %v6483_v52, %v6480_v57 }
  0xd3   : > { %699 = vadd.xlane.f32.xlu1 %v698_v28  ;;  %v10862_v28 = vld [vmem:[#allocation90_spill] sm:$0xff] }
  0xd4   : > { %696 = vadd.xlane.f32.xlu0 %v695_v2  ;;  %v592_v1 = vadd.f32 %v10863_v19, %v10862_v28  ;;  %v692_v2 = vadd.f32 %v6503_v51, %v6494_v48  ;;  %v10871_v48 = vld [vmem:[#allocation101_spill] sm:$0xff] }
  0xd7   : > { %796 = vadd.xlane.f32.xlu1 %v795_v29  ;;  %v10864_v29 = vld [vmem:[#allocation94_spill] sm:$0xff] }
  0xd8   : > { %793 = vadd.xlane.f32.xlu0 %v792_v25  ;;  %v689_v42 = vadd.f32 %v10865_v26, %v10864_v29  ;;  %v10866_v25 = vld [vmem:[#allocation96_spill] sm:$0xff]  ;;  %v10872_v29 = vld [vmem:[#allocation102_spill] sm:$0xff] }
  0xd9   : > { %v789_v45 = vadd.f32 %v10867_v7, %v10866_v25  ;;  %v589_v25 = vadd.f32 %v6555_v58, %v6546_v56  ;;  %v10873_v7 = vld [vmem:[#allocation103_spill] sm:$0xff] }
  0xdb   : > { %498 = vadd.xlane.f32.xlu1 %v497_v15  ;;  %v10528_v15 = vmov 0  }
  0xdc   : > { %495 = vadd.xlane.f32.xlu0 %v494_v50  ;;  %v10868_v50 = vld [vmem:[#allocation98_spill] sm:$0xff]  ;;  %5453 = vset.pattern.permute.xlu1 %v10528_v15 }
  0xdd   : > { %5452 = vset.pattern.permute.xlu0 %v10528_v15  ;;  %v786_v36 = vadd.f32 %v10869_v47, %v10868_v50  ;;  %v686_v15 = vadd.f32 %v6573_v10, %v6570_v33  ;;  %v5511_v33 = vld [vmem:[#allocation7] sm:$0xff]  }
  0xde   : > { %5262 = vmatprep.mubr.bf16.mxu0 %v5511_v33 }
  0xdf   : > { %596 = vadd.xlane.f32.xlu1 %v595_v44  ;;  %v10870_v44 = vld [vmem:[#allocation100_spill] sm:$0xff] }
  0xe0   : > { %593 = vadd.xlane.f32.xlu0 %v592_v1  ;;  %v491_v1 = vadd.f32 %v10870_v44, %v6532_v4 }
  0xe3   : > { %693 = vadd.xlane.f32.xlu1 %v692_v2  ;;  %v488_v2 = vadd.f32 %v10872_v29, %v10871_v48 }
  0xe4   : > { %690 = vadd.xlane.f32.xlu0 %v689_v42  ;;  %v10874_v42 = vld [vmem:[#allocation104_spill] sm:$0xff] }
  0xe5   : > { %v586_v26 = vadd.f32 %v10874_v42, %v10873_v7 }
  0xe7   : > { %790 = vadd.xlane.f32.xlu1 %v789_v45  ;;  %v10875_v45 = vld [vmem:[#allocation107_spill] sm:$0xff] }
  0xe8   : > { %787 = vadd.xlane.f32.xlu0 %v786_v36  ;;  %v683_v50 = vadd.f32 %v6579_v11, %v10875_v45  ;;  %v783_v36 = vadd.f32 %v6587_v54, %v6584_v62  ;;  %v5512_v45 = vld [vmem:[#allocation7 + $0x80] sm:$0xff]  }
  0xe9   : > { %5294 = vmatprep.mubr.bf16.mxu1 %v5512_v45 }
  0xeb   : > { %492 = vadd.xlane.f32.xlu1 %v491_v1  ;;  %v780_v1 = vadd.f32 %v6595_v32, %v6592_v55 }
  0xec   : > { %489 = vadd.xlane.f32.xlu0 %v488_v2 }
  0xef   : > { %590 = vadd.xlane.f32.xlu1 %v589_v25  ;;  %v952_v25 = vld [vmem:[%s10405_s4 + $0x8] sm:$0xff] }
  0xf0   : > { %587 = vadd.xlane.f32.xlu0 %v586_v26 }
  0xf3   : > { %687 = vadd.xlane.f32.xlu1 %v686_v15 }
  0xf4   : > { %684 = vadd.xlane.f32.xlu0 %v683_v50  ;;  %v953_v50 = vld [vmem:[%s10405_s4 + $0x10] sm:$0xff] }
  0xf7   : > { %784 = vadd.xlane.f32.xlu1 %v783_v36  ;;  %v951_v36 = vld [vmem:[%s10405_s4] sm:$0xff] }
  0xf8   : > { %781 = vadd.xlane.f32.xlu0 %v780_v1 }
  0xfa   : > { %v630_v2 = vpop.xlane.xlu1 %629 }
  0xfb   : > { %v648_v54 = vmul.f32 0.00390625, %v630_v2 }
  0xfc   : > { %v532_v47 = vpop.xlane.xlu0 %531 }
  0xfd   : > { %v551_v11 = vmul.f32 0.00390625, %v532_v47  ;;  %v955_v47 = vld [vmem:[%s10405_s4 + $0x20] sm:$0xff] }
  0xfe   : > { %v633_v26 = vpop.xlane.xlu1 %632 }
  0xff   : > { %v649_v1 = vmul.f32 0.00390625, %v633_v26  ;;  %v960_v26 = vld [vmem:[%s10405_s4 + $0x48] sm:$0xff] }
 0x100   : > { %v535_v15 = vpop.xlane.xlu0 %534 }
 0x101   : > { %v552_v62 = vmul.f32 0.00390625, %v535_v15 }
 0x102   : > { %v730_v55 = vpop.xlane.xlu1 %729 }
 0x103   : > { %v746_v10 = vmul.f32 0.00390625, %v730_v55  ;;  %v860_v15 = vsel %vm844_vm0, %v552_v62, %v649_v1  ;;  %v859_v55 = vsel %vm844_vm0, %v551_v11, %v648_v54  ;;  %v962_v62 = vld [vmem:[%s10405_s4 + $0x58] sm:$0xff]  ;;  %v964_v54 = vld [vmem:[%s10405_s4 + $0x68] sm:$0xff] }
 0x104   : > { %v727_v32 = vpop.xlane.xlu0 %726 }
 0x105   : > { %v745_v33 = vmul.f32 0.00390625, %v727_v32  ;;  %v877_v2 = vsel %vm861_vm1, %v860_v15, %v746_v10  ;;  %v956_v10 = vld [vmem:[%s10405_s4 + $0x28] sm:$0xff] }
 0x106   : > { %v827_v45 = vpop.xlane.xlu1 %826 }
 0x108   : > { %1006 = vperm.xlu1 %5453, %v952_v25   ;;  %v954_v25 = vld [vmem:[%s10405_s4 + $0x18] sm:$0xff]  ;;  %v824_v51 = vpop.xlane.xlu0 %823 }
 0x109   : > { %v842_v32 = vmul.f32 0.00390625, %v824_v51 }
 0x10a   : > { %v529_v0 = vpop.xlane.xlu1 %528 }
 0x10c   : > { %1011 = vperm.xlu1 %5453, %v953_v50   ;;  %v843_v50 = vmul.f32 0.00390625, %v827_v45  ;;  %v526_v45 = vpop.xlane.xlu0 %525 }
 0x10e   : > { %1001 = vperm.xlu0 %5452, %v951_v36   ;;  %v876_v36 = vsel %vm861_vm1, %v859_v55, %v745_v33  ;;  %v627_v51 = vpop.xlane.xlu1 %626 }
 0x10f   : > { %v893_v13 = vsel %vm878_vm2, %v876_v36, %v842_v32  ;;  %v647_v15 = vmul.f32 0.00390625, %v627_v51  ;;  %v550_v32 = vmul.f32 0.00390625, %v529_v0  ;;  %v959_v0 = vld [vmem:[%s10405_s4 + $0x40] sm:$0xff] }
 0x110   : > { %1016 = vperm.xlu1 %5453, %v954_v25   ;;  %v894_v25 = vsel %vm878_vm2, %v877_v2, %v843_v50  ;;  %v624_v11 = vpop.xlane.xlu0 %623  ;;  %v958_v2 = vld [vmem:[%s10405_s4 + $0x38] sm:$0xff] }
 0x111   : > { %v950_v1 = vpack.c.bf16 %v894_v25, %v893_v13  ;;  %v957_v13 = vld [vmem:[%s10405_s4 + $0x30] sm:$0xff]  ;;  %v549_v25 = vmul.f32 0.00390625, %v526_v45 }
 0x112   : > { %1046 = vperm.xlu0 %5452, %v960_v26   ;;  %v724_v33 = vpop.xlane.xlu1 %723  ;;  %v966_v26 = vld [vmem:[%s10405_s4 + $0x78] sm:$0xff] }
 0x113   : > { %5246 = vmatprep.subr.bf16.mxu0 %v950_v1  ;;  %5342 = vmatprep.subr.bf16.mxu1 %v950_v1  ;;  %v744_v55 = vmul.f32 0.00390625, %v724_v33 }
 0x114   : > { %1021 = vperm.xlu1 %5453, %v955_v47   ;;  %5247 = vmatpush3.bf16.msra.mxu0 %v950_v1  ;;  %v721_v50 = vpop.xlane.xlu0 %720  ;;  %v646_v47 = vmul.f32 0.00390625, %v624_v11 }
 0x115   : > { %5350 = vmatpush3.bf16.msra.mxu1 %v950_v1  ;;  %v743_v36 = vmul.f32 0.00390625, %v721_v50  ;;  %v968_v1 = vld [vmem:[%s10405_s4 + $0x88] sm:$0xff] }
 0x116   : > { %1056 = vperm.xlu0 %5452, %v962_v62   ;;  %v821_v62 = vpop.xlane.xlu1 %820  ;;  %v857_v11 = vsel %vm844_vm0, %v549_v25, %v646_v47  ;;  %v972_v25 = vld [vmem:[%s10405_s4 + $0xa8] sm:$0xff] }
 0x117   : > { %v841_v51 = vmul.f32 0.00390625, %v821_v62  ;;  %v874_v45 = vsel %vm861_vm1, %v857_v11, %v743_v36 }
 0x118   : > { %1026 = vperm.xlu1 %5453, %v956_v10   ;;  %v858_v10 = vsel %vm844_vm0, %v550_v32, %v647_v15 }
 0x11a   : > { %1066 = vperm.xlu0 %5452, %v964_v54   ;;  %v818_v54 = vpop.xlane.xlu0 %817  ;;  %v523_v15 = vpop.xlane.xlu1 %522 }
 0x11b   : > { %v840_v33 = vmul.f32 0.00390625, %v818_v54 }
 0x11c   : > { %1031 = vperm.xlu1 %5453, %v957_v13   ;;  %v875_v13 = vsel %vm861_vm1, %v858_v10, %v744_v55  ;;  %v961_v55 = vld [vmem:[%s10405_s4 + $0x50] sm:$0xff]  ;;  %v974_v10 = vld [vmem:[%s10405_s4 + $0xb8] sm:$0xff] }
 0x11d   : > { %v891_v50 = vsel %vm878_vm2, %v874_v45, %v840_v33  ;;  %v548_v45 = vmul.f32 0.00390625, %v523_v15  ;;  %v967_v15 = vld [vmem:[%s10405_s4 + $0x80] sm:$0xff] }
 0x11e   : > { %1076 = vperm.xlu0 %5452, %v966_v26   ;;  %v892_v26 = vsel %vm878_vm2, %v875_v13, %v841_v51  ;;  %v520_v32 = vpop.xlane.xlu0 %519  ;;  %v621_v36 = vpop.xlane.xlu1 %620 }
 0x11f   : > { %v949_v47 = vpack.c.bf16 %v892_v26, %v891_v50  ;;  %v645_v54 = vmul.f32 0.00390625, %v621_v36  ;;  %v976_v50 = vld [vmem:[%s10405_s4 + $0xc8] sm:$0xff] }
 0x120   : > { %1036 = vperm.xlu1 %5453, %v958_v2   ;;  %v970_v2 = vld [vmem:[%s10405_s4 + $0x98] sm:$0xff] }
 0x121   : > { %5248 = vmatprep.subr.bf16.mxu0 %v949_v47  ;;  %5343 = vmatprep.subr.bf16.mxu1 %v949_v47 }
 0x122   : > { %1086 = vperm.xlu0 %5452, %v968_v1   ;;  %5249 = vmatpush3.bf16.msra.mxu0 %v949_v47  ;;  %v618_v62 = vpop.xlane.xlu0 %617  ;;  %v963_v1 = vld [vmem:[%s10405_s4 + $0x60] sm:$0xff]  ;;  %v718_v51 = vpop.xlane.xlu1 %717 }
 0x123   : > { %5351 = vmatpush3.bf16.msra.mxu1 %v949_v47  ;;  %v644_v13 = vmul.f32 0.00390625, %v618_v62  ;;  %v742_v33 = vmul.f32 0.00390625, %v718_v51 }
 0x124   : > { %1041 = vperm.xlu1 %5453, %v959_v0   ;;  %v965_v0 = vld [vmem:[%s10405_s4 + $0x70] sm:$0xff] }
 0x126   : > { %1096 = vperm.xlu0 %5452, %v970_v2   ;;  %v715_v11 = vpop.xlane.xlu0 %714  ;;  %v547_v2 = vmul.f32 0.00390625, %v520_v32 }
 0x127   : > { %v741_v26 = vmul.f32 0.00390625, %v715_v11 }
 0x128   : > { %1051 = vperm.xlu1 %5453, %v961_v55   ;;  %v856_v55 = vsel %vm844_vm0, %v548_v45, %v645_v54  ;;  %v855_v62 = vsel %vm844_vm0, %v547_v2, %v644_v13  ;;  %v978_v54 = vld [vmem:[%s10405_s4 + $0xd8] sm:$0xff] }
 0x12a   : > { %1106 = vperm.xlu0 %5452, %v972_v25  }
 0x12c   : > { %1061 = vperm.xlu1 %5453, %v963_v1   ;;  %v873_v1 = vsel %vm861_vm1, %v856_v55, %v742_v33  ;;  %v969_v33 = vld [vmem:[%s10405_s4 + $0x90] sm:$0xff]  ;;  %v982_v55 = vld [vmem:[%s10405_s4 + $0xf8] sm:$0xff] }
 0x12e   : > { %1116 = vperm.xlu0 %5452, %v974_v10   ;;  %v872_v10 = vsel %vm861_vm1, %v855_v62, %v741_v26  ;;  %v980_v26 = vld [vmem:[%s10405_s4 + $0xe8] sm:$0xff] }
 0x130   : > { %v815_v47 = vpop.xlane.xlu1 %814  ;;  %1071 = vperm.xlu1 %5453, %v965_v0  }
 0x131   : > { %v839_v36 = vmul.f32 0.00390625, %v815_v47  ;;  %v812_v25 = vpop.xlane.xlu0 %811  ;;  %v971_v47 = vld [vmem:[%s10405_s4 + $0xa0] sm:$0xff] }
 0x132   : > { %v838_v51 = vmul.f32 0.00390625, %v812_v25  ;;  %1126 = vperm.xlu0 %5452, %v976_v50  }
 0x133   : > { %v890_v32 = vsel %vm878_vm2, %v873_v1, %v839_v36 }
 0x134   : > { %v889_v11 = vsel %vm878_vm2, %v872_v10, %v838_v51  ;;  %v517_v0 = vpop.xlane.xlu1 %516  ;;  %1081 = vperm.xlu1 %5453, %v967_v15   ;;  %v973_v15 = vld [vmem:[%s10405_s4 + $0xb0] sm:$0xff] }
 0x135   : > { %v948_v13 = vpack.c.bf16 %v890_v32, %v889_v11  ;;  %v514_v45 = vpop.xlane.xlu0 %513  ;;  %v546_v10 = vmul.f32 0.00390625, %v517_v0  ;;  %v975_v0 = vld [vmem:[%s10405_s4 + $0xc0] sm:$0xff] }
 0x136   : > { %1136 = vperm.xlu0 %5452, %v978_v54   ;;  %v984_v54 = vld [vmem:[%s10405_s4 + $0x108] sm:$0xff]  ;;  %v545_v11 = vmul.f32 0.00390625, %v514_v45 }
 0x137   : > { %5250 = vmatprep.subr.bf16.mxu0 %v948_v13  ;;  %5344 = vmatprep.subr.bf16.mxu1 %v948_v13 }
 0x138   : > { %5251 = vmatpush3.bf16.msra.mxu0 %v948_v13  ;;  %5352 = vmatpush3.bf16.msra.mxu1 %v948_v13  ;;  %v615_v50 = vpop.xlane.xlu1 %614 }
 0x139   : > { %v612_v2 = vpop.xlane.xlu0 %611  ;;  %1091 = vperm.xlu1 %5453, %v969_v33   ;;  %v643_v25 = vmul.f32 0.00390625, %v615_v50 }
 0x13a   : > { %1146 = vperm.xlu0 %5452, %v980_v26   ;;  %v642_v1 = vmul.f32 0.00390625, %v612_v2 }
 0x13b   : > { %v854_v33 = vsel %vm844_vm0, %v546_v10, %v643_v25  ;;  %v986_v25 = vld [vmem:[%s10405_s4 + $0x118] sm:$0xff] }
 0x13c   : > { %v712_v36 = vpop.xlane.xlu1 %711  ;;  %v853_v2 = vsel %vm844_vm0, %v545_v11, %v642_v1 }
 0x13d   : > { %v709_v62 = vpop.xlane.xlu0 %708  ;;  %1101 = vperm.xlu1 %5453, %v971_v47   ;;  %v740_v51 = vmul.f32 0.00390625, %v712_v36 }
 0x13e   : > { %1156 = vperm.xlu0 %5452, %v982_v55   ;;  %v739_v32 = vmul.f32 0.00390625, %v709_v62 }
 0x13f   : > { %v871_v47 = vsel %vm861_vm1, %v854_v33, %v740_v51  ;;  %v977_v51 = vld [vmem:[%s10405_s4 + $0xd0] sm:$0xff]  ;;  %v990_v33 = vld [vmem:[%s10405_s4 + $0x138] sm:$0xff] }
 0x140   : > { %v809_v13 = vpop.xlane.xlu1 %808  ;;  %v870_v55 = vsel %vm861_vm1, %v853_v2, %v739_v32  ;;  %v988_v32 = vld [vmem:[%s10405_s4 + $0x128] sm:$0xff] }
 0x141   : > { %v837_v26 = vmul.f32 0.00390625, %v809_v13  ;;  %v806_v50 = vpop.xlane.xlu0 %805  ;;  %1111 = vperm.xlu1 %5453, %v973_v15   ;;  %v979_v13 = vld [vmem:[%s10405_s4 + $0xe0] sm:$0xff] }
 0x142   : > { %v836_v36 = vmul.f32 0.00390625, %v806_v50  ;;  %1166 = vperm.xlu0 %5452, %v984_v54  }
 0x143   : > { %v888_v45 = vsel %vm878_vm2, %v871_v47, %v837_v26 }
 0x144   : > { %v887_v62 = vsel %vm878_vm2, %v870_v55, %v836_v36  ;;  %v511_v15 = vpop.xlane.xlu1 %510 }
 0x145   : > { %v947_v1 = vpack.c.bf16 %v888_v45, %v887_v62  ;;  %v508_v10 = vpop.xlane.xlu0 %507  ;;  %1121 = vperm.xlu1 %5453, %v975_v0   ;;  %v981_v0 = vld [vmem:[%s10405_s4 + $0xf0] sm:$0xff]  ;;  %v544_v55 = vmul.f32 0.00390625, %v511_v15  ;;  %v983_v15 = vld [vmem:[%s10405_s4 + $0x100] sm:$0xff] }
 0x146   : > { %1176 = vperm.xlu0 %5452, %v986_v25   ;;  %v992_v25 = vld [vmem:[%s10405_s4 + $0x148] sm:$0xff]  ;;  %v543_v62 = vmul.f32 0.00390625, %v508_v10 }
 0x147   : > { %5252 = vmatprep.subr.bf16.mxu0 %v947_v1  ;;  %5345 = vmatprep.subr.bf16.mxu1 %v947_v1 }
 0x148   : > { %5253 = vmatpush3.bf16.msra.mxu0 %v947_v1  ;;  %5353 = vmatpush3.bf16.msra.mxu1 %v947_v1  ;;  %v609_v54 = vpop.xlane.xlu1 %608 }
 0x149   : > { %v606_v11 = vpop.xlane.xlu0 %605  ;;  %1131 = vperm.xlu1 %5453, %v977_v51   ;;  %v641_v50 = vmul.f32 0.00390625, %v609_v54 }
 0x14a   : > { %1186 = vperm.xlu0 %5452, %v988_v32   ;;  %v640_v47 = vmul.f32 0.00390625, %v606_v11 }
 0x14b   : > { %v852_v51 = vsel %vm844_vm0, %v544_v55, %v641_v50  ;;  %v994_v50 = vld [vmem:[%s10405_s4 + $0x158] sm:$0xff] }
 0x14c   : > { %v706_v26 = vpop.xlane.xlu1 %705  ;;  %v851_v11 = vsel %vm844_vm0, %v543_v62, %v640_v47 }
 0x14d   : > { %v703_v2 = vpop.xlane.xlu0 %702  ;;  %1141 = vperm.xlu1 %5453, %v979_v13   ;;  %v738_v36 = vmul.f32 0.00390625, %v706_v26 }
 0x14e   : > { %1196 = vperm.xlu0 %5452, %v990_v33   ;;  %v737_v45 = vmul.f32 0.00390625, %v703_v2 }
 0x14f   : > { %v869_v13 = vsel %vm861_vm1, %v852_v51, %v738_v36  ;;  %v985_v36 = vld [vmem:[%s10405_s4 + $0x110] sm:$0xff]  ;;  %v998_v51 = vld [vmem:[%s10405_s4 + $0x178] sm:$0xff] }
 0x150   : > { %v803_v1 = vpop.xlane.xlu1 %802  ;;  %v868_v33 = vsel %vm861_vm1, %v851_v11, %v737_v45  ;;  %v996_v45 = vld [vmem:[%s10405_s4 + $0x168] sm:$0xff] }
 0x151   : > { %v835_v32 = vmul.f32 0.00390625, %v803_v1  ;;  %v800_v54 = vpop.xlane.xlu0 %799  ;;  %1151 = vperm.xlu1 %5453, %v981_v0   ;;  %v987_v1 = vld [vmem:[%s10405_s4 + $0x120] sm:$0xff] }
 0x152   : > { %v834_v26 = vmul.f32 0.00390625, %v800_v54  ;;  %1206 = vperm.xlu0 %5452, %v992_v25  }
 0x153   : > { %v886_v10 = vsel %vm878_vm2, %v869_v13, %v835_v32 }
 0x154   : > { %v885_v2 = vsel %vm878_vm2, %v868_v33, %v834_v26  ;;  %v505_v0 = vpop.xlane.xlu1 %504 }
 0x155   : > { %v946_v47 = vpack.c.bf16 %v886_v10, %v885_v2  ;;  %v502_v55 = vpop.xlane.xlu0 %501  ;;  %1161 = vperm.xlu1 %5453, %v983_v15   ;;  %v989_v15 = vld [vmem:[%s10405_s4 + $0x130] sm:$0xff]  ;;  %v542_v33 = vmul.f32 0.00390625, %v505_v0 }
 0x156   : > { %1216 = vperm.xlu0 %5452, %v994_v50   ;;  %v541_v50 = vmul.f32 0.00390625, %v502_v55 }
 0x157   : > { %5254 = vmatprep.subr.bf16.mxu0 %v946_v47  ;;  %5346 = vmatprep.subr.bf16.mxu1 %v946_v47 }
 0x158   : > { %5255 = vmatpush3.bf16.msra.mxu0 %v946_v47  ;;  %5354 = vmatpush3.bf16.msra.mxu1 %v946_v47  ;;  %v603_v25 = vpop.xlane.xlu1 %602 }
 0x159   : > { %v600_v62 = vpop.xlane.xlu0 %599  ;;  %1171 = vperm.xlu1 %5453, %v985_v36   ;;  %v639_v54 = vmul.f32 0.00390625, %v603_v25 }
 0x15a   : > { %1226 = vperm.xlu0 %5452, %v996_v45   ;;  %v638_v13 = vmul.f32 0.00390625, %v600_v62 }
 0x15b   : > { %v850_v47 = vsel %vm844_vm0, %v542_v33, %v639_v54 }
 0x15c   : > { %v700_v32 = vpop.xlane.xlu1 %699  ;;  %v849_v25 = vsel %vm844_vm0, %v541_v50, %v638_v13  ;;  %v993_v13 = vld [vmem:[%s10405_s4 + $0x150] sm:$0xff] }
 0x15d   : > { %v697_v11 = vpop.xlane.xlu0 %696  ;;  %1181 = vperm.xlu1 %5453, %v987_v1   ;;  %v736_v26 = vmul.f32 0.00390625, %v700_v32  ;;  %v991_v32 = vld [vmem:[%s10405_s4 + $0x140] sm:$0xff] }
 0x15e   : > { %1236 = vperm.xlu0 %5452, %v998_v51   ;;  %v735_v10 = vmul.f32 0.00390625, %v697_v11 }
 0x15f   : > { %v867_v1 = vsel %vm861_vm1, %v850_v47, %v736_v26 }
 0x160   : > { %v797_v2 = vpop.xlane.xlu1 %796  ;;  %v866_v51 = vsel %vm861_vm1, %v849_v25, %v735_v10  ;;  %v995_v10 = vld [vmem:[%s10405_s4 + $0x160] sm:$0xff]  ;;  %v997_v25 = vld [vmem:[%s10405_s4 + $0x170] sm:$0xff] }
 0x161   : > { %v833_v36 = vmul.f32 0.00390625, %v797_v2  ;;  %v794_v45 = vpop.xlane.xlu0 %793  ;;  %1191 = vperm.xlu1 %5453, %v989_v15  }
 0x162   : > { %v832_v62 = vmul.f32 0.00390625, %v794_v45 }
 0x163   : > { %v884_v0 = vsel %vm878_vm2, %v867_v1, %v833_v36 }
 0x164   : > { %v883_v55 = vsel %vm878_vm2, %v866_v51, %v832_v62  ;;  %v499_v11 = vpop.xlane.xlu1 %498 }
 0x165   : > { %v945_v54 = vpack.c.bf16 %v884_v0, %v883_v55  ;;  %v496_v33 = vpop.xlane.xlu0 %495  ;;  %1201 = vperm.xlu1 %5453, %v991_v32   ;;  %v540_v1 = vmul.f32 0.00390625, %v499_v11 }
 0x166   : > { %v539_v32 = vmul.f32 0.00390625, %v496_v33 }
 0x167   : > { %5256 = vmatprep.subr.bf16.mxu0 %v945_v54  ;;  %5347 = vmatprep.subr.bf16.mxu1 %v945_v54 }
 0x168   : > { %5257 = vmatpush3.bf16.msra.mxu0 %v945_v54  ;;  %5355 = vmatpush3.bf16.msra.mxu1 %v945_v54  ;;  %v597_v26 = vpop.xlane.xlu1 %596 }
 0x169   : > { %v594_v15 = vpop.xlane.xlu0 %593  ;;  %1211 = vperm.xlu1 %5453, %v993_v13   ;;  %v637_v2 = vmul.f32 0.00390625, %v597_v26 }
 0x16a   : > { %v636_v36 = vmul.f32 0.00390625, %v594_v15 }
 0x16b   : > { %v848_v0 = vsel %vm844_vm0, %v540_v1, %v637_v2 }
 0x16c   : > { %v694_v50 = vpop.xlane.xlu1 %693  ;;  %v847_v13 = vsel %vm844_vm0, %v539_v32, %v636_v36 }
 0x16d   : > { %v691_v47 = vpop.xlane.xlu0 %690  ;;  %1221 = vperm.xlu1 %5453, %v995_v10   ;;  %v734_v45 = vmul.f32 0.00390625, %v694_v50 }
 0x16e   : > { %v733_v62 = vmul.f32 0.00390625, %v691_v47 }
 0x16f   : > { %v865_v26 = vsel %vm861_vm1, %v848_v0, %v734_v45 }
 0x170   : > { %v791_v51 = vpop.xlane.xlu1 %790  ;;  %v864_v15 = vsel %vm861_vm1, %v847_v13, %v733_v62 }
 0x171   : > { %v831_v55 = vmul.f32 0.00390625, %v791_v51  ;;  %v788_v54 = vpop.xlane.xlu0 %787  ;;  %1231 = vperm.xlu1 %5453, %v997_v25  }
 0x172   : > { %v830_v10 = vmul.f32 0.00390625, %v788_v54 }
 0x173   : > { %v882_v50 = vsel %vm878_vm2, %v865_v26, %v831_v55 }
 0x174   : > { %v881_v43 = vsel %vm878_vm2, %v864_v15, %v830_v10  ;;  %v493_v11 = vpop.xlane.xlu1 %492 }
 0x175   : > { %v944_v47 = vpack.c.bf16 %v882_v50, %v881_v43  ;;  %v490_v33 = vpop.xlane.xlu0 %489  ;;  %v538_v0 = vmul.f32 0.00390625, %v493_v11  ;;  %v5513_v11 = vld [vmem:[#allocation7 + $0x8] sm:$0xff]  }
 0x176   : > { %v537_v54 = vmul.f32 0.00390625, %v490_v33  ;;  %v5514_v33 = vld [vmem:[#allocation7 + $0x88] sm:$0xff]  }
 0x177   : > { %5258 = vmatprep.subr.bf16.mxu0 %v944_v47  ;;  %5348 = vmatprep.subr.bf16.mxu1 %v944_v47 }
 0x178   : > { %5259 = vmatpush3.bf16.msra.mxu0 %v944_v47  ;;  %5356 = vmatpush3.bf16.msra.mxu1 %v944_v47  ;;  %v591_v2 = vpop.xlane.xlu1 %590 }
 0x179   : > { %v588_v25 = vpop.xlane.xlu0 %587  ;;  %v635_v36 = vmul.f32 0.00390625, %v591_v2 }
 0x17a   : > { %v634_v45 = vmul.f32 0.00390625, %v588_v25 }
 0x17b   : > { %v846_v13 = vsel %vm844_vm0, %v538_v0, %v635_v36  ;;  %v5515_v36 = vld [vmem:[#allocation7 + $0x10] sm:$0xff]   ;;  %v10877_v0 = vld [vmem:[#allocation18_spill] sm:$0xff] }
 0x17c   : > { %v688_v1 = vpop.xlane.xlu1 %687  ;;  %v845_v10 = vsel %vm844_vm0, %v537_v54, %v634_v45  ;;  %v10879_v54 = vld [vmem:[#allocation16_spill] sm:$0xff] }
 0x17d   : > { %v685_v32 = vpop.xlane.xlu0 %684  ;;  %v732_v51 = vmul.f32 0.00390625, %v688_v1 }
 0x17e   : > { %v731_v62 = vmul.f32 0.00390625, %v685_v32  ;;  %v10876_v32 = vld [vmem:[#allocation20_spill] sm:$0xff] }
 0x17f   : > { %v863_v15 = vsel %vm861_vm1, %v846_v13, %v732_v51  ;;  %v10878_v45 = vpack.c.bf16 %v10876_v32, %v10877_v0  ;;  %v5516_v51 = vld [vmem:[#allocation7 + $0x90] sm:$0xff]   ;;  %v5518_v32 = vld [vmem:[#allocation7 + $0x98] sm:$0xff]   ;;  %v10891_v0 = vld [vmem:[#allocation34_spill] sm:$0xff] }
 0x180   : > { %v785_v55 = vpop.xlane.xlu1 %784  ;;  %v862_v47 = vsel %vm861_vm1, %v845_v10, %v731_v62  ;;  %v10882_v13 = vld [vmem:[#allocation19_spill] sm:$0xff]  ;;  %v10885_v10 = vld [vmem:[#allocation30_spill] sm:$0xff] }
 0x181   : > { %v829_v26 = vmul.f32 0.00390625, %v785_v55  ;;  %v782_v43 = vpop.xlane.xlu0 %781  ;;  %v10880_v55 = vld [vmem:[#allocation14_spill] sm:$0xff] }
 0x182   : > { %v828_v50 = vmul.f32 0.00390625, %v782_v43  ;;  %v10881_v62 = vpack.c.bf16 %v10879_v54, %v10880_v55  ;;  %v10895_v54 = vld [vmem:[#allocation31_spill] sm:$0xff] }
 0x183   : > { %v880_v2 = vsel %vm878_vm2, %v863_v15, %v829_v26  ;;  %v10883_v26 = vld [vmem:[#allocation17_spill] sm:$0xff]  ;;  %v10886_v15 = vld [vmem:[#allocation32_spill] sm:$0xff] }
 0x184   : > { %v879_v25 = vsel %vm878_vm2, %v862_v47, %v828_v50  ;;  %v10884_v43 = vpack.c.bf16 %v10882_v13, %v10883_v26  ;;  %v10887_v50 = vpack.c.bf16 %v10885_v10, %v10886_v15  ;;  %v10888_v47 = vld [vmem:[#allocation15_spill] sm:$0xff]  ;;  %v10898_v13 = vld [vmem:[#allocation48_spill] sm:$0xff] }
 0x185   : > { %v943_v1 = vpack.c.bf16 %v880_v2, %v879_v25  ;;  %v10889_v2 = vld [vmem:[#allocation13_spill] sm:$0xff]  ;;  %v10901_v10 = vld [vmem:[#allocation35_spill] sm:$0xff] }
 0x186   : > { %v10890_v25 = vpack.c.bf16 %v10888_v47, %v10889_v2  ;;  %v10904_v47 = vld [vmem:[#allocation47_spill] sm:$0xff] }
 0x187   : > { %5260 = vmatprep.subr.bf16.mxu0 %v943_v1  ;;  %5349 = vmatprep.subr.bf16.mxu1 %v943_v1 }
 0x188   : > { %5261 = vmatpush3.bf16.msra.mxu0 %v943_v1  ;;  %5357 = vmatpush3.bf16.msra.mxu1 %v943_v1  ;;  %v5517_v1 = vld [vmem:[#allocation7 + $0x18] sm:$0xff]  }
 0x189   : > { %1789 = vmatprep.subr.bf16.mxu1 %v10878_v45  ;;  %2500 = vmatprep.subr.bf16.mxu0 %v10881_v62  ;;  %v10892_v45 = vld [vmem:[#allocation36_spill] sm:$0xff]  ;;  %v10897_v62 = vld [vmem:[#allocation46_spill] sm:$0xff] }
 0x18a   : > { %v10899_v26 = vpack.c.bf16 %v10897_v62, %v10898_v13  ;;  %v10911_v62 = vld [vmem:[#allocation51_spill] sm:$0xff] }
 0x18b   : > { %5263 = vmatmul.mubr.bf16.vlgmr.msra.gmra.mxu0 %v5513_v11  ;;  %5295 = vmatmul.mubr.bf16.vlgmr.msra.gmra.mxu1 %v5514_v33  ;;  %v10893_v11 = vpack.c.bf16 %v10891_v0, %v10892_v45  ;;  %v10894_v33 = vld [vmem:[#allocation29_spill] sm:$0xff]  ;;  %v10907_v0 = vld [vmem:[#allocation50_spill] sm:$0xff]  ;;  %v10908_v45 = vld [vmem:[#allocation52_spill] sm:$0xff] }
 0x18c   : > { %1790 = vmatpush1.bf16.msra.mxu1 %v10884_v43  ;;  %5266 = vmatprep.mubr.bf16.mxu0 %v5515_v36  ;;  %v10896_v55 = vpack.c.bf16 %v10894_v33, %v10895_v54  ;;  %v5519_v36 = vld [vmem:[#allocation7 + $0x20] sm:$0xff]   ;;  %v5521_v33 = vld [vmem:[#allocation7 + $0x28] sm:$0xff]   ;;  %v5524_v13 = vld [vmem:[#allocation7 + $0xb0] sm:$0xff]  }
 0x18d   : > { %1791 = vmatprep.subr.bf16.mxu1 %v10887_v50  ;;  %5298 = vmatprep.mubr.bf16.mxu1 %v5516_v51  ;;  %v5520_v51 = vld [vmem:[#allocation7 + $0xa0] sm:$0xff]   ;;  %v5522_v54 = vld [vmem:[#allocation7 + $0xa8] sm:$0xff]  }
 0x18e   : > { %2501 = vmatpush1.bf16.msra.mxu0 %v10890_v25  ;;  %v10900_v43 = vld [vmem:[#allocation33_spill] sm:$0xff]  ;;  %v10906_v25 = vpack.c.bf16 %v6261_v60, %v6267_v61  ;;  %v10914_v60 = vpack.c.bf16 %v6275_v39, %v6283_v5  ;;  %v10915_v61 = vpack.c.bf16 %v6327_v22, %v6335_v16  ;;  %v10918_v5 = vpack.c.bf16 %v6272_v34, %v6280_v41  ;;  %v5526_v16 = vld [vmem:[#allocation7 + $0xb8] sm:$0xff]  }
 0x18f   : > { %2502 = vmatprep.subr.bf16.mxu0 %v10893_v11  ;;  %v10902_v15 = vpack.c.bf16 %v10900_v43, %v10901_v10  ;;  %v10903_v50 = vld [vmem:[#allocation45_spill] sm:$0xff]  ;;  %v10909_v11 = vpack.c.bf16 %v10907_v0, %v10908_v45  ;;  %v10919_v22 = vpack.c.bf16 %v6347_v30, %v6353_v38  ;;  %v10922_v39 = vpack.c.bf16 %v6338_v37, %v6350_v27  ;;  %v5530_v38 = vld [vmem:[#allocation7 + $0x50] sm:$0xff]   ;;  %v5534_v45 = vld [vmem:[#allocation7 + $0x68] sm:$0xff]  }
 0x190   : > { %1792 = vmatpush1.bf16.msra.mxu1 %v10896_v55  ;;  %v10905_v2 = vpack.c.bf16 %v10903_v50, %v10904_v47  ;;  %v10910_v55 = vld [vmem:[#allocation49_spill] sm:$0xff]  ;;  %v10923_v34 = vpack.c.bf16 %v10858_v59, %v10860_v46  ;;  %v10925_v30 = vmov 0   ;;  %v10928_v37 = vpack.c.bf16 %v6532_v4, %v10871_v48  ;;  %v10931_v59 = vld [vmem:[#allocation24_spill] sm:$0xff]  ;;  %v10935_v4 = vld [vmem:[#allocation23_spill] sm:$0xff] }
 0x191   : > { %1793 = vmatprep.subr.bf16.mxu1 %v10899_v26  ;;  %v10916_v26 = vpack.c.bf16 %v6324_v12, %v6332_v18  ;;  %v10920_v12 = vpack.c.bf16 %v6390_v31, %v6402_v9  ;;  %v5527_v18 = vld [vmem:[#allocation7 + $0x40] sm:$0xff]   ;;  %v10924_v9 = vpack.c.bf16 %v10870_v44, %v10872_v29  ;;  %v10927_v31 = vpack.c.bf16 %v10850_v53, %v10852_v3  ;;  %v10938_v3 = vld [vmem:[#allocation38_spill] sm:$0xff]  ;;  %v5531_v29 = vld [vmem:[#allocation7 + $0x58] sm:$0xff]  }
 0x192   : > { %2503 = vmatpush1.bf16.msra.mxu0 %v10902_v15  ;;  %v6958_v27 = vld [vmem:[#allocation6] sm:$0xff]   ;;  %v10929_v41 = vpack.c.bf16 %v6483_v52, %v10863_v19  ;;  %v10937_v52 = vpack.c.bf16 %v6555_v58, %v10874_v42  ;;  %v10939_v19 = vld [vmem:[#allocation40_spill] sm:$0xff]  ;;  %v6986_v44 = vld [vmem:[#allocation6 + $0x8] sm:$0xff]   ;;  %v10954_v0 = vpack.c.bf16 %v6295_v8, %v6301_v24 }
 0x193   : > { %5267 = vmatmul.mubr.bf16.gmra.mxu0 %v5517_v1  ;;  %5299 = vmatmul.mubr.bf16.gmra.mxu1 %v5518_v32  ;;  %v10912_v1 = vpack.c.bf16 %v10910_v55, %v10911_v62  ;;  %v10913_v32 = vpack.c.bf16 %v6258_v49, %v6264_v40  ;;  %v10917_v40 = vpack.c.bf16 %v6399_v6, %v10849_v63  ;;  %v5525_v49 = vld [vmem:[#allocation7 + $0x38] sm:$0xff]   ;;  %v10930_v63 = vld [vmem:[#allocation22_spill] sm:$0xff]  ;;  %v10934_v48 = vld [vmem:[#allocation21_spill] sm:$0xff] }
 0x194   : > { %1794 = vmatpush1.bf16.msra.mxu1 %v10905_v2  ;;  %5270 = vmatprep.mubr.bf16.mxu0 %v5519_v36  ;;  %v5523_v36 = vld [vmem:[#allocation7 + $0x30] sm:$0xff]   ;;  %v10921_v6 = vpack.c.bf16 %v10859_v21, %v10861_v20  ;;  %v10926_v20 = vpack.c.bf16 %v10851_v23, %v10853_v17  ;;  %v5528_v21 = vld [vmem:[#allocation7 + $0x48] sm:$0xff]   ;;  %v10932_v17 = vpack.c.bf16 %v10930_v63, %v10931_v59  ;;  %v10946_v50 = vld [vmem:[#allocation56_spill] sm:$0xff]  ;;  %v10543_v63 = vmov 1  }
 0x195   : > { %1795 = vmatprep.subr.bf16.mxu1 %v10906_v25  ;;  %5302 = vmatprep.mubr.bf16.mxu1 %v5520_v51  ;;  %v10933_v23 = vpack.c.bf16 %v6480_v57, %v10862_v28  ;;  %v10936_v53 = vpack.c.bf16 %v10934_v48, %v10935_v4  ;;  %v10940_v46 = vpack.c.bf16 %v10938_v3, %v10939_v19  ;;  %v5533_v51 = vld [vmem:[#allocation7 + $0x60] sm:$0xff]   ;;  %v10943_v43 = vld [vmem:[#allocation39_spill] sm:$0xff]  ;;  %v10945_v15 = vld [vmem:[#allocation54_spill] sm:$0xff] }
 0x196   : > { %2504 = vmatprep.subr.bf16.mxu0 %v10909_v11  ;;  %v10941_v57 = vpack.c.bf16 %v6546_v56, %v10873_v7  ;;  %v10942_v28 = vld [vmem:[#allocation37_spill] sm:$0xff]  ;;  %v10947_v58 = vpack.c.bf16 %v10945_v15, %v10946_v50  ;;  %v10948_v42 = vld [vmem:[#allocation26_spill] sm:$0xff]  ;;  %v10949_v47 = vld [vmem:[#allocation28_spill] sm:$0xff]  ;;  %5454 = vset.pattern.permute.xlu0 %v10543_v63 }
 0x197   : > { %2505 = vmatpush1.bf16.msra.mxu0 %v10912_v1  ;;  %v10944_v10 = vpack.c.bf16 %v10942_v28, %v10943_v43  ;;  %v10950_v2 = vpack.c.bf16 %v10948_v42, %v10949_v47  ;;  %v10951_v7 = vld [vmem:[#allocation53_spill] sm:$0xff]  ;;  %v10952_v56 = vld [vmem:[#allocation55_spill] sm:$0xff]  ;;  %v10956_v55 = vld [vmem:[#allocation66_spill] sm:$0xff] }
 0x198   : > { %1796 = vmatpush1.bf16.msra.mxu1 %v10913_v32  ;;  %2506 = vmatprep.subr.bf16.mxu0 %v10914_v60  ;;  %v10953_v25 = vpack.c.bf16 %v10951_v7, %v10952_v56  ;;  %v7008_v11 = vld [vmem:[#allocation6 + $0x10] sm:$0xff]   ;;  %v10957_v62 = vld [vmem:[#allocation68_spill] sm:$0xff]  ;;  %v10959_v8 = vld [vmem:[#allocation65_spill] sm:$0xff] }
 0x199   : > { %1797 = vmatprep.subr.bf16.mxu1 %v10915_v61  ;;  %v10958_v1 = vpack.c.bf16 %v10956_v55, %v10957_v62  ;;  %v10960_v24 = vld [vmem:[#allocation67_spill] sm:$0xff]  ;;  %v10963_v60 = vld [vmem:[#allocation81_spill] sm:$0xff]  ;;  %v10983_v59 = vld [vmem:[#allocation42_spill] sm:$0xff] }
 0x19a   : > { %v10961_v32 = vpack.c.bf16 %v10959_v8, %v10960_v24  ;;  %v7057_v48 = vld [vmem:[#allocation6 + $0x28] sm:$0xff]   ;;  %v10986_v4 = vld [vmem:[#allocation41_spill] sm:$0xff]  ;;  %v10990_v19 = vld [vmem:[#allocation60_spill] sm:$0xff] }
 0x19b   : > { %5271 = vmatmul.mubr.bf16.gmra.mxu0 %v5521_v33  ;;  %5303 = vmatmul.mubr.bf16.gmra.mxu1 %v5522_v54  ;;  %v5536_v33 = vld [vmem:[#allocation7 + $0x70] sm:$0xff]   ;;  %v10955_v54 = vpack.c.bf16 %v6286_v35, %v6298_v14  ;;  %v5537_v14 = vld [vmem:[#allocation7 + $0x78] sm:$0xff]   ;;  %v10989_v3 = vld [vmem:[#allocation58_spill] sm:$0xff] }
 0x19c   : > { %1798 = vmatpush1.bf16.msra.mxu1 %v10916_v26  ;;  %5274 = vmatprep.mubr.bf16.mxu0 %v5523_v36  ;;  %v10962_v36 = vld [vmem:[#allocation79_spill] sm:$0xff]  ;;  %v7024_v35 = vld [vmem:[#allocation6 + $0x18] sm:$0xff]   ;;  %v10995_v28 = vld [vmem:[#allocation62_spill] sm:$0xff] }
 0x19d   : > { %1799 = vmatprep.subr.bf16.mxu1 %v10917_v40  ;;  %5306 = vmatprep.mubr.bf16.mxu1 %v5524_v13  ;;  %v10964_v61 = vpack.c.bf16 %v10962_v36, %v10963_v60  ;;  %v10965_v13 = vld [vmem:[#allocation78_spill] sm:$0xff]  ;;  %v10966_v26 = vld [vmem:[#allocation80_spill] sm:$0xff]  ;;  %v7075_v15 = vld [vmem:[#allocation6 + $0x30] sm:$0xff]  }
 0x19e   : > { %2507 = vmatpush1.bf16.msra.mxu0 %v10918_v5  ;;  %v10967_v40 = vpack.c.bf16 %v10965_v13, %v10966_v26  ;;  %v10968_v5 = vld [vmem:[#allocation93_spill] sm:$0xff]  ;;  %v10996_v43 = vld [vmem:[#allocation64_spill] sm:$0xff]  ;;  %v11001_v47 = vld [vmem:[#allocation70_spill] sm:$0xff] }
 0x19f   : > { %2508 = vmatprep.subr.bf16.mxu0 %v10919_v22  ;;  %v10971_v22 = vld [vmem:[#allocation92_spill] sm:$0xff]  ;;  %v10998_v50 = vld [vmem:[#allocation61_spill] sm:$0xff]  ;;  %v11010_v62 = vld [vmem:[#allocation82_spill] sm:$0xff] }
 0x1a0   : > { %1800 = vmatpush1.bf16.msra.mxu1 %v10920_v12  ;;  %v10972_v12 = vld [vmem:[#allocation94_spill] sm:$0xff]  ;;  %v11004_v56 = vld [vmem:[#allocation69_spill] sm:$0xff]  ;;  %v7093_v55 = vld [vmem:[#allocation6 + $0x38] sm:$0xff]  }
 0x1a1   : > { %1801 = vmatprep.subr.bf16.mxu1 %v10921_v6  ;;  %v10974_v6 = vld [vmem:[#allocation106_spill] sm:$0xff]  ;;  %v11013_v24 = vld [vmem:[#allocation97_spill] sm:$0xff]  ;;  %v11016_v60 = vld [vmem:[#allocation96_spill] sm:$0xff] }
 0x1a2   : > { %2509 = vmatpush1.bf16.msra.mxu0 %v10922_v39  ;;  %v10975_v39 = vld [vmem:[#allocation108_spill] sm:$0xff]  ;;  %v11019_v13 = vld [vmem:[#allocation110_spill] sm:$0xff] }
 0x1a3   : > { %5275 = vmatmul.mubr.bf16.gmra.mxu0 %v5525_v49  ;;  %5307 = vmatmul.mubr.bf16.gmra.mxu1 %v5526_v16  ;;  %v10969_v49 = vld [vmem:[#allocation95_spill] sm:$0xff]  ;;  %v11020_v26 = vld [vmem:[#allocation112_spill] sm:$0xff] }
 0x1a4   : > { %1802 = vmatpush1.bf16.msra.mxu1 %v10923_v34  ;;  %5278 = vmatprep.mubr.bf16.mxu0 %v5527_v18  ;;  %v10970_v16 = vpack.c.bf16 %v10968_v5, %v10969_v49  ;;  %v10973_v18 = vpack.c.bf16 %v10971_v22, %v10972_v12  ;;  %v10976_v34 = vpack.c.bf16 %v10974_v6, %v10975_v39  ;;  %v7111_v5 = vld [vmem:[#allocation6 + $0x40] sm:$0xff]   ;;  %v7120_v12 = vld [vmem:[#allocation6 + $0x48] sm:$0xff]   ;;  %v7132_v6 = vld [vmem:[#allocation6 + $0x58] sm:$0xff]  }
 0x1a5   : > { %1803 = vmatprep.subr.bf16.mxu1 %v10924_v9  ;;  %1821 = vmatprep.mubr.bf16.mxu1 %v10925_v30  ;;  %v7041_v9 = vld [vmem:[#allocation6 + $0x20] sm:$0xff]  }
 0x1a6   : > { %2510 = vmatprep.subr.bf16.mxu0 %v10926_v20  ;;  %v10977_v20 = vld [vmem:[#allocation105_spill] sm:$0xff] }
 0x1a7   : > { %2511 = vmatpush1.bf16.msra.mxu0 %v10927_v31  ;;  %v11022_v49 = vld [vmem:[#allocation109_spill] sm:$0xff] }
 0x1a8   : > { %1804 = vmatpush1.bf16.msra.mxu1 %v10928_v37  ;;  %2512 = vmatprep.subr.bf16.mxu0 %v10929_v41  ;;  %v10980_v37 = vld [vmem:[#allocation25_spill] sm:$0xff] }
 0x1a9   : > { %3204 = vmatprep.subr.bf16.mxu1 %v10932_v17  ;;  %v10984_v17 = vld [vmem:[#allocation44_spill] sm:$0xff]  ;;  %v7138_v39 = vld [vmem:[#allocation6 + $0x60] sm:$0xff]  }
 0x1ab   : > { %5279 = vmatmul.mubr.bf16.gmra.mxu0 %v5528_v21  ;;  %1822 = vmatmul.mubr.bf16.vlgmr.msra.gmra.mxu1 %v6958_v27  ;;  %v10978_v21 = vld [vmem:[#allocation107_spill] sm:$0xff] }
 0x1ac   : > { %5282 = vmatprep.mubr.bf16.mxu0 %v5530_v38  ;;  %1831 = vmatprep.mubr.bf16.mxu1 %v10925_v30  ;;  %v10979_v31 = vpack.c.bf16 %v10977_v20, %v10978_v21  ;;  %v10981_v38 = vld [vmem:[#allocation27_spill] sm:$0xff]  ;;  %v7152_v21 = vpop.permute.xlu1 %1006 }
 0x1ad   : > { %2513 = vmatpush1.bf16.msra.mxu0 %v10933_v23  ;;  %3205 = vmatpush1.bf16.msra.mxu1 %v10936_v53  ;;  %v10982_v41 = vpack.c.bf16 %v10980_v37, %v10981_v38  ;;  %v10985_v23 = vpack.c.bf16 %v10983_v59, %v10984_v17  ;;  %v10987_v53 = vld [vmem:[#allocation43_spill] sm:$0xff] }
 0x1ae   : > { %2514 = vmatprep.subr.bf16.mxu0 %v10937_v52  ;;  %3206 = vmatprep.subr.bf16.mxu1 %v10940_v46  ;;  %v10988_v52 = vpack.c.bf16 %v10986_v4, %v10987_v53  ;;  %v10991_v46 = vpack.c.bf16 %v10989_v3, %v10990_v19  ;;  %v7150_v20 = vld [vmem:[#allocation6 + $0x70] sm:$0xff]   ;;  %v1002_v4 = vpop.permute.xlu0 %1001 }
 0x1b0   : > { %v1012_v37 = vpop.permute.xlu1 %1011 }
 0x1b1   : > { %2515 = vmatpush1.bf16.msra.mxu0 %v10941_v57  ;;  %3207 = vmatpush1.bf16.msra.mxu1 %v10944_v10  ;;  %v10997_v10 = vpack.c.bf16 %v10995_v28, %v10996_v43 }
 0x1b2   : > { %3208 = vmatprep.subr.bf16.mxu1 %v10947_v58  ;;  %3908 = vmatprep.subr.bf16.mxu0 %v10950_v2  ;;  %v10999_v58 = vld [vmem:[#allocation63_spill] sm:$0xff]  ;;  %v11002_v2 = vld [vmem:[#allocation72_spill] sm:$0xff] }
 0x1b3   : > { %5283 = vmatmul.mubr.bf16.gmra.mxu0 %v5531_v29  ;;  %1832 = vmatmul.mubr.bf16.gmra.mxu1 %v6986_v44  ;;  %v10992_v29 = vld [vmem:[#allocation57_spill] sm:$0xff]  ;;  %v11000_v42 = vpack.c.bf16 %v10998_v50, %v10999_v58  ;;  %v11003_v7 = vpack.c.bf16 %v11001_v47, %v11002_v2  ;;  %v10541_v2 = vmov 2  }
 0x1b4   : > { %5286 = vmatprep.mubr.bf16.mxu0 %v5533_v51  ;;  %1841 = vmatprep.mubr.bf16.mxu1 %v10925_v30  ;;  %v10993_v51 = vld [vmem:[#allocation59_spill] sm:$0xff]  ;;  %v1017_v38 = vpop.permute.xlu1 %1016 }
 0x1b5   : > { %3209 = vmatpush1.bf16.msra.mxu1 %v10953_v25  ;;  %v10994_v57 = vpack.c.bf16 %v10992_v29, %v10993_v51  ;;  %v11005_v25 = vld [vmem:[#allocation71_spill] sm:$0xff] }
 0x1b6   : > { %3210 = vmatprep.subr.bf16.mxu1 %v10954_v0  ;;  %v11006_v0 = vpack.c.bf16 %v11004_v56, %v11005_v25 }
 0x1b9   : > { %3211 = vmatpush1.bf16.msra.mxu1 %v10955_v54 }
 0x1ba   : > { %3212 = vmatprep.subr.bf16.mxu1 %v10958_v1  ;;  %v11011_v1 = vld [vmem:[#allocation84_spill] sm:$0xff] }
 0x1bb   : > { %5287 = vmatmul.mubr.bf16.gmra.mxu0 %v5534_v45  ;;  %1842 = vmatmul.mubr.bf16.gmra.mxu1 %v7008_v11  ;;  %v11007_v45 = vld [vmem:[#allocation83_spill] sm:$0xff]  ;;  %v11012_v8 = vpack.c.bf16 %v11010_v62, %v11011_v1  ;;  %v10545_v62 = vmov 3  }
 0x1bc   : > { %5290 = vmatprep.mubr.bf16.mxu0 %v5536_v33  ;;  %1851 = vmatprep.mubr.bf16.mxu1 %v10925_v30  ;;  %v11008_v33 = vld [vmem:[#allocation85_spill] sm:$0xff] }
 0x1bd   : > { %3213 = vmatpush1.bf16.msra.mxu1 %v10961_v32  ;;  %v11009_v54 = vpack.c.bf16 %v11007_v45, %v11008_v33  ;;  %v11014_v32 = vld [vmem:[#allocation99_spill] sm:$0xff] }
 0x1be   : > { %3214 = vmatprep.subr.bf16.mxu1 %v10964_v61  ;;  %v11015_v36 = vpack.c.bf16 %v11013_v24, %v11014_v32  ;;  %v11017_v61 = vld [vmem:[#allocation98_spill] sm:$0xff] }
 0x1c1   : > { %3215 = vmatpush1.bf16.msra.mxu1 %v10967_v40  ;;  %v11021_v40 = vpack.c.bf16 %v11019_v13, %v11020_v26 }
 0x1c2   : > { %3216 = vmatprep.subr.bf16.mxu1 %v10970_v16  ;;  %v11023_v16 = vld [vmem:[#allocation111_spill] sm:$0xff] }
 0x1c3   : > { %5291 = vmatmul.mubr.bf16.gmra.mxu0 %v5537_v14  ;;  %1852 = vmatmul.mubr.bf16.gmra.mxu1 %v7024_v35  ;;  %v11018_v14 = vpack.c.bf16 %v11016_v60, %v11017_v61  ;;  %v11024_v22 = vpack.c.bf16 %v11022_v49, %v11023_v16 }
 0x1c4   : > { %1861 = vmatprep.mubr.bf16.mxu1 %v10925_v30  ;;  %2532 = vmatprep.mubr.bf16.mxu0 %v10925_v30 }
 0x1c5   : > { %3217 = vmatpush1.bf16.msra.mxu1 %v10973_v18  ;;  %v7126_v18 = vld [vmem:[#allocation6 + $0x50] sm:$0xff]  }
 0x1c6   : > { %3218 = vmatprep.subr.bf16.mxu1 %v10976_v34  ;;  %v7144_v34 = vld [vmem:[#allocation6 + $0x68] sm:$0xff]  }
 0x1c9   : > { %3219 = vmatpush1.bf16.msra.mxu1 %v10979_v31  ;;  %v7158_v31 = vld [vmem:[#allocation6 + $0x78] sm:$0xff]  }
 0x1cb   : > { %1862 = vmatmul.mubr.bf16.gmra.mxu1 %v7041_v9  ;;  %2533 = vmatmul.mubr.bf16.vlgmr.msra.gmra.mxu0 %v6958_v27 }
 0x1cc   : > { %1871 = vmatprep.mubr.bf16.mxu1 %v10925_v30  ;;  %2542 = vmatprep.mubr.bf16.mxu0 %v10925_v30 }
 0x1cd   : > { %3909 = vmatpush1.bf16.msra.mxu0 %v10982_v41  ;;  %v7166_v41 = vpop.permute.xlu1 %1021 }
 0x1ce   : > { %3910 = vmatprep.subr.bf16.mxu0 %v10985_v23 }
 0x1d1   : > { %3911 = vmatpush1.bf16.msra.mxu0 %v10988_v52  ;;  %v7170_v59 = vpop.permute.xlu1 %1026  ;;  %v7190_v52 = vpop.permute.xlu0 %1046 }
 0x1d2   : > { %3912 = vmatprep.subr.bf16.mxu0 %v10991_v46 }
 0x1d3   : > { %1872 = vmatmul.mubr.bf16.gmra.mxu1 %v7057_v48  ;;  %2543 = vmatmul.mubr.bf16.gmra.mxu0 %v6986_v44 }
 0x1d4   : > { %1881 = vmatprep.mubr.bf16.mxu1 %v10925_v30  ;;  %2552 = vmatprep.mubr.bf16.mxu0 %v10925_v30 }
 0x1d5   : > { %3913 = vmatpush1.bf16.msra.mxu0 %v10994_v57  ;;  %v7176_v17 = vpop.permute.xlu1 %1031  ;;  %v7198_v29 = vpop.permute.xlu0 %1056 }
 0x1d6   : > { %3914 = vmatprep.subr.bf16.mxu0 %v10997_v10 }
 0x1d9   : > { %3915 = vmatpush1.bf16.msra.mxu0 %v11000_v42  ;;  %v7182_v23 = vpop.permute.xlu1 %1036  ;;  %v7216_v47 = vpop.permute.xlu0 %1066 }
 0x1da   : > { %3916 = vmatprep.subr.bf16.mxu0 %v11003_v7 }
 0x1db   : > { %1882 = vmatmul.mubr.bf16.gmra.mxu1 %v7075_v15  ;;  %2553 = vmatmul.mubr.bf16.gmra.mxu0 %v7008_v11 }
 0x1dc   : > { %1891 = vmatprep.mubr.bf16.mxu1 %v10925_v30  ;;  %2562 = vmatprep.mubr.bf16.mxu0 %v10925_v30 }
 0x1dd   : > { %3917 = vmatpush1.bf16.msra.mxu0 %v11006_v0  ;;  %v7186_v53 = vpop.permute.xlu1 %1041  ;;  %v7240_v1 = vpop.permute.xlu0 %1076 }
 0x1de   : > { %3918 = vmatprep.subr.bf16.mxu0 %v11009_v54 }
 0x1e1   : > { %3919 = vmatpush1.bf16.msra.mxu0 %v11012_v8  ;;  %v7192_v3 = vpop.permute.xlu1 %1051  ;;  %v1087_v26 = vpop.permute.xlu0 %1086 }
 0x1e2   : > { %3920 = vmatprep.subr.bf16.mxu0 %v11015_v36 }
 0x1e3   : > { %1892 = vmatmul.mubr.bf16.gmra.mxu1 %v7093_v55  ;;  %2563 = vmatmul.mubr.bf16.gmra.mxu0 %v7024_v35 }
 0x1e4   : > { %1901 = vmatprep.mubr.bf16.mxu1 %v10925_v30  ;;  %2572 = vmatprep.mubr.bf16.mxu0 %v10925_v30 }
 0x1e5   : > { %3921 = vmatpush1.bf16.msra.mxu0 %v11018_v14  ;;  %v7210_v50 = vpop.permute.xlu1 %1061 }
 0x1e6   : > { %3922 = vmatprep.subr.bf16.mxu0 %v11021_v40 }
 0x1e9   : > { %3923 = vmatpush1.bf16.msra.mxu0 %v11024_v22  ;;  %v7233_v33 = vpop.permute.xlu1 %1071 }
 0x1eb   : > { %1902 = vmatmul.mubr.bf16.gmra.mxu1 %v7111_v5  ;;  %2573 = vmatmul.mubr.bf16.gmra.mxu0 %v7041_v9 }
 0x1ec   : > { %1911 = vmatprep.mubr.bf16.mxu1 %v10925_v30  ;;  %2582 = vmatprep.mubr.bf16.mxu0 %v10925_v30 }
 0x1ed   : > { %v1082_v61 = vpop.permute.xlu1 %1081 }
 0x1f1   : > { %v1092_v22 = vpop.permute.xlu1 %1091 }
 0x1f3   : > { %1912 = vmatmul.mubr.bf16.gmra.mxu1 %v7120_v12  ;;  %2583 = vmatmul.mubr.bf16.gmra.mxu0 %v7057_v48 }
 0x1f4   : > { %1921 = vmatprep.mubr.bf16.mxu1 %v10925_v30  ;;  %2592 = vmatprep.mubr.bf16.mxu0 %v10925_v30 }
 0x1fb   : > { %1922 = vmatmul.mubr.bf16.gmra.mxu1 %v7126_v18  ;;  %2593 = vmatmul.mubr.bf16.gmra.mxu0 %v7075_v15 }
 0x1fc   : > { %1931 = vmatprep.mubr.bf16.mxu1 %v10925_v30  ;;  %2602 = vmatprep.mubr.bf16.mxu0 %v10925_v30 }
 0x203   : > { %1932 = vmatmul.mubr.bf16.gmra.mxu1 %v7132_v6  ;;  %2603 = vmatmul.mubr.bf16.gmra.mxu0 %v7093_v55 }
 0x204   : > { %1941 = vmatprep.mubr.bf16.mxu1 %v10925_v30  ;;  %2612 = vmatprep.mubr.bf16.mxu0 %v10925_v30 }
 0x20b   : > { %1942 = vmatmul.mubr.bf16.gmra.mxu1 %v7138_v39  ;;  %2613 = vmatmul.mubr.bf16.gmra.mxu0 %v7111_v5 }
 0x20c   : > { %1951 = vmatprep.mubr.bf16.mxu1 %v10925_v30  ;;  %2622 = vmatprep.mubr.bf16.mxu0 %v10925_v30 }
 0x213   : > { %1952 = vmatmul.mubr.bf16.gmra.mxu1 %v7144_v34  ;;  %2623 = vmatmul.mubr.bf16.gmra.mxu0 %v7120_v12 }
 0x214   : > { %1961 = vmatprep.mubr.bf16.mxu1 %v10925_v30  ;;  %2632 = vmatprep.mubr.bf16.mxu0 %v10925_v30 }
 0x21b   : > { %1962 = vmatmul.mubr.bf16.gmra.mxu1 %v7150_v20  ;;  %2633 = vmatmul.mubr.bf16.gmra.mxu0 %v7126_v18 }
 0x21c   : > { %1971 = vmatprep.mubr.bf16.mxu1 %v10925_v30  ;;  %2642 = vmatprep.mubr.bf16.mxu0 %v10925_v30 }
 0x223   : > { %1972 = vmatmul.mubr.bf16.gmra.mxu1 %v7158_v31  ;;  %2643 = vmatmul.mubr.bf16.gmra.mxu0 %v7132_v6 }
 0x224   : > { %2652 = vmatprep.mubr.bf16.mxu0 %v10925_v30  ;;  %3236 = vmatprep.mubr.bf16.mxu1 %v10925_v30 }
 0x22b   : > { %2653 = vmatmul.mubr.bf16.gmra.mxu0 %v7138_v39  ;;  %3237 = vmatmul.mubr.bf16.vlgmr.msra.gmra.mxu1 %v6958_v27 }
 0x22c   : > { %2662 = vmatprep.mubr.bf16.mxu0 %v10925_v30  ;;  %3246 = vmatprep.mubr.bf16.mxu1 %v10925_v30 }
 0x233   : > { %2663 = vmatmul.mubr.bf16.gmra.mxu0 %v7144_v34  ;;  %3247 = vmatmul.mubr.bf16.gmra.mxu1 %v6986_v44 }
 0x234   : > { %2672 = vmatprep.mubr.bf16.mxu0 %v10925_v30  ;;  %3256 = vmatprep.mubr.bf16.mxu1 %v10925_v30 }
 0x23b   : > { %2673 = vmatmul.mubr.bf16.gmra.mxu0 %v7150_v20  ;;  %3257 = vmatmul.mubr.bf16.gmra.mxu1 %v7008_v11 }
 0x23c   : > { %2682 = vmatprep.mubr.bf16.mxu0 %v10925_v30  ;;  %3266 = vmatprep.mubr.bf16.mxu1 %v10925_v30 }
 0x243   : > { %2683 = vmatmul.mubr.bf16.gmra.mxu0 %v7158_v31  ;;  %3267 = vmatmul.mubr.bf16.gmra.mxu1 %v7024_v35 }
 0x244   : > { %3276 = vmatprep.mubr.bf16.mxu1 %v10925_v30  ;;  %3940 = vmatprep.mubr.bf16.mxu0 %v10925_v30 }
 0x24b   : > { %v5264_v19 = vpop.f32.mrf.mxu0  ;;  %v7194_v46 = vpop.f32.mrf.mxu1  ;;  %3277 = vmatmul.mubr.bf16.gmra.mxu1 %v7041_v9  ;;  %3941 = vmatmul.mubr.bf16.vlgmr.msra.gmra.mxu0 %v6958_v27 }
 0x24c   : > { %11025 = vst [vmem:[#allocation73_spill] sm:$0xff] %v7194_v46  ;;  %v7200_v51 = vadd.f32 %v5264_v19, %v1012_v37  ;;  %3286 = vmatprep.mubr.bf16.mxu1 %v10925_v30  ;;  %3950 = vmatprep.mubr.bf16.mxu0 %v10925_v30 }
 0x24d   : > { %v1417_v57 = vpop.f32.mrf.mxu0  ;;  %v7204_v28 = vpop.f32.mrf.mxu1 }
 0x24e   : > { %11026 = vst [vmem:[#allocation74_spill] sm:$0xff] %v7204_v28  ;;  %2702 = vperm.xlu0 %5454, %v7200_v51   ;;  %1994 = vperm.xlu1 %5453, %v7200_v51   ;;  %v7212_v27 = vadd.f32 %v1417_v57, %v1002_v4  ;;  %v1097_v4 = vpop.permute.xlu0 %1096 }
 0x24f   : > { %v5265_v43 = vpop.f32.mrf.mxu0  ;;  %v7208_v10 = vpop.f32.mrf.mxu1 }
 0x250   : > { %11027 = vst [vmem:[#allocation75_spill] sm:$0xff] %v7208_v10  ;;  %v7226_v25 = vadd.f32 %v5265_v43, %v1017_v38 }
 0x251   : > { %v1420_v58 = vpop.f32.mrf.mxu0  ;;  %v7214_v42 = vpop.f32.mrf.mxu1 }
 0x252   : > { %11028 = vst [vmem:[#allocation76_spill] sm:$0xff] %v7214_v42  ;;  %5455 = vset.pattern.permute.xlu1 %v10541_v2  ;;  %2694 = vperm.xlu0 %5454, %v7212_v27   ;;  %v7244_v8 = vadd.f32 %v1420_v58, %v7152_v21  ;;  %v7306_v63 = vpop.permute.xlu0 %1106 }
 0x253   : > { %v7220_v7 = vpop.f32.mrf.mxu1  ;;  %3406 = vperm.xlu1 %5455, %v7200_v51   ;;  %v5268_v56 = vpop.f32.mrf.mxu0  ;;  %3287 = vmatmul.mubr.bf16.gmra.mxu1 %v7057_v48 }
 0x254   : > { %11029 = vst [vmem:[#allocation77_spill] sm:$0xff] %v7220_v7  ;;  %3951 = vmatmul.mubr.bf16.gmra.mxu0 %v6986_v44  ;;  %3296 = vmatprep.mubr.bf16.mxu1 %v10925_v30  ;;  %v7275_v21 = vadd.f32 %v5268_v56, %v7176_v17 }
 0x255   : > { %v7228_v0 = vpop.f32.mrf.mxu0  ;;  %v7230_v45 = vpop.f32.mrf.mxu1  ;;  %3960 = vmatprep.mubr.bf16.mxu0 %v10925_v30 }
 0x256   : > { %11030 = vst [vmem:[#allocation86_spill] sm:$0xff] %v7230_v45  ;;  %5460 = vset.pattern.permute.xlu0 %v10925_v30 }
 0x257   : > { %v7236_v54 = vpop.f32.mrf.mxu1  ;;  %5456 = vset.pattern.permute.xlu1 %v10545_v62  ;;  %v5269_v44 = vpop.f32.mrf.mxu0  ;;  %1999 = vperm.xlu0 %5460, %v7226_v25  }
 0x258   : > { %11031 = vst [vmem:[#allocation87_spill] sm:$0xff] %v7236_v54  ;;  %4110 = vperm.xlu1 %5456, %v7200_v51   ;;  %v7293_v17 = vadd.f32 %v5269_v44, %v7182_v23 }
 0x259   : > { %v1436_v24 = vpop.f32.mrf.mxu0  ;;  %v7246_v32 = vpop.f32.mrf.mxu1 }
 0x25a   : > { %11032 = vst [vmem:[#allocation88_spill] sm:$0xff] %v7246_v32  ;;  %v7309_v23 = vadd.f32 %v1436_v24, %v7170_v59  ;;  %v11042_v32 = vmov 2  }
 0x25b   : > { %v7248_v36 = vpop.f32.mrf.mxu0  ;;  %v7250_v60 = vpop.f32.mrf.mxu1  ;;  %1989 = vperm.xlu0 %5460, %v7244_v8   ;;  %3297 = vmatmul.mubr.bf16.gmra.mxu1 %v7075_v15 }
 0x25c   : > { %11033 = vst [vmem:[#allocation89_spill] sm:$0xff] %v7250_v60  ;;  %3961 = vmatmul.mubr.bf16.gmra.mxu0 %v7008_v11  ;;  %5457 = vset.pattern.permute.xlu1 %v10925_v30 }
 0x25d   : > { %v7256_v14 = vpop.f32.mrf.mxu0  ;;  %v7258_v13 = vpop.f32.mrf.mxu1  ;;  %1984 = vperm.xlu1 %5457, %v7212_v27   ;;  %3306 = vmatprep.mubr.bf16.mxu1 %v10925_v30 }
 0x25e   : > { %11034 = vst [vmem:[#allocation90_spill] sm:$0xff] %v7258_v13  ;;  %3970 = vmatprep.mubr.bf16.mxu0 %v10925_v30 }
 0x25f   : > { %v7263_v40 = vpop.f32.mrf.mxu0  ;;  %v7265_v49 = vpop.f32.mrf.mxu1  ;;  %5466 = vset.pattern.permute.xlu0 %v10545_v62 }
 0x260   : > { %11035 = vst [vmem:[#allocation91_spill] sm:$0xff] %v7265_v49  ;;  %4106 = vperm.xlu0 %5466, %v7244_v8  }
 0x261   : > { %v7269_v11 = vpop.f32.mrf.mxu0  ;;  %v7271_v16 = vpop.f32.mrf.mxu1  ;;  %5458 = vset.pattern.permute.xlu1 %v10541_v2 }
 0x262   : > { %11036 = vst [vmem:[#allocation100_spill] sm:$0xff] %v7271_v16  ;;  %3398 = vperm.xlu1 %5458, %v7212_v27  }
 0x263   : > { %v7278_v37 = vpop.f32.mrf.mxu0  ;;  %v7280_v38 = vpop.f32.mrf.mxu1  ;;  %3307 = vmatmul.mubr.bf16.gmra.mxu1 %v7093_v55 }
 0x264   : > { %11037 = vst [vmem:[#allocation101_spill] sm:$0xff] %v7280_v38  ;;  %3971 = vmatmul.mubr.bf16.gmra.mxu0 %v7024_v35  ;;  %4126 = vperm.xlu0 %5466, %v7275_v21   ;;  %v1102_v35 = vpop.permute.xlu1 %1101 }
 0x265   : > { %v7285_v19 = vpop.f32.mrf.mxu0  ;;  %v7287_v57 = vpop.f32.mrf.mxu1  ;;  %3980 = vmatprep.mubr.bf16.mxu0 %v10925_v30  ;;  %3316 = vmatprep.mubr.bf16.mxu1 %v10925_v30 }
 0x266   : > { %11038 = vst [vmem:[#allocation102_spill] sm:$0xff] %v7287_v57  ;;  %5459 = vset.pattern.permute.xlu1 %v10545_v62  ;;  %v11041_v62 = vmov 1  }
 0x267   : > { %v7295_v43 = vpop.f32.mrf.mxu0  ;;  %v7297_v58 = vpop.f32.mrf.mxu1  ;;  %4102 = vperm.xlu1 %5459, %v7212_v27  }
 0x268   : > { %11039 = vst [vmem:[#allocation103_spill] sm:$0xff] %v7297_v58  ;;  %5474 = vset.pattern.permute.xlu0 %v10925_v30  ;;  %v1112_v59 = vpop.permute.xlu1 %1111 }
 0x269   : > { %v7301_v56 = vpop.f32.mrf.mxu0  ;;  %v7303_v2 = vpop.f32.mrf.mxu1  ;;  %2019 = vperm.xlu0 %5474, %v7293_v17  }
 0x26a   : > { %11040 = vst [vmem:[#allocation104_spill] sm:$0xff] %v7303_v2 }
 0x26b   : > { %v5280_v44 = vpop.f32.mrf.mxu0  ;;  %5461 = vset.pattern.permute.xlu1 %v11041_v62  ;;  %v7312_v57 = vpop.f32.mrf.mxu1  ;;  %3317 = vmatmul.mubr.bf16.gmra.mxu1 %v7111_v5 }
 0x26c   : > { %v1490_v58 = vadd.f32 %v5280_v44, %v1092_v22  ;;  %3981 = vmatmul.mubr.bf16.gmra.mxu0 %v7041_v9  ;;  %2706 = vperm.xlu1 %5461, %v7226_v25   ;;  %v1117_v22 = vpop.permute.xlu0 %1116  ;;  %v7327_v9 = vadd.f32 %v7248_v36, %v7192_v3 }
 0x26d   : > { %v1481_v2 = vpop.f32.mrf.mxu0  ;;  %2009 = vperm.xlu0 %5474, %v7309_v23   ;;  %v7318_v38 = vpop.f32.mrf.mxu1  ;;  %3990 = vmatprep.mubr.bf16.mxu0 %v10925_v30 }
 0x26e   : > { %v1610_v24 = vmul.f32 %v1490_v58, %v7200_v51  ;;  %v1482_v16 = vadd.f32 %v1481_v2, %v1082_v61  ;;  %3326 = vmatprep.mubr.bf16.mxu1 %v10925_v30 }
 0x26f   : > { %v5281_v49 = vpop.f32.mrf.mxu0  ;;  %v7323_v13 = vpop.f32.mrf.mxu1 }
 0x270   : > { %v1608_v44 = vmul.f32 %v1482_v16, %v7212_v27  ;;  %v1493_v60 = vadd.f32 %v5281_v49, %v1097_v4  ;;  %5462 = vset.pattern.permute.xlu1 %v11042_v32  ;;  %v1122_v27 = vpop.permute.xlu1 %1121  ;;  %v7345_v16 = vadd.f32 %v7228_v0, %v7166_v41  ;;  %v1628_v45 = vsel %vm1624_vm3, %v1610_v24, 0.0 }
 0x271   : > { %v1484_v54 = vpop.f32.mrf.mxu0  ;;  %5481 = vset.pattern.permute.xlu0 %v11041_v62  ;;  %3410 = vperm.xlu1 %5462, %v7226_v25   ;;  %v7333_v51 = vpop.f32.mrf.mxu1 }
 0x272   : > { %v1611_v2 = vmul.f32 %v1493_v60, %v7226_v25  ;;  %v1485_v61 = vadd.f32 %v1484_v54, %v1087_v26  ;;  %2734 = vperm.xlu0 %5481, %v7327_v9   ;;  %v7349_v54 = vadd.f32 %v7256_v14, %v7186_v53  ;;  %v11043_v26 = vmov 3  }
 0x273   : > { %v5284_v58 = vpop.f32.mrf.mxu0  ;;  %v7337_v3 = vpop.f32.mrf.mxu1  ;;  %3327 = vmatmul.mubr.bf16.gmra.mxu1 %v7120_v12 }
 0x274   : > { %v1609_v36 = vmul.f32 %v1485_v61, %v7244_v8  ;;  %v1506_v49 = vadd.f32 %v5284_v58, %v1112_v59  ;;  %3991 = vmatmul.mubr.bf16.gmra.mxu0 %v7057_v48  ;;  %3336 = vmatprep.mubr.bf16.mxu1 %v10925_v30  ;;  %v1127_v59 = vpop.permute.xlu0 %1126  ;;  %v1625_v48 = vsel %vm1624_vm3, %v1608_v44, 0.0 }
 0x275   : > { %v1497_v60 = vpop.f32.mrf.mxu0  ;;  %5463 = vset.pattern.permute.xlu1 %v11043_v26  ;;  %v7352_v4 = vpop.f32.mrf.mxu1  ;;  %4000 = vmatprep.mubr.bf16.mxu0 %v10925_v30 }
 0x276   : > { %v1626_v61 = vsel %vm1624_vm3, %v1609_v36, 0.0  ;;  %v1614_v41 = vmul.f32 %v1506_v49, %v7275_v21  ;;  %v1498_v0 = vadd.f32 %v1497_v60, %v1102_v35  ;;  %5486 = vset.pattern.permute.xlu0 %v11042_v32  ;;  %4114 = vperm.xlu1 %5463, %v7226_v25   ;;  %v1132_v49 = vpop.permute.xlu1 %1131  ;;  %v7369_v35 = vadd.f32 %v7263_v40, %v7198_v29 }
 0x277   : > { %v1627_v53 = vadd.f32 %v1626_v61, %v1625_v48  ;;  %v5285_v14 = vpop.f32.mrf.mxu0  ;;  %3430 = vperm.xlu0 %5486, %v7349_v54   ;;  %v7361_v58 = vpop.f32.mrf.mxu1  ;;  %v1630_v25 = vsel %vm1624_vm3, %v1611_v2, 0.0 }
 0x278   : > { %v1612_v7 = vmul.f32 %v1498_v0, %v7345_v16  ;;  %v1509_v60 = vadd.f32 %v5285_v14, %v1117_v22  ;;  %v1137_v0 = vpop.permute.xlu0 %1136 }
 0x279   : > { %v1629_v44 = vadd.f32 %v1628_v45, %v1627_v53  ;;  %v1500_v42 = vpop.f32.mrf.mxu0  ;;  %v7365_v36 = vpop.f32.mrf.mxu1 }
 0x27a   : > { %v1501_v48 = vadd.f32 %v1500_v42, %v7306_v63  ;;  %5464 = vset.pattern.permute.xlu1 %v11041_v62  ;;  %v1638_v42 = vsel %vm1624_vm3, %v1612_v7, 0.0  ;;  %v1615_v22 = vmul.f32 %v1509_v60, %v7293_v17  ;;  %v7399_v7 = vadd.f32 %v7269_v11, %v7190_v52 }
 0x27b   : > { %v7374_v61 = vadd.f32 %v1630_v25, %v1629_v44  ;;  %v5288_v24 = vpop.f32.mrf.mxu0  ;;  %5488 = vset.pattern.permute.xlu0 %v10925_v30  ;;  %2698 = vperm.xlu1 %5464, %v7244_v8   ;;  %v7378_v45 = vpop.f32.mrf.mxu1 }
 0x27c   : > { %v1613_v29 = vmul.f32 %v1501_v48, %v7309_v23  ;;  %2039 = vperm.xlu0 %5488, %v7369_v35   ;;  %4001 = vmatmul.mubr.bf16.gmra.mxu0 %v7075_v15  ;;  %v1142_v25 = vpop.permute.xlu1 %1141  ;;  %v1641_v48 = vsel %vm1624_vm3, %v1614_v41, 0.0  ;;  %v1522_v10 = vadd.f32 %v5288_v24, %v1132_v49 }
 0x27d   : > { %v1513_v40 = vpop.f32.mrf.mxu0  ;;  %v7383_v63 = vpop.f32.mrf.mxu1  ;;  %4010 = vmatprep.mubr.bf16.mxu0 %v10925_v30  ;;  %3337 = vmatmul.mubr.bf16.gmra.mxu1 %v7126_v18 }
 0x27e   : > { %v1639_v2 = vsel %vm1624_vm3, %v1613_v29, 0.0  ;;  %v1514_v53 = vadd.f32 %v1513_v40, %v1122_v27  ;;  %3346 = vmatprep.mubr.bf16.mxu1 %v10925_v30  ;;  %v1147_v40 = vpop.permute.xlu0 %1146  ;;  %v1618_v52 = vmul.f32 %v1522_v10, %v7327_v9 }
 0x27f   : > { %v1640_v14 = vadd.f32 %v1639_v2, %v1638_v42  ;;  %v5289_v44 = vpop.f32.mrf.mxu0  ;;  %5465 = vset.pattern.permute.xlu1 %v11042_v32  ;;  %v7392_v15 = vpop.f32.mrf.mxu1  ;;  %v1643_v42 = vsel %vm1624_vm3, %v1615_v22, 0.0 }
 0x280   : > { %v1525_v28 = vadd.f32 %v5289_v44, %v1137_v0  ;;  %3402 = vperm.xlu1 %5465, %v7244_v8   ;;  %5489 = vset.pattern.permute.xlu0 %v11041_v62  ;;  %v1616_v41 = vmul.f32 %v1514_v53, %v7349_v54 }
 0x281   : > { %v1642_v27 = vadd.f32 %v1641_v48, %v1640_v14  ;;  %v1516_v60 = vpop.f32.mrf.mxu0  ;;  %2738 = vperm.xlu0 %5489, %v7369_v35   ;;  %v7402_v29 = vpop.f32.mrf.mxu1 }
 0x282   : > { %v1619_v49 = vmul.f32 %v1525_v28, %v7369_v35  ;;  %v1517_v8 = vadd.f32 %v1516_v60, %v1127_v59  ;;  %v1152_v59 = vpop.permute.xlu1 %1151  ;;  %v1651_v22 = vsel %vm1624_vm3, %v1616_v41, 0.0  ;;  %v7428_v60 = vadd.f32 %v7285_v19, %v7210_v50 }
 0x283   : > { %v7407_v24 = vadd.f32 %v1643_v42, %v1642_v27  ;;  %v5292_v0 = vpop.f32.mrf.mxu0  ;;  %v7409_v2 = vpop.f32.mrf.mxu1  ;;  %v1654_v42 = vsel %vm1624_vm3, %v1618_v52, 0.0 }
 0x284   : > { %v1617_v11 = vmul.f32 %v1517_v8, %v7399_v7  ;;  %5467 = vset.pattern.permute.xlu1 %v10925_v30  ;;  %4011 = vmatmul.mubr.bf16.gmra.mxu0 %v7093_v55  ;;  %v1157_v27 = vpop.permute.xlu0 %1156  ;;  %v1538_v41 = vadd.f32 %v5292_v0, %v1152_v59  ;;  %v7438_v8 = vadd.f32 %v7301_v56, %v7216_v47  ;;  %v1656_v50 = vsel %vm1624_vm3, %v1619_v49, 0.0 }
 0x285   : > { %v1529_v14 = vpop.f32.mrf.mxu0  ;;  %2014 = vperm.xlu1 %5467, %v7275_v21   ;;  %5490 = vset.pattern.permute.xlu0 %v11042_v32  ;;  %v7417_v28 = vpop.f32.mrf.mxu1  ;;  %v7456_v56 = vadd.f32 %v7295_v43, %v7240_v1 }
 0x286   : > { %v1652_v53 = vsel %vm1624_vm3, %v1617_v11, 0.0  ;;  %v1530_v44 = vadd.f32 %v1529_v14, %v1142_v25  ;;  %3442 = vperm.xlu0 %5490, %v7369_v35   ;;  %4020 = vmatprep.mubr.bf16.mxu0 %v10925_v30  ;;  %v7434_v25 = vadd.f32 %v7278_v37, %v7233_v33 }
 0x287   : > { %v1653_v10 = vadd.f32 %v1652_v53, %v1651_v22  ;;  %v5293_v48 = vpop.f32.mrf.mxu0  ;;  %v7423_v55 = vpop.f32.mrf.mxu1  ;;  %3347 = vmatmul.mubr.bf16.gmra.mxu1 %v7132_v6 }
 0x288   : > { %3356 = vmatprep.mubr.bf16.mxu1 %v10925_v30  ;;  %v1620_v19 = vmul.f32 %v1530_v44, %v7428_v60  ;;  %v1541_v0 = vadd.f32 %v5293_v48, %v1157_v27  ;;  %v1622_v49 = vmul.f32 %v1538_v41, %v7434_v25 }
 0x289   : > { %v1655_v11 = vadd.f32 %v1654_v42, %v1653_v10  ;;  %v1532_v14 = vpop.f32.mrf.mxu0  ;;  %5468 = vset.pattern.permute.xlu1 %v11041_v62  ;;  %v7441_v22 = vpop.f32.mrf.mxu1 }
 0x28a   : > { %v1533_v52 = vadd.f32 %v1532_v14, %v1147_v40  ;;  %2718 = vperm.xlu1 %5468, %v7275_v21   ;;  %5491 = vset.pattern.permute.xlu0 %v10925_v30  ;;  %v1664_v44 = vsel %vm1624_vm3, %v1620_v19, 0.0  ;;  %v1623_v10 = vmul.f32 %v1541_v0, %v7456_v56  ;;  %v1667_v27 = vsel %vm1624_vm3, %v1622_v49, 0.0 }
 0x28b   : > { %v7447_v33 = vadd.f32 %v1656_v50, %v1655_v11  ;;  %2029 = vperm.xlu0 %5491, %v7399_v7   ;;  %v7450_v47 = vpop.f32.mrf.mxu1  ;;  %v7452_v37 = vpop.f32.mrf.mxu0 }
 0x28c   : > { %11044 = vst [vmem:[#allocation20_spill] sm:$0xff] %v7450_v47  ;;  %v1621_v40 = vmul.f32 %v1533_v52, %v7438_v8  ;;  %4021 = vmatmul.mubr.bf16.gmra.mxu0 %v7111_v5 }
 0x28d   : > { %v7461_v59 = vpop.f32.mrf.mxu1  ;;  %v7463_v53 = vpop.f32.mrf.mxu0  ;;  %4030 = vmatprep.mubr.bf16.mxu0 %v10925_v30 }
 0x28e   : > { %11045 = vst [vmem:[#allocation18_spill] sm:$0xff] %v7461_v59  ;;  %v1665_v48 = vsel %vm1624_vm3, %v1621_v40, 0.0  ;;  %5469 = vset.pattern.permute.xlu1 %v11042_v32 }
 0x28f   : > { %v1666_v1 = vadd.f32 %v1665_v48, %v1664_v44  ;;  %3422 = vperm.xlu1 %5469, %v7275_v21   ;;  %5494 = vset.pattern.permute.xlu0 %v11043_v26  ;;  %v7472_v5 = vpop.f32.mrf.mxu1  ;;  %v7474_v43 = vpop.f32.mrf.mxu0  ;;  %v1669_v21 = vsel %vm1624_vm3, %v1623_v10, 0.0 }
 0x290   : > { %11046 = vst [vmem:[#allocation16_spill] sm:$0xff] %v7472_v5  ;;  %4138 = vperm.xlu0 %5494, %v7399_v7   ;;  %3357 = vmatmul.mubr.bf16.gmra.mxu1 %v7138_v39  ;;  %v7513_v48 = vpop.permute.xlu1 %1161 }
 0x291   : > { %v1668_v42 = vadd.f32 %v1667_v27, %v1666_v1  ;;  %v7479_v41 = vpop.f32.mrf.mxu1  ;;  %v7481_v11 = vpop.f32.mrf.mxu0  ;;  %3366 = vmatprep.mubr.bf16.mxu1 %v10925_v30  ;;  %11053 = vst [vmem:[#allocation13_spill] sm:$0xff] %v7513_v48 }
 0x292   : > { %11047 = vst [vmem:[#allocation14_spill] sm:$0xff] %v7479_v41 }
 0x293   : > { %v7485_v14 = vadd.f32 %v1669_v21, %v1668_v42  ;;  %5470 = vset.pattern.permute.xlu1 %v10925_v30  ;;  %v7488_v50 = vpop.f32.mrf.mxu1  ;;  %v7490_v19 = vpop.f32.mrf.mxu0 }
 0x294   : > { %11049 = vst [vmem:[#allocation17_spill] sm:$0xff] %v7488_v50  ;;  %2004 = vperm.xlu1 %5470, %v7345_v16   ;;  %5496 = vset.pattern.permute.xlu0 %v11041_v62  ;;  %v7537_v46 = vpop.permute.xlu1 %1171 }
 0x295   : > { %11048 = vst [vmem:[#allocation19_spill] sm:$0xff] %v7485_v14  ;;  %2750 = vperm.xlu0 %5496, %v7434_v25   ;;  %v7495_v0 = vpop.f32.mrf.mxu1  ;;  %v7497_v52 = vpop.f32.mrf.mxu0  ;;  %4031 = vmatmul.mubr.bf16.gmra.mxu0 %v7120_v12  ;;  %11061 = vst [vmem:[#allocation35_spill] sm:$0xff] %v7537_v46 }
 0x296   : > { %11050 = vst [vmem:[#allocation30_spill] sm:$0xff] %v7495_v0  ;;  %4040 = vmatprep.mubr.bf16.mxu0 %v10925_v30  ;;  %v7515_v12 = vpop.permute.xlu0 %1166 }
 0x297   : > { %v7501_v49 = vpop.f32.mrf.mxu1  ;;  %v7503_v40 = vpop.f32.mrf.mxu0  ;;  %11054 = vst [vmem:[#allocation34_spill] sm:$0xff] %v7515_v12 }
 0x298   : > { %11051 = vst [vmem:[#allocation32_spill] sm:$0xff] %v7501_v49  ;;  %5471 = vset.pattern.permute.xlu1 %v11041_v62  ;;  %3367 = vmatmul.mubr.bf16.gmra.mxu1 %v7144_v34 }
 0x299   : > { %2710 = vperm.xlu1 %5471, %v7345_v16   ;;  %5497 = vset.pattern.permute.xlu0 %v11042_v32  ;;  %v7509_v44 = vpop.f32.mrf.mxu1  ;;  %v7511_v10 = vpop.f32.mrf.mxu0 }
 0x29a   : > { %11052 = vst [vmem:[#allocation15_spill] sm:$0xff] %v7509_v44  ;;  %3454 = vperm.xlu0 %5497, %v7434_v25   ;;  %3376 = vmatprep.mubr.bf16.mxu1 %v10925_v30 }
 0x29b   : > { %v7519_v1 = vpop.f32.mrf.mxu1  ;;  %v7521_v27 = vpop.f32.mrf.mxu0 }
 0x29c   : > { %11055 = vst [vmem:[#allocation36_spill] sm:$0xff] %v7519_v1  ;;  %11056 = vst [vmem:[#allocation29_spill] sm:$0xff] %v7521_v27  ;;  %v7539_v27 = vpop.permute.xlu0 %1176 }
 0x29d   : > { %5472 = vset.pattern.permute.xlu1 %v11042_v32  ;;  %v7524_v42 = vpop.f32.mrf.mxu1  ;;  %v7526_v21 = vpop.f32.mrf.mxu0  ;;  %4041 = vmatmul.mubr.bf16.gmra.mxu0 %v7126_v18  ;;  %11062 = vst [vmem:[#allocation45_spill] sm:$0xff] %v7539_v27 }
 0x29e   : > { %11057 = vst [vmem:[#allocation31_spill] sm:$0xff] %v7524_v42  ;;  %11058 = vst [vmem:[#allocation46_spill] sm:$0xff] %v7526_v21  ;;  %3414 = vperm.xlu1 %5472, %v7345_v16   ;;  %5498 = vset.pattern.permute.xlu0 %v11041_v62 }
 0x29f   : > { %2742 = vperm.xlu0 %5498, %v7428_v60   ;;  %v7532_v12 = vpop.f32.mrf.mxu1  ;;  %v7534_v48 = vpop.f32.mrf.mxu0  ;;  %4050 = vmatprep.mubr.bf16.mxu0 %v10925_v30 }
 0x2a0   : > { %11059 = vst [vmem:[#allocation48_spill] sm:$0xff] %v7532_v12  ;;  %11060 = vst [vmem:[#allocation33_spill] sm:$0xff] %v7534_v48  ;;  %3377 = vmatmul.mubr.bf16.gmra.mxu1 %v7150_v20 }
 0x2a1   : > { %v7542_v21 = vpop.f32.mrf.mxu1  ;;  %v7544_v18 = vpop.f32.mrf.mxu0  ;;  %3386 = vmatprep.mubr.bf16.mxu1 %v10925_v30 }
 0x2a2   : > { %11063 = vst [vmem:[#allocation47_spill] sm:$0xff] %v7542_v21  ;;  %11064 = vst [vmem:[#allocation50_spill] sm:$0xff] %v7544_v18  ;;  %5473 = vset.pattern.permute.xlu1 %v11043_v26  ;;  %v7560_v18 = vpop.permute.xlu1 %1181  ;;  %v7562_v21 = vpop.permute.xlu0 %1186 }
 0x2a3   : > { %4118 = vperm.xlu1 %5473, %v7345_v16   ;;  %5499 = vset.pattern.permute.xlu0 %v11042_v32  ;;  %v7550_v48 = vpop.f32.mrf.mxu1  ;;  %v7552_v12 = vpop.f32.mrf.mxu0  ;;  %11069 = vst [vmem:[#allocation24_spill] sm:$0xff] %v7560_v18  ;;  %11070 = vst [vmem:[#allocation21_spill] sm:$0xff] %v7562_v21 }
 0x2a4   : > { %11065 = vst [vmem:[#allocation52_spill] sm:$0xff] %v7550_v48  ;;  %11066 = vst [vmem:[#allocation49_spill] sm:$0xff] %v7552_v12  ;;  %3446 = vperm.xlu0 %5499, %v7428_v60   ;;  %v7742_v12 = vld [vmem:[#allocation4 + $0x38] sm:$0xff] }
 0x2a5   : > { %v7555_v27 = vpop.f32.mrf.mxu1  ;;  %v7557_v46 = vpop.f32.mrf.mxu0  ;;  %4051 = vmatmul.mubr.bf16.gmra.mxu0 %v7132_v6  ;;  %v1840_v0 = vadd.f32 %v7365_v36, %v7742_v12 }
 0x2a6   : > { %11067 = vst [vmem:[#allocation51_spill] sm:$0xff] %v7555_v27  ;;  %11068 = vst [vmem:[#allocation22_spill] sm:$0xff] %v7557_v46  ;;  %4060 = vmatprep.mubr.bf16.mxu0 %v10925_v30  ;;  %v7582_v27 = vpop.permute.xlu1 %1191 }
 0x2a7   : > { %5475 = vset.pattern.permute.xlu1 %v11041_v62  ;;  %v7566_v16 = vpop.f32.mrf.mxu1  ;;  %v7568_v48 = vpop.f32.mrf.mxu0  ;;  %11077 = vst [vmem:[#allocation56_spill] sm:$0xff] %v7582_v27 }
 0x2a8   : > { %11071 = vst [vmem:[#allocation23_spill] sm:$0xff] %v7566_v16  ;;  %11072 = vst [vmem:[#allocation38_spill] sm:$0xff] %v7568_v48  ;;  %2722 = vperm.xlu1 %5475, %v7293_v17   ;;  %5501 = vset.pattern.permute.xlu0 %v10925_v30  ;;  %v7584_v16 = vpop.permute.xlu0 %1196 }
 0x2a9   : > { %2059 = vperm.xlu0 %5501, %v7456_v56   ;;  %v7573_v46 = vpop.f32.mrf.mxu1  ;;  %v7575_v6 = vpop.f32.mrf.mxu0  ;;  %3387 = vmatmul.mubr.bf16.gmra.mxu1 %v7158_v31  ;;  %11078 = vst [vmem:[#allocation26_spill] sm:$0xff] %v7584_v16 }
 0x2aa   : > { %11073 = vst [vmem:[#allocation40_spill] sm:$0xff] %v7573_v46  ;;  %11074 = vst [vmem:[#allocation37_spill] sm:$0xff] %v7575_v6 }
 0x2ab   : > { %v7578_v21 = vpop.f32.mrf.mxu1  ;;  %v7580_v18 = vpop.f32.mrf.mxu0 }
 0x2ac   : > { %11075 = vst [vmem:[#allocation39_spill] sm:$0xff] %v7578_v21  ;;  %11076 = vst [vmem:[#allocation54_spill] sm:$0xff] %v7580_v18  ;;  %5476 = vset.pattern.permute.xlu1 %v11042_v32  ;;  %v7605_v18 = vpop.permute.xlu1 %1201 }
 0x2ad   : > { %3426 = vperm.xlu1 %5476, %v7293_v17   ;;  %2049 = vperm.xlu0 %5501, %v7438_v8   ;;  %v7589_v48 = vpop.f32.mrf.mxu1  ;;  %v7591_v46 = vpop.f32.mrf.mxu0  ;;  %11085 = vst [vmem:[#allocation67_spill] sm:$0xff] %v7605_v18 }
 0x2ae   : > { %11079 = vst [vmem:[#allocation28_spill] sm:$0xff] %v7589_v48  ;;  %11080 = vst [vmem:[#allocation53_spill] sm:$0xff] %v7591_v46  ;;  %4061 = vmatmul.mubr.bf16.gmra.mxu0 %v7138_v39  ;;  %v7607_v48 = vpop.permute.xlu0 %1206 }
 0x2af   : > { %v7594_v6 = vpop.f32.mrf.mxu1  ;;  %v7596_v21 = vpop.f32.mrf.mxu0  ;;  %4070 = vmatprep.mubr.bf16.mxu0 %v10925_v30  ;;  %11086 = vst [vmem:[#allocation79_spill] sm:$0xff] %v7607_v48 }
 0x2b0   : > { %11081 = vst [vmem:[#allocation55_spill] sm:$0xff] %v7594_v6  ;;  %11082 = vst [vmem:[#allocation66_spill] sm:$0xff] %v7596_v21 }
 0x2b1   : > { %5477 = vset.pattern.permute.xlu1 %v11041_v62  ;;  %5503 = vset.pattern.permute.xlu0 %v11043_v26  ;;  %v7601_v16 = vpop.f32.mrf.mxu1  ;;  %v7603_v27 = vpop.f32.mrf.mxu0 }
 0x2b2   : > { %11083 = vst [vmem:[#allocation68_spill] sm:$0xff] %v7601_v16  ;;  %11084 = vst [vmem:[#allocation65_spill] sm:$0xff] %v7603_v27  ;;  %2714 = vperm.xlu1 %5477, %v7309_v23   ;;  %4130 = vperm.xlu0 %5503, %v7293_v17   ;;  %v7627_v17 = vpop.permute.xlu1 %1211 }
 0x2b3   : > { %v7611_v39 = vpop.f32.mrf.mxu1  ;;  %v7613_v6 = vpop.f32.mrf.mxu0  ;;  %11093 = vst [vmem:[#allocation94_spill] sm:$0xff] %v7627_v17 }
 0x2b4   : > { %11087 = vst [vmem:[#allocation81_spill] sm:$0xff] %v7611_v39  ;;  %11088 = vst [vmem:[#allocation78_spill] sm:$0xff] %v7613_v6  ;;  %v7629_v39 = vpop.permute.xlu0 %1216 }
 0x2b5   : > { %v7615_v21 = vpop.f32.mrf.mxu1  ;;  %v7617_v46 = vpop.f32.mrf.mxu0  ;;  %11094 = vst [vmem:[#allocation106_spill] sm:$0xff] %v7629_v39 }
 0x2b6   : > { %11089 = vst [vmem:[#allocation80_spill] sm:$0xff] %v7615_v21  ;;  %11090 = vst [vmem:[#allocation93_spill] sm:$0xff] %v7617_v46  ;;  %5478 = vset.pattern.permute.xlu1 %v11042_v32  ;;  %4146 = vperm.xlu0 %5503, %v7369_v35   ;;  %v7647_v39 = vpop.permute.xlu1 %1221  ;;  %v7718_v46 = vld [vmem:[#allocation4 + $0x10] sm:$0xff] }
 0x2b7   : > { %3418 = vperm.xlu1 %5478, %v7309_v23   ;;  %v7622_v16 = vpop.f32.mrf.mxu1  ;;  %v7624_v48 = vpop.f32.mrf.mxu0  ;;  %4071 = vmatmul.mubr.bf16.gmra.mxu0 %v7144_v34  ;;  %11101 = vst [vmem:[#allocation44_spill] sm:$0xff] %v7647_v39 }
 0x2b8   : > { %11091 = vst [vmem:[#allocation95_spill] sm:$0xff] %v7622_v16  ;;  %11092 = vst [vmem:[#allocation92_spill] sm:$0xff] %v7624_v48  ;;  %4080 = vmatprep.mubr.bf16.mxu0 %v10925_v30  ;;  %v7649_v48 = vpop.permute.xlu0 %1226 }
 0x2b9   : > { %v7632_v21 = vpop.f32.mrf.mxu1  ;;  %v7634_v18 = vpop.f32.mrf.mxu0  ;;  %11102 = vst [vmem:[#allocation41_spill] sm:$0xff] %v7649_v48 }
 0x2ba   : > { %11095 = vst [vmem:[#allocation108_spill] sm:$0xff] %v7632_v21  ;;  %11096 = vst [vmem:[#allocation105_spill] sm:$0xff] %v7634_v18  ;;  %5509 = vset.pattern.permute.xlu0 %v10925_v30  ;;  %v7667_v48 = vpop.permute.xlu1 %1231 }
 0x2bb   : > { %5479 = vset.pattern.permute.xlu1 %v11043_v26  ;;  %v7638_v35 = vpop.f32.mrf.mxu1  ;;  %v7640_v16 = vpop.f32.mrf.mxu0  ;;  %11109 = vst [vmem:[#allocation64_spill] sm:$0xff] %v7667_v48 }
 0x2bc   : > { %11097 = vst [vmem:[#allocation107_spill] sm:$0xff] %v7638_v35  ;;  %11098 = vst [vmem:[#allocation25_spill] sm:$0xff] %v7640_v16  ;;  %4122 = vperm.xlu1 %5479, %v7309_v23  }
 0x2bd   : > { %v7643_v34 = vpop.f32.mrf.mxu1  ;;  %v7645_v17 = vpop.f32.mrf.mxu0 }
 0x2be   : > { %11099 = vst [vmem:[#allocation27_spill] sm:$0xff] %v7643_v34  ;;  %11100 = vst [vmem:[#allocation42_spill] sm:$0xff] %v7645_v17 }
 0x2bf   : > { %v7651_v21 = vpop.f32.mrf.mxu1  ;;  %v7653_v18 = vpop.f32.mrf.mxu0  ;;  %4081 = vmatmul.mubr.bf16.gmra.mxu0 %v7150_v20 }
 0x2c0   : > { %11103 = vst [vmem:[#allocation43_spill] sm:$0xff] %v7651_v21  ;;  %11104 = vst [vmem:[#allocation58_spill] sm:$0xff] %v7653_v18  ;;  %5480 = vset.pattern.permute.xlu1 %v10925_v30  ;;  %4090 = vmatprep.mubr.bf16.mxu0 %v10925_v30  ;;  %v7669_v21 = vpop.permute.xlu0 %1236 }
 0x2c1   : > { %2034 = vperm.xlu1 %5480, %v7327_v9   ;;  %v7659_v23 = vpop.f32.mrf.mxu1  ;;  %v7661_v34 = vpop.f32.mrf.mxu0  ;;  %11110 = vst [vmem:[#allocation61_spill] sm:$0xff] %v7669_v21 }
 0x2c2   : > { %11105 = vst [vmem:[#allocation60_spill] sm:$0xff] %v7659_v23  ;;  %11106 = vst [vmem:[#allocation57_spill] sm:$0xff] %v7661_v34 }
 0x2c3   : > { %v7663_v35 = vpop.f32.mrf.mxu1  ;;  %v7665_v39 = vpop.f32.mrf.mxu0 }
 0x2c4   : > { %11107 = vst [vmem:[#allocation59_spill] sm:$0xff] %v7663_v35  ;;  %11108 = vst [vmem:[#allocation62_spill] sm:$0xff] %v7665_v39 }
 0x2c5   : > { %5482 = vset.pattern.permute.xlu1 %v11042_v32  ;;  %v7672_v20 = vpop.f32.mrf.mxu1  ;;  %v7674_v18 = vpop.f32.mrf.mxu0 }
 0x2c6   : > { %11111 = vst [vmem:[#allocation63_spill] sm:$0xff] %v7672_v20  ;;  %11112 = vst [vmem:[#allocation70_spill] sm:$0xff] %v7674_v18  ;;  %3438 = vperm.xlu1 %5482, %v7327_v9  }
 0x2c7   : > { %v7677_v17 = vpop.f32.mrf.mxu1  ;;  %v7679_v23 = vpop.f32.mrf.mxu0  ;;  %4091 = vmatmul.mubr.bf16.gmra.mxu0 %v7158_v31 }
 0x2c8   : > { %11113 = vst [vmem:[#allocation72_spill] sm:$0xff] %v7677_v17  ;;  %11114 = vst [vmem:[#allocation69_spill] sm:$0xff] %v7679_v23 }
 0x2c9   : > { %v1995_v35 = vpop.permute.xlu1 %1994  ;;  %v7682_v39 = vpop.permute.xlu0 %2702 }
 0x2ca   : > { %v7684_v48 = vpop.f32.mrf.mxu1  ;;  %v7686_v21 = vpop.f32.mrf.mxu0  ;;  %5483 = vset.pattern.permute.xlu1 %v11043_v26 }
 0x2cb   : > { %11115 = vst [vmem:[#allocation71_spill] sm:$0xff] %v7684_v48  ;;  %11116 = vst [vmem:[#allocation83_spill] sm:$0xff] %v7686_v21  ;;  %4142 = vperm.xlu1 %5483, %v7327_v9  }
 0x2cc   : > { %v7690_v20 = vpop.f32.mrf.mxu1  ;;  %v7692_v18 = vpop.f32.mrf.mxu0 }
 0x2cd   : > { %11117 = vst [vmem:[#allocation85_spill] sm:$0xff] %v7690_v20  ;;  %11118 = vst [vmem:[#allocation82_spill] sm:$0xff] %v7692_v18  ;;  %v7694_v17 = vpop.permute.xlu0 %2694 }
 0x2ce   : > { %v7696_v23 = vpop.f32.mrf.mxu1  ;;  %v7698_v31 = vpop.f32.mrf.mxu0 }
 0x2cf   : > { %11119 = vst [vmem:[#allocation84_spill] sm:$0xff] %v7696_v23  ;;  %11120 = vst [vmem:[#allocation97_spill] sm:$0xff] %v7698_v31  ;;  %v7700_v34 = vpop.permute.xlu1 %3406  ;;  %5484 = vset.pattern.permute.xlu1 %v10925_v30  ;;  %v7714_v23 = vld [vmem:[#allocation4] sm:$0xff]  ;;  %v7716_v31 = vld [vmem:[#allocation4 + $0x8] sm:$0xff] }
 0x2d0   : > { %11121 = vst [vmem:[#allocation99_spill] sm:$0xff] %v7700_v34  ;;  %v7703_v48 = vpop.f32.mrf.mxu1  ;;  %v7705_v21 = vpop.f32.mrf.mxu0  ;;  %2024 = vperm.xlu1 %5484, %v7349_v54   ;;  %11127 = vst [vmem:[#allocation111_spill] sm:$0xff] %v7716_v31  ;;  %v1826_v27 = vadd.f32 %v7318_v38, %v7716_v31  ;;  %v7740_v34 = vld [vmem:[#allocation4 + $0x30] sm:$0xff] }
 0x2d1   : > { %11122 = vst [vmem:[#allocation96_spill] sm:$0xff] %v7703_v48  ;;  %11123 = vst [vmem:[#allocation98_spill] sm:$0xff] %v7705_v21  ;;  %v7725_v21 = vld [vmem:[#allocation4 + $0x18] sm:$0xff] }
 0x2d2   : > { %v7708_v9 = vpop.f32.mrf.mxu1  ;;  %v7710_v20 = vpop.f32.mrf.mxu0  ;;  %11130 = vst [vmem:[#allocation115_spill] sm:$0xff] %v7725_v21 }
 0x2d3   : > { %11124 = vst [vmem:[#allocation110_spill] sm:$0xff] %v7708_v9  ;;  %11125 = vst [vmem:[#allocation112_spill] sm:$0xff] %v7710_v20  ;;  %v2000_v18 = vpop.permute.xlu0 %1999  ;;  %v7712_v16 = vpop.permute.xlu1 %4110  ;;  %v7727_v9 = vld [vmem:[#allocation4 + $0x20] sm:$0xff]  ;;  %v7729_v20 = vld [vmem:[#allocation4 + $0x28] sm:$0xff] }
 0x2d4   : > { %11126 = vst [vmem:[#allocation109_spill] sm:$0xff] %v7712_v16  ;;  %v7720_v6 = vpop.f32.mrf.mxu1  ;;  %v7722_v48 = vpop.f32.mrf.mxu0  ;;  %5485 = vset.pattern.permute.xlu1 %v11041_v62  ;;  %11131 = vst [vmem:[#allocation116_spill] sm:$0xff] %v7729_v20  ;;  %v1824_v16 = vadd.f32 %v7312_v57, %v7714_v23  ;;  %v1834_v57 = vadd.f32 %v7337_v3, %v7727_v9  ;;  %v1836_v38 = vadd.f32 %v7352_v4, %v7729_v20 }
 0x2d5   : > { %11128 = vst [vmem:[#allocation113_spill] sm:$0xff] %v7720_v6  ;;  %11129 = vst [vmem:[#allocation114_spill] sm:$0xff] %v7722_v48  ;;  %2726 = vperm.xlu1 %5485, %v7349_v54   ;;  %v1828_v6 = vadd.f32 %v7323_v13, %v7718_v46  ;;  %v1830_v48 = vadd.f32 %v7333_v51, %v7725_v21  ;;  %v1838_v51 = vadd.f32 %v7361_v58, %v7740_v34 }
 0x2d6   : > { %v7744_v42 = vpop.f32.mrf.mxu1  ;;  %v7746_v1 = vpop.f32.mrf.mxu0 }
 0x2d7   : > { %11132 = vst [vmem:[#allocation117_spill] sm:$0xff] %v7744_v42  ;;  %11133 = vst [vmem:[#allocation118_spill] sm:$0xff] %v7746_v1  ;;  %v1990_v44 = vpop.permute.xlu0 %1989 }
 0x2d8   : > { %v7752_v49 = vpop.f32.mrf.mxu1  ;;  %v7754_v13 = vpop.f32.mrf.mxu0  ;;  %v2064_v1 = vmul.f32 %v1990_v44, %v1828_v6  ;;  %v2065_v50 = vmul.f32 %v1990_v44, %v1830_v48  ;;  %v2068_v6 = vmul.f32 %v2000_v18, %v1838_v51  ;;  %v2069_v44 = vmul.f32 %v2000_v18, %v1840_v0 }
 0x2d9   : > { %11134 = vst [vmem:[#allocation119_spill] sm:$0xff] %v7752_v49  ;;  %11135 = vst [vmem:[#allocation120_spill] sm:$0xff] %v7754_v13  ;;  %v1985_v42 = vpop.permute.xlu1 %1984  ;;  %5487 = vset.pattern.permute.xlu1 %v11043_v26  ;;  %v2066_v49 = vmul.f32 %v1995_v35, %v1834_v57  ;;  %v2067_v13 = vmul.f32 %v1995_v35, %v1836_v38 }
 0x2da   : > { %v2062_v41 = vmul.f32 %v1985_v42, %v1824_v16  ;;  %v2063_v3 = vmul.f32 %v1985_v42, %v1826_v27  ;;  %v7761_v5 = vpop.f32.mrf.mxu1  ;;  %v7763_v4 = vpop.f32.mrf.mxu0  ;;  %4134 = vperm.xlu1 %5487, %v7349_v54  }
 0x2db   : > { %11136 = vst [vmem:[#allocation121_spill] sm:$0xff] %v7761_v5  ;;  %11137 = vst [vmem:[#allocation122_spill] sm:$0xff] %v7763_v4  ;;  %v7943_v4 = vld [vmem:[#allocation4 + $0x68] sm:$0xff] }
 0x2dc   : > { %v2094_v59 = vadd.f32 %v2064_v1, %v2062_v41  ;;  %v2103_v58 = vadd.f32 %v2065_v50, %v2063_v3  ;;  %v7766_v47 = vpop.f32.mrf.mxu1  ;;  %v7768_v36 = vpop.f32.mrf.mxu0  ;;  %11188 = vst [vmem:[#allocation173_spill] sm:$0xff] %v7943_v4 }
 0x2dd   : > { %11138 = vst [vmem:[#allocation123_spill] sm:$0xff] %v7766_v47  ;;  %11139 = vst [vmem:[#allocation124_spill] sm:$0xff] %v7768_v36  ;;  %v7770_v14 = vpop.permute.xlu1 %3398 }
 0x2de   : > { %v2095_v48 = vadd.f32 %v2094_v59, %v2066_v49  ;;  %v2104_v27 = vadd.f32 %v2103_v58, %v2067_v13  ;;  %v7772_v42 = vpop.f32.mrf.mxu1  ;;  %v7774_v16 = vpop.f32.mrf.mxu0  ;;  %5492 = vset.pattern.permute.xlu1 %v11041_v62 }
 0x2df   : > { %11140 = vst [vmem:[#allocation125_spill] sm:$0xff] %v7772_v42  ;;  %11141 = vst [vmem:[#allocation126_spill] sm:$0xff] %v7774_v16  ;;  %2730 = vperm.xlu1 %5492, %v7399_v7  }
 0x2e0   : > { %v7778_v54 = vadd.f32 %v2095_v48, %v2068_v6  ;;  %v7780_v41 = vadd.f32 %v2104_v27, %v2069_v44  ;;  %v7782_v50 = vpop.f32.mrf.mxu1  ;;  %v7784_v1 = vpop.f32.mrf.mxu0 }
 0x2e1   : > { %11142 = vst [vmem:[#allocation127_spill] sm:$0xff] %v7782_v50  ;;  %11143 = vst [vmem:[#allocation128_spill] sm:$0xff] %v7784_v1 }
 0x2e2   : > { %v7786_v35 = vpop.f32.mrf.mxu1  ;;  %v7788_v59 = vpop.f32.mrf.mxu0 }
 0x2e3   : > { %11144 = vst [vmem:[#allocation129_spill] sm:$0xff] %v7786_v35  ;;  %11145 = vst [vmem:[#allocation130_spill] sm:$0xff] %v7788_v59  ;;  %v7790_v0 = vpop.permute.xlu1 %4102  ;;  %5493 = vset.pattern.permute.xlu1 %v11042_v32 }
 0x2e4   : > { %11146 = vst [vmem:[#allocation131_spill] sm:$0xff] %v7790_v0  ;;  %v7793_v49 = vpop.f32.mrf.mxu1  ;;  %v7795_v18 = vpop.f32.mrf.mxu0  ;;  %3434 = vperm.xlu1 %5493, %v7399_v7  }
 0x2e5   : > { %11147 = vst [vmem:[#allocation132_spill] sm:$0xff] %v7793_v49  ;;  %11148 = vst [vmem:[#allocation133_spill] sm:$0xff] %v7795_v18 }
 0x2e6   : > { %v7798_v57 = vpop.f32.mrf.mxu1  ;;  %v7800_v38 = vpop.f32.mrf.mxu0 }
 0x2e7   : > { %11149 = vst [vmem:[#allocation134_spill] sm:$0xff] %v7798_v57  ;;  %11150 = vst [vmem:[#allocation135_spill] sm:$0xff] %v7800_v38  ;;  %v2707_v13 = vpop.permute.xlu1 %2706  ;;  %v7843_v57 = vpop.permute.xlu0 %4106 }
 0x2e8   : > { %v7802_v51 = vpop.f32.mrf.mxu1  ;;  %v7804_v3 = vpop.f32.mrf.mxu0  ;;  %5495 = vset.pattern.permute.xlu1 %v10925_v30  ;;  %11161 = vst [vmem:[#allocation146_spill] sm:$0xff] %v7843_v57 }
 0x2e9   : > { %11151 = vst [vmem:[#allocation136_spill] sm:$0xff] %v7802_v51  ;;  %11152 = vst [vmem:[#allocation137_spill] sm:$0xff] %v7804_v3  ;;  %2054 = vperm.xlu1 %5495, %v7434_v25  }
 0x2ea   : > { %v7808_v58 = vpop.f32.mrf.mxu1  ;;  %v7810_v6 = vpop.f32.mrf.mxu0 }
 0x2eb   : > { %11153 = vst [vmem:[#allocation138_spill] sm:$0xff] %v7808_v58  ;;  %11154 = vst [vmem:[#allocation139_spill] sm:$0xff] %v7810_v6  ;;  %v2535_v6 = vadd.f32 %v7452_v37, %v7714_v23  ;;  %v2539_v58 = vadd.f32 %v7474_v43, %v7718_v46  ;;  %v2547_v37 = vadd.f32 %v7497_v52, %v7729_v20 }
 0x2ec   : > { %v7812_v44 = vpop.f32.mrf.mxu0  ;;  %v7814_v7 = vpop.f32.mrf.mxu1  ;;  %v2549_v52 = vadd.f32 %v7503_v40, %v7740_v34 }
 0x2ed   : > { %11155 = vst [vmem:[#allocation140_spill] sm:$0xff] %v7812_v44  ;;  %v7816_v48 = vpop.permute.xlu1 %3410  ;;  %2044 = vperm.xlu1 %5495, %v7428_v60   ;;  %v2757_v43 = vmul.f32 %v7694_v17, %v2535_v6  ;;  %v2762_v36 = vmul.f32 %v7682_v39, %v2547_v37 }
 0x2ee   : > { %v7819_v27 = vpop.f32.mrf.mxu0  ;;  %v7821_v59 = vpop.f32.mrf.mxu1  ;;  %v2763_v40 = vmul.f32 %v2707_v13, %v2549_v52 }
 0x2ef   : > { %11156 = vst [vmem:[#allocation141_spill] sm:$0xff] %v7819_v27  ;;  %v2537_v27 = vadd.f32 %v7463_v53, %v7716_v31 }
 0x2f0   : > { %v7823_v1 = vpop.f32.mrf.mxu0  ;;  %v7825_v16 = vpop.f32.mrf.mxu1 }
 0x2f1   : > { %11157 = vst [vmem:[#allocation142_spill] sm:$0xff] %v7823_v1  ;;  %v7827_v38 = vpop.permute.xlu1 %4114  ;;  %5500 = vset.pattern.permute.xlu1 %v11043_v26  ;;  %v2758_v49 = vmul.f32 %v7694_v17, %v2537_v27 }
 0x2f2   : > { %11158 = vst [vmem:[#allocation143_spill] sm:$0xff] %v7827_v38  ;;  %v7830_v18 = vpop.f32.mrf.mxu0  ;;  %v7832_v44 = vpop.f32.mrf.mxu1  ;;  %4150 = vperm.xlu1 %5500, %v7428_v60   ;;  %v2545_v60 = vadd.f32 %v7490_v19, %v7727_v9 }
 0x2f3   : > { %11159 = vst [vmem:[#allocation144_spill] sm:$0xff] %v7830_v18  ;;  %v2541_v18 = vadd.f32 %v7481_v11, %v7725_v21 }
 0x2f4   : > { %v7839_v3 = vpop.f32.mrf.mxu0  ;;  %v7841_v1 = vpop.f32.mrf.mxu1  ;;  %v2761_v42 = vmul.f32 %v7682_v39, %v2545_v60 }
 0x2f5   : > { %11160 = vst [vmem:[#allocation145_spill] sm:$0xff] %v7839_v3 }
 0x2f6   : > { %v7853_v51 = vpop.f32.mrf.mxu0  ;;  %v7855_v53 = vpop.f32.mrf.mxu1  ;;  %5502 = vset.pattern.permute.xlu1 %v11041_v62 }
 0x2f7   : > { %11162 = vst [vmem:[#allocation147_spill] sm:$0xff] %v7853_v51  ;;  %v2699_v3 = vpop.permute.xlu1 %2698  ;;  %2754 = vperm.xlu1 %5502, %v7456_v56   ;;  %v2551_v51 = vadd.f32 %v7511_v10, %v7742_v12 }
 0x2f8   : > { %v2759_v11 = vmul.f32 %v2699_v3, %v2539_v58  ;;  %v2760_v35 = vmul.f32 %v2699_v3, %v2541_v18  ;;  %v7861_v50 = vpop.f32.mrf.mxu0  ;;  %v7863_v19 = vpop.f32.mrf.mxu1 }
 0x2f9   : > { %11163 = vst [vmem:[#allocation148_spill] sm:$0xff] %v7861_v50  ;;  %v7878_v3 = vpop.permute.xlu0 %4126  ;;  %v2764_v58 = vmul.f32 %v2707_v13, %v2551_v51 }
 0x2fa   : > { %v2789_v47 = vadd.f32 %v2759_v11, %v2757_v43  ;;  %v2798_v6 = vadd.f32 %v2760_v35, %v2758_v49  ;;  %v7871_v5 = vpop.f32.mrf.mxu0  ;;  %v7873_v17 = vpop.f32.mrf.mxu1  ;;  %11165 = vst [vmem:[#allocation150_spill] sm:$0xff] %v7878_v3 }
 0x2fb   : > { %11164 = vst [vmem:[#allocation149_spill] sm:$0xff] %v7871_v5  ;;  %v7875_v18 = vpop.permute.xlu1 %3402  ;;  %5504 = vset.pattern.permute.xlu1 %v11043_v26 }
 0x2fc   : > { %v2790_v27 = vadd.f32 %v2789_v47, %v2761_v42  ;;  %v2799_v10 = vadd.f32 %v2798_v6, %v2762_v36  ;;  %v7880_v50 = vpop.f32.mrf.mxu0  ;;  %4158 = vperm.xlu1 %5504, %v7434_v25   ;;  %v7883_v39 = vpop.f32.mrf.mxu1 }
 0x2fd   : > { %11166 = vst [vmem:[#allocation151_spill] sm:$0xff] %v7880_v50  ;;  %11167 = vst [vmem:[#allocation152_spill] sm:$0xff] %v7883_v39  ;;  %v2020_v36 = vpop.permute.xlu0 %2019  ;;  %v7935_v50 = vld [vmem:[#allocation4 + $0x70] sm:$0xff] }
 0x2fe   : > { %v7885_v35 = vadd.f32 %v2790_v27, %v2763_v40  ;;  %v7887_v49 = vadd.f32 %v2799_v10, %v2764_v58  ;;  %v7889_v60 = vpop.f32.mrf.mxu0  ;;  %v7894_v43 = vpop.f32.mrf.mxu1  ;;  %v7913_v58 = vld [vmem:[#allocation4 + $0x40] sm:$0xff]  ;;  %v7918_v10 = vld [vmem:[#allocation4 + $0x48] sm:$0xff]  ;;  %11184 = vst [vmem:[#allocation169_spill] sm:$0xff] %v7935_v50 }
 0x2ff   : > { %11169 = vst [vmem:[#allocation154_spill] sm:$0xff] %v7889_v60  ;;  %11171 = vst [vmem:[#allocation156_spill] sm:$0xff] %v7894_v43 }
 0x300   : > { %11168 = vst [vmem:[#allocation153_spill] sm:$0xff] %v7887_v49  ;;  %v7891_v37 = vpop.f32.mrf.mxu0  ;;  %5505 = vset.pattern.permute.xlu1 %v11042_v32  ;;  %v2015_v47 = vpop.permute.xlu1 %2014  ;;  %11178 = vst [vmem:[#allocation163_spill] sm:$0xff] %v7913_v58 }
 0x301   : > { %11170 = vst [vmem:[#allocation155_spill] sm:$0xff] %v7891_v37  ;;  %3458 = vperm.xlu1 %5505, %v7456_v56   ;;  %v7901_v13 = vpop.f32.mrf.mxu1  ;;  %v2010_v52 = vpop.permute.xlu0 %2009  ;;  %11180 = vst [vmem:[#allocation165_spill] sm:$0xff] %v7918_v10  ;;  %v1846_v37 = vadd.f32 %v7383_v63, %v7918_v10 }
 0x302   : > { %v7897_v42 = vpop.f32.mrf.mxu0  ;;  %11174 = vst [vmem:[#allocation159_spill] sm:$0xff] %v7901_v13 }
 0x303   : > { %11172 = vst [vmem:[#allocation157_spill] sm:$0xff] %v7897_v42  ;;  %v7911_v40 = vpop.f32.mrf.mxu1  ;;  %v1844_v42 = vadd.f32 %v7378_v45, %v7913_v58 }
 0x304   : > { %v7899_v25 = vpop.f32.mrf.mxu0  ;;  %11177 = vst [vmem:[#allocation162_spill] sm:$0xff] %v7911_v40 }
 0x305   : > { %11173 = vst [vmem:[#allocation158_spill] sm:$0xff] %v7899_v25  ;;  %v7903_v51 = vpop.permute.xlu1 %2718  ;;  %5506 = vset.pattern.permute.xlu1 %v11041_v62  ;;  %v7920_v25 = vld [vmem:[#allocation4 + $0x50] sm:$0xff]  ;;  %v7922_v62 = vld [vmem:[#allocation4 + $0x58] sm:$0xff]  ;;  %v7945_v45 = vpop.f32.mrf.mxu1 }
 0x306   : > { %v7906_v11 = vpop.f32.mrf.mxu0  ;;  %2746 = vperm.xlu1 %5506, %v7438_v8   ;;  %11181 = vst [vmem:[#allocation166_spill] sm:$0xff] %v7920_v25  ;;  %11182 = vst [vmem:[#allocation167_spill] sm:$0xff] %v7922_v62  ;;  %v1848_v60 = vadd.f32 %v7392_v15, %v7920_v25  ;;  %v1856_v15 = vadd.f32 %v7417_v28, %v7943_v4  ;;  %v7951_v3 = vpop.permute.xlu0 %2734 }
 0x307   : > { %11175 = vst [vmem:[#allocation160_spill] sm:$0xff] %v7906_v11  ;;  %11189 = vst [vmem:[#allocation174_spill] sm:$0xff] %v7945_v45  ;;  %v7963_v28 = vpop.f32.mrf.mxu1 }
 0x308   : > { %v7909_v6 = vpop.f32.mrf.mxu0  ;;  %11190 = vst [vmem:[#allocation175_spill] sm:$0xff] %v7951_v3  ;;  %v2072_v45 = vmul.f32 %v2010_v52, %v1848_v60  ;;  %11192 = vst [vmem:[#allocation177_spill] sm:$0xff] %v7963_v28  ;;  %v2075_v0 = vmul.f32 %v2015_v47, %v1856_v15  ;;  %v8005_v15 = vld [vmem:[#allocation4 + $0x88] sm:$0xff] }
 0x309   : > { %11176 = vst [vmem:[#allocation161_spill] sm:$0xff] %v7909_v6  ;;  %v7941_v6 = vld [vmem:[#allocation4 + $0x60] sm:$0xff]  ;;  %11206 = vst [vmem:[#allocation189_spill] sm:$0xff] %v8005_v15 }
 0x30a   : > { %v7915_v27 = vpop.f32.mrf.mxu0  ;;  %5507 = vset.pattern.permute.xlu1 %v11042_v32  ;;  %v7924_v11 = vpop.permute.xlu1 %3422  ;;  %v1850_v32 = vadd.f32 %v7402_v29, %v7922_v62  ;;  %11187 = vst [vmem:[#allocation172_spill] sm:$0xff] %v7941_v6  ;;  %v1854_v63 = vadd.f32 %v7409_v2, %v7941_v6 }
 0x30b   : > { %11179 = vst [vmem:[#allocation164_spill] sm:$0xff] %v7915_v27  ;;  %11183 = vst [vmem:[#allocation168_spill] sm:$0xff] %v7924_v11  ;;  %3450 = vperm.xlu1 %5507, %v7438_v8   ;;  %v7937_v27 = vld [vmem:[#allocation4 + $0x78] sm:$0xff]  ;;  %v1858_v11 = vadd.f32 %v7423_v55, %v7935_v50  ;;  %v7967_v49 = vpop.permute.xlu0 %3430 }
 0x30c   : > { %11185 = vst [vmem:[#allocation170_spill] sm:$0xff] %v7937_v27  ;;  %v7939_v5 = vpop.f32.mrf.mxu0  ;;  %v1860_v40 = vadd.f32 %v7441_v22, %v7937_v27  ;;  %v2073_v43 = vmul.f32 %v2010_v52, %v1850_v32  ;;  %11194 = vst [vmem:[#allocation179_spill] sm:$0xff] %v7967_v49  ;;  %v7995_v32 = vld [vmem:[#allocation4 + $0x80] sm:$0xff] }
 0x30d   : > { %11186 = vst [vmem:[#allocation171_spill] sm:$0xff] %v7939_v5  ;;  %v2076_v22 = vmul.f32 %v2020_v36, %v1858_v11  ;;  %v1658_v11 = vrot.slane %v7447_v33, 4  ;;  %v11222_v49 = vld [vmem:[#allocation17_spill] sm:$0xff] }
 0x30e   : > { %v7953_v29 = vpop.f32.mrf.mxu0  ;;  %v2077_v5 = vmul.f32 %v2020_v36, %v1860_v40 }
 0x30f   : > { %11191 = vst [vmem:[#allocation176_spill] sm:$0xff] %v7953_v29  ;;  %v2005_v13 = vpop.permute.xlu1 %2004  ;;  %5508 = vset.pattern.permute.xlu1 %v11043_v26  ;;  %v2074_v29 = vmul.f32 %v2015_v47, %v1854_v63  ;;  %v7989_v36 = vpop.permute.xlu0 %2039 }
 0x310   : > { %v2070_v38 = vmul.f32 %v2005_v13, %v1844_v42  ;;  %v2071_v2 = vmul.f32 %v2005_v13, %v1846_v37  ;;  %v7960_v39 = vpop.f32.mrf.mxu0  ;;  %4154 = vperm.xlu1 %5508, %v7438_v8   ;;  %v7972_v37 = vpop.f32.mrf.mxu1 }
 0x311   : > { %11195 = vst [vmem:[#allocation180_spill] sm:$0xff] %v7972_v37  ;;  %v11231_v37 = vld [vmem:[#allocation32_spill] sm:$0xff] }
 0x312   : > { %v2112_v57 = vadd.f32 %v2072_v45, %v2070_v38  ;;  %v2121_v55 = vadd.f32 %v2073_v43, %v2071_v2  ;;  %v7965_v3 = vpop.f32.mrf.mxu0  ;;  %v7983_v47 = vpop.f32.mrf.mxu1  ;;  %v8009_v2 = vld [vmem:[#allocation4 + $0x98] sm:$0xff] }
 0x313   : > { %11193 = vst [vmem:[#allocation178_spill] sm:$0xff] %v7965_v3  ;;  %11199 = vst [vmem:[#allocation184_spill] sm:$0xff] %v7983_v47 }
 0x314   : > { %v2113_v26 = vadd.f32 %v2112_v57, %v2074_v29  ;;  %v2122_v60 = vadd.f32 %v2121_v55, %v2075_v0  ;;  %v7969_v42 = vpop.f32.mrf.mxu0  ;;  %4162 = vperm.xlu1 %5508, %v7456_v56   ;;  %v7974_v8 = vpop.permute.xlu1 %2710  ;;  %v1632_v0 = vrot.slane %v7374_v61, 4  ;;  %v1645_v56 = vrot.slane %v7407_v24, 4  ;;  %v8007_v29 = vld [vmem:[#allocation4 + $0x90] sm:$0xff]  ;;  %11208 = vst [vmem:[#allocation191_spill] sm:$0xff] %v8009_v2  ;;  %v11209_v55 = vld [vmem:[#allocation20_spill] sm:$0xff] }
 0x315   : > { %v7997_v45 = vpop.f32.mrf.mxu1  ;;  %11207 = vst [vmem:[#allocation190_spill] sm:$0xff] %v8007_v29 }
 0x316   : > { %v7976_v13 = vadd.f32 %v2113_v26, %v2076_v22  ;;  %v7978_v38 = vadd.f32 %v2122_v60, %v2077_v5  ;;  %v7980_v43 = vpop.f32.mrf.mxu0  ;;  %v11201_v5 = vld [vmem:[#allocation19_spill] sm:$0xff]  ;;  %11203 = vst [vmem:[#allocation186_spill] sm:$0xff] %v7997_v45  ;;  %v8003_v63 = vadd.f32 %v1645_v56, %v7407_v24  ;;  %v8013_v22 = vadd.f32 %v11209_v55, %v7995_v32  ;;  %v11211_v26 = vld [vmem:[#allocation18_spill] sm:$0xff]  ;;  %v8023_v24 = vld [vmem:[#allocation4 + $0xb8] sm:$0xff] }
 0x317   : > { %11198 = vst [vmem:[#allocation183_spill] sm:$0xff] %v7980_v43  ;;  %v1671_v40 = vrot.slane %v11201_v5, 4  ;;  %11202 = vst [vmem:[#allocation19_spill] sm:$0xff] %v7995_v32  ;;  %v8017_v60 = vadd.f32 %v11211_v26, %v8005_v15  ;;  %v3245_v56 = vadd.f32 %v7832_v44, %v7725_v21  ;;  %v8032_v55 = vadd.f32 %v1658_v11, %v7447_v33  ;;  %v11218_v26 = vld [vmem:[#allocation16_spill] sm:$0xff]  ;;  %v8048_v44 = vpop.permute.xlu0 %2738  ;;  %v11228_v11 = vld [vmem:[#allocation30_spill] sm:$0xff] }
 0x318   : > { %11196 = vst [vmem:[#allocation181_spill] sm:$0xff] %v7976_v13  ;;  %11197 = vst [vmem:[#allocation182_spill] sm:$0xff] %v7978_v38  ;;  %5510 = vset.pattern.permute.xlu1 %v10925_v30  ;;  %v7992_v52 = vpop.f32.mrf.mxu0  ;;  %v8000_v30 = vadd.f32 %v1632_v0, %v7374_v61  ;;  %v8021_v61 = vld [vmem:[#allocation4 + $0xb0] sm:$0xff]  ;;  %v3243_v0 = vadd.f32 %v7825_v16, %v7718_v46  ;;  %v8046_v16 = vld [vmem:[#allocation4 + $0xa8] sm:$0xff] }
 0x319   : > { %v7985_v57 = vpop.permute.xlu1 %3414  ;;  %11205 = vst [vmem:[#allocation188_spill] sm:$0xff] %v8003_v63  ;;  %11210 = vst [vmem:[#allocation20_spill] sm:$0xff] %v8013_v22  ;;  %v8036_v63 = vadd.f32 %v11218_v26, %v8007_v29  ;;  %v8053_v33 = vadd.f32 %v1671_v40, %v11201_v5  ;;  %v8057_v26 = vadd.f32 %v11228_v11, %v8046_v16  ;;  %v11232_v5 = vld [vmem:[#allocation15_spill] sm:$0xff]  ;;  %v11233_v11 = vld [vmem:[#allocation36_spill] sm:$0xff] }
 0x31a   : > { %11200 = vst [vmem:[#allocation185_spill] sm:$0xff] %v7985_v57  ;;  %11204 = vst [vmem:[#allocation187_spill] sm:$0xff] %v8000_v30  ;;  %v8019_v57 = vld [vmem:[#allocation4 + $0xa0] sm:$0xff]  ;;  %v8069_v45 = vadd.f32 %v11231_v37, %v8021_v61  ;;  %v8073_v40 = vadd.f32 %v11232_v5, %v8023_v24  ;;  %v2106_v37 = vrot.slane %v7780_v41, 4  ;;  %v3464_v5 = vmul.f32 %v7875_v18, %v3245_v56  ;;  %v11239_v38 = vld [vmem:[#allocation48_spill] sm:$0xff] }
 0x31b   : > { %11212 = vst [vmem:[#allocation18_spill] sm:$0xff] %v8017_v60  ;;  %11213 = vst [vmem:[#allocation192_spill] sm:$0xff] %v8019_v57  ;;  %v11220_v60 = vld [vmem:[#allocation14_spill] sm:$0xff]  ;;  %v8044_v47 = vadd.f32 %v11222_v49, %v8019_v57  ;;  %v3241_v49 = vadd.f32 %v7821_v59, %v7716_v31  ;;  %v8085_v59 = vld [vmem:[#allocation4 + $0xd0] sm:$0xff] }
 0x31c   : > { %11214 = vst [vmem:[#allocation193_spill] sm:$0xff] %v8021_v61  ;;  %11215 = vst [vmem:[#allocation194_spill] sm:$0xff] %v8023_v24  ;;  %v8040_v22 = vadd.f32 %v11220_v60, %v8009_v2  ;;  %v3239_v60 = vadd.f32 %v7814_v7, %v7714_v23  ;;  %v8101_v13 = vadd.f32 %v11239_v38, %v8085_v59  ;;  %v8133_v31 = vld [vmem:[#allocation4 + $0xe8] sm:$0xff] }
 0x31d   : > { %11217 = vst [vmem:[#allocation196_spill] sm:$0xff] %v8032_v55  ;;  %11219 = vst [vmem:[#allocation16_spill] sm:$0xff] %v8036_v63  ;;  %v8059_v55 = vld [vmem:[#allocation4 + $0xc0] sm:$0xff]  ;;  %v3463_v63 = vmul.f32 %v7875_v18, %v3243_v0  ;;  %v8107_v0 = vld [vmem:[#allocation4 + $0xd8] sm:$0xff]  ;;  %v3251_v38 = vadd.f32 %v7855_v53, %v7729_v20 }
 0x31e   : > { %v8029_v30 = vpop.permute.xlu1 %4118  ;;  %11221 = vst [vmem:[#allocation14_spill] sm:$0xff] %v8040_v22  ;;  %11223 = vst [vmem:[#allocation17_spill] sm:$0xff] %v8044_v47  ;;  %v8065_v47 = vpop.f32.mrf.mxu1  ;;  %v8083_v22 = vld [vmem:[#allocation4 + $0xc8] sm:$0xff]  ;;  %v8109_v18 = vld [vmem:[#allocation4 + $0xe0] sm:$0xff]  ;;  %v3461_v56 = vmul.f32 %v7770_v14, %v3239_v60 }
 0x31f   : > { %11216 = vst [vmem:[#allocation195_spill] sm:$0xff] %v8029_v30  ;;  %11224 = vst [vmem:[#allocation197_spill] sm:$0xff] %v8046_v16  ;;  %v8050_v30 = vpop.f32.mrf.mxu0  ;;  %v8135_v53 = vld [vmem:[#allocation4 + $0xf0] sm:$0xff] }
 0x320   : > { %11225 = vst [vmem:[#allocation198_spill] sm:$0xff] %v8048_v44  ;;  %11226 = vst [vmem:[#allocation199_spill] sm:$0xff] %v8050_v30  ;;  %v11241_v44 = vld [vmem:[#allocation33_spill] sm:$0xff] }
 0x321   : > { %11227 = vst [vmem:[#allocation200_spill] sm:$0xff] %v8053_v33  ;;  %11229 = vst [vmem:[#allocation30_spill] sm:$0xff] %v8057_v26  ;;  %v8077_v33 = vadd.f32 %v11233_v11, %v8059_v55  ;;  %v11235_v26 = vld [vmem:[#allocation29_spill] sm:$0xff]  ;;  %v11236_v11 = vld [vmem:[#allocation31_spill] sm:$0xff]  ;;  %v8105_v43 = vpop.f32.mrf.mxu0 }
 0x322   : > { %11230 = vst [vmem:[#allocation201_spill] sm:$0xff] %v8065_v47  ;;  %v8081_v7 = vadd.f32 %v11235_v26, %v7913_v58  ;;  %v2097_v47 = vrot.slane %v7778_v54, 4  ;;  %v11238_v26 = vld [vmem:[#allocation46_spill] sm:$0xff]  ;;  %11240 = vst [vmem:[#allocation36_spill] sm:$0xff] %v8101_v13  ;;  %v2559_v58 = vadd.f32 %v11241_v44, %v7920_v25  ;;  %v11245_v44 = vld [vmem:[#allocation47_spill] sm:$0xff] }
 0x323   : > { %11234 = vst [vmem:[#allocation32_spill] sm:$0xff] %v8077_v33  ;;  %v8091_v28 = vpop.permute.xlu1 %2722  ;;  %v8095_v33 = vadd.f32 %v11236_v11, %v8083_v22  ;;  %v2557_v30 = vadd.f32 %v11238_v26, %v7918_v10  ;;  %11242 = vst [vmem:[#allocation29_spill] sm:$0xff] %v8105_v43  ;;  %v3462_v11 = vmul.f32 %v7770_v14, %v3241_v49  ;;  %v11247_v43 = vld [vmem:[#allocation50_spill] sm:$0xff]  ;;  %v11248_v10 = vld [vmem:[#allocation52_spill] sm:$0xff]  ;;  %v8151_v21 = vpop.f32.mrf.mxu0 }
 0x324   : > { %11243 = vst [vmem:[#allocation31_spill] sm:$0xff] %v8109_v18  ;;  %v3249_v26 = vadd.f32 %v7841_v1, %v7727_v9  ;;  %v8121_v13 = vadd.f32 %v11245_v44, %v8107_v0  ;;  %v2561_v25 = vadd.f32 %v11247_v43, %v7922_v62  ;;  %v8127_v60 = vadd.f32 %v11248_v10, %v8109_v18  ;;  %v11250_v14 = vld [vmem:[#allocation49_spill] sm:$0xff]  ;;  %v8131_v1 = vpop.permute.xlu0 %3442  ;;  %v11254_v43 = vld [vmem:[#allocation51_spill] sm:$0xff]  ;;  %v11256_v10 = vld [vmem:[#allocation22_spill] sm:$0xff] }
 0x325   : > { %11237 = vst [vmem:[#allocation15_spill] sm:$0xff] %v8095_v33  ;;  %v8117_v33 = vpop.f32.mrf.mxu1  ;;  %v2565_v49 = vadd.f32 %v11250_v14, %v7941_v6  ;;  %11251 = vst [vmem:[#allocation47_spill] sm:$0xff] %v8131_v1  ;;  %v2107_v44 = vadd.f32 %v2106_v37, %v7780_v41  ;;  %v3502_v20 = vadd.f32 %v3464_v5, %v3462_v11  ;;  %v11257_v14 = vld [vmem:[#allocation23_spill] sm:$0xff]  ;;  %v11259_v6 = vld [vmem:[#allocation38_spill] sm:$0xff] }
 0x326   : > { %11244 = vst [vmem:[#allocation46_spill] sm:$0xff] %v8117_v33  ;;  %11246 = vst [vmem:[#allocation48_spill] sm:$0xff] %v8121_v13  ;;  %v2098_v33 = vadd.f32 %v2097_v47, %v7778_v54  ;;  %v3493_v13 = vadd.f32 %v3463_v63, %v3461_v56  ;;  %v8141_v62 = vadd.f32 %v11254_v43, %v8133_v31  ;;  %v8155_v41 = vld [vmem:[#allocation4 + $0xf8] sm:$0xff]  ;;  %v11263_v47 = vld [vmem:[#allocation99_spill] sm:$0xff] }
 0x327   : > { %11249 = vst [vmem:[#allocation33_spill] sm:$0xff] %v8127_v60  ;;  %11252 = vst [vmem:[#allocation50_spill] sm:$0xff] %v8133_v31  ;;  %v2567_v60 = vadd.f32 %v11256_v10, %v7943_v4  ;;  %v8147_v1 = vadd.f32 %v11257_v14, %v8135_v53  ;;  %v2569_v3 = vadd.f32 %v11259_v6, %v7935_v50  ;;  %v8163_v11 = vpop.f32.mrf.mxu1  ;;  %v11265_v6 = vld [vmem:[#allocation40_spill] sm:$0xff]  ;;  %v11267_v10 = vld [vmem:[#allocation37_spill] sm:$0xff] }
 0x328   : > { %11253 = vst [vmem:[#allocation52_spill] sm:$0xff] %v8135_v53  ;;  %11255 = vst [vmem:[#allocation49_spill] sm:$0xff] %v8141_v62  ;;  %v8153_v54 = vpop.permute.xlu1 %3426  ;;  %v3465_v63 = vmul.f32 %v11263_v47, %v3249_v26  ;;  %v3466_v37 = vmul.f32 %v11263_v47, %v3251_v38  ;;  %v3253_v5 = vadd.f32 %v7863_v19, %v7740_v34  ;;  %v11268_v62 = vld [vmem:[#allocation54_spill] sm:$0xff]  ;;  %v11270_v38 = vld [vmem:[#allocation53_spill] sm:$0xff]  ;;  %v2099_v19 = vrot.slane %v2098_v33, 2 }
 0x329   : > { %11258 = vst [vmem:[#allocation51_spill] sm:$0xff] %v8147_v1  ;;  %11260 = vst [vmem:[#allocation22_spill] sm:$0xff] %v8151_v21  ;;  %v3255_v56 = vadd.f32 %v7873_v17, %v7742_v12  ;;  %v8167_v43 = vadd.f32 %v11265_v6, %v8155_v41  ;;  %v2571_v14 = vadd.f32 %v11267_v10, %v7937_v27  ;;  %v11272_v21 = vld [vmem:[#allocation66_spill] sm:$0xff]  ;;  %v11274_v6 = vld [vmem:[#allocation65_spill] sm:$0xff] }
 0x32a   : > { %11261 = vst [vmem:[#allocation23_spill] sm:$0xff] %v8153_v54  ;;  %11262 = vst [vmem:[#allocation38_spill] sm:$0xff] %v8155_v41  ;;  %v8173_v26 = vadd.f32 %v11268_v62, %v7995_v32  ;;  %v8177_v47 = vadd.f32 %v11270_v38, %v8005_v15  ;;  %v2108_v54 = vrot.slane %v2107_v44, 2  ;;  %v3494_v17 = vadd.f32 %v3493_v13, %v3465_v63  ;;  %v11276_v10 = vld [vmem:[#allocation78_spill] sm:$0xff]  ;;  %v8191_v38 = vpop.permute.xlu0 %2029 }
 0x32b   : > { %11264 = vst [vmem:[#allocation99_spill] sm:$0xff] %v8163_v11  ;;  %11266 = vst [vmem:[#allocation40_spill] sm:$0xff] %v8167_v43  ;;  %v3503_v1 = vadd.f32 %v3502_v20, %v3466_v37  ;;  %v8181_v11 = vadd.f32 %v11272_v21, %v8007_v29  ;;  %v8185_v43 = vadd.f32 %v11274_v6, %v8009_v2  ;;  %v11279_v20 = vld [vmem:[#allocation92_spill] sm:$0xff]  ;;  %v11280_v21 = vld [vmem:[#allocation105_spill] sm:$0xff] }
 0x32c   : > { %11269 = vst [vmem:[#allocation37_spill] sm:$0xff] %v8173_v26  ;;  %11271 = vst [vmem:[#allocation54_spill] sm:$0xff] %v8177_v47  ;;  %v2585_v62 = vadd.f32 %v11276_v10, %v8019_v57  ;;  %v11277_v26 = vld [vmem:[#allocation93_spill] sm:$0xff]  ;;  %v8193_v47 = vpop.f32.mrf.mxu0  ;;  %v8197_v13 = vadd.f32 %v11279_v20, %v8021_v61  ;;  %v8201_v63 = vadd.f32 %v11280_v21, %v8023_v24  ;;  %v8205_v10 = vpop.f32.mrf.mxu1 }
 0x32d   : > { %11273 = vst [vmem:[#allocation53_spill] sm:$0xff] %v8181_v11  ;;  %11275 = vst [vmem:[#allocation66_spill] sm:$0xff] %v8185_v43  ;;  %v2587_v27 = vadd.f32 %v11277_v26, %v8046_v16  ;;  %v3467_v37 = vmul.f32 %v7816_v48, %v3253_v5  ;;  %v3468_v6 = vmul.f32 %v7816_v48, %v3255_v56  ;;  %v2715_v43 = vpop.permute.xlu1 %2714 }
 0x32e   : > { %11278 = vst [vmem:[#allocation65_spill] sm:$0xff] %v8193_v47  ;;  %11281 = vst [vmem:[#allocation78_spill] sm:$0xff] %v8205_v10  ;;  %v2765_v26 = vmul.f32 %v7974_v8, %v8081_v7  ;;  %v2766_v11 = vmul.f32 %v7974_v8, %v2557_v30  ;;  %v2767_v47 = vmul.f32 %v2715_v43, %v2559_v58  ;;  %v8212_v24 = vpop.f32.mrf.mxu0  ;;  %v11283_v10 = vld [vmem:[#allocation25_spill] sm:$0xff]  ;;  %v11284_v8 = vld [vmem:[#allocation42_spill] sm:$0xff]  ;;  %v8224_v7 = vpop.f32.mrf.mxu1 }
 0x32f   : > { %v2768_v16 = vmul.f32 %v2715_v43, %v2561_v25  ;;  %v2100_v20 = vadd.f32 %v2099_v19, %v2098_v33  ;;  %v2109_v57 = vadd.f32 %v2108_v54, %v2107_v44  ;;  %v3495_v2 = vadd.f32 %v3494_v17, %v3467_v37  ;;  %11282 = vst [vmem:[#allocation93_spill] sm:$0xff] %v8212_v24  ;;  %v11285_v30 = vld [vmem:[#allocation153_spill] sm:$0xff]  ;;  %v11286_v44 = vld [vmem:[#allocation58_spill] sm:$0xff]  ;;  %v8234_v19 = vpop.permute.xlu0 %4138  ;;  %v11331_v24 = vld [vmem:[#allocation159_spill] sm:$0xff] }
 0x330   : > { %v3504_v29 = vadd.f32 %v3503_v1, %v3468_v6  ;;  %v2769_v21 = vmul.f32 %v7903_v51, %v2565_v49  ;;  %v2770_v5 = vmul.f32 %v7903_v51, %v2567_v60  ;;  %v2807_v48 = vadd.f32 %v2767_v47, %v2765_v26  ;;  %11288 = vst [vmem:[#allocation105_spill] sm:$0xff] %v8234_v19  ;;  %v11291_v6 = vld [vmem:[#allocation57_spill] sm:$0xff]  ;;  %v11293_v26 = vld [vmem:[#allocation62_spill] sm:$0xff]  ;;  %v11317_v19 = vld [vmem:[#allocation163_spill] sm:$0xff] }
 0x331   : > { %v2816_v56 = vadd.f32 %v2768_v16, %v2766_v11  ;;  %v8216_v61 = vadd.f32 %v11283_v10, %v8059_v55  ;;  %v8220_v58 = vadd.f32 %v11284_v8, %v8083_v22  ;;  %v2792_v25 = vrot.slane %v7885_v35, 4 }
 0x332   : > { %v2801_v33 = vrot.slane %v11285_v30, 4  ;;  %v2771_v51 = vmul.f32 %v8091_v28, %v2569_v3  ;;  %v2772_v60 = vmul.f32 %v8091_v28, %v2571_v14  ;;  %v2808_v49 = vadd.f32 %v2807_v48, %v2769_v21  ;;  %v8228_v1 = vpop.permute.xlu1 %3418  ;;  %v8238_v3 = vpop.f32.mrf.mxu0 }
 0x333   : > { %v2817_v16 = vadd.f32 %v2816_v56, %v2770_v5  ;;  %v8232_v54 = vadd.f32 %v11286_v44, %v8085_v59  ;;  %v2101_v11 = vrot.slane %v2100_v20, 1  ;;  %v3496_v43 = vrot.slane %v3495_v2, 4  ;;  %v11294_v5 = vld [vmem:[#allocation70_spill] sm:$0xff]  ;;  %v8260_v56 = vpop.f32.mrf.mxu1  ;;  %v11298_v44 = vld [vmem:[#allocation83_spill] sm:$0xff] }
 0x334   : > { %v3505_v47 = vrot.slane %v3504_v29, 4  ;;  %v2110_v17 = vrot.slane %v2109_v57, 1  ;;  %v3947_v37 = vadd.f32 %v7960_v39, %v7718_v46  ;;  %v8240_v28 = vadd.f32 %v2808_v49, %v2771_v51  ;;  %v11295_v46 = vld [vmem:[#allocation69_spill] sm:$0xff] }
 0x335   : > { %11287 = vst [vmem:[#allocation92_spill] sm:$0xff] %v8232_v54  ;;  %v8242_v14 = vadd.f32 %v2817_v16, %v2772_v60  ;;  %v8246_v10 = vadd.f32 %v11291_v6, %v8107_v0  ;;  %v8250_v21 = vadd.f32 %v11293_v26, %v8109_v18  ;;  %v8254_v48 = vadd.f32 %v11294_v5, %v8133_v31  ;;  %v11297_v60 = vld [vmem:[#allocation171_spill] sm:$0xff] }
 0x336   : > { %11289 = vst [vmem:[#allocation25_spill] sm:$0xff] %v8240_v28  ;;  %v8258_v39 = vadd.f32 %v11295_v46, %v8135_v53  ;;  %v2793_v8 = vadd.f32 %v2792_v25, %v7885_v35  ;;  %v2802_v51 = vadd.f32 %v2801_v33, %v11285_v30  ;;  %v3943_v49 = vadd.f32 %v11297_v60, %v7714_v23  ;;  %v11304_v25 = vld [vmem:[#allocation146_spill] sm:$0xff]  ;;  %v8282_v33 = vpop.f32.mrf.mxu0  ;;  %v11313_v60 = vld [vmem:[#allocation111_spill] sm:$0xff] }
 0x337   : > { %11290 = vst [vmem:[#allocation42_spill] sm:$0xff] %v8242_v14  ;;  %11292 = vst [vmem:[#allocation153_spill] sm:$0xff] %v8246_v10  ;;  %v3953_v16 = vadd.f32 %v7969_v42, %v7727_v9  ;;  %v8270_v6 = vadd.f32 %v11298_v44, %v8155_v41  ;;  %v3497_v26 = vadd.f32 %v3496_v43, %v3495_v2  ;;  %v8272_v46 = vpop.permute.xlu1 %4122  ;;  %v11302_v10 = vld [vmem:[#allocation175_spill] sm:$0xff]  ;;  %v11314_v44 = vld [vmem:[#allocation176_spill] sm:$0xff] }
 0x338   : > { %11296 = vst [vmem:[#allocation58_spill] sm:$0xff] %v8258_v39  ;;  %v3506_v5 = vadd.f32 %v3505_v47, %v3504_v29  ;;  %11300 = vst [vmem:[#allocation62_spill] sm:$0xff] %v8272_v46  ;;  %v8274_v39 = vadd.f32 %v2101_v11, %v2100_v20  ;;  %v8277_v35 = vmul.f32 %v11302_v10, %v2585_v62  ;;  %v8297_v62 = vpop.permute.xlu0 %2750  ;;  %v11309_v20 = vld [vmem:[#allocation115_spill] sm:$0xff]  ;;  %v11310_v11 = vld [vmem:[#allocation178_spill] sm:$0xff]  ;;  %v2803_v43 = vrot.slane %v2802_v51, 2 }
 0x339   : > { %11299 = vst [vmem:[#allocation57_spill] sm:$0xff] %v8270_v6  ;;  %v4167_v30 = vmul.f32 %v11304_v25, %v3947_v37  ;;  %v3957_v23 = vadd.f32 %v7992_v52, %v7740_v34  ;;  %11305 = vst [vmem:[#allocation171_spill] sm:$0xff] %v8282_v33  ;;  %v8284_v9 = vadd.f32 %v2110_v17, %v2109_v57  ;;  %v8301_v52 = vpop.f32.mrf.mxu1  ;;  %v2794_v57 = vrot.slane %v2793_v8, 2  ;;  %v11311_v47 = vld [vmem:[#allocation131_spill] sm:$0xff]  ;;  %v11312_v17 = vld [vmem:[#allocation109_spill] sm:$0xff] }
 0x33a   : > { %11301 = vst [vmem:[#allocation70_spill] sm:$0xff] %v8274_v39  ;;  %11303 = vst [vmem:[#allocation69_spill] sm:$0xff] %v8277_v35  ;;  %v8287_v42 = vmul.f32 %v11302_v10, %v2587_v27  ;;  %v8291_v29 = vmul.f32 %v7989_v36, %v8069_v45  ;;  %v8295_v2 = vmul.f32 %v7989_v36, %v8073_v40  ;;  %v3498_v10 = vrot.slane %v3497_v26, 2  ;;  %v11315_v36 = vld [vmem:[#allocation116_spill] sm:$0xff]  ;;  %v11316_v40 = vld [vmem:[#allocation183_spill] sm:$0xff] }
 0x33b   : > { %11306 = vst [vmem:[#allocation83_spill] sm:$0xff] %v8284_v9  ;;  %v3949_v34 = vadd.f32 %v11310_v11, %v11309_v20  ;;  %v4165_v27 = vmul.f32 %v11311_v47, %v3943_v49  ;;  %v4169_v37 = vmul.f32 %v11312_v17, %v3953_v16  ;;  %v3507_v45 = vrot.slane %v3506_v5, 2  ;;  %v11319_v20 = vld [vmem:[#allocation198_spill] sm:$0xff]  ;;  %v11321_v49 = vld [vmem:[#allocation143_spill] sm:$0xff]  ;;  %v8318_v16 = vpop.f32.mrf.mxu0  ;;  %v11323_v46 = vld [vmem:[#allocation181_spill] sm:$0xff]  ;;  %v8327_v28 = vpop.f32.mrf.mxu1 }
 0x33c   : > { %11307 = vst [vmem:[#allocation175_spill] sm:$0xff] %v8287_v42  ;;  %11308 = vst [vmem:[#allocation146_spill] sm:$0xff] %v8295_v2  ;;  %v3945_v6 = vadd.f32 %v11314_v44, %v11313_v60  ;;  %v3955_v54 = vadd.f32 %v11316_v40, %v11315_v36  ;;  %v11318_v2 = vld [vmem:[#allocation152_spill] sm:$0xff]  ;;  %v8315_v11 = vmul.f32 %v11319_v20, %v8197_v13  ;;  %v8320_v53 = vpop.permute.xlu1 %2034  ;;  %v2115_v60 = vrot.slane %v11323_v46, 4  ;;  %v11324_v44 = vld [vmem:[#allocation182_spill] sm:$0xff]  ;;  %v8334_v39 = vpop.permute.xlu0 %3454 }
 0x33d   : > { %v8311_v41 = vadd.f32 %v11318_v2, %v11317_v19  ;;  %v4197_v42 = vadd.f32 %v4167_v30, %v4165_v27  ;;  %v4171_v35 = vmul.f32 %v11321_v49, %v3957_v23  ;;  %11322 = vst [vmem:[#allocation178_spill] sm:$0xff] %v8318_v16  ;;  %v2124_v14 = vrot.slane %v11324_v44, 4  ;;  %v11325_v2 = vld [vmem:[#allocation199_spill] sm:$0xff]  ;;  %11327 = vst [vmem:[#allocation109_spill] sm:$0xff] %v8334_v39  ;;  %v11329_v33 = vld [vmem:[#allocation156_spill] sm:$0xff] }
 0x33e   : > { %11320 = vst [vmem:[#allocation115_spill] sm:$0xff] %v8315_v11  ;;  %v4168_v36 = vmul.f32 %v11304_v25, %v3949_v34  ;;  %v3959_v40 = vadd.f32 %v11325_v2, %v7742_v12  ;;  %v2795_v13 = vadd.f32 %v2794_v57, %v2793_v8  ;;  %v2804_v11 = vadd.f32 %v2803_v43, %v2802_v51  ;;  %v11328_v34 = vld [vmem:[#allocation165_spill] sm:$0xff]  ;;  %v11330_v2 = vld [vmem:[#allocation166_spill] sm:$0xff]  ;;  %v11332_v51 = vld [vmem:[#allocation167_spill] sm:$0xff] }
 0x33f   : > { %v8331_v30 = vmul.f32 %v11319_v20, %v8201_v63  ;;  %v4198_v23 = vadd.f32 %v4197_v42, %v4169_v37  ;;  %v3499_v27 = vadd.f32 %v3498_v10, %v3497_v26  ;;  %v3508_v16 = vadd.f32 %v3507_v45, %v3506_v5  ;;  %v11333_v57 = vld [vmem:[#allocation162_spill] sm:$0xff]  ;;  %v8347_v26 = vpop.f32.mrf.mxu0  ;;  %v11336_v37 = vld [vmem:[#allocation172_spill] sm:$0xff] }
 0x340   : > { %v4166_v9 = vmul.f32 %v11311_v47, %v3945_v6  ;;  %v4170_v25 = vmul.f32 %v11312_v17, %v3955_v54  ;;  %v3261_v12 = vadd.f32 %v11329_v33, %v11328_v34  ;;  %v8341_v8 = vadd.f32 %v11331_v24, %v11330_v2  ;;  %11334 = vst [vmem:[#allocation111_spill] sm:$0xff] %v8347_v26  ;;  %v8352_v47 = vpop.f32.mrf.mxu1  ;;  %v11337_v10 = vld [vmem:[#allocation174_spill] sm:$0xff] }
 0x341   : > { %11326 = vst [vmem:[#allocation131_spill] sm:$0xff] %v8331_v30  ;;  %v8345_v63 = vadd.f32 %v11333_v57, %v11332_v51  ;;  %v4199_v42 = vadd.f32 %v4198_v23, %v4171_v35  ;;  %v2116_v6 = vadd.f32 %v2115_v60, %v11323_v46  ;;  %v2125_v5 = vadd.f32 %v2124_v14, %v11324_v44  ;;  %v8354_v33 = vpop.permute.xlu1 %3438  ;;  %v11338_v35 = vld [vmem:[#allocation177_spill] sm:$0xff]  ;;  %v11339_v46 = vld [vmem:[#allocation16_spill] sm:$0xff]  ;;  %v11340_v60 = vld [vmem:[#allocation14_spill] sm:$0xff] }
 0x342   : > { %v4206_v43 = vadd.f32 %v4168_v36, %v4166_v9  ;;  %v4172_v54 = vmul.f32 %v11321_v49, %v3959_v40  ;;  %11335 = vst [vmem:[#allocation176_spill] sm:$0xff] %v8354_v33  ;;  %v2796_v24 = vrot.slane %v2795_v13, 1  ;;  %v2805_v17 = vrot.slane %v2804_v11, 1  ;;  %v11341_v44 = vld [vmem:[#allocation186_spill] sm:$0xff]  ;;  %v11342_v40 = vld [vmem:[#allocation201_spill] sm:$0xff] }
 0x343   : > { %v3269_v45 = vadd.f32 %v11337_v10, %v11336_v37  ;;  %v3271_v20 = vadd.f32 %v11338_v35, %v7943_v4  ;;  %v3500_v23 = vrot.slane %v3499_v27, 1  ;;  %v3509_v57 = vrot.slane %v3508_v16, 1  ;;  %v8368_v10 = vpop.f32.mrf.mxu0  ;;  %v11344_v35 = vld [vmem:[#allocation180_spill] sm:$0xff] }
 0x344   : > { %v2080_v14 = vmul.f32 %v8191_v38, %v11339_v46  ;;  %v4207_v9 = vadd.f32 %v4206_v43, %v4170_v25  ;;  %v2081_v49 = vmul.f32 %v8191_v38, %v11340_v60  ;;  %v3279_v36 = vadd.f32 %v11341_v44, %v7995_v32  ;;  %11343 = vst [vmem:[#allocation116_spill] sm:$0xff] %v8368_v10  ;;  %v2743_v25 = vpop.permute.xlu0 %2742  ;;  %v8374_v43 = vpop.f32.mrf.mxu1  ;;  %v11346_v38 = vld [vmem:[#allocation170_spill] sm:$0xff]  ;;  %v11347_v60 = vld [vmem:[#allocation184_spill] sm:$0xff] }
 0x345   : > { %v3281_v33 = vadd.f32 %v11342_v40, %v8005_v15  ;;  %v4200_v30 = vrot.slane %v4199_v42, 4  ;;  %v8372_v26 = vadd.f32 %v11344_v35, %v7935_v50  ;;  %v2117_v39 = vrot.slane %v2116_v6, 2  ;;  %v11348_v44 = vld [vmem:[#allocation168_spill] sm:$0xff] }
 0x346   : > { %v2126_v4 = vrot.slane %v2125_v5, 2  ;;  %v4208_v46 = vadd.f32 %v4207_v9, %v4172_v54  ;;  %v8378_v51 = vadd.f32 %v11347_v60, %v11346_v38  ;;  %v8381_v32 = vmul.f32 %v11348_v44, %v3269_v45  ;;  %v8383_v40 = vpop.permute.xlu1 %4142  ;;  %v11352_v54 = vld [vmem:[#allocation193_spill] sm:$0xff]  ;;  %v11355_v60 = vld [vmem:[#allocation179_spill] sm:$0xff] }
 0x347   : > { %11345 = vst [vmem:[#allocation183_spill] sm:$0xff] %v8372_v26  ;;  %11349 = vst [vmem:[#allocation163_spill] sm:$0xff] %v8383_v40  ;;  %v8385_v15 = vadd.f32 %v2796_v24, %v2795_v13  ;;  %v8387_v10 = vadd.f32 %v2805_v17, %v2804_v11  ;;  %v8390_v35 = vmul.f32 %v11348_v44, %v3271_v20  ;;  %v11358_v13 = vld [vmem:[#allocation190_spill] sm:$0xff]  ;;  %v8408_v20 = vpop.f32.mrf.mxu0 }
 0x348   : > { %v3293_v9 = vadd.f32 %v8260_v56, %v11352_v54  ;;  %v8394_v26 = vadd.f32 %v3500_v23, %v3499_v27  ;;  %v8396_v50 = vadd.f32 %v3509_v57, %v3508_v16  ;;  %v8399_v38 = vmul.f32 %v11355_v60, %v3279_v36  ;;  %v11359_v24 = vld [vmem:[#allocation46_spill] sm:$0xff]  ;;  %v3304_v27 = vpop.f32.mrf.mxu1  ;;  %v11364_v57 = vld [vmem:[#allocation99_spill] sm:$0xff] }
 0x349   : > { %11350 = vst [vmem:[#allocation152_spill] sm:$0xff] %v8385_v15  ;;  %11351 = vst [vmem:[#allocation198_spill] sm:$0xff] %v8387_v10  ;;  %v8402_v45 = vmul.f32 %v11355_v60, %v3281_v33  ;;  %v8406_v11 = vadd.f32 %v11359_v24, %v11358_v13  ;;  %v4201_v17 = vadd.f32 %v4200_v30, %v4199_v42  ;;  %v4209_v16 = vrot.slane %v4208_v46, 4  ;;  %v11363_v33 = vld [vmem:[#allocation191_spill] sm:$0xff]  ;;  %v11366_v60 = vld [vmem:[#allocation192_spill] sm:$0xff]  ;;  %v8440_v15 = vpop.f32.mrf.mxu0 }
 0x34a   : > { %11353 = vst [vmem:[#allocation143_spill] sm:$0xff] %v8394_v26  ;;  %11354 = vst [vmem:[#allocation181_spill] sm:$0xff] %v8396_v50  ;;  %v2118_v44 = vadd.f32 %v2117_v39, %v2116_v6  ;;  %v2127_v10 = vadd.f32 %v2126_v4, %v2125_v5  ;;  %v8412_v56 = vmul.f32 %v8297_v62, %v8250_v21  ;;  %v11367_v30 = vld [vmem:[#allocation78_spill] sm:$0xff]  ;;  %v11369_v39 = vld [vmem:[#allocation197_spill] sm:$0xff] }
 0x34b   : > { %11356 = vst [vmem:[#allocation182_spill] sm:$0xff] %v8399_v38  ;;  %11357 = vst [vmem:[#allocation199_spill] sm:$0xff] %v8402_v45  ;;  %v8416_v23 = vmul.f32 %v8297_v62, %v8254_v48  ;;  %v8420_v36 = vadd.f32 %v11364_v57, %v11363_v33  ;;  %v8424_v42 = vadd.f32 %v11367_v30, %v11366_v60  ;;  %v11371_v21 = vld [vmem:[#allocation47_spill] sm:$0xff]  ;;  %v11373_v5 = vld [vmem:[#allocation185_spill] sm:$0xff]  ;;  %v4202_v50 = vrot.slane %v4201_v17, 2  ;;  %v3308_v38 = vpop.f32.mrf.mxu1 }
 0x34c   : > { %11360 = vst [vmem:[#allocation165_spill] sm:$0xff] %v8406_v11  ;;  %11361 = vst [vmem:[#allocation156_spill] sm:$0xff] %v8412_v56  ;;  %v8428_v4 = vadd.f32 %v8224_v7, %v11369_v39  ;;  %v8431_v6 = vmul.f32 %v11371_v21, %v3293_v9  ;;  %v3469_v24 = vmul.f32 %v11373_v5, %v8311_v41  ;;  %v11374_v62 = vld [vmem:[#allocation194_spill] sm:$0xff]  ;;  %v2025_v56 = vpop.permute.xlu1 %2024  ;;  %v11375_v30 = vld [vmem:[#allocation29_spill] sm:$0xff]  ;;  %v2128_v45 = vrot.slane %v2127_v10, 1 }
 0x34d   : > { %11362 = vst [vmem:[#allocation166_spill] sm:$0xff] %v8416_v23  ;;  %11365 = vst [vmem:[#allocation159_spill] sm:$0xff] %v8420_v36  ;;  %v3470_v48 = vmul.f32 %v11373_v5, %v3261_v12  ;;  %v3295_v57 = vadd.f32 %v8301_v52, %v11374_v62  ;;  %v3447_v23 = vpop.permute.xlu0 %3446  ;;  %v3963_v26 = vadd.f32 %v11375_v30, %v11317_v19  ;;  %v11376_v7 = vld [vmem:[#allocation20_spill] sm:$0xff]  ;;  %v11377_v9 = vld [vmem:[#allocation18_spill] sm:$0xff] }
 0x34e   : > { %11368 = vst [vmem:[#allocation162_spill] sm:$0xff] %v8424_v42  ;;  %11370 = vst [vmem:[#allocation172_spill] sm:$0xff] %v8428_v4  ;;  %v2078_v4 = vmul.f32 %v2025_v56, %v11376_v7  ;;  %v2119_v42 = vrot.slane %v2118_v44, 1  ;;  %v4210_v41 = vadd.f32 %v4209_v16, %v4208_v46  ;;  %v11378_v12 = vld [vmem:[#allocation22_spill] sm:$0xff]  ;;  %v11379_v52 = vld [vmem:[#allocation17_spill] sm:$0xff]  ;;  %v3299_v46 = vadd.f32 %v8327_v28, %v8059_v55 }
 0x34f   : > { %11372 = vst [vmem:[#allocation174_spill] sm:$0xff] %v8431_v6  ;;  %v2079_v6 = vmul.f32 %v2025_v56, %v11377_v9  ;;  %v3965_v5 = vadd.f32 %v11378_v12, %v11328_v34  ;;  %v2082_v36 = vmul.f32 %v8320_v53, %v11379_v52  ;;  %v11380_v11 = vld [vmem:[#allocation30_spill] sm:$0xff]  ;;  %v8451_v7 = vmul.f32 %v11371_v21, %v3295_v57  ;;  %v8463_v12 = vpop.f32.mrf.mxu0  ;;  %v11392_v57 = vld [vmem:[#allocation93_spill] sm:$0xff] }
 0x350   : > { %v2083_v19 = vmul.f32 %v8320_v53, %v11380_v11  ;;  %v2130_v30 = vadd.f32 %v2080_v14, %v2078_v4  ;;  %v8454_v56 = vmul.f32 %v2743_v25, %v8216_v61  ;;  %v3301_v34 = vadd.f32 %v8352_v47, %v8083_v22  ;;  %v11383_v4 = vld [vmem:[#allocation195_spill] sm:$0xff] }
 0x351   : > { %v2139_v40 = vadd.f32 %v2081_v49, %v2079_v6  ;;  %v4203_v16 = vadd.f32 %v4202_v50, %v4201_v17  ;;  %v8461_v9 = vmul.f32 %v2743_v25, %v8220_v58  ;;  %v2727_v49 = vpop.permute.xlu1 %2726  ;;  %v4211_v11 = vrot.slane %v4210_v41, 2  ;;  %v2060_v28 = vpop.permute.xlu0 %2059 }
 0x352   : > { %11381 = vst [vmem:[#allocation177_spill] sm:$0xff] %v8454_v56  ;;  %v2131_v53 = vadd.f32 %v2130_v30, %v2082_v36  ;;  %v8468_v61 = vmul.f32 %v11383_v4, %v3963_v26  ;;  %v8471_v21 = vmul.f32 %v11383_v4, %v3965_v5  ;;  %v3310_v6 = vpop.f32.mrf.mxu1  ;;  %v8473_v47 = vadd.f32 %v2119_v42, %v2118_v44 }
 0x353   : > { %11382 = vst [vmem:[#allocation16_spill] sm:$0xff] %v8461_v9  ;;  %v8465_v14 = vadd.f32 %v2139_v40, %v2083_v19  ;;  %v3471_v50 = vmul.f32 %v8228_v1, %v8341_v8  ;;  %v3472_v58 = vmul.f32 %v8228_v1, %v8345_v63  ;;  %v8482_v40 = vadd.f32 %v2128_v45, %v2127_v10  ;;  %v11389_v1 = vld [vmem:[#allocation65_spill] sm:$0xff]  ;;  %v8498_v10 = vpop.f32.mrf.mxu0 }
 0x354   : > { %11384 = vst [vmem:[#allocation14_spill] sm:$0xff] %v8473_v47  ;;  %v8480_v25 = vadd.f32 %v2131_v53, %v8291_v29  ;;  %v8484_v26 = vmul.f32 %v3447_v23, %v3299_v46  ;;  %v8486_v17 = vmul.f32 %v3447_v23, %v3301_v34  ;;  %v3309_v36 = vadd.f32 %v3308_v38, %v8109_v18  ;;  %v11391_v38 = vld [vmem:[#allocation167_spill] sm:$0xff]  ;;  %v11395_v46 = vld [vmem:[#allocation70_spill] sm:$0xff] }
 0x355   : > { %11385 = vst [vmem:[#allocation186_spill] sm:$0xff] %v8482_v40  ;;  %v3973_v44 = vadd.f32 %v8238_v3, %v11336_v37  ;;  %v4204_v42 = vrot.slane %v4203_v16, 1  ;;  %v8493_v8 = vadd.f32 %v8374_v43, %v8085_v59  ;;  %v3967_v29 = vadd.f32 %v11389_v1, %v11330_v2  ;;  %v11393_v3 = vld [vmem:[#allocation173_spill] sm:$0xff]  ;;  %v11394_v37 = vld [vmem:[#allocation171_spill] sm:$0xff]  ;;  %v8507_v19 = vpop.permute.xlu1 %4134 }
 0x356   : > { %11386 = vst [vmem:[#allocation201_spill] sm:$0xff] %v8484_v26  ;;  %11387 = vst [vmem:[#allocation180_spill] sm:$0xff] %v8486_v17  ;;  %v3311_v63 = vadd.f32 %v3310_v6, %v8133_v31  ;;  %v4212_v45 = vadd.f32 %v4211_v11, %v4210_v41  ;;  %v8501_v23 = vadd.f32 %v3304_v27, %v8107_v0  ;;  %v11396_v34 = vld [vmem:[#allocation83_spill] sm:$0xff]  ;;  %v11398_v41 = vld [vmem:[#allocation109_spill] sm:$0xff] }
 0x357   : > { %11388 = vst [vmem:[#allocation184_spill] sm:$0xff] %v8493_v8  ;;  %v3969_v5 = vadd.f32 %v11392_v57, %v11391_v38  ;;  %v3975_v52 = vadd.f32 %v11394_v37, %v11393_v3  ;;  %v3511_v43 = vadd.f32 %v3471_v50, %v3469_v24  ;;  %v3520_v30 = vadd.f32 %v3472_v58, %v3470_v48  ;;  %v11400_v11 = vld [vmem:[#allocation150_spill] sm:$0xff]  ;;  %v11401_v6 = vld [vmem:[#allocation51_spill] sm:$0xff]  ;;  %v11402_v24 = vld [vmem:[#allocation40_spill] sm:$0xff]  ;;  %v2050_v50 = vpop.permute.xlu0 %2049 }
 0x358   : > { %11390 = vst [vmem:[#allocation168_spill] sm:$0xff] %v8501_v23  ;;  %v8512_v2 = vsel %vm2174_vm4, %v8473_v47, %v11395_v46  ;;  %v8517_v27 = vsel %vm2174_vm4, %v8482_v40, %v11396_v34  ;;  %v8520_v53 = vmul.f32 %v11398_v41, %v3309_v36  ;;  %v8523_v4 = vmul.f32 %v11400_v11, %v3973_v44  ;;  %v11405_v57 = vld [vmem:[#allocation25_spill] sm:$0xff]  ;;  %v11406_v37 = vld [vmem:[#allocation42_spill] sm:$0xff]  ;;  %v8538_v40 = vpop.f32.mrf.mxu0  ;;  %v3312_v44 = vpop.f32.mrf.mxu1 }
 0x359   : > { %11397 = vst [vmem:[#allocation193_spill] sm:$0xff] %v8517_v27  ;;  %v8526_v1 = vmul.f32 %v2060_v28, %v11401_v6  ;;  %v8529_v48 = vmul.f32 %v2060_v28, %v11402_v24  ;;  %v8531_v58 = vadd.f32 %v4204_v42, %v4203_v16  ;;  %v8534_v38 = vmul.f32 %v11398_v41, %v3311_v63  ;;  %v11407_v34 = vld [vmem:[#allocation169_spill] sm:$0xff]  ;;  %v11408_v46 = vld [vmem:[#allocation178_spill] sm:$0xff]  ;;  %v11409_v24 = vld [vmem:[#allocation183_spill] sm:$0xff] }
 0x35a   : > { %11399 = vst [vmem:[#allocation179_spill] sm:$0xff] %v8520_v53  ;;  %v2810_v3 = vrot.slane %v11405_v57, 4  ;;  %v2819_v36 = vrot.slane %v11406_v37, 4  ;;  %v4213_v47 = vrot.slane %v4212_v45, 1  ;;  %v4178_v6 = vmul.f32 %v11400_v11, %v3975_v52  ;;  %v11410_v53 = vld [vmem:[#allocation23_spill] sm:$0xff]  ;;  %v11411_v63 = vld [vmem:[#allocation36_spill] sm:$0xff]  ;;  %v2731_v17 = vpop.permute.xlu1 %2730 }
 0x35b   : > { %11403 = vst [vmem:[#allocation190_spill] sm:$0xff] %v8531_v58  ;;  %11404 = vst [vmem:[#allocation46_spill] sm:$0xff] %v8534_v38  ;;  %v3977_v28 = vadd.f32 %v11408_v46, %v11407_v34  ;;  %v3475_v16 = vmul.f32 %v11410_v53, %v11409_v24  ;;  %v3476_v42 = vmul.f32 %v11410_v53, %v8378_v51  ;;  %v11412_v26 = vld [vmem:[#allocation37_spill] sm:$0xff]  ;;  %v11413_v52 = vld [vmem:[#allocation54_spill] sm:$0xff] }
 0x35c   : > { %v8548_v41 = vmul.f32 %v2050_v50, %v11411_v63  ;;  %v3512_v58 = vadd.f32 %v3511_v43, %v8381_v32  ;;  %v3521_v38 = vadd.f32 %v3520_v30, %v8390_v35  ;;  %v2773_v23 = vmul.f32 %v2727_v49, %v11412_v26  ;;  %v11414_v8 = vld [vmem:[#allocation53_spill] sm:$0xff]  ;;  %v11415_v34 = vld [vmem:[#allocation66_spill] sm:$0xff]  ;;  %v11416_v24 = vld [vmem:[#allocation48_spill] sm:$0xff]  ;;  %v3996_v35 = vpop.f32.mrf.mxu0  ;;  %v3314_v43 = vpop.f32.mrf.mxu1 }
 0x35d   : > { %v2774_v11 = vmul.f32 %v2727_v49, %v11413_v52  ;;  %v2775_v46 = vmul.f32 %v2731_v17, %v11414_v8  ;;  %v2776_v9 = vmul.f32 %v2731_v17, %v11415_v34  ;;  %v8557_v56 = vmul.f32 %v2050_v50, %v11416_v24  ;;  %v11417_v51 = vld [vmem:[#allocation170_spill] sm:$0xff]  ;;  %v11418_v53 = vld [vmem:[#allocation111_spill] sm:$0xff]  ;;  %v11420_v34 = vld [vmem:[#allocation52_spill] sm:$0xff] }
 0x35e   : > { %v3979_v63 = vadd.f32 %v11418_v53, %v11417_v51  ;;  %v2811_v31 = vadd.f32 %v2810_v3, %v11405_v57  ;;  %v2820_v32 = vadd.f32 %v2819_v36, %v11406_v37  ;;  %v11419_v30 = vld [vmem:[#allocation62_spill] sm:$0xff]  ;;  %v8565_v18 = vadd.f32 %v4213_v47, %v4212_v45  ;;  %v11421_v3 = vld [vmem:[#allocation69_spill] sm:$0xff]  ;;  %v11422_v36 = vld [vmem:[#allocation175_spill] sm:$0xff]  ;;  %v4131_v47 = vpop.permute.xlu0 %4130 }
 0x35f   : > { %v4175_v26 = vmul.f32 %v11419_v30, %v3967_v29  ;;  %v4176_v49 = vmul.f32 %v11419_v30, %v3969_v5  ;;  %v2825_v52 = vadd.f32 %v2775_v46, %v2773_v23  ;;  %v2834_v8 = vadd.f32 %v2776_v9, %v2774_v11  ;;  %v3435_v53 = vpop.permute.xlu1 %3434  ;;  %v11423_v29 = vld [vmem:[#allocation38_spill] sm:$0xff]  ;;  %v3998_v5 = vpop.f32.mrf.mxu0  ;;  %v11427_v46 = vld [vmem:[#allocation19_spill] sm:$0xff] }
 0x360   : > { %v3513_v17 = vadd.f32 %v3512_v58, %v3475_v16  ;;  %v3522_v50 = vadd.f32 %v3521_v38, %v3476_v42  ;;  %v8568_v24 = vadd.f32 %v3312_v44, %v11420_v34  ;;  %v3987_v57 = vadd.f32 %v8440_v15, %v11358_v13  ;;  %v11424_v58 = vld [vmem:[#allocation146_spill] sm:$0xff]  ;;  %v11425_v44 = vld [vmem:[#allocation115_spill] sm:$0xff] }
 0x361   : > { %v2826_v37 = vadd.f32 %v2825_v52, %v11421_v3  ;;  %v2835_v51 = vadd.f32 %v2834_v8, %v11422_v36  ;;  %v8575_v27 = vadd.f32 %v3314_v43, %v11423_v29  ;;  %v2812_v23 = vrot.slane %v2811_v31, 2  ;;  %v11426_v42 = vld [vmem:[#allocation131_spill] sm:$0xff]  ;;  %v11428_v43 = vld [vmem:[#allocation116_spill] sm:$0xff]  ;;  %v11429_v52 = vld [vmem:[#allocation189_spill] sm:$0xff] }
 0x362   : > { %v2821_v9 = vrot.slane %v2820_v32, 2  ;;  %v3989_v45 = vadd.f32 %v8463_v12, %v11363_v33  ;;  %v2141_v38 = vadd.f32 %v8465_v14, %v11424_v58  ;;  %v4215_v15 = vadd.f32 %v4175_v26, %v8468_v61  ;;  %v11430_v58 = vld [vmem:[#allocation105_spill] sm:$0xff] }
 0x363   : > { %v4224_v13 = vadd.f32 %v4176_v49, %v8471_v21  ;;  %v8584_v16 = vadd.f32 %v2826_v37, %v11425_v44  ;;  %v8587_v11 = vadd.f32 %v2835_v51, %v11426_v42  ;;  %v3983_v30 = vadd.f32 %v11428_v43, %v11427_v46 }
 0x364   : > { %v3985_v33 = vadd.f32 %v8408_v20, %v11429_v52  ;;  %v3514_v12 = vrot.slane %v3513_v17, 4  ;;  %v3523_v8 = vrot.slane %v3522_v50, 4  ;;  %v4179_v3 = vmul.f32 %v4131_v47, %v3977_v28  ;;  %v2055_v51 = vpop.permute.xlu1 %2054  ;;  %v4147_v28 = vpop.permute.xlu0 %4146 }
 0x365   : > { %v4180_v14 = vmul.f32 %v4131_v47, %v3979_v63  ;;  %v3997_v61 = vadd.f32 %v3996_v35, %v11352_v54  ;;  %v3999_v21 = vadd.f32 %v3998_v5, %v11374_v62  ;;  %v2813_v26 = vadd.f32 %v2812_v23, %v2811_v31  ;;  %v4002_v23 = vpop.f32.mrf.mxu0 }
 0x366   : > { %v8595_v49 = vadd.f32 %v2821_v9, %v2820_v32  ;;  %v2133_v37 = vrot.slane %v8480_v25, 4  ;;  %v2142_v36 = vrot.slane %v2141_v38, 4  ;;  %v4183_v44 = vmul.f32 %v11430_v58, %v3987_v57 }
 0x367   : > { %v4184_v42 = vmul.f32 %v11430_v58, %v3989_v45  ;;  %v4216_v20 = vadd.f32 %v4215_v15, %v8523_v4  ;;  %v4225_v46 = vadd.f32 %v4224_v13, %v4178_v6  ;;  %v3515_v63 = vadd.f32 %v3514_v12, %v3513_v17  ;;  %v11431_v15 = vld [vmem:[#allocation32_spill] sm:$0xff]  ;;  %v11432_v13 = vld [vmem:[#allocation15_spill] sm:$0xff] }
 0x368   : > { %v3524_v47 = vadd.f32 %v3523_v8, %v3522_v50  ;;  %v4181_v54 = vmul.f32 %v8507_v19, %v3983_v30  ;;  %v4182_v31 = vmul.f32 %v8507_v19, %v3985_v33  ;;  %v3993_v62 = vadd.f32 %v8498_v10, %v11366_v60  ;;  %v2045_v50 = vpop.permute.xlu1 %2044  ;;  %v11434_v33 = vld [vmem:[#allocation49_spill] sm:$0xff] }
 0x369   : > { %v3995_v32 = vadd.f32 %v8538_v40, %v11369_v39  ;;  %v4187_v35 = vmul.f32 %v4147_v28, %v3997_v61  ;;  %v4188_v57 = vmul.f32 %v4147_v28, %v3999_v21  ;;  %v2814_v9 = vrot.slane %v2813_v26, 1  ;;  %v11433_v40 = vld [vmem:[#allocation33_spill] sm:$0xff]  ;;  %v11435_v61 = vld [vmem:[#allocation163_spill] sm:$0xff] }
 0x36a   : > { %v2823_v4 = vrot.slane %v8595_v49, 1  ;;  %v2134_v6 = vadd.f32 %v2133_v37, %v8480_v25  ;;  %v2143_v17 = vadd.f32 %v2142_v36, %v2141_v38  ;;  %v4217_v45 = vadd.f32 %v4216_v20, %v4179_v3  ;;  %v4004_v38 = vpop.f32.mrf.mxu0  ;;  %v11436_v36 = vld [vmem:[#allocation165_spill] sm:$0xff]  ;;  %v11437_v20 = vld [vmem:[#allocation159_spill] sm:$0xff] }
 0x36b   : > { %v4226_v5 = vadd.f32 %v4225_v46, %v4180_v14  ;;  %v2086_v19 = vmul.f32 %v2045_v50, %v11431_v15  ;;  %v2087_v43 = vmul.f32 %v2045_v50, %v11432_v13  ;;  %v3516_v60 = vrot.slane %v3515_v63, 2 }
 0x36c   : > { %v3525_v10 = vrot.slane %v3524_v47, 2  ;;  %v4233_v30 = vadd.f32 %v4183_v44, %v4181_v54  ;;  %v4242_v39 = vadd.f32 %v4184_v42, %v4182_v31  ;;  %v2090_v52 = vmul.f32 %v2055_v51, %v11433_v40  ;;  %v4006_v13 = vpop.f32.mrf.mxu0  ;;  %v11438_v40 = vld [vmem:[#allocation182_spill] sm:$0xff] }
 0x36d   : > { %v2091_v12 = vmul.f32 %v2055_v51, %v11434_v33  ;;  %v2148_v8 = vadd.f32 %v8548_v41, %v2086_v19  ;;  %v2157_v25 = vadd.f32 %v8557_v56, %v2087_v43  ;;  %v4185_v3 = vmul.f32 %v11435_v61, %v3993_v62  ;;  %v8619_v28 = vpop.permute.xlu1 %4150 }
 0x36e   : > { %v4186_v14 = vmul.f32 %v11435_v61, %v3995_v32  ;;  %v2135_v21 = vrot.slane %v2134_v6, 2  ;;  %v2144_v37 = vrot.slane %v2143_v17, 2  ;;  %v3479_v58 = vmul.f32 %v3435_v53, %v11436_v36 }
 0x36f   : > { %v3480_v44 = vmul.f32 %v3435_v53, %v11437_v20  ;;  %v2149_v42 = vadd.f32 %v2148_v8, %v2090_v52  ;;  %v2158_v46 = vadd.f32 %v2157_v25, %v2091_v12  ;;  %v4218_v51 = vrot.slane %v4217_v45, 4 }
 0x370   : > { %v4227_v54 = vrot.slane %v4226_v5, 4  ;;  %v8622_v41 = vadd.f32 %v4002_v23, %v8059_v55  ;;  %v8625_v56 = vadd.f32 %v4004_v38, %v8083_v22  ;;  %v4234_v31 = vadd.f32 %v4233_v30, %v4185_v3  ;;  %v11439_v55 = vld [vmem:[#allocation199_spill] sm:$0xff] }
 0x371   : > { %v4243_v62 = vadd.f32 %v4242_v39, %v4186_v14  ;;  %v2150_v32 = vadd.f32 %v2149_v42, %v8526_v1  ;;  %v2159_v50 = vadd.f32 %v2158_v46, %v8529_v48  ;;  %v8629_v15 = vadd.f32 %v3516_v60, %v3515_v63  ;;  %v11440_v39 = vld [vmem:[#allocation162_spill] sm:$0xff]  ;;  %v11441_v1 = vld [vmem:[#allocation176_spill] sm:$0xff] }
 0x372   : > { %v2136_v53 = vadd.f32 %v2135_v21, %v2134_v6  ;;  %v2145_v19 = vadd.f32 %v2144_v37, %v2143_v17  ;;  %v8631_v43 = vadd.f32 %v2814_v9, %v2813_v26  ;;  %v3529_v52 = vadd.f32 %v3479_v58, %v11438_v40  ;;  %v11442_v48 = vld [vmem:[#allocation172_spill] sm:$0xff]  ;;  %v8641_v6 = vpop.permute.xlu1 %2754 }
 0x373   : > { %v3538_v23 = vadd.f32 %v3480_v44, %v11439_v55  ;;  %v2151_v33 = vrot.slane %v2150_v32, 4  ;;  %v2160_v22 = vrot.slane %v2159_v50, 4  ;;  %v8635_v12 = vadd.f32 %v3525_v10, %v3524_v47  ;;  %v4008_v47 = vpop.f32.mrf.mxu0  ;;  %v11444_v55 = vld [vmem:[#allocation152_spill] sm:$0xff] }
 0x374   : > { %v4219_v30 = vadd.f32 %v4218_v51, %v4217_v45  ;;  %v3481_v8 = vmul.f32 %v11441_v1, %v11440_v39  ;;  %v3482_v63 = vmul.f32 %v11441_v1, %v11442_v48  ;;  %v4235_v17 = vadd.f32 %v4234_v31, %v4187_v35 }
 0x375   : > { %v4244_v26 = vadd.f32 %v4243_v62, %v4188_v57  ;;  %v2152_v9 = vadd.f32 %v2151_v33, %v2150_v32  ;;  %v2161_v60 = vadd.f32 %v2160_v22, %v2159_v50  ;;  %v8644_v25 = vadd.f32 %v4006_v13, %v8085_v59  ;;  %v11443_v62 = vld [vmem:[#allocation174_spill] sm:$0xff] }
 0x376   : > { %v2137_v10 = vrot.slane %v2136_v53, 1  ;;  %v2146_v45 = vrot.slane %v2145_v19, 1  ;;  %v8647_v38 = vadd.f32 %v2823_v4, %v8595_v49  ;;  %v3530_v61 = vadd.f32 %v3529_v52, %v3481_v8  ;;  %v4012_v4 = vpop.f32.mrf.mxu0  ;;  %v11445_v8 = vld [vmem:[#allocation193_spill] sm:$0xff] }
 0x377   : > { %v3539_v3 = vadd.f32 %v3538_v23, %v3482_v63  ;;  %v2153_v14 = vrot.slane %v2152_v9, 2  ;;  %v2162_v21 = vrot.slane %v2161_v60, 2  ;;  %v3518_v35 = vrot.slane %v8629_v15, 1  ;;  %v8651_v20 = vpop.permute.xlu1 %4158 }
 0x378   : > { %v3527_v57 = vrot.slane %v8635_v12, 1  ;;  %v4220_v37 = vrot.slane %v4219_v30, 2  ;;  %v4228_v36 = vadd.f32 %v4227_v54, %v4226_v5  ;;  %v4236_v58 = vrot.slane %v4235_v17, 4 }
 0x379   : > { %v4245_v59 = vrot.slane %v4244_v26, 4  ;;  %v2154_v44 = vadd.f32 %v2153_v14, %v2152_v9  ;;  %v2163_v42 = vadd.f32 %v2162_v21, %v2161_v60  ;;  %v2828_v46 = vrot.slane %v8584_v16, 4 }
 0x37a   : > { %v2837_v49 = vrot.slane %v8587_v11, 4  ;;  %v8655_v51 = vadd.f32 %v2137_v10, %v2136_v53  ;;  %v8657_v31 = vadd.f32 %v2146_v45, %v2145_v19  ;;  %v3531_v32 = vadd.f32 %v3530_v61, %v11443_v62 }
 0x37b   : > { %v3540_v50 = vadd.f32 %v3539_v3, %v8451_v7  ;;  %v2155_v5 = vrot.slane %v2154_v44, 1  ;;  %v2164_v54 = vrot.slane %v2163_v42, 1  ;;  %v4221_v13 = vadd.f32 %v4220_v37, %v4219_v30  ;;  %v4014_v30 = vpop.f32.mrf.mxu0  ;;  %v11446_v37 = vld [vmem:[#allocation31_spill] sm:$0xff] }
 0x37c   : > { %v4229_v40 = vrot.slane %v4228_v36, 2  ;;  %v8662_v52 = vadd.f32 %v4008_v47, %v8107_v0  ;;  %v8667_v23 = vsel %vm2174_vm4, %v8631_v43, %v11444_v55  ;;  %v4237_v53 = vadd.f32 %v4236_v58, %v4235_v17  ;;  %v8675_v1 = vpop.permute.xlu1 %3458 }
 0x37d   : > { %v4246_v33 = vadd.f32 %v4245_v59, %v4244_v26  ;;  %v8669_v19 = vadd.f32 %v2155_v5, %v2154_v44  ;;  %v8671_v22 = vadd.f32 %v2164_v54, %v2163_v42  ;;  %v2829_v7 = vadd.f32 %v2828_v46, %v8584_v16  ;;  %v4016_v47 = vpop.f32.mrf.mxu0  ;;  %v11450_v5 = vld [vmem:[#allocation153_spill] sm:$0xff] }
 0x37e   : > { %v2838_v39 = vadd.f32 %v2837_v49, %v8587_v11  ;;  %v2177_v0 = vsel %vm2176_vm5, %v8655_v51, %v8512_v2  ;;  %v2181_v48 = vsel %vm2176_vm5, %v8657_v31, %v11445_v8  ;;  %v3532_v63 = vrot.slane %v3531_v32, 4 }
 0x37f   : > { %v3541_v17 = vrot.slane %v3540_v50, 4  ;;  %v2179_v26 = vsel %vm2178_vm7, %v8669_v19, %v2177_v0  ;;  %v2182_v16 = vsel %vm2178_vm7, %v8671_v22, %v2181_v48  ;;  %v8687_v11 = vadd.f32 %v4229_v40, %v4228_v36  ;;  %v11447_v36 = vld [vmem:[#allocation198_spill] sm:$0xff]  ;;  %v4018_v40 = vpop.f32.mrf.mxu0 }
 0x380   : > { %v2186_v9 = vsel %vm2185_vm6, %v2179_v26, -inf  ;;  %v2187_v60 = vsel %vm2185_vm6, %v2182_v16, -inf  ;;  %v8692_v2 = vadd.f32 %v3518_v35, %v8629_v15  ;;  %v4238_v10 = vrot.slane %v4237_v53, 2  ;;  %v11448_v15 = vld [vmem:[#allocation50_spill] sm:$0xff]  ;;  %v11453_v26 = vld [vmem:[#allocation177_spill] sm:$0xff] }
 0x381   : > { %v4247_v45 = vrot.slane %v4246_v33, 2  ;;  %v2188_v61 = vmax.f32 %v2186_v9, %v2187_v60  ;;  %v8695_v3 = vadd.f32 %v3527_v57, %v8635_v12  ;;  %v2830_v14 = vrot.slane %v2829_v7, 2  ;;  %v2747_v49 = vpop.permute.xlu1 %2746  ;;  %v11449_v12 = vld [vmem:[#allocation92_spill] sm:$0xff] }
 0x382   : > { %v2839_v21 = vrot.slane %v2838_v39, 2  ;;  %v4013_v58 = vadd.f32 %v4012_v4, %v11446_v37  ;;  %v8701_v59 = vsel %vm2174_vm4, %v8647_v38, %v11447_v36  ;;  %v4222_v44 = vrot.slane %v4221_v13, 1  ;;  %v11451_v4 = vld [vmem:[#allocation143_spill] sm:$0xff]  ;;  %v11454_v9 = vld [vmem:[#allocation16_spill] sm:$0xff] }
 0x383   : > { %v3533_v42 = vadd.f32 %v3532_v63, %v3531_v32  ;;  %v3542_v46 = vadd.f32 %v3541_v17, %v3540_v50  ;;  %v4015_v35 = vadd.f32 %v4014_v30, %v11448_v15  ;;  %2189 = vmax.xlane.f32.xlu1 %v2188_v61  ;;  %v4231_v62 = vrot.slane %v8687_v11, 1  ;;  %v11452_v30 = vld [vmem:[#allocation181_spill] sm:$0xff]  ;;  %v11457_v15 = vld [vmem:[#allocation156_spill] sm:$0xff] }
 0x384   : > { %v2783_v57 = vmul.f32 %v2747_v49, %v11449_v12  ;;  %v2784_v54 = vmul.f32 %v2747_v49, %v11450_v5  ;;  %v8710_v0 = vsel %vm2174_vm4, %v8692_v2, %v11451_v4  ;;  %v8712_v8 = vadd.f32 %v4238_v10, %v4237_v53 }
 0x385   : > { %v8714_v32 = vadd.f32 %v4247_v45, %v4246_v33  ;;  %v4017_v50 = vadd.f32 %v4016_v47, %v11420_v34  ;;  %v8720_v48 = vsel %vm2174_vm4, %v8695_v3, %v11452_v30  ;;  %v2831_v63 = vadd.f32 %v2830_v14, %v2829_v7  ;;  %v11455_v33 = vld [vmem:[#allocation58_spill] sm:$0xff]  ;;  %v11456_v47 = vld [vmem:[#allocation57_spill] sm:$0xff] }
 0x386   : > { %v2840_v17 = vadd.f32 %v2839_v21, %v2838_v39  ;;  %v2843_v16 = vadd.f32 %v2783_v57, %v11453_v26  ;;  %v2852_v60 = vadd.f32 %v2784_v54, %v11454_v9  ;;  %v3534_v61 = vrot.slane %v3533_v42, 2  ;;  %v11458_v7 = vld [vmem:[#allocation166_spill] sm:$0xff]  ;;  %v3451_v14 = vpop.permute.xlu1 %3450  ;;  %v11459_v21 = vld [vmem:[#allocation184_spill] sm:$0xff] }
 0x387   : > { %v3543_v37 = vrot.slane %v3542_v46, 2  ;;  %v4019_v53 = vadd.f32 %v4018_v40, %v11423_v29  ;;  %v8725_v10 = vadd.f32 %v4222_v44, %v4221_v13  ;;  %v2787_v34 = vmul.f32 %v8641_v6, %v11455_v33  ;;  %v11460_v57 = vld [vmem:[#allocation168_spill] sm:$0xff] }
 0x388   : > { %v2788_v45 = vmul.f32 %v8641_v6, %v11456_v47  ;;  %v2844_v49 = vadd.f32 %v2843_v16, %v11457_v15  ;;  %v2853_v39 = vadd.f32 %v2852_v60, %v11458_v7  ;;  %v3487_v12 = vmul.f32 %v3451_v14, %v11459_v21  ;;  %v11461_v6 = vld [vmem:[#allocation201_spill] sm:$0xff]  ;;  %v11462_v16 = vld [vmem:[#allocation180_spill] sm:$0xff] }
 0x389   : > { %v3488_v5 = vmul.f32 %v3451_v14, %v11460_v57  ;;  %v4240_v54 = vrot.slane %v8712_v8, 1  ;;  %v4249_v29 = vrot.slane %v8714_v32, 1  ;;  %v2832_v40 = vrot.slane %v2831_v63, 1 }
 0x38a   : > { %v2845_v13 = vadd.f32 %v2844_v49, %v2787_v34  ;;  %v2854_v44 = vadd.f32 %v2853_v39, %v2788_v45  ;;  %v2841_v26 = vrot.slane %v2840_v17, 1  ;;  %v3535_v9 = vadd.f32 %v3534_v61, %v3533_v42  ;;  %v11463_v42 = vld [vmem:[#allocation179_spill] sm:$0xff]  ;;  %v11464_v61 = vld [vmem:[#allocation46_spill] sm:$0xff] }
 0x38b   : > { %v3544_v33 = vadd.f32 %v3543_v37, %v3542_v46  ;;  %v3547_v47 = vadd.f32 %v3487_v12, %v11461_v6  ;;  %v3556_v15 = vadd.f32 %v3488_v5, %v11462_v16  ;;  %v4189_v60 = vmul.f32 %v8619_v28, %v8622_v41  ;;  %v4155_v49 = vpop.permute.xlu1 %4154 }
 0x38c   : > { %v4190_v7 = vmul.f32 %v8619_v28, %v8625_v56  ;;  %v2846_v14 = vrot.slane %v2845_v13, 4  ;;  %v2855_v21 = vrot.slane %v2854_v44, 4  ;;  %v3491_v34 = vmul.f32 %v8675_v1, %v8568_v24 }
 0x38d   : > { %v3492_v45 = vmul.f32 %v8675_v1, %v8575_v27  ;;  %v3548_v46 = vadd.f32 %v3547_v47, %v11463_v42  ;;  %v3557_v37 = vadd.f32 %v3556_v15, %v11464_v61  ;;  %v4191_v41 = vmul.f32 %v4155_v49, %v8644_v25 }
 0x38e   : > { %v2847_v39 = vadd.f32 %v2846_v14, %v2845_v13  ;;  %v2856_v12 = vadd.f32 %v2855_v21, %v2854_v44  ;;  %v4192_v57 = vmul.f32 %v4155_v49, %v8662_v52  ;;  %v4193_v28 = vmul.f32 %v8651_v20, %v4013_v58 }
 0x38f   : > { %v4194_v56 = vmul.f32 %v8651_v20, %v4015_v35  ;;  %v3549_v5 = vadd.f32 %v3548_v46, %v3491_v34  ;;  %v3558_v24 = vadd.f32 %v3557_v37, %v3492_v45  ;;  %v4251_v27 = vadd.f32 %v4191_v41, %v4189_v60  ;;  %v4163_v15 = vpop.permute.xlu1 %4162 }
 0x390   : > { %v2848_v6 = vrot.slane %v2847_v39, 2  ;;  %v2857_v16 = vrot.slane %v2856_v12, 2  ;;  %v4260_v1 = vadd.f32 %v4192_v57, %v4190_v7  ;;  %v8753_v61 = vadd.f32 %v2832_v40, %v2831_v63 }
 0x391   : > { %v3550_v47 = vrot.slane %v3549_v5, 4  ;;  %v3559_v42 = vrot.slane %v3558_v24, 4  ;;  %v8755_v13 = vadd.f32 %v2841_v26, %v2840_v17  ;;  %v4195_v25 = vmul.f32 %v4163_v15, %v4017_v50 }
 0x392   : > { %v4196_v44 = vmul.f32 %v4163_v15, %v4019_v53  ;;  %v4252_v52 = vadd.f32 %v4251_v27, %v4193_v28  ;;  %v4261_v14 = vadd.f32 %v4260_v1, %v4194_v56  ;;  %v2849_v20 = vadd.f32 %v2848_v6, %v2847_v39 }
 0x393   : > { %v3551_v58 = vadd.f32 %v3550_v47, %v3549_v5  ;;  %v3560_v21 = vadd.f32 %v3559_v42, %v3558_v24  ;;  %v2858_v35 = vadd.f32 %v2857_v16, %v2856_v12  ;;  %v3536_v46 = vrot.slane %v3535_v9, 1 }
 0x394   : > { %v4253_v34 = vadd.f32 %v4252_v52, %v4195_v25  ;;  %v4262_v45 = vadd.f32 %v4261_v14, %v4196_v44  ;;  %v3545_v60 = vrot.slane %v3544_v33, 1  ;;  %v2850_v49 = vrot.slane %v2849_v20, 1 }
 0x395   : > { %v3552_v7 = vrot.slane %v3551_v58, 2  ;;  %v3561_v37 = vrot.slane %v3560_v21, 2  ;;  %v2859_v41 = vrot.slane %v2858_v35, 1  ;;  %v2870_v50 = vsel %vm2176_vm5, %v8753_v61, %v8667_v23 }
 0x396   : > { %v4254_v63 = vrot.slane %v4253_v34, 4  ;;  %v4263_v40 = vrot.slane %v4262_v45, 4  ;;  %v2873_v17 = vsel %vm2176_vm5, %v8755_v13, %v8701_v59  ;;  %v8763_v53 = vadd.f32 %v2850_v49, %v2849_v20  ;;  %v11468_v49 = vld [vmem:[#allocation187_spill] sm:$0xff] }
 0x397   : > { %v8765_v26 = vadd.f32 %v2859_v41, %v2858_v35  ;;  %v3553_v39 = vadd.f32 %v3552_v7, %v3551_v58  ;;  %v3562_v12 = vadd.f32 %v3561_v37, %v3560_v21  ;;  %v8767_v56 = vadd.f32 %v3536_v46, %v3535_v9  ;;  %v11466_v46 = vld [vmem:[#allocation196_spill] sm:$0xff] }
 0x398   : > { %v4255_v57 = vadd.f32 %v4254_v63, %v4253_v34  ;;  %v4264_v28 = vadd.f32 %v4263_v40, %v4262_v45  ;;  %v8769_v5 = vadd.f32 %v3545_v60, %v3544_v33  ;;  %v2871_v24 = vsel %vm2178_vm7, %v8763_v53, %v2870_v50  ;;  %v11465_v34 = vld [vmem:[#allocation188_spill] sm:$0xff] }
 0x399   : > { %v2874_v23 = vsel %vm2178_vm7, %v8765_v26, %v2873_v17  ;;  %v3554_v6 = vrot.slane %v3553_v39, 1  ;;  %v3563_v59 = vrot.slane %v3562_v12, 1  ;;  %v2877_v1 = vsel %vm2185_vm6, %v2871_v24, -inf  ;;  %v11469_v63 = vld [vmem:[#allocation200_spill] sm:$0xff] }
 0x39a   : > { %v4256_v16 = vrot.slane %v4255_v57, 2  ;;  %v4265_v27 = vrot.slane %v4264_v28, 2  ;;  %v2878_v47 = vsel %vm2185_vm6, %v2874_v23, -inf  ;;  %v8784_v33 = vadd.f32 %v4231_v62, %v8687_v11 }
 0x39b   : > { %v2879_v42 = vmax.f32 %v2877_v1, %v2878_v47  ;;  %v8777_v15 = vadd.f32 %v3554_v6, %v3553_v39  ;;  %v8779_v9 = vadd.f32 %v3563_v59, %v3562_v12  ;;  %v3574_v52 = vsel %vm2176_vm5, %v8767_v56, %v8710_v0 }
 0x39c   : > { %v4257_v25 = vadd.f32 %v4256_v16, %v4255_v57  ;;  %v4266_v44 = vadd.f32 %v4265_v27, %v4264_v28  ;;  %v3577_v14 = vsel %vm2176_vm5, %v8769_v5, %v8720_v48  ;;  %v8799_v11 = vadd.f32 %v4240_v54, %v8712_v8  ;;  %v11467_v54 = vld [vmem:[#allocation190_spill] sm:$0xff] }
 0x39d   : > { %2880 = vmax.xlane.f32.xlu0 %v2879_v42  ;;  %v3575_v58 = vsel %vm2178_vm7, %v8777_v15, %v3574_v52  ;;  %v3578_v21 = vsel %vm2178_vm7, %v8779_v9, %v3577_v14  ;;  %v8804_v62 = vadd.f32 %v4249_v29, %v8714_v32  ;;  %v1647_v45 = vrot.slane %v11465_v34, 2 }
 0x39e   : > { %v4258_v0 = vrot.slane %v4257_v25, 1  ;;  %v4267_v20 = vrot.slane %v4266_v44, 1  ;;  %v3581_v48 = vsel %vm2185_vm6, %v3575_v58, -inf  ;;  %v3582_v35 = vsel %vm2185_vm6, %v3578_v21, -inf }
 0x39f   : > { %v1660_v60 = vrot.slane %v11466_v46, 2  ;;  %v3583_v7 = vmax.f32 %v3581_v48, %v3582_v35  ;;  %v4277_v32 = vsel %vm2174_vm4, %v8725_v10, %v11467_v54  ;;  %v4280_v29 = vsel %vm2174_vm4, %v8784_v33, %v8565_v18 }
 0x3a0   : > { %v8810_v37 = vadd.f32 %v4258_v0, %v4257_v25  ;;  %v8812_v8 = vadd.f32 %v4267_v20, %v4266_v44  ;;  %v1634_v41 = vrot.slane %v11468_v49, 2  ;;  %v1673_v40 = vrot.slane %v11469_v63, 2 }
 0x3a1   : > { %3584 = vmax.xlane.f32.xlu1 %v3583_v7  ;;  %v4278_v50 = vsel %vm2176_vm5, %v8799_v11, %v4277_v32  ;;  %v4281_v17 = vsel %vm2176_vm5, %v8804_v62, %v4280_v29  ;;  %v1648_v57 = vadd.f32 %v1647_v45, %v11465_v34  ;;  %v1661_v23 = vadd.f32 %v1660_v60, %v11466_v46 }
 0x3a2   : > { %v4279_v39 = vsel %vm2178_vm7, %v8810_v37, %v4278_v50  ;;  %v4282_v12 = vsel %vm2178_vm7, %v8812_v8, %v4281_v17  ;;  %v1635_v59 = vadd.f32 %v1634_v41, %v11468_v49  ;;  %v1674_v16 = vadd.f32 %v1673_v40, %v11469_v63 }
 0x3a3   : > { %v4285_v28 = vsel %vm2185_vm6, %v4279_v39, -inf  ;;  %v4286_v24 = vsel %vm2185_vm6, %v4282_v12, -inf  ;;  %v1649_v27 = vrot.slane %v1648_v57, 1  ;;  %v1662_v1 = vrot.slane %v1661_v23, 1 }
 0x3a4   : > { %v4287_v6 = vmax.f32 %v4285_v28, %v4286_v24  ;;  %v1636_v47 = vrot.slane %v1635_v59, 1  ;;  %v1675_v42 = vrot.slane %v1674_v16, 1 }
 0x3a5   : > { %v8836_v25 = vadd.f32 %v1649_v27, %v1648_v57  ;;  %v8838_v44 = vadd.f32 %v1662_v1, %v1661_v23 }
 0x3a6   : > { %4288 = vmax.xlane.f32.xlu0 %v4287_v6  ;;  %v8840_v52 = vadd.f32 %v1636_v47, %v1635_v59  ;;  %v8842_v14 = vadd.f32 %v1675_v42, %v1674_v16  ;;  %v11470_v16 = vld [vmem:[#allocation70_spill] sm:$0xff] }
 0x3a8   : > { %v2195_v58 = vsel %vm2174_vm4, %v8836_v25, %v8840_v52 }
 0x3a9   : > { %v2196_v21 = vsel %vm2176_vm5, %v8838_v44, %v2195_v58 }
 0x3aa   : > { %v2197_v0 = vsel %vm2178_vm7, %v8842_v14, %v2196_v21 }
 0x3b2   : > { %3586 = vrot.lane.b32.xlu1 %v2197_v0, %s5852_s13 }
 0x3b6   : > { %4290 = vrot.lane.b32.xlu1 %v2197_v0, %s5853_s17 }
 0x3bc   : > { %2882 = vrot.lane.b32.xlu0 %v2197_v0, %s5854_s8 }
 0x40c   : > { %v2190_v20 = vpop.xlane.xlu1 %2189 }
 0x40d   : > { %v8854_v48 = vmax.f32 %v2190_v20, %v2197_v0 }
 0x40f   : > { %2202 = vperm.xlu0 %5509, %v8854_v48  }
 0x426   : > { %v2881_v35 = vpop.xlane.xlu0 %2880 }
 0x42a   : > { %v3585_v45 = vpop.xlane.xlu1 %3584 }
 0x42e   : > { %v3587_v29 = vpop.permute.xlu1 %3586 }
 0x42f   : > { %v4289_v34 = vpop.xlane.xlu0 %4288  ;;  %v3589_v49 = vmax.f32 %v3585_v45, %v3587_v29  ;;  %v11471_v45 = vld [vmem:[#allocation83_spill] sm:$0xff]  ;;  %v11472_v29 = vld [vmem:[#allocation14_spill] sm:$0xff] }
 0x431   : > { %v3625_v63 = vrot.slane %v3589_v49, 1  ;;  %v3626_v17 = vrot.slane %v3589_v49, 2  ;;  %v3627_v39 = vrot.slane %v3589_v49, 3 }
 0x432   : > { %v4291_v40 = vpop.permute.xlu1 %4290 }
 0x433   : > { %v2883_v46 = vpop.permute.xlu0 %2882  ;;  %v4293_v50 = vmax.f32 %v4289_v34, %v4291_v40 }
 0x434   : > { %v2885_v60 = vmax.f32 %v2881_v35, %v2883_v46 }
 0x435   : > { %v4329_v12 = vrot.slane %v4293_v50, 1  ;;  %v4330_v57 = vrot.slane %v4293_v50, 2  ;;  %v4331_v28 = vrot.slane %v4293_v50, 3 }
 0x436   : > { %2924 = vrot.lane.b32.xlu1 %v2885_v60, %s5855_s9  ;;  %2888 = vperm.xlu0 %5509, %v2885_v60   ;;  %v2922_v7 = vrot.slane %v2885_v60, 2  ;;  %v2921_v32 = vrot.slane %v2885_v60, 1  ;;  %v2923_v41 = vrot.slane %v2885_v60, 3 }
 0x43a   : > { %2928 = vrot.lane.b32.xlu1 %v2922_v7, %s5855_s9  ;;  %2926 = vrot.lane.b32.xlu0 %v2921_v32, %s5855_s9 }
 0x43e   : > { %2930 = vrot.lane.b32.xlu0 %v2923_v41, %s5855_s9  ;;  %3592 = vperm.xlu1 %5510, %v3589_v49  }
 0x442   : > { %3628 = vrot.lane.b32.xlu1 %v3589_v49, %s5856_s10  ;;  %3630 = vrot.lane.b32.xlu0 %v3625_v63, %s5856_s10  ;;  %v11473_v63 = vld [vmem:[#allocation186_spill] sm:$0xff] }
 0x446   : > { %3632 = vrot.lane.b32.xlu1 %v3626_v17, %s5856_s10  ;;  %3634 = vrot.lane.b32.xlu0 %v3627_v39, %s5856_s10 }
 0x44a   : > { %4296 = vperm.xlu1 %5510, %v4293_v50   ;;  %4334 = vrot.lane.b32.xlu0 %v4329_v12, %s5857_s11 }
 0x44e   : > { %4336 = vrot.lane.b32.xlu1 %v4330_v57, %s5857_s11  ;;  %4332 = vrot.lane.b32.xlu0 %v4293_v50, %s5857_s11 }
 0x452   : > { %4338 = vrot.lane.b32.xlu1 %v4331_v28, %s5857_s11 }
 0x48a   : > { %v2203_v24 = vpop.permute.xlu0 %2202 }
 0x48b   : > { %v2211_v27 = vsub.f32 %v11470_v16, %v2203_v24  ;;  %v2204_v42 = vrot.slane %v2203_v24, 1  ;;  %v2205_v21 = vrot.slane %v2203_v24, 2  ;;  %v2212_v46 = vsub.f32 %v11471_v45, %v2203_v24 }
 0x48c   : > { %v2206_v32 = vrot.slane %v2203_v24, 3 }
 0x48d   : > { %v2219_v0 = vmul.f32 1.442695, %v2211_v27  ;;  %v2213_v49 = vsub.f32 %v11472_v29, %v2204_v42  ;;  %v2214_v40 = vsub.f32 %v11473_v63, %v2204_v42  ;;  %v2215_v17 = vsub.f32 %v8655_v51, %v2205_v21 }
 0x48e   : > { %v2216_v28 = vsub.f32 %v8657_v31, %v2205_v21  ;;  %v2218_v42 = vsub.f32 %v8671_v22, %v2206_v32 }
 0x48f   : > { %5559 = vpow2.f32 %v2219_v0  ;;  %v2223_v16 = vmul.f32 1.442695, %v2213_v49  ;;  %v2225_v24 = vmul.f32 1.442695, %v2214_v40  ;;  %v2227_v27 = vmul.f32 1.442695, %v2215_v17 }
 0x490   : > { %v2233_v45 = vmul.f32 1.442695, %v2218_v42 }
 0x4a8   : > { %v2925_v23 = vpop.permute.xlu1 %2924 }
 0x4a9   : > { %v2936_v20 = vsub.f32 %v8840_v52, %v2925_v23  ;;  %v2221_v23 = vmul.f32 1.442695, %v2212_v46 }
 0x4ab   : > { %v2940_v39 = vmul.f32 1.442695, %v2936_v20 }
 0x4ac   : > { %v2929_v59 = vpop.permute.xlu1 %2928 }
 0x4ad   : > { %v2938_v47 = vsub.f32 %v8838_v44, %v2929_v59  ;;  %v2217_v59 = vsub.f32 %v8669_v19, %v2206_v32 }
 0x4af   : > { %v2944_v60 = vmul.f32 1.442695, %v2938_v47  ;;  %v2231_v31 = vmul.f32 1.442695, %v2217_v59 }
 0x4b1   : > { %v8869_v6 = vpop.permute.xlu0 %2888  ;;  %5561 = vpow2.f32 %v2944_v60 }
 0x4b2   : > { %v2890_v19 = vrot.slane %v8869_v6, 1  ;;  %v2891_v46 = vrot.slane %v8869_v6, 2  ;;  %v2897_v22 = vsub.f32 %v11444_v55, %v8869_v6  ;;  %v2892_v32 = vrot.slane %v8869_v6, 3 }
 0x4b3   : > { %v2898_v29 = vsub.f32 %v11447_v36, %v8869_v6 }
 0x4b4   : > { %v2899_v49 = vsub.f32 %v8631_v43, %v2890_v19  ;;  %v2900_v63 = vsub.f32 %v8647_v38, %v2890_v19  ;;  %v2901_v55 = vsub.f32 %v8753_v61, %v2891_v46  ;;  %v2903_v43 = vsub.f32 %v8763_v53, %v2892_v32 }
 0x4b5   : > { %v2927_v1 = vpop.permute.xlu0 %2926  ;;  %v2907_v38 = vmul.f32 1.442695, %v2898_v29 }
 0x4b6   : > { %v2937_v58 = vsub.f32 %v8836_v25, %v2927_v1  ;;  %v2909_v6 = vmul.f32 1.442695, %v2899_v49 }
 0x4b8   : > { %v2942_v41 = vmul.f32 1.442695, %v2937_v58  ;;  %v2229_v58 = vmul.f32 1.442695, %v2216_v28 }
 0x4b9   : > { %v2931_v35 = vpop.permute.xlu0 %2930  ;;  %v8875_v34 = vpop.permute.xlu1 %3592 }
 0x4ba   : > { %v2939_v7 = vsub.f32 %v8842_v14, %v2931_v35  ;;  %5563 = vpow2.f32 %v2942_v41 }
 0x4bc   : > { %v2946_v50 = vmul.f32 1.442695, %v2939_v7 }
 0x4bd   : > { %v3631_v12 = vpop.permute.xlu0 %3630  ;;  %v3629_v57 = vpop.permute.xlu1 %3628 }
 0x4be   : > { %5565 = vpow2.f32 %v2946_v50  ;;  %v3641_v1 = vsub.f32 %v8836_v25, %v3631_v12  ;;  %v3640_v35 = vsub.f32 %v8840_v52, %v3629_v57  ;;  %v8900_v50 = vpop.eup %5559  ;;  %v2902_v12 = vsub.f32 %v8755_v13, %v2891_v46 }
 0x4bf   : > { %5567 = vpow2.f32 %v2940_v39  ;;  %v8904_v39 = vpop.eup %5561  ;;  %v2905_v57 = vmul.f32 1.442695, %v2897_v22  ;;  %v2913_v13 = vmul.f32 1.442695, %v2901_v55 }
 0x4c0   : > { %5569 = vpow2.f32 %v2221_v23  ;;  %v3646_v20 = vmul.f32 1.442695, %v3641_v1  ;;  %v3644_v40 = vmul.f32 1.442695, %v3640_v35  ;;  %11474 = vst [vmem:[#allocation191_spill] sm:$0xff] %v8904_v39 }
 0x4c1   : > { %v3635_v47 = vpop.permute.xlu0 %3634  ;;  %v3633_v51 = vpop.permute.xlu1 %3632  ;;  %5571 = vpow2.f32 %v2223_v16  ;;  %v2911_v23 = vmul.f32 1.442695, %v2900_v63 }
 0x4c2   : > { %v3643_v21 = vsub.f32 %v8842_v14, %v3635_v47  ;;  %5573 = vpow2.f32 %v2225_v24  ;;  %v3642_v0 = vsub.f32 %v8838_v44, %v3633_v51  ;;  %v3594_v47 = vrot.slane %v8875_v34, 1 }
 0x4c3   : > { %5575 = vpow2.f32 %v2227_v27  ;;  %v2981_v27 = vrot.slane %v8904_v39, 6 }
 0x4c4   : > { %5577 = vpow2.f32 %v2229_v58  ;;  %v3650_v60 = vmul.f32 1.442695, %v3643_v21  ;;  %v3648_v41 = vmul.f32 1.442695, %v3642_v0  ;;  %v2917_v0 = vmul.f32 1.442695, %v2903_v43 }
 0x4c5   : > { %5579 = vpow2.f32 %v2231_v31  ;;  %v8893_v7 = vpop.permute.xlu1 %4296  ;;  %v2904_v31 = vsub.f32 %v8765_v26, %v2892_v32 }
 0x4c6   : > { %5581 = vpow2.f32 %v3646_v20  ;;  %v4298_v17 = vrot.slane %v8893_v7, 1  ;;  %v4299_v61 = vrot.slane %v8893_v7, 2  ;;  %v4305_v49 = vsub.f32 %v11467_v54, %v8893_v7 }
 0x4c7   : > { %5583 = vpow2.f32 %v2233_v45  ;;  %v8907_v36 = vpop.eup %5563  ;;  %v4300_v45 = vrot.slane %v8893_v7, 3 }
 0x4c8   : > { %5585 = vpow2.f32 %v3650_v60  ;;  %11475 = vst [vmem:[#allocation99_spill] sm:$0xff] %v8907_v36  ;;  %v2979_v59 = vrot.slane %v8907_v36, 7  ;;  %v4307_v24 = vsub.f32 %v8725_v10, %v4298_v17  ;;  %v4308_v51 = vsub.f32 %v8784_v33, %v4298_v17 }
 0x4c9   : > { %5587 = vpow2.f32 %v3648_v41  ;;  %v2915_v10 = vmul.f32 1.442695, %v2902_v12  ;;  %v4309_v20 = vsub.f32 %v8799_v11, %v4299_v61  ;;  %v4310_v46 = vsub.f32 %v8804_v62, %v4299_v61 }
 0x4ca   : > { %5589 = vpow2.f32 %v3644_v40  ;;  %v4317_v26 = vmul.f32 1.442695, %v4307_v24  ;;  %v3603_v60 = vsub.f32 %v8692_v2, %v3594_v47  ;;  %v4319_v32 = vmul.f32 1.442695, %v4308_v51 }
 0x4cb   : > { %v8910_v28 = vpop.eup %5565  ;;  %5591 = vpow2.f32 %v2905_v57  ;;  %v2919_v11 = vmul.f32 1.442695, %v2904_v31  ;;  %v4306_v62 = vsub.f32 %v8565_v18, %v8893_v7  ;;  %v4321_v41 = vmul.f32 1.442695, %v4309_v20 }
 0x4cc   : > { %v8914_v16 = vpop.eup %5567  ;;  %v2983_v53 = vrot.slane %v8910_v28, 5  ;;  %5593 = vpow2.f32 %v2907_v38  ;;  %v3595_v40 = vrot.slane %v8875_v34, 2  ;;  %v4311_v55 = vsub.f32 %v8810_v37, %v4300_v45 }
 0x4cd   : > { %11476 = vst [vmem:[#allocation192_spill] sm:$0xff] %v8914_v16  ;;  %v8919_v1 = vpop.eup %5569  ;;  %v2980_v42 = vsel %vm2174_vm4, %v2979_v59, %v8914_v16  ;;  %5595 = vpow2.f32 %v2909_v6  ;;  %v4323_v2 = vmul.f32 1.442695, %v4310_v46  ;;  %v3613_v12 = vmul.f32 1.442695, %v3603_v60 }
 0x4ce   : > { %v8925_v58 = vpop.eup %5571  ;;  %v2982_v21 = vsel %vm2176_vm5, %v2981_v27, %v2980_v42  ;;  %5597 = vpow2.f32 %v2911_v23  ;;  %v4312_v57 = vsub.f32 %v8812_v8, %v4300_v45  ;;  %v3604_v18 = vsub.f32 %v8695_v3, %v3594_v47 }
 0x4cf   : > { %v8929_v19 = vpop.eup %5573  ;;  %v2984_v35 = vsel %vm2178_vm7, %v2983_v53, %v2982_v21  ;;  %5599 = vpow2.f32 %v2913_v13  ;;  %v4313_v7 = vmul.f32 1.442695, %v4305_v49  ;;  %v3596_v37 = vrot.slane %v8875_v34, 3 }
 0x4d0   : > { %v8933_v33 = vpop.eup %5575  ;;  %2985 = vrot.lane.b32.xlu0 %v2984_v35, %s5854_s8  ;;  %5601 = vpow2.f32 %v2915_v10  ;;  %v4315_v6 = vmul.f32 1.442695, %v4306_v62  ;;  %v3605_v8 = vsub.f32 %v8767_v56, %v3595_v40  ;;  %v4325_v59 = vmul.f32 1.442695, %v4311_v55  ;;  %s5197_s8 = sshll.u32 %s11923_s28, 7 }
 0x4d1   : > { %v8938_v22 = vpop.eup %5577  ;;  %5603 = vpow2.f32 %v2917_v0  ;;  %v3606_v24 = vsub.f32 %v8769_v5, %v3595_v40  ;;  %v4327_v3 = vmul.f32 1.442695, %v4312_v57  ;;  %v3601_v47 = vsub.f32 %v11451_v4, %v8875_v34 }
 0x4d2   : > { %v8941_v29 = vpop.eup %5579  ;;  %5605 = vpow2.f32 %v4317_v26  ;;  %v3615_v51 = vmul.f32 1.442695, %v3604_v18  ;;  %v3602_v31 = vsub.f32 %v11452_v30, %v8875_v34  ;;  %v2262_v10 = vrot.slane %v8925_v58, 7 }
 0x4d3   : > { %v8947_v63 = vpop.eup %5581  ;;  %5607 = vpow2.f32 %v4319_v32  ;;  %v3607_v0 = vsub.f32 %v8777_v15, %v3596_v37  ;;  %v3617_v20 = vmul.f32 1.442695, %v3605_v8  ;;  %v2268_v4 = vrot.slane %v8929_v19, 7 }
 0x4d4   : > { %11477 = vst [vmem:[#allocation78_spill] sm:$0xff] %v8947_v63  ;;  %v8951_v17 = vpop.eup %5583  ;;  %v3683_v54 = vrot.slane %v8947_v63, 7  ;;  %5609 = vpow2.f32 %v2919_v11  ;;  %v3619_v45 = vmul.f32 1.442695, %v3606_v24  ;;  %v3608_v34 = vsub.f32 %v8779_v9, %v3596_v37 }
 0x4d5   : > { %v8955_v43 = vpop.eup %5585  ;;  %5611 = vpow2.f32 %v4321_v41  ;;  %v3609_v46 = vmul.f32 1.442695, %v3601_v47  ;;  %v3611_v60 = vmul.f32 1.442695, %v3602_v31  ;;  %v2264_v15 = vrot.slane %v8933_v33, 6 }
 0x4d6   : > { %11478 = vst [vmem:[#allocation197_spill] sm:$0xff] %v8955_v43  ;;  %v8958_v38 = vpop.eup %5587  ;;  %v3687_v23 = vrot.slane %v8955_v43, 5  ;;  %5613 = vpow2.f32 %v4323_v2  ;;  %v2270_v32 = vrot.slane %v8938_v22, 6  ;;  %v3621_v49 = vmul.f32 1.442695, %v3607_v0  ;;  %v9353_v43 = vld [vmem:[#allocation4 + $0x130] sm:$0xff] }
 0x4d7   : > { %11479 = vst [vmem:[#allocation47_spill] sm:$0xff] %v8958_v38  ;;  %v8962_v61 = vpop.eup %5589  ;;  %v3685_v13 = vrot.slane %v8958_v38, 6  ;;  %5615 = vpow2.f32 %v3613_v12  ;;  %v2263_v62 = vsel %vm2174_vm4, %v2262_v10, %v8900_v50  ;;  %v2269_v41 = vsel %vm2174_vm4, %v2268_v4, %v8919_v1  ;;  %v4335_v10 = vpop.permute.xlu0 %4334  ;;  %v11613_v38 = vld [vmem:[#allocation82_spill] sm:$0xff] }
 0x4d8   : > { %11480 = vst [vmem:[#allocation185_spill] sm:$0xff] %v8962_v61  ;;  %v3684_v27 = vsel %vm2174_vm4, %v3683_v54, %v8962_v61  ;;  %v8969_v53 = vpop.eup %5591  ;;  %5617 = vpow2.f32 %v4313_v7  ;;  %v3623_v12 = vmul.f32 1.442695, %v3608_v34  ;;  %v2265_v54 = vsel %vm2176_vm5, %v2264_v15, %v2263_v62 }
 0x4d9   : > { %v3686_v56 = vsel %vm2176_vm5, %v3685_v13, %v3684_v27  ;;  %v8974_v42 = vpop.eup %5593  ;;  %5619 = vpow2.f32 %v4315_v6  ;;  %v2266_v18 = vrot.slane %v8941_v29, 5  ;;  %v2271_v7 = vsel %vm2176_vm5, %v2270_v32, %v2269_v41 }
 0x4da   : > { %v3688_v5 = vsel %vm2178_vm7, %v3687_v23, %v3686_v56  ;;  %v8980_v21 = vpop.eup %5595  ;;  %5621 = vpow2.f32 %v4325_v59  ;;  %v2272_v6 = vrot.slane %v8951_v17, 5 }
 0x4db   : > { %3689 = vrot.lane.b32.xlu1 %v3688_v5, %s5852_s13  ;;  %v8985_v35 = vpop.eup %5597  ;;  %5623 = vpow2.f32 %v4327_v3  ;;  %v2956_v40 = vrot.slane %v8980_v21, 7  ;;  %v2267_v56 = vsel %vm2178_vm7, %v2266_v18, %v2265_v54 }
 0x4dc   : > { %v8987_v30 = vpop.eup %5599  ;;  %5625 = vpow2.f32 %v3615_v51  ;;  %v2962_v55 = vrot.slane %v8985_v35, 7  ;;  %v2273_v31 = vsel %vm2178_vm7, %v2272_v6, %v2271_v7  ;;  %v2276_v62 = vsel %vm2185_vm6, %v2267_v56, 0.0 }
 0x4dd   : > { %v8990_v26 = vpop.eup %5601  ;;  %5627 = vpow2.f32 %v3617_v20  ;;  %v2958_v23 = vrot.slane %v8987_v30, 6  ;;  %v2957_v13 = vsel %vm2174_vm4, %v2956_v40, %v8969_v53  ;;  %v2277_v41 = vsel %vm2185_vm6, %v2273_v31, 0.0 }
 0x4de   : > { %v8994_v11 = vpop.eup %5603  ;;  %5629 = vpow2.f32 %v3619_v45  ;;  %v2964_v8 = vrot.slane %v8990_v26, 6  ;;  %v2963_v24 = vsel %vm2174_vm4, %v2962_v55, %v8974_v42  ;;  %v4337_v55 = vpop.permute.xlu1 %4336 }
 0x4df   : > { %v9000_v9 = vpop.eup %5605  ;;  %5631 = vpow2.f32 %v3609_v46  ;;  %v2959_v0 = vsel %vm2176_vm5, %v2958_v23, %v2957_v13  ;;  %v2960_v46 = vrot.slane %v8994_v11, 5  ;;  %v2278_v23 = vadd.f32 %v2277_v41, %v2276_v62 }
 0x4e0   : > { %11481 = vst [vmem:[#allocation194_spill] sm:$0xff] %v9000_v9  ;;  %v9004_v2 = vpop.eup %5607  ;;  %5633 = vpow2.f32 %v3611_v60  ;;  %v4364_v3 = vrot.slane %v9000_v9, 7  ;;  %v2965_v20 = vsel %vm2176_vm5, %v2964_v8, %v2963_v24 }
 0x4e1   : > { %11482 = vst [vmem:[#allocation29_spill] sm:$0xff] %v9004_v2  ;;  %v9006_v57 = vpop.eup %5609  ;;  %5635 = vpow2.f32 %v3621_v49  ;;  %v4370_v27 = vrot.slane %v9004_v2, 7 }
 0x4e2   : > { %v9011_v37 = vpop.eup %5611  ;;  %5637 = vpow2.f32 %v3623_v12  ;;  %v2966_v60 = vrot.slane %v9006_v57, 5  ;;  %v2961_v12 = vsel %vm2178_vm7, %v2960_v46, %v2959_v0  ;;  %v4339_v62 = vpop.permute.xlu1 %4338 }
 0x4e3   : > { %11483 = vst [vmem:[#allocation20_spill] sm:$0xff] %v9011_v37  ;;  %v9016_v59 = vpop.eup %5613  ;;  %v4366_v4 = vrot.slane %v9011_v37, 6  ;;  %v11523_v37 = vld [vmem:[#allocation88_spill] sm:$0xff] }
 0x4e4   : > { %11484 = vst [vmem:[#allocation18_spill] sm:$0xff] %v9016_v59  ;;  %v9024_v47 = vpop.eup %5615  ;;  %v4372_v45 = vrot.slane %v9016_v59, 6  ;;  %v2967_v54 = vsel %vm2178_vm7, %v2966_v60, %v2965_v20  ;;  %v4345_v60 = vsub.f32 %v8836_v25, %v4335_v10 }
 0x4e5   : > { %11485 = vst [vmem:[#allocation22_spill] sm:$0xff] %v9024_v47  ;;  %v9026_v51 = vpop.eup %5617  ;;  %v2971_v56 = vsel %vm2185_vm6, %v2967_v54, 0.0  ;;  %v3660_v31 = vrot.slane %v9024_v47, 7 }
 0x4e6   : > { %11486 = vst [vmem:[#allocation17_spill] sm:$0xff] %v9026_v51  ;;  %v9030_v5 = vpop.eup %5619  ;;  %v4365_v15 = vsel %vm2174_vm4, %v4364_v3, %v9026_v51  ;;  %v4333_v3 = vpop.permute.xlu0 %4332  ;;  %v11528_v51 = vld [vmem:[#allocation67_spill] sm:$0xff] }
 0x4e7   : > { %11487 = vst [vmem:[#allocation30_spill] sm:$0xff] %v9030_v5  ;;  %v9036_v34 = vpop.eup %5621  ;;  %v4371_v32 = vsel %vm2174_vm4, %v4370_v27, %v9030_v5  ;;  %v4367_v18 = vsel %vm2176_vm5, %v4366_v4, %v4365_v15  ;;  %v2970_v27 = vsel %vm2185_vm6, %v2961_v12, 0.0 }
 0x4e8   : > { %11488 = vst [vmem:[#allocation195_spill] sm:$0xff] %v9036_v34  ;;  %v9044_v49 = vpop.eup %5623  ;;  %v4373_v7 = vsel %vm2176_vm5, %v4372_v45, %v4371_v32  ;;  %v4368_v8 = vrot.slane %v9036_v34, 5  ;;  %v4344_v32 = vsub.f32 %v8840_v52, %v4333_v3  ;;  %v2972_v41 = vadd.f32 %v2971_v56, %v2970_v27  ;;  %v11526_v34 = vld [vmem:[#allocation89_spill] sm:$0xff] }
 0x4e9   : > { %11489 = vst [vmem:[#allocation65_spill] sm:$0xff] %v9044_v49  ;;  %v9048_v40 = vpop.eup %5625  ;;  %v4374_v13 = vrot.slane %v9044_v49, 5  ;;  %v4347_v3 = vsub.f32 %v8842_v14, %v4339_v62  ;;  %v4350_v27 = vmul.f32 1.442695, %v4345_v60 }
 0x4ea   : > { %11490 = vst [vmem:[#allocation167_spill] sm:$0xff] %v9048_v40  ;;  %v9054_v6 = vpop.eup %5627  ;;  %v3666_v0 = vrot.slane %v9048_v40, 7  ;;  %v4369_v4 = vsel %vm2178_vm7, %v4368_v8, %v4367_v18  ;;  %v9523_v40 = vld [vmem:[#allocation4 + $0x1d0] sm:$0xff] }
 0x4eb   : > { %11491 = vst [vmem:[#allocation93_spill] sm:$0xff] %v9054_v6  ;;  %v9058_v24 = vpop.eup %5629  ;;  %v4375_v45 = vsel %vm2178_vm7, %v4374_v13, %v4373_v7  ;;  %v3662_v12 = vrot.slane %v9054_v6, 6  ;;  %v4346_v13 = vsub.f32 %v8838_v44, %v4337_v55  ;;  %5639 = vpow2.f32 %v4350_v27 }
 0x4ec   : > { %11492 = vst [vmem:[#allocation173_spill] sm:$0xff] %v9058_v24  ;;  %v9064_v20 = vpop.eup %5631  ;;  %v3668_v54 = vrot.slane %v9058_v24, 6  ;;  %v4379_v18 = vsel %vm2185_vm6, %v4375_v45, 0.0  ;;  %v4348_v45 = vmul.f32 1.442695, %v4344_v32 }
 0x4ed   : > { %11493 = vst [vmem:[#allocation171_spill] sm:$0xff] %v9064_v20  ;;  %v9068_v46 = vpop.eup %5633  ;;  %v3661_v7 = vsel %vm2174_vm4, %v3660_v31, %v9064_v20  ;;  %v4352_v16 = vmul.f32 1.442695, %v4346_v13  ;;  %v2236_v13 = vrot.slane %v8854_v48, 2 }
 0x4ee   : > { %11494 = vst [vmem:[#allocation109_spill] sm:$0xff] %v9068_v46  ;;  %v9071_v15 = vpop.eup %5635  ;;  %v3667_v10 = vsel %vm2174_vm4, %v3666_v0, %v9068_v46  ;;  %v3663_v61 = vsel %vm2176_vm5, %v3662_v12, %v3661_v7  ;;  %v4354_v0 = vmul.f32 1.442695, %v4347_v3  ;;  %5641 = vpow2.f32 %v4348_v45  ;;  %v9536_v46 = vld [vmem:[#allocation4 + $0x1d8] sm:$0xff] }
 0x4ef   : > { %2279 = vadd.xlane.f32.xlu0 %v2278_v23  ;;  %11495 = vst [vmem:[#allocation150_spill] sm:$0xff] %v9071_v15  ;;  %v4378_v23 = vsel %vm2185_vm6, %v4369_v4, 0.0  ;;  %v9082_v8 = vpop.eup %5637  ;;  %v3669_v4 = vsel %vm2176_vm5, %v3668_v54, %v3667_v10  ;;  %v3664_v39 = vrot.slane %v9071_v15, 5  ;;  %5643 = vpow2.f32 %v4352_v16 }
 0x4f0   : > { %11496 = vst [vmem:[#allocation51_spill] sm:$0xff] %v9082_v8  ;;  %v4380_v56 = vadd.f32 %v4379_v18, %v4378_v23  ;;  %v3670_v31 = vrot.slane %v9082_v8, 5  ;;  %5645 = vpow2.f32 %v4354_v0  ;;  %v2235_v10 = vrot.slane %v8854_v48, 1 }
 0x4f1   : > { %v3665_v59 = vsel %vm2178_vm7, %v3664_v39, %v3663_v61  ;;  %v2244_v27 = vsub.f32 %v8838_v44, %v2236_v13  ;;  %v2242_v45 = vsub.f32 %v8840_v52, %v8854_v48 }
 0x4f2   : > { %v3671_v55 = vsel %vm2178_vm7, %v3670_v31, %v3669_v4  ;;  %v3674_v60 = vsel %vm2185_vm6, %v3665_v59, 0.0  ;;  %v2243_v3 = vsub.f32 %v8836_v25, %v2235_v10 }
 0x4f3   : > { %2973 = vadd.xlane.f32.xlu0 %v2972_v41  ;;  %v3675_v62 = vsel %vm2185_vm6, %v3671_v55, 0.0  ;;  %v2250_v31 = vmul.f32 1.442695, %v2244_v27  ;;  %v2246_v55 = vmul.f32 1.442695, %v2242_v45 }
 0x4f4   : > { %v3676_v32 = vadd.f32 %v3675_v62, %v3674_v60  ;;  %v2248_v4 = vmul.f32 1.442695, %v2243_v3  ;;  %v2324_v3 = vlaneseq }
 0x4f6   : > { %5647 = vpow2.f32 %v2248_v4  ;;  %v2325_v27 = vshrl.u32 %v2324_v3, 7 }
 0x4f7   : > { %4381 = vadd.xlane.f32.xlu0 %v4380_v56  ;;  %v2237_v56 = vrot.slane %v8854_v48, 3  ;;  %5649 = vpow2.f32 %v2250_v31  ;;  %v11501_v31 = vld [vmem:[#allocation35_spill] sm:$0xff] }
 0x4f8   : > { %v9094_v41 = vpop.eup %5639  ;;  %5651 = vpow2.f32 %v2246_v55  ;;  %v9121_v4 = vsub.s32 0, %v2325_v27 }
 0x4f9   : > { %11497 = vst [vmem:[#allocation40_spill] sm:$0xff] %v9094_v41  ;;  %v4387_v39 = vrot.slane %v9094_v41, 7  ;;  %v2245_v0 = vsub.f32 %v8842_v14, %v2237_v56 }
 0x4fb   : > { %v9096_v12 = vpop.eup %5641  ;;  %v2252_v60 = vmul.f32 1.442695, %v2245_v0  ;;  %v11502_v0 = vld [vmem:[#allocation73_spill] sm:$0xff] }
 0x4fc   : > { %11498 = vst [vmem:[#allocation25_spill] sm:$0xff] %v9096_v12  ;;  %v9098_v54 = vpop.eup %5643  ;;  %v4388_v16 = vsel %vm2174_vm4, %v4387_v39, %v9096_v12  ;;  %v9125_v55 = vadd.f32 %v11502_v0, %v11501_v31  ;;  %v11513_v31 = vld [vmem:[#allocation56_spill] sm:$0xff]  ;;  %v11514_v0 = vld [vmem:[#allocation77_spill] sm:$0xff] }
 0x4fd   : > { %11499 = vst [vmem:[#allocation42_spill] sm:$0xff] %v9098_v54  ;;  %v9100_v23 = vpop.eup %5645  ;;  %v4389_v61 = vrot.slane %v9098_v54, 6  ;;  %5653 = vpow2.f32 %v2252_v60  ;;  %v11504_v60 = vld [vmem:[#allocation13_spill] sm:$0xff]  ;;  %v9141_v12 = vadd.f32 %v11514_v0, %v11513_v31 }
 0x4fe   : > { %11500 = vst [vmem:[#allocation169_spill] sm:$0xff] %v9100_v23  ;;  %v4391_v59 = vrot.slane %v9100_v23, 5  ;;  %11503 = vst [vmem:[#allocation178_spill] sm:$0xff] %v9125_v55 }
 0x4ff   : > { %3677 = vadd.xlane.f32.xlu1 %v3676_v32  ;;  %v4390_v18 = vsel %vm2176_vm5, %v4389_v61, %v4388_v16  ;;  %11515 = vst [vmem:[#allocation37_spill] sm:$0xff] %v9141_v12  ;;  %11607 = vst [vmem:[#allocation13_spill] sm:$0xff] %v9353_v43 }
 0x500   : > { %v4392_v7 = vsel %vm2178_vm7, %v4391_v59, %v4390_v18 }
 0x503   : > { %v5648_v62 = vpop.eup %5647 }
 0x504   : > { %v5650_v32 = vpop.eup %5649  ;;  %v2285_v25 = vrot.slane %v5648_v62, 7 }
 0x505   : > { %v5652_v39 = vpop.eup %5651  ;;  %v2287_v44 = vrot.slane %v5650_v32, 6 }
 0x506   : > { %v2286_v61 = vsel %vm2174_vm4, %v2285_v25, %v5652_v39  ;;  %v11505_v25 = vld [vmem:[#allocation74_spill] sm:$0xff] }
 0x507   : > { %v2288_v52 = vsel %vm2176_vm5, %v2287_v44, %v2286_v61  ;;  %v9129_v44 = vadd.f32 %v11505_v25, %v11504_v60  ;;  %v11507_v61 = vld [vmem:[#allocation45_spill] sm:$0xff]  ;;  %v11516_v60 = vld [vmem:[#allocation24_spill] sm:$0xff]  ;;  %v11517_v25 = vld [vmem:[#allocation86_spill] sm:$0xff] }
 0x508   : > { %v9145_v41 = vadd.f32 %v11517_v25, %v11516_v60  ;;  %v11529_v60 = vld [vmem:[#allocation90_spill] sm:$0xff] }
 0x509   : > { %11506 = vst [vmem:[#allocation183_spill] sm:$0xff] %v9129_v44  ;;  %v9162_v25 = vadd.f32 %v11529_v60, %v11528_v51  ;;  %v11540_v60 = vld [vmem:[#allocation61_spill] sm:$0xff] }
 0x50a   : > { %v5654_v16 = vpop.eup %5653  ;;  %11518 = vst [vmem:[#allocation54_spill] sm:$0xff] %v9145_v41 }
 0x50b   : > { %v2289_v48 = vrot.slane %v5654_v16, 5  ;;  %11530 = vst [vmem:[#allocation170_spill] sm:$0xff] %v9162_v25 }
 0x50d   : > { %v2290_v14 = vsel %vm2178_vm7, %v2289_v48, %v2288_v52  ;;  %v11508_v52 = vld [vmem:[#allocation75_spill] sm:$0xff] }
 0x50e   : > { %v9133_v48 = vadd.f32 %v11508_v52, %v11507_v61  ;;  %v11519_v61 = vld [vmem:[#allocation26_spill] sm:$0xff]  ;;  %v11520_v52 = vld [vmem:[#allocation87_spill] sm:$0xff] }
 0x50f   : > { %v9149_v54 = vadd.f32 %v11520_v52, %v11519_v61 }
 0x510   : > { %4393 = vrot.lane.b32.xlu1 %v4392_v7, %s5853_s17  ;;  %11509 = vst [vmem:[#allocation23_spill] sm:$0xff] %v9133_v48 }
 0x511   : > { %11521 = vst [vmem:[#allocation53_spill] sm:$0xff] %v9149_v54 }
 0x542   : > { %v2986_v59 = vpop.permute.xlu0 %2985 }
 0x54d   : > { %v3690_v56 = vpop.permute.xlu1 %3689 }
 0x578   : > { %v2280_v18 = vpop.xlane.xlu0 %2279 }
 0x579   : > { %v2292_v7 = vadd.f32 %v2290_v14, %v2280_v18  ;;  %v11511_v14 = vld [vmem:[#allocation76_spill] sm:$0xff] }
 0x57b   : > { %5655 = vrcp.f32 %v2292_v7 }
 0x57c   : > { %v2974_v10 = vpop.xlane.xlu0 %2973 }
 0x57d   : > { %v2988_v13 = vadd.f32 %v2986_v59, %v2974_v10  ;;  %v11510_v59 = vld [vmem:[#allocation34_spill] sm:$0xff] }
 0x57e   : > { %v9137_v18 = vadd.f32 %v11511_v14, %v11510_v59  ;;  %v11522_v14 = vld [vmem:[#allocation21_spill] sm:$0xff] }
 0x57f   : > { %5657 = vrcp.f32 %v2988_v13  ;;  %v9153_v49 = vadd.f32 %v11523_v37, %v11522_v14  ;;  %v11534_v37 = vld [vmem:[#allocation79_spill] sm:$0xff]  ;;  %v11535_v14 = vld [vmem:[#allocation100_spill] sm:$0xff] }
 0x580   : > { %11512 = vst [vmem:[#allocation36_spill] sm:$0xff] %v9137_v18  ;;  %v9170_v24 = vadd.f32 %v11535_v14, %v11534_v37 }
 0x581   : > { %11524 = vst [vmem:[#allocation66_spill] sm:$0xff] %v9153_v49 }
 0x582   : > { %11536 = vst [vmem:[#allocation62_spill] sm:$0xff] %v9170_v24 }
 0x588   : > { %v5656_v45 = vpop.eup %5655  ;;  %v3678_v7 = vpop.xlane.xlu1 %3677 }
 0x589   : > { %2296 = vperm.xlu1 %5510, %v5656_v45   ;;  %v2320_v10 = vmul.f32 %v5656_v45, %v5652_v39  ;;  %v2313_v13 = vrot.slane %v5656_v45, 1  ;;  %v2314_v3 = vrot.slane %v5656_v45, 2  ;;  %v2315_v27 = vrot.slane %v5656_v45, 3  ;;  %v11525_v39 = vld [vmem:[#allocation94_spill] sm:$0xff] }
 0x58a   : > { %v3692_v59 = vadd.f32 %v3690_v56, %v3678_v7  ;;  %v9157_v45 = vadd.f32 %v11526_v34, %v11525_v39  ;;  %v11531_v56 = vld [vmem:[#allocation106_spill] sm:$0xff]  ;;  %v11532_v7 = vld [vmem:[#allocation91_spill] sm:$0xff]  ;;  %v11537_v34 = vld [vmem:[#allocation64_spill] sm:$0xff] }
 0x58b   : > { %v2439_v31 = vrot.slane %v2320_v10, %v9121_v4  ;;  %v2321_v0 = vmul.f32 %v5648_v62, %v2313_v13  ;;  %v2322_v61 = vmul.f32 %v5650_v32, %v2314_v3  ;;  %v2323_v52 = vmul.f32 %v5654_v16, %v2315_v27  ;;  %v11538_v39 = vld [vmem:[#allocation101_spill] sm:$0xff]  ;;  %v4382_v62 = vpop.xlane.xlu0 %4381 }
 0x58c   : > { %11527 = vst [vmem:[#allocation48_spill] sm:$0xff] %v9157_v45  ;;  %v5658_v5 = vpop.eup %5657  ;;  %5659 = vrcp.f32 %v3692_v59  ;;  %v9166_v63 = vadd.f32 %v11532_v7, %v11531_v56  ;;  %v9174_v10 = vadd.f32 %v11538_v39, %v11537_v34  ;;  %v4394_v13 = vpop.permute.xlu1 %4393  ;;  %v11541_v59 = vld [vmem:[#allocation103_spill] sm:$0xff]  ;;  %v11545_v56 = vld [vmem:[#allocation41_spill] sm:$0xff]  ;;  %v11546_v7 = vld [vmem:[#allocation104_spill] sm:$0xff] }
 0x58d   : > { %2992 = vperm.xlu1 %5510, %v5658_v5   ;;  %v3011_v51 = vrot.slane %v5658_v5, 3  ;;  %v9178_v32 = vadd.f32 %v11541_v59, %v11540_v60  ;;  %v4396_v16 = vadd.f32 %v4394_v13, %v4382_v62  ;;  %v9181_v3 = vmul.f32 %v2439_v31, %v9129_v44 }
 0x58e   : > { %11533 = vst [vmem:[#allocation111_spill] sm:$0xff] %v9166_v63  ;;  %11539 = vst [vmem:[#allocation52_spill] sm:$0xff] %v9174_v10  ;;  %v9184_v27 = vmul.f32 %v2439_v31, %v9125_v55  ;;  %v9188_v37 = vadd.f32 %v11546_v7, %v11545_v56  ;;  %v9192_v14 = vmul.f32 %v2439_v31, %v9137_v18  ;;  %v3009_v62 = vrot.slane %v5658_v5, 1 }
 0x58f   : > { %11542 = vst [vmem:[#allocation69_spill] sm:$0xff] %v9178_v32  ;;  %11543 = vst [vmem:[#allocation175_spill] sm:$0xff] %v9181_v3  ;;  %3018 = vrot.lane.b32.xlu0 %v3011_v51, %s5855_s9  ;;  %v9195_v34 = vmul.f32 %v2439_v31, %v9133_v48  ;;  %v2443_v39 = vrot.slane %v2321_v0, %v9121_v4  ;;  %5661 = vrcp.f32 %v4396_v16  ;;  %v11554_v0 = vld [vmem:[#allocation44_spill] sm:$0xff]  ;;  %v11555_v16 = vld [vmem:[#allocation102_spill] sm:$0xff] }
 0x590   : > { %11544 = vst [vmem:[#allocation38_spill] sm:$0xff] %v9184_v27  ;;  %11547 = vst [vmem:[#allocation146_spill] sm:$0xff] %v9188_v37  ;;  %v2447_v13 = vrot.slane %v2322_v61, %v9121_v4  ;;  %v2451_v60 = vrot.slane %v2323_v52, %v9121_v4  ;;  %v9215_v7 = vadd.f32 %v11555_v16, %v11554_v0  ;;  %v3010_v61 = vrot.slane %v5658_v5, 2 }
 0x591   : > { %11548 = vst [vmem:[#allocation115_spill] sm:$0xff] %v9192_v14  ;;  %11549 = vst [vmem:[#allocation131_spill] sm:$0xff] %v9195_v34  ;;  %3012 = vrot.lane.b32.xlu1 %v5658_v5, %s5855_s9  ;;  %v9202_v59 = vmul.f32 %v2443_v39, %v9145_v41  ;;  %v9205_v51 = vmul.f32 %v2443_v39, %v9153_v49  ;;  %v9208_v56 = vmul.f32 %v2443_v39, %v9141_v12  ;;  %v11604_v12 = vld [vmem:[#allocation68_spill] sm:$0xff] }
 0x592   : > { %v9211_v31 = vmul.f32 %v2443_v39, %v9149_v54  ;;  %11556 = vst [vmem:[#allocation32_spill] sm:$0xff] %v9215_v7  ;;  %v9218_v52 = vmul.f32 %v2447_v13, %v9170_v24  ;;  %v9221_v55 = vmul.f32 %v2447_v13, %v9166_v63  ;;  %v9231_v39 = vmul.f32 %v2451_v60, %v9188_v37  ;;  %v9327_v63 = vld [vmem:[#allocation4 + $0x118] sm:$0xff]  ;;  %v11605_v54 = vld [vmem:[#allocation81_spill] sm:$0xff] }
 0x593   : > { %11550 = vst [vmem:[#allocation19_spill] sm:$0xff] %v9202_v59  ;;  %11551 = vst [vmem:[#allocation116_spill] sm:$0xff] %v9205_v51  ;;  %3014 = vrot.lane.b32.xlu0 %v3009_v62, %s5855_s9  ;;  %v9225_v51 = vmul.f32 %v2451_v60, %v9178_v32  ;;  %v9234_v0 = vmul.f32 %v2447_v13, %v9157_v45  ;;  %v9237_v5 = vmul.f32 %v2451_v60, %v9174_v10  ;;  %v9279_v59 = vpop.f32.mrf.mxu0  ;;  %v9331_v45 = vld [vmem:[#allocation4 + $0x128] sm:$0xff]  ;;  %v11606_v10 = vld [vmem:[#allocation80_spill] sm:$0xff] }
 0x594   : > { %11552 = vst [vmem:[#allocation189_spill] sm:$0xff] %v9208_v56  ;;  %11553 = vst [vmem:[#allocation105_spill] sm:$0xff] %v9211_v31  ;;  %v9228_v56 = vmul.f32 %v2447_v13, %v9162_v25  ;;  %v9240_v16 = vmul.f32 %v2451_v60, %v9215_v7  ;;  %v9308_v25 = vld [vmem:[#allocation4 + $0x100] sm:$0xff]  ;;  %v1910_v7 = vadd.f32 %v11604_v12, %v9327_v63 }
 0x595   : > { %11557 = vst [vmem:[#allocation15_spill] sm:$0xff] %v9218_v52  ;;  %11558 = vst [vmem:[#allocation33_spill] sm:$0xff] %v9221_v55  ;;  %3016 = vrot.lane.b32.xlu1 %v3010_v61, %s5855_s9  ;;  %v9283_v52 = vpop.f32.mrf.mxu0  ;;  %v2615_v36 = vadd.f32 %v11613_v38, %v9308_v25  ;;  %v11618_v38 = vld [vmem:[#allocation112_spill] sm:$0xff] }
 0x596   : > { %11559 = vst [vmem:[#allocation49_spill] sm:$0xff] %v9225_v51  ;;  %11560 = vst [vmem:[#allocation163_spill] sm:$0xff] %v9228_v56 }
 0x597   : > { %11561 = vst [vmem:[#allocation165_spill] sm:$0xff] %v9231_v39  ;;  %11562 = vst [vmem:[#allocation159_spill] sm:$0xff] %v9234_v0  ;;  %v9287_v34 = vpop.f32.mrf.mxu0 }
 0x598   : > { %11563 = vst [vmem:[#allocation182_spill] sm:$0xff] %v9237_v5  ;;  %11564 = vst [vmem:[#allocation199_spill] sm:$0xff] %v9240_v16  ;;  %v9261_v16 = vpop.f32.mrf.mxu1 }
 0x599   : > { %v9243_v62 = vpop.eup %5659  ;;  %11567 = vst [vmem:[#allocation172_spill] sm:$0xff] %v9261_v16  ;;  %11576 = vst [vmem:[#allocation143_spill] sm:$0xff] %v9279_v59  ;;  %v9291_v44 = vpop.f32.mrf.mxu0 }
 0x59a   : > { %11565 = vst [vmem:[#allocation162_spill] sm:$0xff] %v9243_v62  ;;  %3696 = vperm.xlu1 %5510, %v9243_v62   ;;  %v3714_v56 = vrot.slane %v9243_v62, 2  ;;  %v3715_v39 = vrot.slane %v9243_v62, 3  ;;  %v3713_v60 = vrot.slane %v9243_v62, 1  ;;  %11578 = vst [vmem:[#allocation177_spill] sm:$0xff] %v9283_v52 }
 0x59b   : > { %11580 = vst [vmem:[#allocation58_spill] sm:$0xff] %v9287_v34  ;;  %11582 = vst [vmem:[#allocation156_spill] sm:$0xff] %v9291_v44  ;;  %v9295_v14 = vpop.f32.mrf.mxu0 }
 0x59c   : > { %3720 = vrot.lane.b32.xlu0 %v3714_v56, %s5856_s10  ;;  %v9249_v13 = vpop.eup %5661  ;;  %11584 = vst [vmem:[#allocation184_spill] sm:$0xff] %v9295_v14  ;;  %11590 = vst [vmem:[#allocation188_spill] sm:$0xff] %v9308_v25  ;;  %v11592_v14 = vld [vmem:[#allocation39_spill] sm:$0xff] }
 0x59d   : > { %11566 = vst [vmem:[#allocation176_spill] sm:$0xff] %v9249_v13  ;;  %v4419_v5 = vrot.slane %v9249_v13, 3  ;;  %v4417_v61 = vrot.slane %v9249_v13, 1  ;;  %v4418_v56 = vrot.slane %v9249_v13, 2  ;;  %v9299_v3 = vpop.f32.mrf.mxu0  ;;  %11597 = vst [vmem:[#allocation70_spill] sm:$0xff] %v9327_v63 }
 0x59e   : > { %3722 = vrot.lane.b32.xlu1 %v3715_v39, %s5856_s10  ;;  %v9263_v39 = vpop.f32.mrf.mxu1  ;;  %11586 = vst [vmem:[#allocation201_spill] sm:$0xff] %v9299_v3  ;;  %v9317_v3 = vld [vmem:[#allocation4 + $0x108] sm:$0xff]  ;;  %11599 = vst [vmem:[#allocation14_spill] sm:$0xff] %v9331_v45 }
 0x59f   : > { %11568 = vst [vmem:[#allocation174_spill] sm:$0xff] %v9263_v39  ;;  %v9303_v59 = vpop.f32.mrf.mxu0  ;;  %11593 = vst [vmem:[#allocation190_spill] sm:$0xff] %v9317_v3 }
 0x5a0   : > { %4426 = vrot.lane.b32.xlu0 %v4419_v5, %s5857_s11  ;;  %v9265_v0 = vpop.f32.mrf.mxu1  ;;  %11588 = vst [vmem:[#allocation179_spill] sm:$0xff] %v9303_v59 }
 0x5a1   : > { %11569 = vst [vmem:[#allocation152_spill] sm:$0xff] %v9265_v0  ;;  %v9321_v59 = vpop.f32.mrf.mxu0 }
 0x5a2   : > { %3718 = vrot.lane.b32.xlu1 %v3713_v60, %s5856_s10  ;;  %v9267_v5 = vpop.f32.mrf.mxu1  ;;  %11595 = vst [vmem:[#allocation200_spill] sm:$0xff] %v9321_v59 }
 0x5a3   : > { %11570 = vst [vmem:[#allocation193_spill] sm:$0xff] %v9267_v5  ;;  %v9377_v8 = vpop.f32.mrf.mxu0 }
 0x5a4   : > { %4422 = vrot.lane.b32.xlu0 %v4417_v61, %s5857_s11  ;;  %v9269_v31 = vpop.f32.mrf.mxu1  ;;  %11616 = vst [vmem:[#allocation75_spill] sm:$0xff] %v9377_v8 }
 0x5a5   : > { %11571 = vst [vmem:[#allocation31_spill] sm:$0xff] %v9269_v31  ;;  %v11656_v31 = vld [vmem:[#allocation121_spill] sm:$0xff] }
 0x5a6   : > { %4400 = vperm.xlu1 %5510, %v9249_v13   ;;  %v9271_v60 = vpop.f32.mrf.mxu1 }
 0x5a7   : > { %11572 = vst [vmem:[#allocation198_spill] sm:$0xff] %v9271_v60  ;;  %v9501_v60 = vld [vmem:[#allocation4 + $0x1b8] sm:$0xff] }
 0x5a8   : > { %v9273_v51 = vpop.f32.mrf.mxu1  ;;  %11654 = vst [vmem:[#allocation64_spill] sm:$0xff] %v9501_v60 }
 0x5a9   : > { %11573 = vst [vmem:[#allocation50_spill] sm:$0xff] %v9273_v51  ;;  %v2621_v51 = vadd.f32 %v11618_v38, %v9327_v63 }
 0x5aa   : > { %4424 = vrot.lane.b32.xlu1 %v4418_v56, %s5857_s11  ;;  %v9275_v61 = vpop.f32.mrf.mxu1 }
 0x5ab   : > { %11574 = vst [vmem:[#allocation92_spill] sm:$0xff] %v9275_v61 }
 0x5ac   : > { %v9277_v55 = vpop.f32.mrf.mxu1 }
 0x5ad   : > { %11575 = vst [vmem:[#allocation153_spill] sm:$0xff] %v9277_v55  ;;  %v9521_v55 = vld [vmem:[#allocation4 + $0x1c8] sm:$0xff] }
 0x5ae   : > { %v9281_v56 = vpop.f32.mrf.mxu1  ;;  %11660 = vst [vmem:[#allocation103_spill] sm:$0xff] %v9521_v55 }
 0x5af   : > { %11577 = vst [vmem:[#allocation181_spill] sm:$0xff] %v9281_v56 }
 0x5b0   : > { %v9285_v18 = vpop.f32.mrf.mxu1 }
 0x5b1   : > { %11579 = vst [vmem:[#allocation16_spill] sm:$0xff] %v9285_v18 }
 0x5b2   : > { %v9289_v13 = vpop.f32.mrf.mxu1 }
 0x5b3   : > { %11581 = vst [vmem:[#allocation57_spill] sm:$0xff] %v9289_v13 }
 0x5b4   : > { %v9293_v62 = vpop.f32.mrf.mxu1 }
 0x5b5   : > { %11583 = vst [vmem:[#allocation166_spill] sm:$0xff] %v9293_v62 }
 0x5b6   : > { %v9297_v48 = vpop.f32.mrf.mxu1 }
 0x5b7   : > { %11585 = vst [vmem:[#allocation168_spill] sm:$0xff] %v9297_v48  ;;  %v1904_v48 = vadd.f32 %v11592_v14, %v9308_v25 }
 0x5b8   : > { %v9301_v27 = vpop.f32.mrf.mxu1 }
 0x5b9   : > { %11587 = vst [vmem:[#allocation180_spill] sm:$0xff] %v9301_v27  ;;  %v9319_v27 = vld [vmem:[#allocation4 + $0x110] sm:$0xff] }
 0x5ba   : > { %v9305_v24 = vpop.f32.mrf.mxu1  ;;  %11594 = vst [vmem:[#allocation187_spill] sm:$0xff] %v9319_v27 }
 0x5bb   : > { %11589 = vst [vmem:[#allocation46_spill] sm:$0xff] %v9305_v24 }
 0x5bc   : > { %v9333_v49 = vpop.f32.mrf.mxu1 }
 0x5bd   : > { %11600 = vst [vmem:[#allocation186_spill] sm:$0xff] %v9333_v49 }
 0x601   : > { %v3019_v52 = vpop.permute.xlu0 %3018 }
 0x602   : > { %v3027_v34 = vmul.f32 %v8910_v28, %v3019_v52  ;;  %v11596_v28 = vld [vmem:[#allocation28_spill] sm:$0xff] }
 0x603   : > { %v1906_v52 = vadd.f32 %v11596_v28, %v9317_v3  ;;  %v11603_v28 = vld [vmem:[#allocation55_spill] sm:$0xff] }
 0x604   : > { %v9311_v44 = vrot.slane %v3027_v34, %v9121_v4  ;;  %v9313_v62 = vpop.permute.xlu1 %2296  ;;  %v9329_v34 = vld [vmem:[#allocation4 + $0x120] sm:$0xff]  ;;  %v1908_v41 = vadd.f32 %v11603_v28, %v9319_v27 }
 0x605   : > { %v2305_v24 = vmul.f32 %v8900_v50, %v9313_v62  ;;  %11598 = vst [vmem:[#allocation83_spill] sm:$0xff] %v9329_v34  ;;  %v2306_v14 = vmul.f32 %v8919_v1, %v9313_v62  ;;  %v1914_v49 = vadd.f32 %v11605_v54, %v9329_v34  ;;  %v1916_v1 = vadd.f32 %v11606_v10, %v9331_v45  ;;  %v9361_v28 = vld [vmem:[#allocation4 + $0x140] sm:$0xff]  ;;  %v11612_v10 = vld [vmem:[#allocation107_spill] sm:$0xff] }
 0x606   : > { %11591 = vst [vmem:[#allocation196_spill] sm:$0xff] %v9311_v44  ;;  %v9339_v59 = vmul.f32 %v9311_v44, %v9178_v32  ;;  %v9343_v50 = vmul.f32 %v9311_v44, %v9188_v37  ;;  %v9355_v32 = vld [vmem:[#allocation4 + $0x138] sm:$0xff]  ;;  %11611 = vst [vmem:[#allocation45_spill] sm:$0xff] %v9361_v28  ;;  %v9369_v23 = vadd.f32 %v11612_v10, %v9361_v28  ;;  %v2298_v8 = vrot.slane %v9313_v62, 1 }
 0x607   : > { %11608 = vst [vmem:[#allocation74_spill] sm:$0xff] %v9355_v32  ;;  %v2327_v12 = vrot.slane %v2305_v24, %v9121_v4  ;;  %v2331_v6 = vrot.slane %v2306_v14, %v9121_v4  ;;  %v9379_v24 = vpop.f32.mrf.mxu1  ;;  %v2299_v38 = vrot.slane %v9313_v62, 2 }
 0x608   : > { %11601 = vst [vmem:[#allocation35_spill] sm:$0xff] %v9339_v59  ;;  %11602 = vst [vmem:[#allocation73_spill] sm:$0xff] %v9343_v50  ;;  %v11609_v59 = vld [vmem:[#allocation95_spill] sm:$0xff]  ;;  %v11610_v50 = vld [vmem:[#allocation108_spill] sm:$0xff]  ;;  %v9365_v54 = vpop.permute.xlu1 %2992 }
 0x609   : > { %v1918_v37 = vadd.f32 %v11609_v59, %v9353_v43  ;;  %v1920_v44 = vadd.f32 %v11610_v50, %v9355_v32  ;;  %v11614_v59 = vld [vmem:[#allocation97_spill] sm:$0xff]  ;;  %v11615_v50 = vld [vmem:[#allocation98_spill] sm:$0xff]  ;;  %11617 = vst [vmem:[#allocation34_spill] sm:$0xff] %v9379_v24  ;;  %v3001_v14 = vmul.f32 %v8969_v53, %v9365_v54  ;;  %v3002_v10 = vmul.f32 %v8974_v42, %v9365_v54  ;;  %v11621_v24 = vld [vmem:[#allocation120_spill] sm:$0xff] }
 0x60a   : > { %v2617_v2 = vadd.f32 %v11614_v59, %v9317_v3  ;;  %v2619_v9 = vadd.f32 %v11615_v50, %v9319_v27  ;;  %v2360_v15 = vmul.f32 %v2327_v12, %v1914_v49  ;;  %v2361_v61 = vmul.f32 %v2331_v6, %v1916_v1  ;;  %v11619_v59 = vld [vmem:[#allocation114_spill] sm:$0xff]  ;;  %v9398_v1 = vpop.f32.mrf.mxu0 }
 0x60b   : > { %v2625_v5 = vadd.f32 %v11619_v59, %v9329_v34  ;;  %v11620_v50 = vld [vmem:[#allocation118_spill] sm:$0xff]  ;;  %v2629_v27 = vadd.f32 %v11621_v24, %v9353_v43  ;;  %v3031_v42 = vrot.slane %v3001_v14, %v9121_v4  ;;  %v3035_v49 = vrot.slane %v3002_v10, %v9121_v4  ;;  %11623 = vst [vmem:[#allocation76_spill] sm:$0xff] %v9398_v1 }
 0x60c   : > { %v2627_v0 = vadd.f32 %v11620_v50, %v9331_v45  ;;  %v11622_v53 = vld [vmem:[#allocation122_spill] sm:$0xff]  ;;  %v2394_v59 = vadd.f32 %v2361_v61, %v2360_v15  ;;  %v2356_v63 = vmul.f32 %v2327_v12, %v1904_v48  ;;  %v2357_v3 = vmul.f32 %v2331_v6, %v1906_v52  ;;  %v9401_v50 = vpop.f32.mrf.mxu1  ;;  %v11626_v61 = vld [vmem:[#allocation27_spill] sm:$0xff]  ;;  %v9503_v45 = vld [vmem:[#allocation4 + $0x1c0] sm:$0xff] }
 0x60d   : > { %v2631_v39 = vadd.f32 %v11622_v53, %v9355_v32  ;;  %11624 = vst [vmem:[#allocation56_spill] sm:$0xff] %v9401_v50  ;;  %v2358_v16 = vmul.f32 %v2327_v12, %v1908_v41  ;;  %v2359_v25 = vmul.f32 %v2331_v6, %v1910_v7  ;;  %v3066_v13 = vmul.f32 %v3031_v42, %v2629_v27  ;;  %v9405_v32 = vld [vmem:[#allocation4 + $0x148] sm:$0xff]  ;;  %v9409_v41 = vpop.f32.mrf.mxu0 }
 0x60e   : > { %v2307_v43 = vmul.f32 %v8925_v58, %v2298_v8  ;;  %v2308_v53 = vmul.f32 %v8929_v19, %v2298_v8  ;;  %2395 = vadd.xlane.f32.xlu1 %v2394_v59  ;;  %v2388_v14 = vadd.f32 %v2357_v3, %v2356_v63  ;;  %v2362_v10 = vmul.f32 %v2327_v12, %v1918_v37  ;;  %v9412_v19 = vld [vmem:[#allocation4 + $0x150] sm:$0xff]  ;;  %v9414_v63 = vld [vmem:[#allocation4 + $0x158] sm:$0xff]  ;;  %v9416_v8 = vpop.f32.mrf.mxu1 }
 0x60f   : > { %v3067_v24 = vmul.f32 %v3035_v49, %v2631_v39  ;;  %11625 = vst [vmem:[#allocation77_spill] sm:$0xff] %v9405_v32  ;;  %v2391_v1 = vadd.f32 %v2359_v25, %v2358_v16  ;;  %v2363_v15 = vmul.f32 %v2331_v6, %v1920_v44  ;;  %v3060_v48 = vmul.f32 %v3031_v42, %v2615_v36  ;;  %v11631_v44 = vld [vmem:[#allocation43_spill] sm:$0xff]  ;;  %v11632_v16 = vld [vmem:[#allocation60_spill] sm:$0xff] }
 0x610   : > { %v1926_v52 = vadd.f32 %v11626_v61, %v9405_v32  ;;  %11627 = vst [vmem:[#allocation24_spill] sm:$0xff] %v9409_v41  ;;  %v2309_v27 = vmul.f32 %v8933_v33, %v2299_v38  ;;  %2389 = vadd.xlane.f32.xlu0 %v2388_v14  ;;  %v3061_v58 = vmul.f32 %v3035_v49, %v2617_v2  ;;  %11628 = vst [vmem:[#allocation86_spill] sm:$0xff] %v9412_v19  ;;  %v9424_v33 = vld [vmem:[#allocation4 + $0x160] sm:$0xff]  ;;  %v9429_v12 = vld [vmem:[#allocation4 + $0x170] sm:$0xff]  ;;  %v9463_v61 = vpop.f32.mrf.mxu0 }
 0x611   : > { %v3101_v18 = vadd.f32 %v3067_v24, %v3066_v13  ;;  %v3064_v7 = vmul.f32 %v3031_v42, %v2625_v5  ;;  %11629 = vst [vmem:[#allocation26_spill] sm:$0xff] %v9414_v63  ;;  %11630 = vst [vmem:[#allocation87_spill] sm:$0xff] %v9416_v8  ;;  %v2397_v25 = vadd.f32 %v2363_v15, %v2362_v10  ;;  %v9427_v5 = vld [vmem:[#allocation4 + $0x168] sm:$0xff]  ;;  %v11637_v59 = vld [vmem:[#allocation59_spill] sm:$0xff]  ;;  %v2300_v41 = vrot.slane %v9313_v62, 3 }
 0x612   : > { %v3065_v3 = vmul.f32 %v3035_v49, %v2627_v0  ;;  %v3062_v6 = vmul.f32 %v3031_v42, %v2619_v9  ;;  %v3063_v36 = vmul.f32 %v3035_v49, %v2621_v51  ;;  %v1928_v37 = vadd.f32 %v11631_v44, %v9412_v19  ;;  %11633 = vst [vmem:[#allocation21_spill] sm:$0xff] %v9424_v33  ;;  %v9431_v0 = vld [vmem:[#allocation4 + $0x178] sm:$0xff]  ;;  %v11640_v10 = vld [vmem:[#allocation71_spill] sm:$0xff] }
 0x613   : > { %v9422_v13 = vadd.f32 %v11632_v16, %v9414_v63  ;;  %v2310_v2 = vmul.f32 %v8938_v22, %v2299_v38  ;;  %3102 = vadd.xlane.f32.xlu1 %v3101_v18  ;;  %v3092_v39 = vadd.f32 %v3061_v58, %v3060_v48  ;;  %11634 = vst [vmem:[#allocation88_spill] sm:$0xff] %v9427_v5  ;;  %11635 = vst [vmem:[#allocation94_spill] sm:$0xff] %v9429_v12  ;;  %v11638_v18 = vld [vmem:[#allocation63_spill] sm:$0xff]  ;;  %v11639_v24 = vld [vmem:[#allocation72_spill] sm:$0xff] }
 0x614   : > { %11636 = vst [vmem:[#allocation89_spill] sm:$0xff] %v9431_v0  ;;  %v9433_v9 = vadd.f32 %v3065_v3, %v3064_v7  ;;  %v3095_v51 = vadd.f32 %v3063_v36, %v3062_v6  ;;  %v9436_v42 = vrot.slane %v2307_v43, %v9121_v4  ;;  %v9439_v49 = vrot.slane %v2308_v53, %v9121_v4  ;;  %v9457_v43 = vld [vmem:[#allocation4 + $0x180] sm:$0xff]  ;;  %v9459_v53 = vld [vmem:[#allocation4 + $0x188] sm:$0xff]  ;;  %v9461_v48 = vld [vmem:[#allocation4 + $0x190] sm:$0xff] }
 0x615   : > { %v9443_v22 = vadd.f32 %v11637_v59, %v9424_v33  ;;  %v9447_v38 = vadd.f32 %v11638_v18, %v9427_v5  ;;  %v9451_v14 = vadd.f32 %v11639_v24, %v9429_v12  ;;  %v9455_v15 = vadd.f32 %v11640_v10, %v9431_v0  ;;  %11641 = vst [vmem:[#allocation67_spill] sm:$0xff] %v9457_v43  ;;  %v11645_v58 = vld [vmem:[#allocation85_spill] sm:$0xff]  ;;  %v11646_v3 = vld [vmem:[#allocation84_spill] sm:$0xff]  ;;  %v9479_v18 = vld [vmem:[#allocation4 + $0x1a8] sm:$0xff]  ;;  %v9481_v24 = vpop.f32.mrf.mxu1 }
 0x616   : > { %11642 = vst [vmem:[#allocation90_spill] sm:$0xff] %v9459_v53  ;;  %11643 = vst [vmem:[#allocation106_spill] sm:$0xff] %v9461_v48  ;;  %2392 = vadd.xlane.f32.xlu0 %v2391_v1  ;;  %v9467_v7 = vadd.f32 %v11645_v58, %v9457_v43  ;;  %v9471_v6 = vadd.f32 %v11646_v3, %v9459_v53  ;;  %v11647_v36 = vld [vmem:[#allocation96_spill] sm:$0xff]  ;;  %v9477_v59 = vld [vmem:[#allocation4 + $0x1a0] sm:$0xff]  ;;  %v9484_v1 = vrot.slane %v2309_v27, %v9121_v4 }
 0x617   : > { %11644 = vst [vmem:[#allocation91_spill] sm:$0xff] %v9463_v61  ;;  %v1948_v44 = vadd.f32 %v11647_v36, %v9461_v48  ;;  %v9475_v16 = vld [vmem:[#allocation4 + $0x198] sm:$0xff]  ;;  %11649 = vst [vmem:[#allocation100_spill] sm:$0xff] %v9481_v24  ;;  %v11650_v10 = vld [vmem:[#allocation110_spill] sm:$0xff]  ;;  %3093 = vadd.xlane.f32.xlu1 %v3092_v39  ;;  %v1960_v34 = vadd.f32 %v11656_v31, %v9501_v60  ;;  %v2312_v19 = vmul.f32 %v8951_v17, %v2300_v41 }
 0x618   : > { %11648 = vst [vmem:[#allocation79_spill] sm:$0xff] %v9475_v16  ;;  %v1950_v58 = vadd.f32 %v11650_v10, %v9475_v16  ;;  %v11651_v3 = vld [vmem:[#allocation113_spill] sm:$0xff]  ;;  %v9496_v61 = vld [vmem:[#allocation4 + $0x1b0] sm:$0xff]  ;;  %11655 = vst [vmem:[#allocation101_spill] sm:$0xff] %v9503_v45  ;;  %v2364_v10 = vmul.f32 %v9436_v42, %v9369_v23  ;;  %v9525_v23 = vpop.f32.mrf.mxu0 }
 0x619   : > { %v9490_v8 = vadd.f32 %v11651_v3, %v9477_v59  ;;  %v11652_v36 = vld [vmem:[#allocation117_spill] sm:$0xff]  ;;  %v11653_v24 = vld [vmem:[#allocation119_spill] sm:$0xff]  ;;  %v2365_v3 = vmul.f32 %v9439_v49, %v1926_v52  ;;  %11661 = vst [vmem:[#allocation41_spill] sm:$0xff] %v9525_v23  ;;  %v2996_v52 = vrot.slane %v9365_v54, 3  ;;  %v2366_v23 = vmul.f32 %v9436_v42, %v1928_v37  ;;  %v11668_v33 = vld [vmem:[#allocation136_spill] sm:$0xff] }
 0x61a   : > { %v9494_v50 = vadd.f32 %v11652_v36, %v9479_v18  ;;  %v1958_v27 = vadd.f32 %v11653_v24, %v9496_v61  ;;  %v9509_v36 = vrot.slane %v2310_v2, %v9121_v4  ;;  %v11657_v62 = vld [vmem:[#allocation123_spill] sm:$0xff]  ;;  %v11658_v24 = vld [vmem:[#allocation124_spill] sm:$0xff]  ;;  %2398 = vadd.xlane.f32.xlu0 %v2397_v25  ;;  %v11662_v2 = vld [vmem:[#allocation125_spill] sm:$0xff] }
 0x61b   : > { %v9515_v39 = vadd.f32 %v11657_v62, %v9503_v45  ;;  %v9519_v56 = vadd.f32 %v11658_v24, %v9361_v28  ;;  %v9530_v31 = vadd.f32 %v11662_v2, %v9521_v55  ;;  %v11663_v62 = vld [vmem:[#allocation127_spill] sm:$0xff]  ;;  %v9538_v24 = vld [vmem:[#allocation4 + $0x1e0] sm:$0xff]  ;;  %v9540_v28 = vpop.f32.mrf.mxu1  ;;  %v11666_v2 = vld [vmem:[#allocation132_spill] sm:$0xff]  ;;  %3096 = vadd.xlane.f32.xlu1 %v3095_v51  ;;  %v2400_v37 = vadd.f32 %v2365_v3, %v2364_v10  ;;  %v9568_v51 = vpop.f32.mrf.mxu0 }
 0x61c   : > { %v9534_v47 = vadd.f32 %v11663_v62, %v9523_v40  ;;  %11664 = vst [vmem:[#allocation104_spill] sm:$0xff] %v9540_v28  ;;  %v11665_v25 = vld [vmem:[#allocation129_spill] sm:$0xff]  ;;  %v9550_v63 = vadd.f32 %v11666_v2, %v9538_v24  ;;  %v2311_v62 = vmul.f32 %v8941_v29, %v2300_v41  ;;  %v9554_v32 = vld [vmem:[#allocation4 + $0x1f0] sm:$0xff]  ;;  %v9556_v28 = vld [vmem:[#allocation4 + $0x1f8] sm:$0xff]  ;;  %v2375_v5 = vmul.f32 %v9509_v36, %v1950_v58 }
 0x61d   : > { %11659 = vst [vmem:[#allocation61_spill] sm:$0xff] %v9519_v56  ;;  %v2374_v56 = vmul.f32 %v9484_v1, %v1948_v44  ;;  %v9546_v20 = vadd.f32 %v11665_v25, %v9536_v46  ;;  %v9558_v44 = vpop.permute.xlu1 %3012  ;;  %v2367_v25 = vmul.f32 %v9439_v49, %v9422_v13  ;;  %v2378_v2 = vmul.f32 %v9484_v1, %v1958_v27  ;;  %v11669_v17 = vld [vmem:[#allocation138_spill] sm:$0xff]  ;;  %v9573_v58 = vpop.f32.mrf.mxu1 }
 0x61e   : > { %11667 = vst [vmem:[#allocation44_spill] sm:$0xff] %v9558_v44  ;;  %v1978_v29 = vadd.f32 %v11668_v33, %v9554_v32  ;;  %v1980_v41 = vadd.f32 %v11669_v17, %v9556_v28  ;;  %11670 = vst [vmem:[#allocation102_spill] sm:$0xff] %v9568_v51  ;;  %v3007_v53 = vmul.f32 %v8994_v11, %v2996_v52  ;;  %3099 = vadd.xlane.f32.xlu0 %v9433_v9  ;;  %v9578_v44 = vld [vmem:[#allocation4 + $0x1e8] sm:$0xff] }
 0x61f   : > { %v2379_v10 = vmul.f32 %v9509_v36, %v1960_v34  ;;  %v3008_v13 = vmul.f32 %v9006_v57, %v2996_v52  ;;  %v2415_v3 = vadd.f32 %v2375_v5, %v2374_v56  ;;  %v2403_v27 = vadd.f32 %v2367_v25, %v2366_v23  ;;  %v11671_v9 = vld [vmem:[#allocation134_spill] sm:$0xff]  ;;  %v11672_v56 = vld [vmem:[#allocation137_spill] sm:$0xff]  ;;  %v9598_v23 = vpop.f32.mrf.mxu0 }
 0x620   : > { %v2368_v33 = vmul.f32 %v9436_v42, %v9443_v22  ;;  %v2369_v51 = vmul.f32 %v9439_v49, %v9447_v38  ;;  %v9583_v11 = vrot.slane %v2311_v62, %v9121_v4  ;;  %v9586_v34 = vrot.slane %v2312_v19, %v9121_v4  ;;  %11673 = vst [vmem:[#allocation39_spill] sm:$0xff] %v9598_v23 }
 0x621   : > { %v2421_v17 = vadd.f32 %v2379_v10, %v2378_v2  ;;  %v1976_v57 = vadd.f32 %v11671_v9, %v9578_v44  ;;  %v9592_v5 = vadd.f32 %v11672_v56, %v9429_v12  ;;  %2416 = vadd.xlane.f32.xlu1 %v2415_v3  ;;  %v2370_v22 = vmul.f32 %v9436_v42, %v9451_v14  ;;  %v11674_v2 = vld [vmem:[#allocation139_spill] sm:$0xff]  ;;  %v11675_v42 = vld [vmem:[#allocation140_spill] sm:$0xff] }
 0x622   : > { %v2371_v38 = vmul.f32 %v9439_v49, %v9455_v15  ;;  %2401 = vadd.xlane.f32.xlu0 %v2400_v37  ;;  %v2406_v52 = vadd.f32 %v2369_v51, %v2368_v33  ;;  %v2386_v19 = vmul.f32 %v9583_v11, %v1978_v29  ;;  %v2387_v62 = vmul.f32 %v9586_v34, %v1980_v41  ;;  %v11676_v49 = vld [vmem:[#allocation142_spill] sm:$0xff]  ;;  %v11677_v37 = vld [vmem:[#allocation161_spill] sm:$0xff]  ;;  %v9619_v51 = vpop.f32.mrf.mxu1  ;;  %v9621_v41 = vpop.permute.xlu1 %3016  ;;  %v11680_v56 = vld [vmem:[#allocation144_spill] sm:$0xff] }
 0x623   : > { %v9603_v25 = vrot.slane %v3007_v53, %v9121_v4  ;;  %v9607_v10 = vadd.f32 %v11674_v2, %v9431_v0  ;;  %v9611_v14 = vadd.f32 %v11675_v42, %v9457_v43  ;;  %v9615_v15 = vadd.f32 %v11676_v49, %v9461_v48  ;;  %11678 = vst [vmem:[#allocation28_spill] sm:$0xff] %v9619_v51  ;;  %v11681_v42 = vld [vmem:[#allocation145_spill] sm:$0xff] }
 0x624   : > { %v2689_v29 = vadd.f32 %v11677_v37, %v9554_v32  ;;  %11679 = vst [vmem:[#allocation55_spill] sm:$0xff] %v9621_v41  ;;  %v2995_v53 = vrot.slane %v9365_v54, 2  ;;  %v2433_v3 = vadd.f32 %v2387_v62, %v2386_v19  ;;  %v2409_v33 = vadd.f32 %v2371_v38, %v2370_v22  ;;  %v11682_v37 = vld [vmem:[#allocation147_spill] sm:$0xff]  ;;  %v11683_v41 = vld [vmem:[#allocation148_spill] sm:$0xff]  ;;  %v11684_v22 = vld [vmem:[#allocation149_spill] sm:$0xff]  ;;  %v9643_v62 = vpop.f32.mrf.mxu0 }
 0x625   : > { %v9625_v9 = vrot.slane %v3008_v13, %v9121_v4  ;;  %v2661_v2 = vadd.f32 %v11680_v56, %v9475_v16  ;;  %v9631_v49 = vadd.f32 %v11681_v42, %v9477_v59  ;;  %v9635_v23 = vadd.f32 %v11682_v37, %v9479_v18  ;;  %2422 = vadd.xlane.f32.xlu1 %v2421_v17  ;;  %v11685_v13 = vld [vmem:[#allocation164_spill] sm:$0xff]  ;;  %v11687_v37 = vld [vmem:[#allocation151_spill] sm:$0xff]  ;;  %v11688_v16 = vld [vmem:[#allocation154_spill] sm:$0xff] }
 0x626   : > { %v2669_v0 = vadd.f32 %v11683_v41, %v9496_v61  ;;  %v2671_v38 = vadd.f32 %v11684_v22, %v9501_v60  ;;  %v2691_v19 = vadd.f32 %v11685_v13, %v9556_v28  ;;  %11686 = vst [vmem:[#allocation68_spill] sm:$0xff] %v9643_v62  ;;  %v2994_v56 = vrot.slane %v9365_v54, 1  ;;  %2404 = vadd.xlane.f32.xlu0 %v2403_v27  ;;  %v11689_v17 = vld [vmem:[#allocation155_spill] sm:$0xff]  ;;  %v11690_v22 = vld [vmem:[#allocation157_spill] sm:$0xff]  ;;  %v9655_v13 = vpop.f32.mrf.mxu1  ;;  %v11692_v62 = vld [vmem:[#allocation158_spill] sm:$0xff] }
 0x627   : > { %v3090_v42 = vmul.f32 %v9603_v25, %v2689_v29  ;;  %v2675_v12 = vadd.f32 %v11687_v37, %v9503_v45  ;;  %v2677_v41 = vadd.f32 %v11688_v16, %v9521_v55  ;;  %v2679_v48 = vadd.f32 %v11689_v17, %v9523_v40  ;;  %11691 = vst [vmem:[#allocation81_spill] sm:$0xff] %v9655_v13  ;;  %v9662_v45 = vpop.permute.xlu1 %3696  ;;  %v11745_v60 = vld [vmem:[#allocation194_spill] sm:$0xff] }
 0x628   : > { %v2681_v43 = vadd.f32 %v11690_v22, %v9536_v46  ;;  %v2685_v54 = vadd.f32 %v11692_v62, %v9538_v24  ;;  %v3005_v27 = vmul.f32 %v8987_v30, %v2995_v53  ;;  %v3006_v29 = vmul.f32 %v8990_v26, %v2995_v53  ;;  %v11693_v30 = vld [vmem:[#allocation160_spill] sm:$0xff]  ;;  %v9674_v53 = vpop.f32.mrf.mxu0  ;;  %v9678_v55 = vpop.f32.mrf.mxu1 }
 0x629   : > { %v3091_v37 = vmul.f32 %v9625_v9, %v2691_v19  ;;  %2434 = vadd.xlane.f32.xlu1 %v2433_v3  ;;  %v2372_v16 = vmul.f32 %v9484_v1, %v9467_v7  ;;  %v2373_v17 = vmul.f32 %v9509_v36, %v9471_v6  ;;  %v2382_v22 = vmul.f32 %v9583_v11, %v9534_v47 }
 0x62a   : > { %v2383_v62 = vmul.f32 %v9586_v34, %v9546_v20  ;;  %v2687_v26 = vadd.f32 %v11693_v30, %v9578_v44  ;;  %11694 = vst [vmem:[#allocation80_spill] sm:$0xff] %v9674_v53  ;;  %v3003_v19 = vmul.f32 %v8980_v21, %v2994_v56  ;;  %v3004_v3 = vmul.f32 %v8985_v35, %v2994_v56 }
 0x62b   : > { %2407 = vadd.xlane.f32.xlu0 %v2406_v52  ;;  %v3137_v7 = vadd.f32 %v3091_v37, %v3090_v42  ;;  %11695 = vst [vmem:[#allocation95_spill] sm:$0xff] %v9678_v55  ;;  %v2412_v6 = vadd.f32 %v2373_v17, %v2372_v16  ;;  %v2376_v47 = vmul.f32 %v9484_v1, %v9490_v8  ;;  %v9692_v1 = vpop.f32.mrf.mxu0 }
 0x62c   : > { %v2427_v13 = vadd.f32 %v2383_v62, %v2382_v22  ;;  %v2377_v20 = vmul.f32 %v9509_v36, %v9494_v50  ;;  %v3086_v30 = vmul.f32 %v9603_v25, %v2679_v48  ;;  %v3087_v53 = vmul.f32 %v9625_v9, %v2681_v43  ;;  %11696 = vst [vmem:[#allocation108_spill] sm:$0xff] %v9692_v1  ;;  %v9697_v36 = vpop.f32.mrf.mxu1 }
 0x62d   : > { %v2384_v21 = vmul.f32 %v9583_v11, %v9550_v63  ;;  %v2385_v35 = vmul.f32 %v9586_v34, %v1976_v57  ;;  %3138 = vadd.xlane.f32.xlu1 %v3137_v7  ;;  %v3047_v56 = vrot.slane %v3005_v27, %v9121_v4  ;;  %v3051_v42 = vrot.slane %v3006_v29, %v9121_v4  ;;  %v9699_v57 = vpop.permute.xlu1 %3722 }
 0x62e   : > { %v2418_v52 = vadd.f32 %v2377_v20, %v2376_v47  ;;  %v3088_v8 = vmul.f32 %v9603_v25, %v2685_v54  ;;  %v3131_v50 = vadd.f32 %v3087_v53, %v3086_v30  ;;  %v3089_v43 = vmul.f32 %v9625_v9, %v2687_v26  ;;  %v11698_v26 = vld [vmem:[#allocation141_spill] sm:$0xff]  ;;  %v11703_v47 = vld [vmem:[#allocation135_spill] sm:$0xff] }
 0x62f   : > { %2410 = vadd.xlane.f32.xlu0 %v2409_v33  ;;  %v2430_v48 = vadd.f32 %v2385_v35, %v2384_v21  ;;  %v2380_v63 = vmul.f32 %v9583_v11, %v9515_v39  ;;  %v3082_v37 = vmul.f32 %v3047_v56, %v2669_v0  ;;  %v3083_v27 = vmul.f32 %v3051_v42, %v2671_v38  ;;  %v11697_v38 = vld [vmem:[#allocation90_spill] sm:$0xff] }
 0x630   : > { %v3078_v29 = vmul.f32 %v3047_v56, %v9615_v15  ;;  %v3079_v16 = vmul.f32 %v3051_v42, %v2661_v2  ;;  %v9702_v54 = vadd.f32 %v3089_v43, %v3088_v8  ;;  %v2381_v33 = vmul.f32 %v9586_v34, %v9530_v31  ;;  %v9712_v2 = vpop.f32.mrf.mxu0  ;;  %v11705_v21 = vld [vmem:[#allocation126_spill] sm:$0xff]  ;;  %v11707_v43 = vld [vmem:[#allocation128_spill] sm:$0xff] }
 0x631   : > { %v3039_v17 = vrot.slane %v3003_v19, %v9121_v4  ;;  %v3043_v22 = vrot.slane %v3004_v3, %v9121_v4  ;;  %2428 = vadd.xlane.f32.xlu1 %v2427_v13  ;;  %v3125_v39 = vadd.f32 %v3083_v27, %v3082_v37  ;;  %v3084_v62 = vmul.f32 %v9603_v25, %v2675_v12  ;;  %v9718_v19 = vpop.f32.mrf.mxu1  ;;  %v11706_v8 = vld [vmem:[#allocation86_spill] sm:$0xff]  ;;  %v9734_v37 = vpop.permute.xlu1 %3718 }
 0x632   : > { %v3119_v11 = vadd.f32 %v3079_v16, %v3078_v29  ;;  %v3085_v0 = vmul.f32 %v9625_v9, %v2677_v41  ;;  %v2657_v15 = vadd.f32 %v11698_v26, %v11697_v38  ;;  %11699 = vst [vmem:[#allocation107_spill] sm:$0xff] %v9712_v2  ;;  %v9714_v53 = vadd.f32 %v2381_v33, %v2380_v63  ;;  %v11700_v9 = vld [vmem:[#allocation21_spill] sm:$0xff]  ;;  %v11708_v27 = vld [vmem:[#allocation26_spill] sm:$0xff]  ;;  %v9740_v33 = vpop.f32.mrf.mxu0 }
 0x633   : > { %2413 = vadd.xlane.f32.xlu0 %v2412_v6  ;;  %v3074_v31 = vmul.f32 %v3039_v17, %v9592_v5  ;;  %v3075_v34 = vmul.f32 %v3043_v22, %v9607_v10  ;;  %v3698_v13 = vrot.slane %v9662_v45, 1  ;;  %v3080_v12 = vmul.f32 %v3047_v56, %v9631_v49  ;;  %v11701_v41 = vld [vmem:[#allocation133_spill] sm:$0xff]  ;;  %v11702_v6 = vld [vmem:[#allocation88_spill] sm:$0xff]  ;;  %v11709_v29 = vld [vmem:[#allocation130_spill] sm:$0xff]  ;;  %11710 = vst [vmem:[#allocation82_spill] sm:$0xff] %v9740_v33  ;;  %v9744_v26 = vpop.f32.mrf.mxu1 }
 0x634   : > { %v9721_v3 = vadd.f32 %v3085_v0, %v3084_v62  ;;  %v3081_v25 = vmul.f32 %v3051_v42, %v9635_v23  ;;  %v2645_v7 = vadd.f32 %v11701_v41, %v11700_v9  ;;  %v2647_v20 = vadd.f32 %v11703_v47, %v11702_v6  ;;  %v11704_v10 = vld [vmem:[#allocation77_spill] sm:$0xff]  ;;  %v11711_v62 = vld [vmem:[#allocation171_spill] sm:$0xff]  ;;  %v9757_v33 = vpop.f32.mrf.mxu0  ;;  %v11731_v2 = vld [vmem:[#allocation174_spill] sm:$0xff] }
 0x635   : > { %v3113_v30 = vadd.f32 %v3075_v34, %v3074_v31  ;;  %v3076_v5 = vmul.f32 %v3047_v56, %v9611_v14  ;;  %v2637_v35 = vadd.f32 %v11705_v21, %v11704_v10  ;;  %v2639_v63 = vadd.f32 %v11707_v43, %v11706_v8  ;;  %3132 = vadd.xlane.f32.xlu1 %v3131_v50  ;;  %v11712_v31 = vld [vmem:[#allocation109_spill] sm:$0xff]  ;;  %v11713_v50 = vld [vmem:[#allocation22_spill] sm:$0xff]  ;;  %v11715_v41 = vld [vmem:[#allocation167_spill] sm:$0xff] }
 0x636   : > { %v9736_v49 = vadd.f32 %v3081_v25, %v3080_v12  ;;  %v3077_v23 = vmul.f32 %v3051_v42, %v2657_v15  ;;  %v2641_v16 = vadd.f32 %v11709_v29, %v11708_v27  ;;  %v3705_v14 = vmul.f32 %v11711_v62, %v9662_v45  ;;  %v11714_v42 = vld [vmem:[#allocation61_spill] sm:$0xff]  ;;  %11718 = vst [vmem:[#allocation97_spill] sm:$0xff] %v9757_v33  ;;  %v11733_v33 = vld [vmem:[#allocation152_spill] sm:$0xff] }
 0x637   : > { %2419 = vadd.xlane.f32.xlu0 %v2418_v52  ;;  %v3072_v56 = vmul.f32 %v3039_v17, %v2645_v7  ;;  %v3073_v0 = vmul.f32 %v3043_v22, %v2647_v20  ;;  %v3706_v34 = vmul.f32 %v11712_v31, %v9662_v45  ;;  %v3707_v12 = vmul.f32 %v11713_v50, %v3698_v13  ;;  %v11716_v20 = vld [vmem:[#allocation45_spill] sm:$0xff]  ;;  %v11724_v50 = vld [vmem:[#allocation14_spill] sm:$0xff] }
 0x638   : > { %v9749_v25 = vadd.f32 %v3077_v23, %v3076_v5  ;;  %v3068_v15 = vmul.f32 %v3039_v17, %v11714_v42  ;;  %v3708_v47 = vmul.f32 %v11715_v41, %v3698_v13  ;;  %v3069_v43 = vmul.f32 %v3043_v22, %v2637_v35  ;;  %v11717_v29 = vld [vmem:[#allocation153_spill] sm:$0xff]  ;;  %v9761_v5 = vpop.f32.mrf.mxu1 }
 0x639   : > { %v9753_v21 = vadd.f32 %v3073_v0, %v3072_v56  ;;  %3126 = vadd.xlane.f32.xlu1 %v3125_v39  ;;  %v3070_v52 = vmul.f32 %v3039_v17, %v2639_v63  ;;  %v3071_v7 = vmul.f32 %v3043_v22, %v2641_v16  ;;  %v3339_v62 = vadd.f32 %v11717_v29, %v11716_v20  ;;  %v9772_v17 = vpop.permute.xlu1 %4400  ;;  %v11721_v35 = vld [vmem:[#allocation181_spill] sm:$0xff]  ;;  %v3015_v63 = vpop.permute.xlu0 %3014  ;;  %v11722_v56 = vld [vmem:[#allocation83_spill] sm:$0xff] }
 0x63a   : > { %v9759_v31 = vadd.f32 %v3069_v43, %v3068_v15  ;;  %v9764_v23 = vrot.slane %v3705_v14, %v9121_v4  ;;  %v9767_v13 = vrot.slane %v3706_v34, %v9121_v4  ;;  %v9770_v39 = vrot.slane %v3707_v12, %v9121_v4  ;;  %11719 = vst [vmem:[#allocation98_spill] sm:$0xff] %v9772_v17  ;;  %v11723_v14 = vld [vmem:[#allocation31_spill] sm:$0xff]  ;;  %v11725_v34 = vld [vmem:[#allocation198_spill] sm:$0xff]  ;;  %v11726_v12 = vld [vmem:[#allocation16_spill] sm:$0xff] }
 0x63b   : > { %2431 = vadd.xlane.f32.xlu0 %v2430_v48  ;;  %v9774_v22 = vadd.f32 %v3071_v7, %v3070_v52  ;;  %v3341_v48 = vadd.f32 %v11721_v35, %v11704_v10  ;;  %v9779_v16 = vrot.slane %v3708_v47, %v9121_v4  ;;  %v3329_v0 = vadd.f32 %v11723_v14, %v11722_v56  ;;  %v11727_v41 = vld [vmem:[#allocation57_spill] sm:$0xff]  ;;  %v11728_v52 = vld [vmem:[#allocation188_spill] sm:$0xff]  ;;  %v11730_v35 = vld [vmem:[#allocation190_spill] sm:$0xff] }
 0x63c   : > { %v3331_v42 = vadd.f32 %v11725_v34, %v11724_v50  ;;  %v3343_v15 = vadd.f32 %v11726_v12, %v11706_v8  ;;  %v3345_v43 = vadd.f32 %v11727_v41, %v11708_v27  ;;  %v11729_v7 = vld [vmem:[#allocation172_spill] sm:$0xff]  ;;  %v3321_v47 = vadd.f32 %v11731_v2, %v11730_v35  ;;  %v11732_v34 = vld [vmem:[#allocation187_spill] sm:$0xff]  ;;  %v9800_v12 = vpop.f32.mrf.mxu0  ;;  %v3392_v41 = vpop.f32.mrf.mxu1  ;;  %v11735_v2 = vld [vmem:[#allocation70_spill] sm:$0xff] }
 0x63d   : > { %11720 = vst [vmem:[#allocation112_spill] sm:$0xff] %v9774_v22  ;;  %3120 = vadd.xlane.f32.xlu1 %v3119_v11  ;;  %v3319_v29 = vadd.f32 %v11729_v7, %v11728_v52  ;;  %v3700_v1 = vrot.slane %v9662_v45, 3  ;;  %v4402_v14 = vrot.slane %v9772_v17, 1  ;;  %v9798_v50 = vadd.f32 %v11733_v33, %v11732_v34  ;;  %11734 = vst [vmem:[#allocation114_spill] sm:$0xff] %v9800_v12  ;;  %v11736_v35 = vld [vmem:[#allocation193_spill] sm:$0xff]  ;;  %v11738_v17 = vld [vmem:[#allocation50_spill] sm:$0xff]  ;;  %v3721_v33 = vpop.permute.xlu0 %3720 }
 0x63e   : > { %v3768_v11 = vmul.f32 %v9764_v23, %v3329_v0  ;;  %v3769_v7 = vmul.f32 %v9767_v13, %v3331_v42  ;;  %v3772_v52 = vmul.f32 %v9770_v39, %v3339_v62  ;;  %v3325_v56 = vadd.f32 %v11736_v35, %v11735_v2  ;;  %v11737_v6 = vld [vmem:[#allocation13_spill] sm:$0xff]  ;;  %v11740_v22 = vld [vmem:[#allocation92_spill] sm:$0xff]  ;;  %v11741_v12 = vld [vmem:[#allocation75_spill] sm:$0xff] }
 0x63f   : > { %3135 = vadd.xlane.f32.xlu0 %v9702_v54  ;;  %v3333_v38 = vadd.f32 %v11738_v17, %v11737_v6  ;;  %v11739_v54 = vld [vmem:[#allocation74_spill] sm:$0xff]  ;;  %v3773_v34 = vmul.f32 %v9779_v16, %v3341_v48  ;;  %v4043_v55 = vadd.f32 %v11741_v12, %v11716_v20  ;;  %v11742_v0 = vld [vmem:[#allocation76_spill] sm:$0xff]  ;;  %v3774_v62 = vmul.f32 %v9770_v39, %v3343_v15  ;;  %v11744_v17 = vld [vmem:[#allocation51_spill] sm:$0xff]  ;;  %v3394_v20 = vpop.f32.mrf.mxu1 }
 0x640   : > { %v3335_v9 = vadd.f32 %v11740_v22, %v11739_v54  ;;  %v4045_v42 = vadd.f32 %v11742_v0, %v11704_v10  ;;  %v3775_v35 = vmul.f32 %v9779_v16, %v3345_v43  ;;  %v11743_v2 = vld [vmem:[#allocation150_spill] sm:$0xff]  ;;  %v3712_v6 = vmul.f32 %v11744_v17, %v3700_v1  ;;  %v9824_v54 = vpop.f32.mrf.mxu0  ;;  %v11746_v43 = vld [vmem:[#allocation24_spill] sm:$0xff] }
 0x641   : > { %3114 = vadd.xlane.f32.xlu1 %v3113_v30  ;;  %v3711_v51 = vmul.f32 %v11743_v2, %v3700_v1  ;;  %v4411_v22 = vmul.f32 %v11745_v60, %v4402_v14  ;;  %v9822_v48 = vadd.f32 %v3773_v34, %v3772_v52  ;;  %v3802_v12 = vadd.f32 %v3769_v7, %v3768_v11  ;;  %v11747_v1 = vld [vmem:[#allocation91_spill] sm:$0xff]  ;;  %v11749_v34 = vld [vmem:[#allocation29_spill] sm:$0xff]  ;;  %v11750_v11 = vld [vmem:[#allocation104_spill] sm:$0xff] }
 0x642   : > { %v3770_v30 = vmul.f32 %v9764_v23, %v3333_v38  ;;  %v3771_v10 = vmul.f32 %v9767_v13, %v3335_v9  ;;  %v9828_v15 = vadd.f32 %v3775_v35, %v3774_v62  ;;  %v4047_v2 = vadd.f32 %v11746_v43, %v11706_v8  ;;  %v11751_v38 = vld [vmem:[#allocation99_spill] sm:$0xff]  ;;  %v4427_v35 = vpop.permute.xlu0 %4426 }
 0x643   : > { %2425 = vadd.xlane.f32.xlu0 %v9714_v53  ;;  %v4049_v60 = vadd.f32 %v11747_v1, %v11708_v27  ;;  %v11748_v53 = vld [vmem:[#allocation100_spill] sm:$0xff]  ;;  %v4412_v0 = vmul.f32 %v11749_v34, %v4402_v14  ;;  %v9841_v7 = vadd.f32 %v11750_v11, %v9479_v18  ;;  %v3025_v9 = vmul.f32 %v11751_v38, %v3015_v63  ;;  %v9856_v63 = vpop.f32.mrf.mxu0  ;;  %v11752_v1 = vld [vmem:[#allocation47_spill] sm:$0xff]  ;;  %v11758_v38 = vld [vmem:[#allocation78_spill] sm:$0xff] }
 0x644   : > { %v9836_v52 = vadd.f32 %v11748_v53, %v9477_v59  ;;  %v3383_v62 = vadd.f32 %v9697_v36, %v9523_v40  ;;  %v3699_v8 = vrot.slane %v9662_v45, 2  ;;  %v3393_v27 = vadd.f32 %v3392_v41, %v9554_v32  ;;  %v11754_v53 = vld [vmem:[#allocation169_spill] sm:$0xff] }
 0x645   : > { %3803 = vadd.xlane.f32.xlu1 %v3802_v12  ;;  %v9849_v17 = vrot.slane %v3711_v51, %v9121_v4  ;;  %v3395_v14 = vadd.f32 %v3394_v20, %v9556_v28  ;;  %v9853_v43 = vrot.slane %v3712_v6, %v9121_v4  ;;  %v9859_v36 = vrot.slane %v4411_v22, %v9121_v4 }
 0x646   : > { %v3805_v45 = vadd.f32 %v3771_v10, %v3770_v30  ;;  %v3764_v12 = vmul.f32 %v9764_v23, %v3319_v29  ;;  %v3765_v41 = vmul.f32 %v9767_v13, %v3321_v47  ;;  %v3730_v51 = vmul.f32 %v11752_v1, %v3721_v33  ;;  %v11755_v10 = vld [vmem:[#allocation93_spill] sm:$0xff] }
 0x647   : > { %3129 = vadd.xlane.f32.xlu0 %v9721_v3  ;;  %v3385_v20 = vadd.f32 %v9718_v19, %v9536_v46  ;;  %v9868_v6 = vadd.f32 %v9744_v26, %v9538_v24  ;;  %v9871_v3 = vrot.slane %v4412_v0, %v9121_v4  ;;  %v3147_v22 = vrot.slane %v3025_v9, %v9121_v4  ;;  %v11756_v47 = vld [vmem:[#allocation197_spill] sm:$0xff]  ;;  %v9884_v9 = vpop.f32.mrf.mxu0 }
 0x648   : > { %v4435_v30 = vmul.f32 %v11754_v53, %v4427_v35  ;;  %v3709_v29 = vmul.f32 %v11755_v10, %v3699_v8  ;;  %v3731_v34 = vmul.f32 %v11756_v47, %v9699_v57  ;;  %v11757_v33 = vld [vmem:[#allocation173_spill] sm:$0xff]  ;;  %v3794_v19 = vmul.f32 %v9849_v17, %v3393_v27  ;;  %v11762_v53 = vld [vmem:[#allocation196_spill] sm:$0xff] }
 0x649   : > { %11753 = vst [vmem:[#allocation118_spill] sm:$0xff] %v9871_v3  ;;  %3806 = vadd.xlane.f32.xlu1 %v3805_v45  ;;  %v3710_v11 = vmul.f32 %v11757_v33, %v3699_v8  ;;  %v3795_v26 = vmul.f32 %v9853_v43, %v3395_v14  ;;  %v3729_v0 = vmul.f32 %v11758_v38, %v9734_v37  ;;  %v11768_v33 = vld [vmem:[#allocation37_spill] sm:$0xff] }
 0x64a   : > { %v3796_v35 = vadd.f32 %v3765_v41, %v3764_v12  ;;  %v3766_v1 = vmul.f32 %v9764_v23, %v9798_v50  ;;  %v3767_v57 = vmul.f32 %v9767_v13, %v3325_v56  ;;  %v4476_v45 = vmul.f32 %v9859_v36, %v4043_v55  ;;  %v11772_v38 = vld [vmem:[#allocation69_spill] sm:$0xff] }
 0x64b   : > { %3123 = vadd.xlane.f32.xlu0 %v9736_v49  ;;  %v3855_v8 = vrot.slane %v3730_v51, %v9121_v4  ;;  %v3391_v27 = vadd.f32 %v9761_v5, %v9578_v44  ;;  %v4477_v14 = vmul.f32 %v9871_v3, %v4045_v42  ;;  %v4478_v37 = vmul.f32 %v9859_v36, %v4047_v2  ;;  %v9908_v42 = vpop.f32.mrf.mxu0  ;;  %v11761_v51 = vld [vmem:[#allocation52_spill] sm:$0xff] }
 0x64c   : > { %v4563_v49 = vrot.slane %v4435_v30, %v9121_v4  ;;  %v9897_v12 = vrot.slane %v3709_v29, %v9121_v4  ;;  %v3859_v23 = vrot.slane %v3731_v34, %v9121_v4  ;;  %v4479_v13 = vmul.f32 %v9871_v3, %v4049_v60  ;;  %v11764_v60 = vld [vmem:[#allocation53_spill] sm:$0xff] }
 0x64d   : > { %3797 = vadd.xlane.f32.xlu1 %v3796_v35  ;;  %v9902_v55 = vrot.slane %v3710_v11, %v9121_v4  ;;  %v3851_v56 = vrot.slane %v3729_v0, %v9121_v4  ;;  %v3841_v5 = vadd.f32 %v3795_v26, %v3794_v19  ;;  %v9906_v50 = vadd.f32 %v4477_v14, %v4476_v45  ;;  %v11770_v19 = vld [vmem:[#allocation54_spill] sm:$0xff]  ;;  %v11779_v45 = vld [vmem:[#allocation48_spill] sm:$0xff] }
 0x64e   : > { %v3799_v2 = vadd.f32 %v3767_v57, %v3766_v1  ;;  %v9910_v41 = vadd.f32 %v4479_v13, %v4478_v37  ;;  %v9914_v30 = vmul.f32 %v11762_v53, %v11761_v51  ;;  %v9917_v10 = vmul.f32 %v3147_v22, %v11764_v60  ;;  %v11774_v35 = vld [vmem:[#allocation66_spill] sm:$0xff]  ;;  %v11782_v13 = vld [vmem:[#allocation111_spill] sm:$0xff] }
 0x64f   : > { %3117 = vadd.xlane.f32.xlu0 %v9749_v25  ;;  %11759 = vst [vmem:[#allocation120_spill] sm:$0xff] %v9906_v50  ;;  %v3790_v29 = vmul.f32 %v9849_v17, %v3383_v62  ;;  %v3791_v47 = vmul.f32 %v9853_v43, %v3385_v20  ;;  %v11766_v25 = vld [vmem:[#allocation32_spill] sm:$0xff]  ;;  %v9926_v11 = vmul.f32 %v3147_v22, %v11768_v33  ;;  %v11776_v62 = vld [vmem:[#allocation146_spill] sm:$0xff]  ;;  %v11826_v50 = vld [vmem:[#allocation195_spill] sm:$0xff] }
 0x650   : > { %11760 = vst [vmem:[#allocation122_spill] sm:$0xff] %v9910_v41  ;;  %11763 = vst [vmem:[#allocation27_spill] sm:$0xff] %v9914_v30  ;;  %v9923_v34 = vmul.f32 %v11762_v53, %v11766_v25  ;;  %v9929_v26 = vmul.f32 %v3147_v22, %v11770_v19  ;;  %v9932_v0 = vmul.f32 %v3859_v23, %v11772_v38  ;;  %v9953_v53 = vpop.f32.mrf.mxu0  ;;  %v11823_v30 = vld [vmem:[#allocation179_spill] sm:$0xff] }
 0x651   : > { %11765 = vst [vmem:[#allocation43_spill] sm:$0xff] %v9917_v10  ;;  %11769 = vst [vmem:[#allocation59_spill] sm:$0xff] %v9926_v11  ;;  %3800 = vadd.xlane.f32.xlu1 %v3799_v2  ;;  %v9935_v1 = vmul.f32 %v3147_v22, %v11774_v35  ;;  %v9938_v57 = vmul.f32 %v3859_v23, %v11776_v62  ;;  %v9942_v20 = vmul.f32 %v3859_v23, %v11761_v51 }
 0x652   : > { %11767 = vst [vmem:[#allocation60_spill] sm:$0xff] %v9923_v34  ;;  %11771 = vst [vmem:[#allocation63_spill] sm:$0xff] %v9929_v26  ;;  %v9945_v14 = vmul.f32 %v3855_v8, %v11779_v45  ;;  %v9948_v37 = vmul.f32 %v3859_v23, %v11766_v25  ;;  %v9951_v2 = vmul.f32 %v3855_v8, %v11782_v13  ;;  %v11814_v34 = vld [vmem:[#allocation87_spill] sm:$0xff]  ;;  %v11825_v13 = vld [vmem:[#allocation200_spill] sm:$0xff] }
 0x653   : > { %11773 = vst [vmem:[#allocation72_spill] sm:$0xff] %v9932_v0  ;;  %11775 = vst [vmem:[#allocation71_spill] sm:$0xff] %v9935_v1  ;;  %3111 = vadd.xlane.f32.xlu0 %v9753_v21  ;;  %v9956_v22 = vmul.f32 %v3851_v56, %v11768_v33  ;;  %v11785_v1 = vld [vmem:[#allocation170_spill] sm:$0xff]  ;;  %v9962_v21 = vmul.f32 %v3851_v56, %v11770_v19  ;;  %v9968_v23 = vmul.f32 %v3851_v56, %v11774_v35  ;;  %v11797_v35 = vld [vmem:[#allocation28_spill] sm:$0xff] }
 0x654   : > { %11777 = vst [vmem:[#allocation85_spill] sm:$0xff] %v9938_v57  ;;  %11778 = vst [vmem:[#allocation84_spill] sm:$0xff] %v9942_v20  ;;  %v9959_v57 = vmul.f32 %v3855_v8, %v11785_v1  ;;  %v11788_v20 = vld [vmem:[#allocation62_spill] sm:$0xff]  ;;  %v9977_v33 = vmul.f32 %v4563_v49, %v11766_v25  ;;  %v9983_v19 = vmul.f32 %v4563_v49, %v11776_v62  ;;  %v11798_v25 = vld [vmem:[#allocation101_spill] sm:$0xff] }
 0x655   : > { %11780 = vst [vmem:[#allocation96_spill] sm:$0xff] %v9945_v14  ;;  %11781 = vst [vmem:[#allocation110_spill] sm:$0xff] %v9948_v37  ;;  %v9965_v26 = vmul.f32 %v3855_v8, %v11788_v20  ;;  %v9971_v37 = vmul.f32 %v3851_v56, %v11764_v60  ;;  %3842 = vadd.xlane.f32.xlu1 %v3841_v5  ;;  %v3373_v8 = vadd.f32 %v9573_v58, %v9496_v61  ;;  %v11796_v56 = vld [vmem:[#allocation64_spill] sm:$0xff] }
 0x656   : > { %11783 = vst [vmem:[#allocation113_spill] sm:$0xff] %v9951_v2  ;;  %11784 = vst [vmem:[#allocation117_spill] sm:$0xff] %v9956_v22  ;;  %v9974_v2 = vmul.f32 %v4563_v49, %v11772_v38  ;;  %v9980_v22 = vmul.f32 %v4563_v49, %v11761_v51  ;;  %v3375_v60 = vadd.f32 %v11797_v35, %v11796_v56  ;;  %v9990_v38 = vpop.f32.mrf.mxu0  ;;  %v11799_v49 = vld [vmem:[#allocation81_spill] sm:$0xff]  ;;  %v11812_v1 = vld [vmem:[#allocation56_spill] sm:$0xff] }
 0x657   : > { %11786 = vst [vmem:[#allocation119_spill] sm:$0xff] %v9959_v57  ;;  %11787 = vst [vmem:[#allocation121_spill] sm:$0xff] %v9962_v21  ;;  %3105 = vadd.xlane.f32.xlu0 %v9759_v31  ;;  %v3784_v5 = vmul.f32 %v9897_v12, %v9836_v52  ;;  %v3785_v51 = vmul.f32 %v9902_v55, %v9841_v7  ;;  %v3379_v62 = vadd.f32 %v11799_v49, %v11798_v25  ;;  %v11805_v52 = vld [vmem:[#allocation186_spill] sm:$0xff]  ;;  %v11806_v21 = vld [vmem:[#allocation112_spill] sm:$0xff] }
 0x658   : > { %11789 = vst [vmem:[#allocation123_spill] sm:$0xff] %v9965_v26  ;;  %11790 = vst [vmem:[#allocation124_spill] sm:$0xff] %v9968_v23  ;;  %v3792_v31 = vmul.f32 %v9849_v17, %v9868_v6  ;;  %v3793_v35 = vmul.f32 %v9853_v43, %v3391_v27  ;;  %v11804_v23 = vld [vmem:[#allocation67_spill] sm:$0xff]  ;;  %v11807_v7 = vld [vmem:[#allocation90_spill] sm:$0xff]  ;;  %v10010_v57 = vpop.f32.mrf.mxu0  ;;  %v3786_v14 = vmul.f32 %v9897_v12, %v3373_v8 }
 0x659   : > { %11791 = vst [vmem:[#allocation125_spill] sm:$0xff] %v9971_v37  ;;  %11792 = vst [vmem:[#allocation127_spill] sm:$0xff] %v9974_v2  ;;  %v3835_v2 = vadd.f32 %v3791_v47, %v3790_v29  ;;  %v11803_v29 = vld [vmem:[#allocation166_spill] sm:$0xff]  ;;  %v3359_v37 = vadd.f32 %v11805_v52, %v11804_v23  ;;  %v3787_v6 = vmul.f32 %v9902_v55, %v3375_v60  ;;  %v11809_v27 = vld [vmem:[#allocation88_spill] sm:$0xff] }
 0x65a   : > { %11793 = vst [vmem:[#allocation129_spill] sm:$0xff] %v9977_v33  ;;  %11794 = vst [vmem:[#allocation132_spill] sm:$0xff] %v9980_v22  ;;  %v11800_v22 = vld [vmem:[#allocation103_spill] sm:$0xff]  ;;  %v11802_v33 = vld [vmem:[#allocation21_spill] sm:$0xff]  ;;  %v3838_v11 = vadd.f32 %v3793_v35, %v3792_v31 }
 0x65b   : > { %11795 = vst [vmem:[#allocation136_spill] sm:$0xff] %v9983_v19  ;;  %v11801_v19 = vld [vmem:[#allocation95_spill] sm:$0xff]  ;;  %3836 = vadd.xlane.f32.xlu1 %v3835_v2  ;;  %v3349_v47 = vadd.f32 %v11803_v29, %v11802_v33  ;;  %3108 = vadd.xlane.f32.xlu0 %v11806_v21  ;;  %v11808_v26 = vld [vmem:[#allocation34_spill] sm:$0xff]  ;;  %v11810_v2 = vld [vmem:[#allocation168_spill] sm:$0xff]  ;;  %v3788_v29 = vmul.f32 %v9849_v17, %v3379_v62 }
 0x65c   : > { %v3381_v58 = vadd.f32 %v11801_v19, %v11800_v22  ;;  %v3361_v49 = vadd.f32 %v11808_v26, %v11807_v7  ;;  %v3826_v19 = vadd.f32 %v3785_v51, %v3784_v5  ;;  %v3351_v0 = vadd.f32 %v11810_v2, %v11809_v27  ;;  %v11811_v21 = vld [vmem:[#allocation106_spill] sm:$0xff]  ;;  %v11813_v26 = vld [vmem:[#allocation79_spill] sm:$0xff]  ;;  %v10022_v51 = vpop.f32.mrf.mxu0 }
 0x65d   : > { %v3363_v45 = vadd.f32 %v11812_v1, %v11811_v21  ;;  %v3365_v5 = vadd.f32 %v11814_v34, %v11813_v26  ;;  %v3829_v8 = vadd.f32 %v3787_v6, %v3786_v14  ;;  %v3780_v60 = vmul.f32 %v9897_v12, %v3359_v37  ;;  %v11815_v62 = vld [vmem:[#allocation94_spill] sm:$0xff]  ;;  %v11820_v14 = vld [vmem:[#allocation17_spill] sm:$0xff] }
 0x65e   : > { %v3789_v52 = vmul.f32 %v9853_v43, %v3381_v58  ;;  %v3781_v2 = vmul.f32 %v9902_v55, %v3361_v49  ;;  %v3776_v17 = vmul.f32 %v9770_v39, %v3349_v47  ;;  %v3777_v43 = vmul.f32 %v9779_v16, %v3351_v0  ;;  %v11816_v58 = vld [vmem:[#allocation180_spill] sm:$0xff]  ;;  %v11818_v35 = vld [vmem:[#allocation46_spill] sm:$0xff] }
 0x65f   : > { %3827 = vadd.xlane.f32.xlu1 %v3826_v19  ;;  %3839 = vadd.xlane.f32.xlu0 %v3838_v11  ;;  %v3353_v1 = vadd.f32 %v11816_v58, %v11815_v62  ;;  %v11817_v11 = vld [vmem:[#allocation89_spill] sm:$0xff]  ;;  %v11819_v34 = vld [vmem:[#allocation98_spill] sm:$0xff]  ;;  %v3782_v0 = vmul.f32 %v9897_v12, %v3363_v45 }
 0x660   : > { %v3832_v31 = vadd.f32 %v3789_v52, %v3788_v29  ;;  %v3355_v19 = vadd.f32 %v11818_v35, %v11817_v11  ;;  %v4404_v10 = vrot.slane %v11819_v34, 3  ;;  %v4409_v6 = vmul.f32 %v11820_v14, %v11819_v34  ;;  %v11821_v37 = vld [vmem:[#allocation30_spill] sm:$0xff]  ;;  %v4096_v29 = vpop.f32.mrf.mxu0  ;;  %v11822_v58 = vld [vmem:[#allocation13_spill] sm:$0xff] }
 0x661   : > { %v4410_v49 = vmul.f32 %v11821_v37, %v11819_v34  ;;  %v3820_v47 = vadd.f32 %v3781_v2, %v3780_v60  ;;  %v3783_v52 = vmul.f32 %v9902_v55, %v3365_v5  ;;  %v4037_v20 = vadd.f32 %v11823_v30, %v11822_v58  ;;  %v11824_v35 = vld [vmem:[#allocation74_spill] sm:$0xff]  ;;  %v11828_v30 = vld [vmem:[#allocation83_spill] sm:$0xff]  ;;  %v11829_v2 = vld [vmem:[#allocation184_spill] sm:$0xff] }
 0x662   : > { %v4039_v41 = vadd.f32 %v11825_v13, %v11824_v35  ;;  %v4415_v14 = vmul.f32 %v11826_v50, %v4404_v10  ;;  %v4439_v37 = vrot.slane %v4409_v6, %v9121_v4  ;;  %v4098_v12 = vpop.f32.mrf.mxu0  ;;  %v3778_v55 = vmul.f32 %v9770_v39, %v3353_v1  ;;  %v11831_v13 = vld [vmem:[#allocation201_spill] sm:$0xff] }
 0x663   : > { %3830 = vadd.xlane.f32.xlu1 %v3829_v8  ;;  %3833 = vadd.xlane.f32.xlu0 %v3832_v31  ;;  %v3814_v8 = vadd.f32 %v3777_v43, %v3776_v17  ;;  %v11827_v31 = vld [vmem:[#allocation65_spill] sm:$0xff]  ;;  %v4443_v60 = vrot.slane %v4410_v49, %v9121_v4  ;;  %v3823_v45 = vadd.f32 %v3783_v52, %v3782_v0  ;;  %v11830_v43 = vld [vmem:[#allocation14_spill] sm:$0xff]  ;;  %v11833_v0 = vld [vmem:[#allocation143_spill] sm:$0xff] }
 0x664   : > { %v4416_v3 = vmul.f32 %v11827_v31, %v4404_v10  ;;  %v3779_v5 = vmul.f32 %v9779_v16, %v3355_v19  ;;  %v4033_v17 = vadd.f32 %v11829_v2, %v11828_v30  ;;  %v4097_v50 = vadd.f32 %v4096_v29, %v9554_v32  ;;  %v11832_v19 = vld [vmem:[#allocation188_spill] sm:$0xff]  ;;  %v11835_v58 = vld [vmem:[#allocation177_spill] sm:$0xff]  ;;  %v11836_v32 = vld [vmem:[#allocation187_spill] sm:$0xff] }
 0x665   : > { %v4463_v10 = vrot.slane %v4415_v14, %v9121_v4  ;;  %v4099_v6 = vadd.f32 %v4098_v12, %v9556_v28  ;;  %v4474_v1 = vmul.f32 %v4439_v37, %v4037_v20  ;;  %v4475_v16 = vmul.f32 %v4443_v60, %v4039_v41  ;;  %v11837_v29 = vld [vmem:[#allocation58_spill] sm:$0xff] }
 0x666   : > { %v4467_v49 = vrot.slane %v4416_v3, %v9121_v4  ;;  %v3817_v39 = vadd.f32 %v3779_v5, %v3778_v55  ;;  %v4023_v52 = vadd.f32 %v11833_v0, %v11832_v19  ;;  %v4472_v31 = vmul.f32 %v4439_v37, %v4033_v17  ;;  %v11838_v55 = vld [vmem:[#allocation70_spill] sm:$0xff]  ;;  %v11839_v5 = vld [vmem:[#allocation156_spill] sm:$0xff] }
 0x667   : > { %3821 = vadd.xlane.f32.xlu1 %v3820_v47  ;;  %3815 = vadd.xlane.f32.xlu0 %v3814_v8  ;;  %v4035_v47 = vadd.f32 %v11831_v13, %v11830_v43  ;;  %v11834_v8 = vld [vmem:[#allocation190_spill] sm:$0xff]  ;;  %v4027_v14 = vadd.f32 %v11837_v29, %v11836_v32  ;;  %v4083_v28 = vadd.f32 %v9884_v9, %v11798_v25 }
 0x668   : > { %v4025_v35 = vadd.f32 %v11835_v58, %v11834_v8  ;;  %v4085_v3 = vadd.f32 %v9908_v42, %v11800_v22  ;;  %v4498_v41 = vmul.f32 %v4463_v10, %v4097_v50  ;;  %v4499_v20 = vmul.f32 %v4467_v49, %v4099_v6  ;;  %v11840_v42 = vld [vmem:[#allocation20_spill] sm:$0xff] }
 0x669   : > { %v4509_v12 = vadd.f32 %v4475_v16, %v4474_v1  ;;  %v4029_v30 = vadd.f32 %v11839_v5, %v11838_v55  ;;  %v4468_v17 = vmul.f32 %v4439_v37, %v4023_v52  ;;  %v4087_v9 = vadd.f32 %v9953_v53, %v9523_v40  ;;  %v11851_v55 = vld [vmem:[#allocation68_spill] sm:$0xff] }
 0x66a   : > { %v4469_v43 = vmul.f32 %v4443_v60, %v4025_v35  ;;  %v4089_v25 = vadd.f32 %v9990_v38, %v9536_v46  ;;  %v4492_v50 = vmul.f32 %v4463_v10, %v4083_v28  ;;  %v4493_v6 = vmul.f32 %v4467_v49, %v4085_v3  ;;  %v11842_v46 = vld [vmem:[#allocation80_spill] sm:$0xff]  ;;  %v11844_v38 = vld [vmem:[#allocation114_spill] sm:$0xff]  ;;  %v11848_v3 = vld [vmem:[#allocation39_spill] sm:$0xff] }
 0x66b   : > { %3824 = vadd.xlane.f32.xlu1 %v3823_v45  ;;  %3809 = vadd.xlane.f32.xlu0 %v9822_v48  ;;  %v4473_v45 = vmul.f32 %v4443_v60, %v4035_v47  ;;  %v4403_v48 = vrot.slane %v11819_v34, 2  ;;  %v11841_v34 = vld [vmem:[#allocation18_spill] sm:$0xff]  ;;  %v4545_v47 = vadd.f32 %v4499_v20, %v4498_v41  ;;  %v4470_v16 = vmul.f32 %v4439_v37, %v4027_v14  ;;  %v11845_v37 = vld [vmem:[#allocation108_spill] sm:$0xff]  ;;  %v11849_v41 = vld [vmem:[#allocation107_spill] sm:$0xff] }
 0x66c   : > { %v4500_v1 = vadd.f32 %v4469_v43, %v4468_v17  ;;  %v4471_v40 = vmul.f32 %v4443_v60, %v4029_v30  ;;  %v4063_v53 = vadd.f32 %v11842_v46, %v11804_v23  ;;  %v4075_v19 = vadd.f32 %v11844_v38, %v9479_v18  ;;  %v11847_v28 = vld [vmem:[#allocation102_spill] sm:$0xff]  ;;  %v11858_v46 = vld [vmem:[#allocation175_spill] sm:$0xff] }
 0x66d   : > { %v4506_v2 = vadd.f32 %v4473_v45, %v4472_v31  ;;  %v4413_v22 = vmul.f32 %v11840_v42, %v4403_v48  ;;  %v4414_v13 = vmul.f32 %v11841_v34, %v4403_v48  ;;  %v4536_v8 = vadd.f32 %v4493_v6, %v4492_v50  ;;  %v11855_v34 = vld [vmem:[#allocation44_spill] sm:$0xff]  ;;  %v10116_v50 = vpop.permute.xlu1 %4424  ;;  %v10118_v6 = vpop.permute.xlu0 %4422 }
 0x66e   : > { %v4065_v60 = vadd.f32 %v11845_v37, %v11807_v7  ;;  %v4503_v58 = vadd.f32 %v4471_v40, %v4470_v16  ;;  %v4077_v18 = vadd.f32 %v9824_v54, %v9496_v61  ;;  %v4079_v45 = vadd.f32 %v9856_v63, %v11796_v56  ;;  %v11850_v54 = vld [vmem:[#allocation82_spill] sm:$0xff] }
 0x66f   : > { %3818 = vadd.xlane.f32.xlu1 %v3817_v39  ;;  %3812 = vadd.xlane.f32.xlu0 %v9828_v15  ;;  %v4093_v15 = vadd.f32 %v10010_v57, %v9538_v24  ;;  %v4095_v39 = vadd.f32 %v10022_v51, %v9578_v44  ;;  %v11843_v24 = vld [vmem:[#allocation97_spill] sm:$0xff]  ;;  %v4455_v0 = vrot.slane %v4413_v22, %v9121_v4  ;;  %v11854_v22 = vld [vmem:[#allocation122_spill] sm:$0xff] }
 0x670   : > { %v4073_v57 = vadd.f32 %v11843_v24, %v9477_v59  ;;  %v4459_v52 = vrot.slane %v4414_v13, %v9121_v4  ;;  %v4494_v44 = vmul.f32 %v4463_v10, %v4087_v9  ;;  %v4495_v51 = vmul.f32 %v4467_v49, %v4089_v25  ;;  %v11846_v59 = vld [vmem:[#allocation41_spill] sm:$0xff]  ;;  %v11856_v13 = vld [vmem:[#allocation192_spill] sm:$0xff]  ;;  %v11859_v24 = vld [vmem:[#allocation23_spill] sm:$0xff] }
 0x671   : > { %v4496_v35 = vmul.f32 %v4463_v10, %v4093_v15  ;;  %v4497_v23 = vmul.f32 %v4467_v49, %v4095_v39  ;;  %v4053_v31 = vadd.f32 %v11846_v59, %v11802_v33  ;;  %v4055_v7 = vadd.f32 %v11847_v28, %v11809_v27 }
 0x672   : > { %v4539_v32 = vadd.f32 %v4495_v51, %v4494_v44  ;;  %v4488_v29 = vmul.f32 %v4455_v0, %v4073_v57  ;;  %v4489_v14 = vmul.f32 %v4459_v52, %v4075_v19  ;;  %v4484_v10 = vmul.f32 %v4455_v0, %v4063_v53  ;;  %v11861_v44 = vld [vmem:[#allocation162_spill] sm:$0xff]  ;;  %v11862_v51 = vld [vmem:[#allocation183_spill] sm:$0xff] }
 0x673   : > { %4510 = vadd.xlane.f32.xlu1 %v4509_v12  ;;  %4507 = vadd.xlane.f32.xlu0 %v4506_v2  ;;  %v4542_v48 = vadd.f32 %v4497_v23, %v4496_v35  ;;  %v4485_v49 = vmul.f32 %v4459_v52, %v4065_v60  ;;  %v4057_v33 = vadd.f32 %v11848_v3, %v11815_v62  ;;  %v11852_v2 = vld [vmem:[#allocation118_spill] sm:$0xff]  ;;  %v11863_v35 = vld [vmem:[#allocation176_spill] sm:$0xff] }
 0x674   : > { %v4067_v61 = vadd.f32 %v11849_v41, %v11811_v21  ;;  %v4069_v63 = vadd.f32 %v11850_v54, %v11813_v26  ;;  %v4530_v56 = vadd.f32 %v4489_v14, %v4488_v29  ;;  %v4490_v20 = vmul.f32 %v4455_v0, %v4077_v18  ;;  %v11864_v18 = vld [vmem:[#allocation131_spill] sm:$0xff]  ;;  %v11865_v29 = vld [vmem:[#allocation36_spill] sm:$0xff]  ;;  %v4669_v41 = vld [vmem:[%s10407_s6 + $0x8] sm:$0xff] }
 0x675   : > { %v4491_v12 = vmul.f32 %v4459_v52, %v4079_v45  ;;  %v4059_v27 = vadd.f32 %v11851_v55, %v11817_v11  ;;  %v4524_v5 = vadd.f32 %v4485_v49, %v4484_v10  ;;  %v4480_v30 = vmul.f32 %v9859_v36, %v4053_v31  ;;  %v11853_v11 = vld [vmem:[#allocation120_spill] sm:$0xff]  ;;  %v4668_v31 = vld [vmem:[%s10407_s6] sm:$0xff]  ;;  %v11866_v10 = vld [vmem:[#allocation178_spill] sm:$0xff] }
 0x676   : > { %v4481_v17 = vmul.f32 %v11852_v2, %v4055_v7  ;;  %v4486_v43 = vmul.f32 %v4455_v0, %v4067_v61  ;;  %v4487_v21 = vmul.f32 %v4459_v52, %v4069_v63  ;;  %v4482_v25 = vmul.f32 %v9859_v36, %v4057_v33  ;;  %v11860_v52 = vld [vmem:[#allocation115_spill] sm:$0xff]  ;;  %v4675_v7 = vld [vmem:[%s10407_s6 + $0x38] sm:$0xff]  ;;  %v4677_v63 = vld [vmem:[%s10407_s6 + $0x48] sm:$0xff] }
 0x677   : > { %4546 = vadd.xlane.f32.xlu1 %v4545_v47  ;;  %4501 = vadd.xlane.f32.xlu0 %v4500_v1  ;;  %v4533_v62 = vadd.f32 %v4491_v12, %v4490_v20  ;;  %v4483_v26 = vmul.f32 %v11852_v2, %v4059_v27  ;;  %v3024_v47 = vmul.f32 %v11856_v13, %v11855_v34  ;;  %v11857_v1 = vld [vmem:[#allocation38_spill] sm:$0xff]  ;;  %v11867_v55 = vld [vmem:[#allocation15_spill] sm:$0xff]  ;;  %v11871_v13 = vld [vmem:[#allocation49_spill] sm:$0xff] }
 0x678   : > { %v4518_v9 = vadd.f32 %v4481_v17, %v4480_v30  ;;  %v4527_v15 = vadd.f32 %v4487_v21, %v4486_v43  ;;  %v11868_v30 = vld [vmem:[#allocation19_spill] sm:$0xff]  ;;  %v4679_v17 = vld [vmem:[%s10407_s6 + $0x58] sm:$0xff]  ;;  %v11869_v21 = vld [vmem:[#allocation33_spill] sm:$0xff] }
 0x679   : > { %v4521_v42 = vadd.f32 %v4483_v26, %v4482_v25  ;;  %v3143_v36 = vrot.slane %v3024_v47, %v9121_v4  ;;  %v4671_v25 = vld [vmem:[%s10407_s6 + $0x18] sm:$0xff]  ;;  %v5551_v26 = vld [vmem:[#allocation9] sm:$0xff]  }
 0x67a   : > { %5326 = vmatprep.mubr.bf16.mxu1 %v5551_v26 }
 0x67b   : > { %4537 = vadd.xlane.f32.xlu1 %v4536_v8  ;;  %4504 = vadd.xlane.f32.xlu0 %v4503_v58  ;;  %v3159_v57 = vmul.f32 %v3143_v36, %v11859_v24  ;;  %v3156_v37 = vmul.f32 %v3143_v36, %v11862_v51  ;;  %v4673_v58 = vld [vmem:[%s10407_s6 + $0x28] sm:$0xff]  ;;  %v3157_v14 = vmul.f32 %v3143_v36, %v11865_v29 }
 0x67c   : > { %v3158_v49 = vmul.f32 %v3143_v36, %v11866_v10  ;;  %v4672_v36 = vld [vmem:[%s10407_s6 + $0x20] sm:$0xff] }
 0x67f   : > { %4540 = vadd.xlane.f32.xlu1 %v4539_v32  ;;  %4543 = vadd.xlane.f32.xlu0 %v4542_v48 }
 0x683   : > { %4531 = vadd.xlane.f32.xlu1 %v4530_v56  ;;  %4525 = vadd.xlane.f32.xlu0 %v4524_v5  ;;  %v4670_v5 = vld [vmem:[%s10407_s6 + $0x10] sm:$0xff] }
 0x687   : > { %4534 = vadd.xlane.f32.xlu1 %v4533_v62  ;;  %4519 = vadd.xlane.f32.xlu0 %v4518_v9 }
 0x68b   : > { %4528 = vadd.xlane.f32.xlu1 %v4527_v15  ;;  %4522 = vadd.xlane.f32.xlu0 %v4521_v42  ;;  %v11870_v15 = vld [vmem:[#allocation116_spill] sm:$0xff] }
 0x68f   : > { %4513 = vadd.xlane.f32.xlu1 %v11853_v11  ;;  %v4681_v11 = vld [vmem:[%s10407_s6 + $0x68] sm:$0xff] }
 0x693   : > { %4516 = vadd.xlane.f32.xlu1 %v11854_v22 }
 0x697   : > { %v2396_v39 = vpop.xlane.xlu1 %2395 }
 0x698   : > { %v2470_v16 = vadd.f32 %v11857_v1, %v2396_v39  ;;  %v11872_v39 = vld [vmem:[#allocation189_spill] sm:$0xff] }
 0x699   : > { %v2390_v40 = vpop.xlane.xlu0 %2389 }
 0x69a   : > { %v2468_v53 = vadd.f32 %v11858_v46, %v2390_v40 }
 0x69c   : > { %v3103_v38 = vpop.xlane.xlu1 %3102 }
 0x69d   : > { %v3175_v19 = vadd.f32 %v3159_v57, %v3103_v38  ;;  %v4674_v38 = vld [vmem:[%s10407_s6 + $0x30] sm:$0xff] }
 0x69f   : > { %v2393_v0 = vpop.xlane.xlu0 %2392 }
 0x6a0   : > { %v2469_v8 = vadd.f32 %v11860_v52, %v2393_v0  ;;  %v3094_v60 = vpop.xlane.xlu1 %3093  ;;  %v11875_v52 = vld [vmem:[#allocation55_spill] sm:$0xff] }
 0x6a1   : > { %3716 = vrot.lane.b32.xlu0 %v11861_v44, %s5856_s10  ;;  %v3172_v23 = vadd.f32 %v3156_v37, %v3094_v60 }
 0x6a3   : > { %v2399_v59 = vpop.xlane.xlu0 %2398  ;;  %v10138_v32 = vsel %vm844_vm0, %v2468_v53, %v3172_v23  ;;  %v11873_v53 = vld [vmem:[#allocation35_spill] sm:$0xff] }
 0x6a4   : > { %4420 = vrot.lane.b32.xlu1 %v11863_v35, %s5857_s11  ;;  %v2471_v45 = vadd.f32 %v11864_v18, %v2399_v59  ;;  %v3097_v28 = vpop.xlane.xlu1 %3096  ;;  %v11877_v35 = vld [vmem:[#allocation165_spill] sm:$0xff]  ;;  %s10354_s11 = scalar_lea.vmem %s10408_s7, %s5197_s8 }
 0x6a5   : > { %4711 = vperm.xlu0 %5509, %v4673_v58   ;;  %v3173_v3 = vadd.f32 %v3157_v14, %v3097_v28  ;;  %v4676_v59 = vld [vmem:[%s10407_s6 + $0x40] sm:$0xff] }
 0x6a6   : > { %v10145_v48 = vsel %vm844_vm0, %v2471_v45, %v3175_v19  ;;  %v11874_v19 = vld [vmem:[#allocation105_spill] sm:$0xff] }
 0x6a7   : > { %v3100_v33 = vpop.xlane.xlu0 %3099  ;;  %v10152_v54 = vsel %vm844_vm0, %v2469_v8, %v3173_v3  ;;  %v11876_v8 = vld [vmem:[#allocation191_spill] sm:$0xff] }
 0x6a8   : > { %4686 = vperm.xlu1 %5510, %v4668_v31   ;;  %v3174_v61 = vadd.f32 %v3158_v49, %v3100_v33  ;;  %v3026_v44 = vmul.f32 %v11876_v8, %v11875_v52  ;;  %v11878_v31 = vld [vmem:[#allocation163_spill] sm:$0xff]  ;;  %v11887_v52 = vld [vmem:[#allocation60_spill] sm:$0xff] }
 0x6a9   : > { %4721 = vperm.xlu0 %5509, %v4675_v7   ;;  %v11879_v7 = vld [vmem:[#allocation73_spill] sm:$0xff]  ;;  %v4678_v3 = vld [vmem:[%s10407_s6 + $0x50] sm:$0xff] }
 0x6aa   : > { %v10158_v56 = vsel %vm844_vm0, %v2470_v16, %v3174_v61  ;;  %v2417_v20 = vpop.xlane.xlu1 %2416  ;;  %v4683_v16 = vld [vmem:[%s10407_s6 + $0x78] sm:$0xff]  ;;  %v3151_v45 = vrot.slane %v3026_v44, %v9121_v4  ;;  %v11880_v33 = vld [vmem:[#allocation159_spill] sm:$0xff] }
 0x6ab   : > { %v2402_v12 = vpop.xlane.xlu0 %2401  ;;  %v2477_v27 = vadd.f32 %v11867_v55, %v2417_v20 }
 0x6ac   : > { %4691 = vperm.xlu1 %5510, %v4669_v41   ;;  %v10165_v2 = vadd.f32 %v11868_v30, %v2402_v12  ;;  %v4680_v30 = vld [vmem:[%s10407_s6 + $0x60] sm:$0xff] }
 0x6ad   : > { %4731 = vperm.xlu0 %5509, %v4677_v63   ;;  %v11881_v63 = vld [vmem:[#allocation111_spill] sm:$0xff] }
 0x6ae   : > { %v2423_v62 = vpop.xlane.xlu1 %2422  ;;  %v3167_v20 = vmul.f32 %v3151_v45, %v11881_v63 }
 0x6af   : > { %v2405_v43 = vpop.xlane.xlu0 %2404  ;;  %v2479_v9 = vadd.f32 %v11869_v21, %v2423_v62  ;;  %v11883_v21 = vld [vmem:[#allocation62_spill] sm:$0xff] }
 0x6b0   : > { %4696 = vperm.xlu1 %5510, %v4670_v5   ;;  %v10175_v42 = vadd.f32 %v11870_v15, %v2405_v43 }
 0x6b1   : > { %4741 = vperm.xlu0 %5509, %v4679_v17   ;;  %v11882_v17 = vld [vmem:[#allocation182_spill] sm:$0xff] }
 0x6b2   : > { %v2435_v22 = vpop.xlane.xlu1 %2434 }
 0x6b3   : > { %v2483_v47 = vadd.f32 %v11871_v13, %v2435_v22  ;;  %v4682_v22 = vld [vmem:[%s10407_s6 + $0x70] sm:$0xff] }
 0x6b4   : > { %4701 = vperm.xlu1 %5510, %v4671_v25   ;;  %v2408_v34 = vpop.xlane.xlu0 %2407  ;;  %v3165_v25 = vmul.f32 %v3151_v45, %v11883_v21 }
 0x6b5   : > { %v10185_v1 = vadd.f32 %v11872_v39, %v2408_v34  ;;  %4751 = vperm.xlu0 %5509, %v4681_v11   ;;  %v11884_v34 = vld [vmem:[#allocation27_spill] sm:$0xff] }
 0x6b6   : > { %v3139_v40 = vpop.xlane.xlu1 %3138 }
 0x6b7   : > { %v3187_v57 = vadd.f32 %v11873_v53, %v3139_v40 }
 0x6b8   : > { %4706 = vperm.xlu1 %5510, %v4672_v36   ;;  %v2411_v46 = vpop.xlane.xlu0 %2410 }
 0x6b9   : > { %v2475_v0 = vadd.f32 %v11874_v19, %v2411_v46  ;;  %4761 = vperm.xlu0 %5509, %v4683_v16   ;;  %v4611_v37 = vsel %vm844_vm0, %v2483_v47, %v3187_v57 }
 0x6ba   : > { %v2429_v60 = vpop.xlane.xlu1 %2428 }
 0x6bb   : > { %v2481_v23 = vadd.f32 %v11877_v35, %v2429_v60  ;;  %v11888_v60 = vld [vmem:[#allocation48_spill] sm:$0xff] }
 0x6bc   : > { %4716 = vperm.xlu1 %5510, %v4674_v38   ;;  %v2414_v58 = vpop.xlane.xlu0 %2413  ;;  %v11886_v38 = vld [vmem:[#allocation199_spill] sm:$0xff] }
 0x6bd   : > { %v2476_v18 = vadd.f32 %v11878_v31, %v2414_v58  ;;  %v11889_v31 = vld [vmem:[#allocation170_spill] sm:$0xff] }
 0x6be   : > { %v3133_v14 = vpop.xlane.xlu1 %3132 }
 0x6bf   : > { %v3185_v49 = vadd.f32 %v11879_v7, %v3133_v14  ;;  %v3164_v14 = vmul.f32 %v3151_v45, %v11889_v31 }
 0x6c0   : > { %4726 = vperm.xlu1 %5510, %v4676_v59   ;;  %v2420_v28 = vpop.xlane.xlu0 %2419 }
 0x6c1   : > { %v2478_v41 = vadd.f32 %v11880_v33, %v2420_v28  ;;  %v4609_v61 = vsel %vm844_vm0, %v2481_v23, %v3185_v49 }
 0x6c2   : > { %v3127_v12 = vpop.xlane.xlu1 %3126 }
 0x6c3   : > { %v3183_v5 = vadd.f32 %v3167_v20, %v3127_v12  ;;  %v11890_v20 = vld [vmem:[#allocation59_spill] sm:$0xff] }
 0x6c4   : > { %4736 = vperm.xlu1 %5510, %v4678_v3   ;;  %v2432_v55 = vpop.xlane.xlu0 %2431 }
 0x6c5   : > { %v2482_v62 = vadd.f32 %v11882_v17, %v2432_v55  ;;  %v4607_v43 = vsel %vm844_vm0, %v2479_v9, %v3183_v5  ;;  %v11885_v9 = vld [vmem:[#allocation43_spill] sm:$0xff]  ;;  %v11891_v17 = vld [vmem:[#allocation72_spill] sm:$0xff] }
 0x6c6   : > { %v3121_v26 = vpop.xlane.xlu1 %3120 }
 0x6c7   : > { %v3181_v11 = vadd.f32 %v3165_v25, %v3121_v26 }
 0x6c8   : > { %4746 = vperm.xlu1 %5510, %v4680_v30   ;;  %v3136_v15 = vpop.xlane.xlu0 %3135 }
 0x6c9   : > { %v3186_v13 = vadd.f32 %v11884_v34, %v3136_v15  ;;  %v4605_v47 = vsel %vm844_vm0, %v2477_v27, %v3181_v11  ;;  %v3166_v27 = vmul.f32 %v3151_v45, %v11888_v60  ;;  %v11893_v11 = vld [vmem:[#allocation85_spill] sm:$0xff]  ;;  %v11894_v34 = vld [vmem:[#allocation71_spill] sm:$0xff] }
 0x6ca   : > { %v3115_v39 = vpop.xlane.xlu1 %3114 }
 0x6cb   : > { %v4610_v36 = vsel %vm844_vm0, %v2482_v62, %v3186_v13  ;;  %v3179_v40 = vadd.f32 %v11885_v9, %v3115_v39  ;;  %v11892_v62 = vld [vmem:[#allocation63_spill] sm:$0xff] }
 0x6cc   : > { %4756 = vperm.xlu1 %5510, %v4682_v22   ;;  %v2426_v16 = vpop.xlane.xlu0 %2425 }
 0x6cd   : > { %v4603_v46 = vsel %vm844_vm0, %v2475_v0, %v3179_v40  ;;  %v2480_v19 = vadd.f32 %v11886_v38, %v2426_v16  ;;  %v11895_v40 = vld [vmem:[#allocation96_spill] sm:$0xff] }
 0x6ce   : > { %v10225_v53 = vpop.xlane.xlu1 %3803  ;;  %v11896_v38 = vld [vmem:[#allocation84_spill] sm:$0xff] }
 0x6d0   : > { %v3130_v57 = vpop.xlane.xlu0 %3129 }
 0x6d1   : > { %v3184_v8 = vadd.f32 %v11887_v52, %v3130_v57 }
 0x6d2   : > { %v10231_v58 = vpop.xlane.xlu1 %3806 }
 0x6d3   : > { %v4608_v44 = vsel %vm844_vm0, %v2480_v19, %v3184_v8 }
 0x6d4   : > { %v3124_v35 = vpop.xlane.xlu0 %3123 }
 0x6d5   : > { %v3182_v23 = vadd.f32 %v3166_v27, %v3124_v35  ;;  %v11897_v27 = vld [vmem:[#allocation113_spill] sm:$0xff] }
 0x6d6   : > { %v10235_v0 = vpop.xlane.xlu1 %3797 }
 0x6d7   : > { %v4606_v59 = vsel %vm844_vm0, %v2478_v41, %v3182_v23  ;;  %v11898_v23 = vld [vmem:[#allocation110_spill] sm:$0xff] }
 0x6d8   : > { %v3118_v28 = vpop.xlane.xlu0 %3117 }
 0x6d9   : > { %v3180_v7 = vadd.f32 %v3164_v14, %v3118_v28 }
 0x6da   : > { %v10238_v3 = vpop.xlane.xlu1 %3800 }
 0x6db   : > { %v4604_v49 = vsel %vm844_vm0, %v2476_v18, %v3180_v7 }
 0x6dc   : > { %v3112_v33 = vpop.xlane.xlu0 %3111 }
 0x6dd   : > { %v3178_v12 = vadd.f32 %v11890_v20, %v3112_v33  ;;  %v11899_v33 = vld [vmem:[#allocation119_spill] sm:$0xff] }
 0x6de   : > { %v3843_v5 = vpop.xlane.xlu1 %3842 }
 0x6df   : > { %v4602_v55 = vsel %vm844_vm0, %v10185_v1, %v3178_v12  ;;  %v3891_v41 = vadd.f32 %v11891_v17, %v3843_v5  ;;  %v11900_v12 = vld [vmem:[#allocation117_spill] sm:$0xff] }
 0x6e0   : > { %v3106_v30 = vpop.xlane.xlu0 %3105 }
 0x6e1   : > { %v3176_v45 = vadd.f32 %v11892_v62, %v3106_v30  ;;  %v4627_v25 = vsel %vm861_vm1, %v4611_v37, %v3891_v41  ;;  %v11901_v41 = vld [vmem:[#allocation123_spill] sm:$0xff] }
 0x6e3   : > { %v4600_v26 = vsel %vm844_vm0, %v10165_v2, %v3176_v45  ;;  %v11902_v45 = vld [vmem:[#allocation121_spill] sm:$0xff] }
 0x6e4   : > { %v3837_v18 = vpop.xlane.xlu1 %3836  ;;  %v3109_v15 = vpop.xlane.xlu0 %3108 }
 0x6e5   : > { %v3889_v22 = vadd.f32 %v11893_v11, %v3837_v18  ;;  %v3177_v13 = vadd.f32 %v11894_v34, %v3109_v15 }
 0x6e7   : > { %v4625_v39 = vsel %vm861_vm1, %v4609_v61, %v3889_v22  ;;  %v4601_v1 = vsel %vm844_vm0, %v10175_v42, %v3177_v13  ;;  %v11903_v22 = vld [vmem:[#allocation125_spill] sm:$0xff]  ;;  %v11904_v13 = vld [vmem:[#allocation124_spill] sm:$0xff] }
 0x6e8   : > { %v3828_v16 = vpop.xlane.xlu1 %3827  ;;  %v3840_v9 = vpop.xlane.xlu0 %3839 }
 0x6e9   : > { %v3886_v57 = vadd.f32 %v11895_v40, %v3828_v16  ;;  %v3890_v37 = vadd.f32 %v11896_v38, %v3840_v9 }
 0x6eb   : > { %v4622_v19 = vsel %vm861_vm1, %v4606_v59, %v3886_v57  ;;  %v4626_v2 = vsel %vm861_vm1, %v4610_v36, %v3890_v37  ;;  %v11906_v37 = vld [vmem:[#allocation42_spill] sm:$0xff] }
 0x6ec   : > { %v3831_v52 = vpop.xlane.xlu1 %3830  ;;  %v3834_v8 = vpop.xlane.xlu0 %3833 }
 0x6ed   : > { %v3887_v35 = vadd.f32 %v11897_v27, %v3831_v52  ;;  %v3888_v14 = vadd.f32 %v11898_v23, %v3834_v8  ;;  %v4434_v52 = vmul.f32 %v11906_v37, %v10116_v50 }
 0x6ef   : > { %v4623_v61 = vsel %vm861_vm1, %v4607_v43, %v3887_v35  ;;  %v4624_v42 = vsel %vm861_vm1, %v4608_v44, %v3888_v14  ;;  %v4559_v23 = vrot.slane %v4434_v52, %v9121_v4  ;;  %v11912_v52 = vld [vmem:[#allocation53_spill] sm:$0xff] }
 0x6f0   : > { %v3822_v28 = vpop.xlane.xlu1 %3821  ;;  %v3816_v7 = vpop.xlane.xlu0 %3815 }
 0x6f1   : > { %v3884_v20 = vadd.f32 %v11899_v33, %v3822_v28  ;;  %v3882_v5 = vadd.f32 %v11900_v12, %v3816_v7  ;;  %v11908_v28 = vld [vmem:[#allocation40_spill] sm:$0xff] }
 0x6f2   : > { %v4433_v7 = vmul.f32 %v11908_v28, %v10118_v6  ;;  %v11909_v12 = vld [vmem:[#allocation136_spill] sm:$0xff] }
 0x6f3   : > { %v4620_v59 = vsel %vm861_vm1, %v4604_v49, %v3884_v20  ;;  %v4618_v36 = vsel %vm861_vm1, %v4602_v55, %v3882_v5 }
 0x6f4   : > { %v3825_v30 = vpop.xlane.xlu1 %3824  ;;  %v3810_v17 = vpop.xlane.xlu0 %3809 }
 0x6f5   : > { %v3885_v62 = vadd.f32 %v11901_v41, %v3825_v30  ;;  %v3880_v18 = vadd.f32 %v11902_v45, %v3810_v17  ;;  %v11910_v30 = vld [vmem:[#allocation132_spill] sm:$0xff]  ;;  %v4555_v41 = vrot.slane %v4433_v7, %v9121_v4 }
 0x6f7   : > { %v4621_v43 = vsel %vm861_vm1, %v4605_v47, %v3885_v62  ;;  %v10269_v44 = vsel %vm861_vm1, %v4600_v26, %v3880_v18  ;;  %v11905_v26 = vld [vmem:[#allocation127_spill] sm:$0xff]  ;;  %v4572_v62 = vmul.f32 %v4559_v23, %v11889_v31 }
 0x6f8   : > { %v3819_v15 = vpop.xlane.xlu1 %3818  ;;  %v3813_v11 = vpop.xlane.xlu0 %3812 }
 0x6f9   : > { %v3883_v34 = vadd.f32 %v11903_v22, %v3819_v15  ;;  %v3881_v16 = vadd.f32 %v11904_v13, %v3813_v11 }
 0x6fb   : > { %v4619_v49 = vsel %vm861_vm1, %v4603_v46, %v3883_v34  ;;  %v10275_v55 = vsel %vm861_vm1, %v4601_v1, %v3881_v16  ;;  %v11907_v46 = vld [vmem:[#allocation129_spill] sm:$0xff]  ;;  %v4575_v34 = vmul.f32 %v4559_v23, %v11881_v63 }
 0x6fc   : > { %v10277_v9 = vpop.xlane.xlu1 %4510  ;;  %v10279_v40 = vpop.xlane.xlu0 %4507 }
 0x700   : > { %v4547_v57 = vpop.xlane.xlu1 %4546  ;;  %v10281_v47 = vpop.xlane.xlu0 %4501 }
 0x701   : > { %v4595_v38 = vadd.f32 %v11905_v26, %v4547_v57 }
 0x703   : > { %v4643_v8 = vsel %vm878_vm2, %v4627_v25, %v4595_v38  ;;  %v4574_v25 = vmul.f32 %v4559_v23, %v11888_v60  ;;  %v11911_v60 = vld [vmem:[#allocation37_spill] sm:$0xff]  ;;  %v4573_v38 = vmul.f32 %v4559_v23, %v11883_v21 }
 0x704   : > { %v4538_v27 = vpop.xlane.xlu1 %4537  ;;  %v10287_v35 = vpop.xlane.xlu0 %4504 }
 0x705   : > { %v4592_v1 = vadd.f32 %v11907_v46, %v4538_v27 }
 0x707   : > { %v4640_v14 = vsel %vm878_vm2, %v4624_v42, %v4592_v1 }
 0x708   : > { %v4541_v33 = vpop.xlane.xlu1 %4540  ;;  %v4544_v20 = vpop.xlane.xlu0 %4543 }
 0x709   : > { %v4593_v5 = vadd.f32 %v11909_v12, %v4541_v33  ;;  %v4594_v50 = vadd.f32 %v11910_v30, %v4544_v20 }
 0x70b   : > { %v4641_v17 = vsel %vm878_vm2, %v4625_v39, %v4593_v5  ;;  %v4642_v42 = vsel %vm878_vm2, %v4626_v2, %v4594_v50  ;;  %v4570_v39 = vmul.f32 %v4555_v41, %v11911_v60  ;;  %v11914_v5 = vld [vmem:[#allocation185_spill] sm:$0xff] }
 0x70c   : > { %v4532_v45 = vpop.xlane.xlu1 %4531  ;;  %v4666_v18 = vpack.c.bf16 %v4641_v17, %v4640_v14  ;;  %v4526_v15 = vpop.xlane.xlu0 %4525  ;;  %v4667_v11 = vpack.c.bf16 %v4643_v8, %v4642_v42  ;;  %v4571_v8 = vmul.f32 %v4555_v41, %v11912_v52 }
 0x70d   : > { %v4590_v6 = vadd.f32 %v4574_v25, %v4532_v45  ;;  %v4588_v22 = vadd.f32 %v4572_v62, %v4526_v15 }
 0x70e   : > { %5310 = vmatprep.subr.bf16.mxu1 %v4667_v11 }
 0x70f   : > { %v4638_v13 = vsel %vm878_vm2, %v4622_v19, %v4590_v6  ;;  %5311 = vmatpush3.bf16.msra.mxu1 %v4667_v11  ;;  %v4636_v57 = vsel %vm878_vm2, %v4620_v59, %v4588_v22  ;;  %v11913_v59 = vld [vmem:[#allocation54_spill] sm:$0xff] }
 0x710   : > { %v4535_v16 = vpop.xlane.xlu1 %4534  ;;  %v4520_v31 = vpop.xlane.xlu0 %4519  ;;  %5312 = vmatprep.subr.bf16.mxu1 %v4666_v18  ;;  %v4568_v28 = vmul.f32 %v4555_v41, %v11913_v59 }
 0x711   : > { %v4591_v26 = vadd.f32 %v4575_v34, %v4535_v16  ;;  %v4586_v2 = vadd.f32 %v4570_v39, %v4520_v31  ;;  %v11916_v34 = vld [vmem:[#allocation25_spill] sm:$0xff] }
 0x713   : > { %v4639_v37 = vsel %vm878_vm2, %v4623_v61, %v4591_v26  ;;  %5313 = vmatpush3.bf16.msra.mxu1 %v4666_v18  ;;  %v4634_v19 = vsel %vm878_vm2, %v4618_v36, %v4586_v2  ;;  %v11915_v36 = vld [vmem:[#allocation66_spill] sm:$0xff] }
 0x714   : > { %v4529_v63 = vpop.xlane.xlu1 %4528  ;;  %v4665_v27 = vpack.c.bf16 %v4639_v37, %v4638_v13  ;;  %v4523_v46 = vpop.xlane.xlu0 %4522  ;;  %v4569_v50 = vmul.f32 %v4555_v41, %v11915_v36  ;;  %v5558_v37 = vld [vmem:[#allocation9 + $0x38] sm:$0xff]  }
 0x715   : > { %v4589_v1 = vadd.f32 %v4573_v38, %v4529_v63  ;;  %v4587_v14 = vadd.f32 %v4571_v8, %v4523_v46  ;;  %v5557_v38 = vld [vmem:[#allocation9 + $0x30] sm:$0xff]  }
 0x716   : > { %5314 = vmatprep.subr.bf16.mxu1 %v4665_v27 }
 0x717   : > { %v4637_v7 = vsel %vm878_vm2, %v4621_v43, %v4589_v1  ;;  %5315 = vmatpush3.bf16.msra.mxu1 %v4665_v27  ;;  %v4635_v61 = vsel %vm878_vm2, %v4619_v49, %v4587_v14 }
 0x718   : > { %v4514_v33 = vpop.xlane.xlu1 %4513  ;;  %v4664_v21 = vpack.c.bf16 %v4637_v7, %v4636_v57  ;;  %v3717_v23 = vpop.permute.xlu0 %3716  ;;  %v4663_v12 = vpack.c.bf16 %v4635_v61, %v4634_v19 }
 0x719   : > { %v4584_v20 = vadd.f32 %v4568_v28, %v4514_v33  ;;  %v3728_v30 = vmul.f32 %v11914_v5, %v3717_v23 }
 0x71a   : > { %5316 = vmatprep.subr.bf16.mxu1 %v4664_v21 }
 0x71b   : > { %v4632_v25 = vsel %vm878_vm2, %v10269_v44, %v4584_v20  ;;  %v3847_v17 = vrot.slane %v3728_v30, %v9121_v4  ;;  %5317 = vmatpush3.bf16.msra.mxu1 %v4664_v21 }
 0x71c   : > { %v4517_v43 = vpop.xlane.xlu1 %4516  ;;  %5318 = vmatprep.subr.bf16.mxu1 %v4663_v12 }
 0x71d   : > { %v4585_v62 = vadd.f32 %v4569_v50, %v4517_v43  ;;  %v3860_v45 = vmul.f32 %v3847_v17, %v11862_v51  ;;  %v3861_v49 = vmul.f32 %v3847_v17, %v11865_v29  ;;  %v3862_v42 = vmul.f32 %v3847_v17, %v11866_v10 }
 0x71e   : > { %v3863_v18 = vmul.f32 %v3847_v17, %v11859_v24 }
 0x71f   : > { %v4633_v41 = vsel %vm878_vm2, %v10275_v55, %v4585_v62  ;;  %5319 = vmatpush3.bf16.msra.mxu1 %v4663_v12  ;;  %v3878_v6 = vadd.f32 %v3862_v42, %v10225_v53  ;;  %v3876_v22 = vadd.f32 %v3860_v45, %v10235_v0  ;;  %v3877_v60 = vadd.f32 %v3861_v49, %v10238_v3 }
 0x720   : > { %v4421_v15 = vpop.permute.xlu1 %4420  ;;  %v4662_v44 = vpack.c.bf16 %v4633_v41, %v4632_v25  ;;  %v3879_v11 = vadd.f32 %v3863_v18, %v10231_v58  ;;  %v4712_v46 = vpop.permute.xlu0 %4711 }
 0x721   : > { %v4432_v13 = vmul.f32 %v11916_v34, %v4421_v15  ;;  %v4614_v39 = vsel %vm861_vm1, %v10158_v56, %v3878_v6  ;;  %v4612_v16 = vsel %vm861_vm1, %v10138_v32, %v3876_v22  ;;  %v4613_v58 = vsel %vm861_vm1, %v10152_v54, %v3877_v60 }
 0x722   : > { %5320 = vmatprep.subr.bf16.mxu1 %v4662_v44  ;;  %v4615_v55 = vsel %vm861_vm1, %v10145_v48, %v3879_v11 }
 0x723   : > { %v4551_v53 = vrot.slane %v4432_v13, %v9121_v4  ;;  %5321 = vmatpush3.bf16.msra.mxu1 %v4662_v44 }
 0x724   : > { %v4687_v52 = vpop.permute.xlu1 %4686  ;;  %v4722_v33 = vpop.permute.xlu0 %4721 }
 0x725   : > { %v4564_v0 = vmul.f32 %v4551_v53, %v11862_v51  ;;  %v4565_v3 = vmul.f32 %v4551_v53, %v11865_v29  ;;  %v4566_v57 = vmul.f32 %v4551_v53, %v11866_v10  ;;  %v4567_v56 = vmul.f32 %v4551_v53, %v11859_v24  ;;  %v5552_v24 = vld [vmem:[#allocation9 + $0x8] sm:$0xff]  }
 0x727   : > { %v4582_v31 = vadd.f32 %v4566_v57, %v10279_v40  ;;  %v4583_v48 = vadd.f32 %v4567_v56, %v10277_v9  ;;  %v4580_v32 = vadd.f32 %v4564_v0, %v10281_v47  ;;  %v4581_v4 = vadd.f32 %v4565_v3, %v10287_v35  ;;  %v5553_v9 = vld [vmem:[#allocation9 + $0x10] sm:$0xff]   ;;  %v5554_v40 = vld [vmem:[#allocation9 + $0x18] sm:$0xff]   ;;  %v5555_v47 = vld [vmem:[#allocation9 + $0x20] sm:$0xff]  }
 0x728   : > { %v5556_v35 = vld [vmem:[#allocation9 + $0x28] sm:$0xff]   ;;  %v4692_v8 = vpop.permute.xlu1 %4691  ;;  %v4732_v36 = vpop.permute.xlu0 %4731 }
 0x729   : > { %v4630_v26 = vsel %vm878_vm2, %v4614_v39, %v4582_v31  ;;  %v4631_v54 = vsel %vm878_vm2, %v4615_v55, %v4583_v48  ;;  %v4628_v51 = vsel %vm878_vm2, %v4612_v16, %v4580_v32  ;;  %v4629_v29 = vsel %vm878_vm2, %v4613_v58, %v4581_v4 }
 0x72a   : > { %v4661_v2 = vpack.c.bf16 %v4631_v54, %v4630_v26  ;;  %v4660_v10 = vpack.c.bf16 %v4629_v29, %v4628_v51 }
 0x72c   : > { %5322 = vmatprep.subr.bf16.mxu1 %v4661_v2  ;;  %v4697_v63 = vpop.permute.xlu1 %4696  ;;  %v4742_v42 = vpop.permute.xlu0 %4741 }
 0x72d   : > { %5323 = vmatpush3.bf16.msra.mxu1 %v4661_v2 }
 0x72e   : > { %5324 = vmatprep.subr.bf16.mxu1 %v4660_v10 }
 0x730   : > { %v4702_v27 = vpop.permute.xlu1 %4701  ;;  %v4752_v34 = vpop.permute.xlu0 %4751 }
 0x731   : > { %5325 = vmatpush3.bf16.msra.mxu1 %v4660_v10 }
 0x734   : > { %5327 = vmatmul.mubr.bf16.vlgmr.msra.gmra.mxu1 %v5552_v24  ;;  %v4707_v19 = vpop.permute.xlu1 %4706  ;;  %v4762_v0 = vpop.permute.xlu0 %4761 }
 0x735   : > { %5330 = vmatprep.mubr.bf16.mxu1 %v5553_v9 }
 0x738   : > { %v4717_v1 = vpop.permute.xlu1 %4716 }
 0x73c   : > { %5331 = vmatmul.mubr.bf16.gmra.mxu1 %v5554_v40  ;;  %v4727_v23 = vpop.permute.xlu1 %4726 }
 0x73d   : > { %5334 = vmatprep.mubr.bf16.mxu1 %v5555_v47 }
 0x740   : > { %v4737_v17 = vpop.permute.xlu1 %4736 }
 0x744   : > { %5335 = vmatmul.mubr.bf16.gmra.mxu1 %v5556_v35  ;;  %v4747_v15 = vpop.permute.xlu1 %4746 }
 0x745   : > { %5338 = vmatprep.mubr.bf16.mxu1 %v5557_v38 }
 0x748   : > { %v4757_v39 = vpop.permute.xlu1 %4756 }
 0x74c   : > { %5339 = vmatmul.mubr.bf16.gmra.mxu1 %v5558_v37 }
 0x7f4   : > { %v5328_v14 = vpop.f32.mrf.mxu1 }
 0x7f5   : > { %v4855_v59 = vadd.f32 %v5328_v14, %v4697_v63 }
 0x7f6   : > { %v4846_v28 = vpop.f32.mrf.mxu1 }
 0x7f7   : > { %4911 = vst.msk [vmem:[%s10354_s11 + $0x10] sm:$0xff] %vm1624_vm3, %v4855_v59  ;;  %v4847_v7 = vadd.f32 %v4846_v28, %v4687_v52 }
 0x7f8   : > { %v5329_v21 = vpop.f32.mrf.mxu1 }
 0x7f9   : > { %4909 = vst.msk [vmem:[%s10354_s11] sm:$0xff] %vm1624_vm3, %v4847_v7  ;;  %v4858_v61 = vadd.f32 %v5329_v21, %v4702_v27 }
 0x7fa   : > { %v4849_v20 = vpop.f32.mrf.mxu1 }
 0x7fb   : > { %4912 = vst.msk [vmem:[%s10354_s11 + $0x18] sm:$0xff] %vm1624_vm3, %v4858_v61  ;;  %v4850_v12 = vadd.f32 %v4849_v20, %v4692_v8 }
 0x7fc   : > { %v5332_v5 = vpop.f32.mrf.mxu1 }
 0x7fd   : > { %4910 = vst.msk [vmem:[%s10354_s11 + $0x8] sm:$0xff] %vm1624_vm3, %v4850_v12  ;;  %v4871_v30 = vadd.f32 %v5332_v5, %v4717_v1 }
 0x7fe   : > { %v4862_v50 = vpop.f32.mrf.mxu1 }
 0x7ff   : > { %4915 = vst.msk [vmem:[%s10354_s11 + $0x30] sm:$0xff] %vm1624_vm3, %v4871_v30  ;;  %v4863_v25 = vadd.f32 %v4862_v50, %v4707_v19 }
 0x800   : > { %v5333_v43 = vpop.f32.mrf.mxu1 }
 0x801   : > { %4913 = vst.msk [vmem:[%s10354_s11 + $0x20] sm:$0xff] %vm1624_vm3, %v4863_v25  ;;  %v4874_v62 = vadd.f32 %v5333_v43, %v4722_v33 }
 0x802   : > { %v4865_v45 = vpop.f32.mrf.mxu1 }
 0x803   : > { %4916 = vst.msk [vmem:[%s10354_s11 + $0x38] sm:$0xff] %vm1624_vm3, %v4874_v62  ;;  %v4866_v49 = vadd.f32 %v4865_v45, %v4712_v46 }
 0x804   : > { %v5336_v18 = vpop.f32.mrf.mxu1 }
 0x805   : > { %4914 = vst.msk [vmem:[%s10354_s11 + $0x28] sm:$0xff] %vm1624_vm3, %v4866_v49  ;;  %v4887_v41 = vadd.f32 %v5336_v18, %v4737_v17 }
 0x806   : > { %v4878_v44 = vpop.f32.mrf.mxu1 }
 0x807   : > { %4919 = vst.msk [vmem:[%s10354_s11 + $0x50] sm:$0xff] %vm1624_vm3, %v4887_v41  ;;  %v4879_v6 = vadd.f32 %v4878_v44, %v4727_v23 }
 0x808   : > { %v5337_v11 = vpop.f32.mrf.mxu1 }
 0x809   : > { %4917 = vst.msk [vmem:[%s10354_s11 + $0x40] sm:$0xff] %vm1624_vm3, %v4879_v6  ;;  %v4890_v22 = vadd.f32 %v5337_v11, %v4742_v42 }
 0x80a   : > { %v4881_v13 = vpop.f32.mrf.mxu1 }
 0x80b   : > { %4920 = vst.msk [vmem:[%s10354_s11 + $0x58] sm:$0xff] %vm1624_vm3, %v4890_v22  ;;  %v4882_v60 = vadd.f32 %v4881_v13, %v4732_v36 }
 0x80c   : > { %v5340_v55 = vpop.f32.mrf.mxu1 }
 0x80d   : > { %4918 = vst.msk [vmem:[%s10354_s11 + $0x48] sm:$0xff] %vm1624_vm3, %v4882_v60  ;;  %v4903_v16 = vadd.f32 %v5340_v55, %v4757_v39 }
 0x80e   : > { %v4894_v53 = vpop.f32.mrf.mxu1 }
 0x80f   : > { %4923 = vst.msk [vmem:[%s10354_s11 + $0x70] sm:$0xff] %vm1624_vm3, %v4903_v16  ;;  %v4895_v58 = vadd.f32 %v4894_v53, %v4747_v15 }
 0x810   : > { %v5341_v3 = vpop.f32.mrf.mxu1 }
 0x811   : > { %4921 = vst.msk [vmem:[%s10354_s11 + $0x60] sm:$0xff] %vm1624_vm3, %v4895_v58  ;;  %v4906_v57 = vadd.f32 %v5341_v3, %v4762_v0 }
 0x812   : > { %v4897_v56 = vpop.f32.mrf.mxu1 }
 0x813   : > { %4924 = vst.msk [vmem:[%s10354_s11 + $0x78] sm:$0xff] %vm1624_vm3, %v4906_v57  ;;  %v4898_v31 = vadd.f32 %v4897_v56, %v4752_v34 }
 0x815   : > { %4922 = vst.msk [vmem:[%s10354_s11 + $0x68] sm:$0xff] %vm1624_vm3, %v4898_v31 }
 0x816 PF: > { %s11917_s28 = smov %s5990_s24  ;;  %p19_p8 = scmp.ge.s32.totalorder %s5979_s19, 6  }
 0x817   : > { %s11918_s24 = smov %s5829_s25  ;;  %s11919_s25 = smov %s5833_s26 }
 0x818   : > { %s11920_s26 = smov %s11917_s28  ;;  %s11921_s27 = smov %s5979_s19 }
 0x819   :  { %21 = sbr.rel (!%p19_p8) target bundleno = 5 (0x5), region = 107 }
 0x81e   :  { %4946 = vsyncpa [#allocation3], 1 }
 0x81f   :  { %4948 = vsyncpa [#allocation3 + $0x1], 1 }
 0x820   :  { %4949 = vsyncpa [#allocation5], 1 }
 0x821   :  { %4950 = vsyncpa [#allocation8], 1 }

</bundles_post_ra>
